<compile_context>
chip_gen: v7x
topology: tpu7x:2x2x1
jax: 0.10.0
libtpu: 0.0.40
codegen_flags: <defaults>
</compile_context>

<pallas_src>
import functools
import math

import jax
import jax.numpy as jnp
from jax.experimental import pallas as pl
from jax.experimental.pallas import tpu as pltpu  # noqa: F401  (kept for memory-space/params use when scaled up)

# ----------------------------- model hyper-parameters (small analogs) ------------------
VOCAB = 50          # embedding rows  (weight_matrix rows)
EMB_DIM = 16        # word embedding dim   (emsize of inner transformer)
WORDS = 4           # tokens per utterance (=> decoder in_features = WORDS*EMB_DIM, "14000")
D_MODEL = 32        # utterance embedding dim (stand-in for 768)
FF_DIM = 64         # transformer feed-forward dim (stand-in for nhid=768)
NLAYERS = 6         # encoder layers
NHEAD = 2           # attention heads
N_PERSONA = 5       # total_persona
MAX_LEN = 16        # positional-encoding table length
CLS_PAD = 128       # lane-dense padding for the classifier output

INNER_KEYS = ("wv", "bv", "wo", "bo", "g1", "be1", "w1", "bf1", "w2", "bf2", "g2", "be2")
OUTER_KEYS = ("wq", "bq", "wk", "bk", "wv", "bv", "wo", "bo",
              "g1", "be1", "w1", "bf1", "w2", "bf2", "g2", "be2")


# ----------------------------- in-kernel helpers ----------------------------------------
def _layernorm(x, g, b):
    # torch LayerNorm: biased variance, eps = 1e-5
    mu = jnp.mean(x, axis=-1, keepdims=True)
    d = x - mu
    var = jnp.mean(d * d, axis=-1, keepdims=True)
    return d * jax.lax.rsqrt(var + 1e-5) * g + b


# ----------------------------- the single fused kernel ----------------------------------
def _fused_forward_kernel(
        ids_ref, emb_ref, ipe_ref,
        iwv_ref, ibv_ref, iwo_ref, ibo_ref, ig1_ref, ibe1_ref,
        iw1_ref, ibf1_ref, iw2_ref, ibf2_ref, ig2_ref, ibe2_ref,
        decw_ref, decb_ref, ope_ref,
        owq_ref, obq_ref, owk_ref, obk_ref, owv_ref, obv_ref,
        owo_ref, obo_ref, og1_ref, obe1_ref,
        ow1_ref, obf1_ref, ow2_ref, obf2_ref, og2_ref, obe2_ref,
        clsw_ref, clsb_ref,
        op2_ref, op4_ref,
        *, B, S, W, nhead, sqrt_e, sqrt_d):
    BS = B * S
    M = BS * W
    VOC, E = emb_ref.shape
    D = decw_ref.shape[1]
    Dh = D // nhead
    L = iwv_ref.shape[0]

    # ---- embedding gather as one-hot matmul (table row 0 = padding row = zeros) ----
    ids = ids_ref[...]                                                     # (M, 1) int32, rows ordered (w, b, s)
    onehot = (jax.lax.broadcasted_iota(jnp.int32, (M, VOC), 1) == ids).astype(jnp.float32)
    emb = jnp.dot(onehot, emb_ref[...], preferred_element_type=jnp.float32)  # (M, E)

    # ---- inner transformer: every token is an independent seq-len-1 sequence -----------
    # seq len == 1 => causal softmax over a single key == 1 => attention output == V proj.
    x = emb * sqrt_e + ipe_ref[...]                                        # + pe row 0
    for l in range(L):
        v = jnp.dot(x, iwv_ref[l], preferred_element_type=jnp.float32) + ibv_ref[l]
        attn = jnp.dot(v, iwo_ref[l], preferred_element_type=jnp.float32) + ibo_ref[l]
        y = _layernorm(x + attn, ig1_ref[l], ibe1_ref[l])
        ff = jnp.maximum(jnp.dot(y, iw1_ref[l], preferred_element_type=jnp.float32) + ibf1_ref[l], 0.0)
        ff = jnp.dot(ff, iw2_ref[l], preferred_element_type=jnp.float32) + ibf2_ref[l]
        x = _layernorm(y + ff, ig2_ref[l], ibe2_ref[l])

    # ---- decoder Linear on flatten(tr_op): W row-block matmuls (rows of x for token w are
    #      x[w*BS:(w+1)*BS]); avoids any lane-merging reshape. -----------------------------
    dec = jnp.dot(x[0:BS, :], decw_ref[0:E, :], preferred_element_type=jnp.float32) + decb_ref[...]
    for w in range(1, W):
        dec = dec + jnp.dot(x[w * BS:(w + 1) * BS, :],
                            decw_ref[w * E:(w + 1) * E, :],
                            preferred_element_type=jnp.float32)

    # ---- outer transformer over the (seq = B, batch = S) utterance grid ----------------
    x2 = (dec.reshape(B, S, D) * sqrt_d + ope_ref[...]).reshape(BS, D)     # rows ordered (b, s)

    # additive causal mask over the seq axis, built in-kernel (hoisted out of the layer loop)
    rows = jax.lax.broadcasted_iota(jnp.int32, (B, B, S, 1), 0)
    cols = jax.lax.broadcasted_iota(jnp.int32, (B, B, S, 1), 1)
    mask4 = jnp.where(cols <= rows, jnp.float32(0.0), jnp.float32(-1e30))  # (Bq, Bk, S, 1)

    for l in range(L):
        # Q/K/V projections (1/sqrt(Dh) folded into the Q weights/bias at packing time)
        q2 = jnp.dot(x2, owq_ref[l], preferred_element_type=jnp.float32) + obq_ref[l]
        k2 = jnp.dot(x2, owk_ref[l], preferred_element_type=jnp.float32) + obk_ref[l]
        v2 = jnp.dot(x2, owv_ref[l], preferred_element_type=jnp.float32) + obv_ref[l]

        heads = []
        for h in range(nhead):  # per head, batched over all (q_pos, k_pos, batch) at once
            qh = q2[:, h * Dh:(h + 1) * Dh].reshape(B, S, Dh)
            kh = k2[:, h * Dh:(h + 1) * Dh].reshape(B, S, Dh)
            vh = v2[:, h * Dh:(h + 1) * Dh].reshape(B, S, Dh)
            s4 = jnp.sum(qh[:, None] * kh[None, :], axis=-1, keepdims=True)  # (Bq, Bk, S, 1)
            s4 = s4 + mask4
            s4 = s4 - jnp.max(s4, axis=1, keepdims=True)
            p4 = jnp.exp(s4)
            p4 = p4 / jnp.sum(p4, axis=1, keepdims=True)                     # exact division
            oh = jnp.sum(p4 * vh[None, :], axis=1)                           # (Bq, S, Dh)
            heads.append(oh.reshape(BS, Dh))
        attn = jnp.concatenate(heads, axis=-1)                               # (BS, D) in vregs

        attn = jnp.dot(attn, owo_ref[l], preferred_element_type=jnp.float32) + obo_ref[l]
        y = _layernorm(x2 + attn, og1_ref[l], obe1_ref[l])
        ff = jnp.maximum(jnp.dot(y, ow1_ref[l], preferred_element_type=jnp.float32) + obf1_ref[l], 0.0)
        ff = jnp.dot(ff, ow2_ref[l], preferred_element_type=jnp.float32) + obf2_ref[l]
        x2 = _layernorm(y + ff, og2_ref[l], obe2_ref[l])

    op2_ref[...] = x2
    # lane-dense (padded to 128) classifier head; wrapper slices back to N_PERSONA.
    op4_ref[...] = jnp.dot(x2, clsw_ref[...], preferred_element_type=jnp.float32) + clsb_ref[...]


# ----------------------------- wrapper ---------------------------------------------------
def persona_classifier_forward(params, x_tokens, sp):
    del sp  # `sp` is accepted but unused by the reference forward
    B, S, W = x_tokens.shape
    inner = params["inner"]
    outer = params["outer"]

    # token rows ordered (w, b, s) so the in-kernel decoder fold uses contiguous row blocks.
    ids = jnp.transpose(x_tokens, (2, 0, 1)).reshape(B * S * W, 1).astype(jnp.int32)

    kernel = functools.partial(
        _fused_forward_kernel,
        B=B, S=S, W=W, nhead=NHEAD,
        sqrt_e=math.sqrt(EMB_DIM), sqrt_d=math.sqrt(D_MODEL))

    args = ([ids, params["embedding"], inner["pe_row"]]
            + [inner[k] for k in INNER_KEYS]
            + [outer["dec_w"], outer["dec_b"], outer["pe"][:B]]
            + [outer[k] for k in OUTER_KEYS]
            + [outer["cls_w"], outer["cls_b"]])

    op2_flat, op4_pad = pl.pallas_call(
        kernel,
        out_shape=(jax.ShapeDtypeStruct((B * S, D_MODEL), jnp.float32),
                   jax.ShapeDtypeStruct((B * S, CLS_PAD), jnp.float32)),
    )(*args)

    op2 = op2_flat.reshape(B, S, D_MODEL)
    op4 = op4_pad[:, :N_PERSONA].reshape(B, S, N_PERSONA)
    return op2, op4


# ----------------------------- deterministic parameter init + packing -------------------
def _dense(key, out_f, in_f, scale=0.05):
    kw, kb = jax.random.split(key)
    return (jax.random.normal(kw, (out_f, in_f), jnp.float32) * scale,
            jax.random.normal(kb, (out_f,), jnp.float32) * scale)


def _encoder_layer_params(key, d_model, d_ff):
    ks = jax.random.split(key, 4)
    in_w, in_b = _dense(ks[0], 3 * d_model, d_model)   # torch in_proj_weight (3E, E)
    out_w, out_b = _dense(ks[1], d_model, d_model)
    w1, b1 = _dense(ks[2], d_ff, d_model)
    w2, b2 = _dense(ks[3], d_model, d_ff)
    return dict(in_proj_w=in_w, in_proj_b=in_b, out_proj_w=out_w, out_proj_b=out_b,
                ln1_g=jnp.ones((d_model,), jnp.float32), ln1_b=jnp.zeros((d_model,), jnp.float32),
                ln2_g=jnp.ones((d_model,), jnp.float32), ln2_b=jnp.zeros((d_model,), jnp.float32),
                ffn_w1=w1, ffn_b1=b1, ffn_w2=w2, ffn_b2=b2)


def _stack(layers, fn):
    return jnp.stack([fn(p) for p in layers])


def _pack_inner(layers):
    # seq len == 1 inside utterance_emb => only the V slice of in_proj is ever needed.
    E = layers[0]["out_proj_w"].shape[0]
    return dict(
        wv=_stack(layers, lambda p: p["in_proj_w"][2 * E:3 * E].T),
        bv=_stack(layers, lambda p: p["in_proj_b"][2 * E:3 * E].reshape(1, E)),
        wo=_stack(layers, lambda p: p["out_proj_w"].T),
        bo=_stack(layers, lambda p: p["out_proj_b"].reshape(1, E)),
        g1=_stack(layers, lambda p: p["ln1_g"].reshape(1, E)),
        be1=_stack(layers, lambda p: p["ln1_b"].reshape(1, E)),
        w1=_stack(layers, lambda p: p["ffn_w1"].T),
        bf1=_stack(layers, lambda p: p["ffn_b1"].reshape(1, -1)),
        w2=_stack(layers, lambda p: p["ffn_w2"].T),
        bf2=_stack(layers, lambda p: p["ffn_b2"].reshape(1, E)),
        g2=_stack(layers, lambda p: p["ln2_g"].reshape(1, E)),
        be2=_stack(layers, lambda p: p["ln2_b"].reshape(1, E)),
    )


def _pack_outer(layers, nhead):
    D = layers[0]["out_proj_w"].shape[0]
    qscale = 1.0 / math.sqrt(D // nhead)   # fold the attention scale into the Q projection
    return dict(
        wq=_stack(layers, lambda p: p["in_proj_w"][:D].T * qscale),
        bq=_stack(layers, lambda p: (p["in_proj_b"][:D] * qscale).reshape(1, D)),
        wk=_stack(layers, lambda p: p["in_proj_w"][D:2 * D].T),
        bk=_stack(layers, lambda p: p["in_proj_b"][D:2 * D].reshape(1, D)),
        wv=_stack(layers, lambda p: p["in_proj_w"][2 * D:3 * D].T),
        bv=_stack(layers, lambda p: p["in_proj_b"][2 * D:3 * D].reshape(1, D)),
        wo=_stack(layers, lambda p: p["out_proj_w"].T),
        bo=_stack(layers, lambda p: p["out_proj_b"].reshape(1, D)),
        g1=_stack(layers, lambda p: p["ln1_g"].reshape(1, D)),
        be1=_stack(layers, lambda p: p["ln1_b"].reshape(1, D)),
        w1=_stack(layers, lambda p: p["ffn_w1"].T),
        bf1=_stack(layers, lambda p: p["ffn_b1"].reshape(1, -1)),
        w2=_stack(layers, lambda p: p["ffn_w2"].T),
        bf2=_stack(layers, lambda p: p["ffn_b2"].reshape(1, D)),
        g2=_stack(layers, lambda p: p["ln2_g"].reshape(1, D)),
        be2=_stack(layers, lambda p: p["ln2_b"].reshape(1, D)),
    )


def positional_encoding_table(max_len, d_model):
    pos = jnp.arange(max_len, dtype=jnp.float32)[:, None]
    div = jnp.exp(jnp.arange(0, d_model, 2, dtype=jnp.float32) * (-math.log(10000.0) / d_model))
    pe = jnp.zeros((max_len, d_model), dtype=jnp.float32)
    pe = pe.at[:, 0::2].set(jnp.sin(pos * div))
    pe = pe.at[:, 1::2].set(jnp.cos(pos * div))
    return pe[:, None, :]  # (max_len, 1, d_model) — matches pe.unsqueeze(0).transpose(0,1)


def init_params(key):
    k_emb, k_tr_in, k_dec, k_tr_out, k_cls = jax.random.split(key, 5)
    embedding = jax.random.normal(k_emb, (VOCAB, EMB_DIM), jnp.float32) * 0.1
    embedding = embedding.at[0].set(0.0)   # padding_idx row

    inner_layers = [_encoder_layer_params(k, EMB_DIM, FF_DIM) for k in jax.random.split(k_tr_in, NLAYERS)]
    outer_layers = [_encoder_layer_params(k, D_MODEL, FF_DIM) for k in jax.random.split(k_tr_out, NLAYERS)]
    dec_w, dec_b = _dense(k_dec, D_MODEL, WORDS * EMB_DIM)
    cls_w, cls_b = _dense(k_cls, N_PERSONA, D_MODEL)

    inner = _pack_inner(inner_layers)
    inner["pe_row"] = positional_encoding_table(MAX_LEN, EMB_DIM)[0]      # (1, EMB_DIM): pe row 0

    outer = _pack_outer(outer_layers, NHEAD)
    outer["pe"] = positional_encoding_table(MAX_LEN, D_MODEL)             # (MAX_LEN, 1, D_MODEL)
    outer["dec_w"] = dec_w.T                                              # (WORDS*EMB_DIM, D_MODEL)
    outer["dec_b"] = dec_b.reshape(1, D_MODEL)
    outer["cls_w"] = jnp.zeros((D_MODEL, CLS_PAD), jnp.float32).at[:, :N_PERSONA].set(cls_w.T)
    outer["cls_b"] = jnp.zeros((1, CLS_PAD), jnp.float32).at[0, :N_PERSONA].set(cls_b)

    return dict(embedding=embedding, inner=inner, outer=outer)


# ----------------------------- main -----------------------------------------------------
if __name__ == "__main__":
    key = jax.random.PRNGKey(0)
    k_params, k_x, k_sp = jax.random.split(key, 3)

    params = init_params(k_params)

    B, S = 2, 2
    x = jax.random.randint(k_x, (B, S, WORDS), minval=1, maxval=VOCAB, dtype=jnp.int32)
    sp = jax.random.randint(k_sp, (B, S), minval=0, maxval=2, dtype=jnp.int32)  # unused, like reference

    fwd = jax.jit(persona_classifier_forward)
    op2, op4 = fwd(params, x, sp)
    jax.block_until_ready((op2, op4))

    assert op2.shape == (B, S, D_MODEL) and op2.dtype == jnp.float32
    assert op4.shape == (B, S, N_PERSONA) and op4.dtype == jnp.float32
    print("KERNEL_OK")
</pallas_src>

<mosaic_0001>
module attributes {stable_mosaic.version = 11 : i64} {
  func.func @_fused_forward_kernel(%arg0: memref<16x1xi32, #tpu.memory_space<vmem>>, %arg1: memref<50x16xf32, #tpu.memory_space<vmem>>, %arg2: memref<1x16xf32, #tpu.memory_space<vmem>>, %arg3: memref<6x16x16xf32, #tpu.memory_space<vmem>>, %arg4: memref<6x1x16xf32, #tpu.memory_space<vmem>>, %arg5: memref<6x16x16xf32, #tpu.memory_space<vmem>>, %arg6: memref<6x1x16xf32, #tpu.memory_space<vmem>>, %arg7: memref<6x1x16xf32, #tpu.memory_space<vmem>>, %arg8: memref<6x1x16xf32, #tpu.memory_space<vmem>>, %arg9: memref<6x16x64xf32, #tpu.memory_space<vmem>>, %arg10: memref<6x1x64xf32, #tpu.memory_space<vmem>>, %arg11: memref<6x64x16xf32, #tpu.memory_space<vmem>>, %arg12: memref<6x1x16xf32, #tpu.memory_space<vmem>>, %arg13: memref<6x1x16xf32, #tpu.memory_space<vmem>>, %arg14: memref<6x1x16xf32, #tpu.memory_space<vmem>>, %arg15: memref<64x32xf32, #tpu.memory_space<vmem>>, %arg16: memref<1x32xf32, #tpu.memory_space<vmem>>, %arg17: memref<2x1x32xf32, #tpu.memory_space<vmem>>, %arg18: memref<6x32x32xf32, #tpu.memory_space<vmem>>, %arg19: memref<6x1x32xf32, #tpu.memory_space<vmem>>, %arg20: memref<6x32x32xf32, #tpu.memory_space<vmem>>, %arg21: memref<6x1x32xf32, #tpu.memory_space<vmem>>, %arg22: memref<6x32x32xf32, #tpu.memory_space<vmem>>, %arg23: memref<6x1x32xf32, #tpu.memory_space<vmem>>, %arg24: memref<6x32x32xf32, #tpu.memory_space<vmem>>, %arg25: memref<6x1x32xf32, #tpu.memory_space<vmem>>, %arg26: memref<6x1x32xf32, #tpu.memory_space<vmem>>, %arg27: memref<6x1x32xf32, #tpu.memory_space<vmem>>, %arg28: memref<6x32x64xf32, #tpu.memory_space<vmem>>, %arg29: memref<6x1x64xf32, #tpu.memory_space<vmem>>, %arg30: memref<6x64x32xf32, #tpu.memory_space<vmem>>, %arg31: memref<6x1x32xf32, #tpu.memory_space<vmem>>, %arg32: memref<6x1x32xf32, #tpu.memory_space<vmem>>, %arg33: memref<6x1x32xf32, #tpu.memory_space<vmem>>, %arg34: memref<32x128xf32, #tpu.memory_space<vmem>>, %arg35: memref<1x128xf32, #tpu.memory_space<vmem>>, %arg36: memref<4x32xf32, #tpu.memory_space<vmem>>, %arg37: memref<4x128xf32, #tpu.memory_space<vmem>>) attributes {dimension_semantics = [], scalar_prefetch = 0 : i64, scratch_operands = 0 : i64, tpu.core_type = #tpu.core_type<tc>} {
    %c0 = arith.constant 0 : index
    %c0_0 = arith.constant 0 : index
    %0 = vector.load %arg0[%c0, %c0_0] : memref<16x1xi32, #tpu.memory_space<vmem>>, vector<16x1xi32>
    %1 = tpu.iota {dimensions = array<i32: 1>} : vector<16x50xi32>
    %2 = vector.broadcast %0 : vector<16x1xi32> to vector<16x50xi32>
    %3 = arith.cmpi eq, %1, %2 : vector<16x50xi32>
    %4 = arith.extui %3 : vector<16x50xi1> to vector<16x50xi32>
    %5 = arith.sitofp %4 : vector<16x50xi32> to vector<16x50xf32>
    %c0_1 = arith.constant 0 : index
    %c0_2 = arith.constant 0 : index
    %6 = vector.load %arg1[%c0_1, %c0_2] : memref<50x16xf32, #tpu.memory_space<vmem>>, vector<50x16xf32>
    %cst = arith.constant dense<0.000000e+00> : vector<16x16xf32>
    %7 = tpu.matmul %5, %6, %cst {dimension_numbers = #tpu.dot_dimension_numbers<[1], [0], [0], [1], [0, 0, 1, 1], [], []>} : vector<16x50xf32>, vector<50x16xf32>, vector<16x16xf32> -> vector<16x16xf32>
    %cst_3 = arith.constant 4.000000e+00 : f32
    %8 = vector.broadcast %cst_3 : f32 to vector<16x16xf32>
    %9 = arith.mulf %7, %8 : vector<16x16xf32>
    %c0_4 = arith.constant 0 : index
    %c0_5 = arith.constant 0 : index
    %10 = vector.load %arg2[%c0_4, %c0_5] : memref<1x16xf32, #tpu.memory_space<vmem>>, vector<1x16xf32>
    %11 = vector.broadcast %10 : vector<1x16xf32> to vector<16x16xf32>
    %12 = arith.addf %9, %11 : vector<16x16xf32>
    %c0_6 = arith.constant 0 : index
    %c0_7 = arith.constant 0 : index
    %c0_8 = arith.constant 0 : index
    %13 = vector.load %arg3[%c0_6, %c0_7, %c0_8] : memref<6x16x16xf32, #tpu.memory_space<vmem>>, vector<1x16x16xf32>
    %14 = vector.shape_cast %13 : vector<1x16x16xf32> to vector<16x16xf32>
    %cst_9 = arith.constant dense<0.000000e+00> : vector<16x16xf32>
    %15 = tpu.matmul %12, %14, %cst_9 {dimension_numbers = #tpu.dot_dimension_numbers<[1], [0], [0], [1], [0, 0, 1, 1], [], []>} : vector<16x16xf32>, vector<16x16xf32>, vector<16x16xf32> -> vector<16x16xf32>
    %c0_10 = arith.constant 0 : index
    %c0_11 = arith.constant 0 : index
    %c0_12 = arith.constant 0 : index
    %16 = vector.load %arg4[%c0_10, %c0_11, %c0_12] : memref<6x1x16xf32, #tpu.memory_space<vmem>>, vector<1x1x16xf32>
    %17 = vector.shape_cast %16 : vector<1x1x16xf32> to vector<1x16xf32>
    %18 = vector.broadcast %17 : vector<1x16xf32> to vector<16x16xf32>
    %19 = arith.addf %15, %18 : vector<16x16xf32>
    %c0_13 = arith.constant 0 : index
    %c0_14 = arith.constant 0 : index
    %c0_15 = arith.constant 0 : index
    %20 = vector.load %arg5[%c0_13, %c0_14, %c0_15] : memref<6x16x16xf32, #tpu.memory_space<vmem>>, vector<1x16x16xf32>
    %21 = vector.shape_cast %20 : vector<1x16x16xf32> to vector<16x16xf32>
    %cst_16 = arith.constant dense<0.000000e+00> : vector<16x16xf32>
    %22 = tpu.matmul %19, %21, %cst_16 {dimension_numbers = #tpu.dot_dimension_numbers<[1], [0], [0], [1], [0, 0, 1, 1], [], []>} : vector<16x16xf32>, vector<16x16xf32>, vector<16x16xf32> -> vector<16x16xf32>
    %c0_17 = arith.constant 0 : index
    %c0_18 = arith.constant 0 : index
    %c0_19 = arith.constant 0 : index
    %23 = vector.load %arg6[%c0_17, %c0_18, %c0_19] : memref<6x1x16xf32, #tpu.memory_space<vmem>>, vector<1x1x16xf32>
    %24 = vector.shape_cast %23 : vector<1x1x16xf32> to vector<1x16xf32>
    %25 = vector.broadcast %24 : vector<1x16xf32> to vector<16x16xf32>
    %26 = arith.addf %22, %25 : vector<16x16xf32>
    %27 = arith.addf %12, %26 : vector<16x16xf32>
    %c0_20 = arith.constant 0 : index
    %c0_21 = arith.constant 0 : index
    %c0_22 = arith.constant 0 : index
    %28 = vector.load %arg7[%c0_20, %c0_21, %c0_22] : memref<6x1x16xf32, #tpu.memory_space<vmem>>, vector<1x1x16xf32>
    %29 = vector.shape_cast %28 : vector<1x1x16xf32> to vector<1x16xf32>
    %c0_23 = arith.constant 0 : index
    %c0_24 = arith.constant 0 : index
    %c0_25 = arith.constant 0 : index
    %30 = vector.load %arg8[%c0_23, %c0_24, %c0_25] : memref<6x1x16xf32, #tpu.memory_space<vmem>>, vector<1x1x16xf32>
    %31 = vector.shape_cast %30 : vector<1x1x16xf32> to vector<1x16xf32>
    %cst_26 = arith.constant dense<0.000000e+00> : vector<16xf32>
    %32 = vector.multi_reduction <add>, %27, %cst_26 [1] : vector<16x16xf32> to vector<16xf32>
    %33 = vector.shape_cast %32 : vector<16xf32> to vector<16x1xf32>
    %cst_27 = arith.constant 1.600000e+01 : f32
    %34 = vector.broadcast %cst_27 : f32 to vector<16x1xf32>
    %35 = arith.divf %33, %34 : vector<16x1xf32>
    %36 = vector.broadcast %35 : vector<16x1xf32> to vector<16x16xf32>
    %37 = arith.subf %27, %36 : vector<16x16xf32>
    %38 = arith.mulf %37, %37 : vector<16x16xf32>
    %cst_28 = arith.constant dense<0.000000e+00> : vector<16xf32>
    %39 = vector.multi_reduction <add>, %38, %cst_28 [1] : vector<16x16xf32> to vector<16xf32>
    %40 = vector.shape_cast %39 : vector<16xf32> to vector<16x1xf32>
    %cst_29 = arith.constant 1.600000e+01 : f32
    %41 = vector.broadcast %cst_29 : f32 to vector<16x1xf32>
    %42 = arith.divf %40, %41 : vector<16x1xf32>
    %cst_30 = arith.constant 9.99999974E-6 : f32
    %43 = vector.broadcast %cst_30 : f32 to vector<16x1xf32>
    %44 = arith.addf %42, %43 : vector<16x1xf32>
    %45 = math.rsqrt %44 : vector<16x1xf32>
    %46 = vector.broadcast %45 : vector<16x1xf32> to vector<16x16xf32>
    %47 = arith.mulf %37, %46 : vector<16x16xf32>
    %48 = vector.broadcast %29 : vector<1x16xf32> to vector<16x16xf32>
    %49 = arith.mulf %47, %48 : vector<16x16xf32>
    %50 = vector.broadcast %31 : vector<1x16xf32> to vector<16x16xf32>
    %51 = arith.addf %49, %50 : vector<16x16xf32>
    %c0_31 = arith.constant 0 : index
    %c0_32 = arith.constant 0 : index
    %c0_33 = arith.constant 0 : index
    %52 = vector.load %arg9[%c0_31, %c0_32, %c0_33] : memref<6x16x64xf32, #tpu.memory_space<vmem>>, vector<1x16x64xf32>
    %53 = vector.shape_cast %52 : vector<1x16x64xf32> to vector<16x64xf32>
    %cst_34 = arith.constant dense<0.000000e+00> : vector<16x64xf32>
    %54 = tpu.matmul %51, %53, %cst_34 {dimension_numbers = #tpu.dot_dimension_numbers<[1], [0], [0], [1], [0, 0, 1, 1], [], []>} : vector<16x16xf32>, vector<16x64xf32>, vector<16x64xf32> -> vector<16x64xf32>
    %c0_35 = arith.constant 0 : index
    %c0_36 = arith.constant 0 : index
    %c0_37 = arith.constant 0 : index
    %55 = vector.load %arg10[%c0_35, %c0_36, %c0_37] : memref<6x1x64xf32, #tpu.memory_space<vmem>>, vector<1x1x64xf32>
    %56 = vector.shape_cast %55 : vector<1x1x64xf32> to vector<1x64xf32>
    %57 = vector.broadcast %56 : vector<1x64xf32> to vector<16x64xf32>
    %58 = arith.addf %54, %57 : vector<16x64xf32>
    %cst_38 = arith.constant 0.000000e+00 : f32
    %59 = vector.broadcast %cst_38 : f32 to vector<16x64xf32>
    %60 = arith.maximumf %58, %59 : vector<16x64xf32>
    %c0_39 = arith.constant 0 : index
    %c0_40 = arith.constant 0 : index
    %c0_41 = arith.constant 0 : index
    %61 = vector.load %arg11[%c0_39, %c0_40, %c0_41] : memref<6x64x16xf32, #tpu.memory_space<vmem>>, vector<1x64x16xf32>
    %62 = vector.shape_cast %61 : vector<1x64x16xf32> to vector<64x16xf32>
    %cst_42 = arith.constant dense<0.000000e+00> : vector<16x16xf32>
    %63 = tpu.matmul %60, %62, %cst_42 {dimension_numbers = #tpu.dot_dimension_numbers<[1], [0], [0], [1], [0, 0, 1, 1], [], []>} : vector<16x64xf32>, vector<64x16xf32>, vector<16x16xf32> -> vector<16x16xf32>
    %c0_43 = arith.constant 0 : index
    %c0_44 = arith.constant 0 : index
    %c0_45 = arith.constant 0 : index
    %64 = vector.load %arg12[%c0_43, %c0_44, %c0_45] : memref<6x1x16xf32, #tpu.memory_space<vmem>>, vector<1x1x16xf32>
    %65 = vector.shape_cast %64 : vector<1x1x16xf32> to vector<1x16xf32>
    %66 = vector.broadcast %65 : vector<1x16xf32> to vector<16x16xf32>
    %67 = arith.addf %63, %66 : vector<16x16xf32>
    %68 = arith.addf %51, %67 : vector<16x16xf32>
    %c0_46 = arith.constant 0 : index
    %c0_47 = arith.constant 0 : index
    %c0_48 = arith.constant 0 : index
    %69 = vector.load %arg13[%c0_46, %c0_47, %c0_48] : memref<6x1x16xf32, #tpu.memory_space<vmem>>, vector<1x1x16xf32>
    %70 = vector.shape_cast %69 : vector<1x1x16xf32> to vector<1x16xf32>
    %c0_49 = arith.constant 0 : index
    %c0_50 = arith.constant 0 : index
    %c0_51 = arith.constant 0 : index
    %71 = vector.load %arg14[%c0_49, %c0_50, %c0_51] : memref<6x1x16xf32, #tpu.memory_space<vmem>>, vector<1x1x16xf32>
    %72 = vector.shape_cast %71 : vector<1x1x16xf32> to vector<1x16xf32>
    %cst_52 = arith.constant dense<0.000000e+00> : vector<16xf32>
    %73 = vector.multi_reduction <add>, %68, %cst_52 [1] : vector<16x16xf32> to vector<16xf32>
    %74 = vector.shape_cast %73 : vector<16xf32> to vector<16x1xf32>
    %cst_53 = arith.constant 1.600000e+01 : f32
    %75 = vector.broadcast %cst_53 : f32 to vector<16x1xf32>
    %76 = arith.divf %74, %75 : vector<16x1xf32>
    %77 = vector.broadcast %76 : vector<16x1xf32> to vector<16x16xf32>
    %78 = arith.subf %68, %77 : vector<16x16xf32>
    %79 = arith.mulf %78, %78 : vector<16x16xf32>
    %cst_54 = arith.constant dense<0.000000e+00> : vector<16xf32>
    %80 = vector.multi_reduction <add>, %79, %cst_54 [1] : vector<16x16xf32> to vector<16xf32>
    %81 = vector.shape_cast %80 : vector<16xf32> to vector<16x1xf32>
    %cst_55 = arith.constant 1.600000e+01 : f32
    %82 = vector.broadcast %cst_55 : f32 to vector<16x1xf32>
    %83 = arith.divf %81, %82 : vector<16x1xf32>
    %cst_56 = arith.constant 9.99999974E-6 : f32
    %84 = vector.broadcast %cst_56 : f32 to vector<16x1xf32>
    %85 = arith.addf %83, %84 : vector<16x1xf32>
    %86 = math.rsqrt %85 : vector<16x1xf32>
    %87 = vector.broadcast %86 : vector<16x1xf32> to vector<16x16xf32>
    %88 = arith.mulf %78, %87 : vector<16x16xf32>
    %89 = vector.broadcast %70 : vector<1x16xf32> to vector<16x16xf32>
    %90 = arith.mulf %88, %89 : vector<16x16xf32>
    %91 = vector.broadcast %72 : vector<1x16xf32> to vector<16x16xf32>
    %92 = arith.addf %90, %91 : vector<16x16xf32>
    %c1 = arith.constant 1 : index
    %c0_57 = arith.constant 0 : index
    %c0_58 = arith.constant 0 : index
    %93 = vector.load %arg3[%c1, %c0_57, %c0_58] : memref<6x16x16xf32, #tpu.memory_space<vmem>>, vector<1x16x16xf32>
    %94 = vector.shape_cast %93 : vector<1x16x16xf32> to vector<16x16xf32>
    %cst_59 = arith.constant dense<0.000000e+00> : vector<16x16xf32>
    %95 = tpu.matmul %92, %94, %cst_59 {dimension_numbers = #tpu.dot_dimension_numbers<[1], [0], [0], [1], [0, 0, 1, 1], [], []>} : vector<16x16xf32>, vector<16x16xf32>, vector<16x16xf32> -> vector<16x16xf32>
    %c1_60 = arith.constant 1 : index
    %c0_61 = arith.constant 0 : index
    %c0_62 = arith.constant 0 : index
    %96 = vector.load %arg4[%c1_60, %c0_61, %c0_62] : memref<6x1x16xf32, #tpu.memory_space<vmem>>, vector<1x1x16xf32>
    %97 = vector.shape_cast %96 : vector<1x1x16xf32> to vector<1x16xf32>
    %98 = vector.broadcast %97 : vector<1x16xf32> to vector<16x16xf32>
    %99 = arith.addf %95, %98 : vector<16x16xf32>
    %c1_63 = arith.constant 1 : index
    %c0_64 = arith.constant 0 : index
    %c0_65 = arith.constant 0 : index
    %100 = vector.load %arg5[%c1_63, %c0_64, %c0_65] : memref<6x16x16xf32, #tpu.memory_space<vmem>>, vector<1x16x16xf32>
    %101 = vector.shape_cast %100 : vector<1x16x16xf32> to vector<16x16xf32>
    %cst_66 = arith.constant dense<0.000000e+00> : vector<16x16xf32>
    %102 = tpu.matmul %99, %101, %cst_66 {dimension_numbers = #tpu.dot_dimension_numbers<[1], [0], [0], [1], [0, 0, 1, 1], [], []>} : vector<16x16xf32>, vector<16x16xf32>, vector<16x16xf32> -> vector<16x16xf32>
    %c1_67 = arith.constant 1 : index
    %c0_68 = arith.constant 0 : index
    %c0_69 = arith.constant 0 : index
    %103 = vector.load %arg6[%c1_67, %c0_68, %c0_69] : memref<6x1x16xf32, #tpu.memory_space<vmem>>, vector<1x1x16xf32>
    %104 = vector.shape_cast %103 : vector<1x1x16xf32> to vector<1x16xf32>
    %105 = vector.broadcast %104 : vector<1x16xf32> to vector<16x16xf32>
    %106 = arith.addf %102, %105 : vector<16x16xf32>
    %107 = arith.addf %92, %106 : vector<16x16xf32>
    %c1_70 = arith.constant 1 : index
    %c0_71 = arith.constant 0 : index
    %c0_72 = arith.constant 0 : index
    %108 = vector.load %arg7[%c1_70, %c0_71, %c0_72] : memref<6x1x16xf32, #tpu.memory_space<vmem>>, vector<1x1x16xf32>
    %109 = vector.shape_cast %108 : vector<1x1x16xf32> to vector<1x16xf32>
    %c1_73 = arith.constant 1 : index
    %c0_74 = arith.constant 0 : index
    %c0_75 = arith.constant 0 : index
    %110 = vector.load %arg8[%c1_73, %c0_74, %c0_75] : memref<6x1x16xf32, #tpu.memory_space<vmem>>, vector<1x1x16xf32>
    %111 = vector.shape_cast %110 : vector<1x1x16xf32> to vector<1x16xf32>
    %cst_76 = arith.constant dense<0.000000e+00> : vector<16xf32>
    %112 = vector.multi_reduction <add>, %107, %cst_76 [1] : vector<16x16xf32> to vector<16xf32>
    %113 = vector.shape_cast %112 : vector<16xf32> to vector<16x1xf32>
    %cst_77 = arith.constant 1.600000e+01 : f32
    %114 = vector.broadcast %cst_77 : f32 to vector<16x1xf32>
    %115 = arith.divf %113, %114 : vector<16x1xf32>
    %116 = vector.broadcast %115 : vector<16x1xf32> to vector<16x16xf32>
    %117 = arith.subf %107, %116 : vector<16x16xf32>
    %118 = arith.mulf %117, %117 : vector<16x16xf32>
    %cst_78 = arith.constant dense<0.000000e+00> : vector<16xf32>
    %119 = vector.multi_reduction <add>, %118, %cst_78 [1] : vector<16x16xf32> to vector<16xf32>
    %120 = vector.shape_cast %119 : vector<16xf32> to vector<16x1xf32>
    %cst_79 = arith.constant 1.600000e+01 : f32
    %121 = vector.broadcast %cst_79 : f32 to vector<16x1xf32>
    %122 = arith.divf %120, %121 : vector<16x1xf32>
    %cst_80 = arith.constant 9.99999974E-6 : f32
    %123 = vector.broadcast %cst_80 : f32 to vector<16x1xf32>
    %124 = arith.addf %122, %123 : vector<16x1xf32>
    %125 = math.rsqrt %124 : vector<16x1xf32>
    %126 = vector.broadcast %125 : vector<16x1xf32> to vector<16x16xf32>
    %127 = arith.mulf %117, %126 : vector<16x16xf32>
    %128 = vector.broadcast %109 : vector<1x16xf32> to vector<16x16xf32>
    %129 = arith.mulf %127, %128 : vector<16x16xf32>
    %130 = vector.broadcast %111 : vector<1x16xf32> to vector<16x16xf32>
    %131 = arith.addf %129, %130 : vector<16x16xf32>
    %c1_81 = arith.constant 1 : index
    %c0_82 = arith.constant 0 : index
    %c0_83 = arith.constant 0 : index
    %132 = vector.load %arg9[%c1_81, %c0_82, %c0_83] : memref<6x16x64xf32, #tpu.memory_space<vmem>>, vector<1x16x64xf32>
    %133 = vector.shape_cast %132 : vector<1x16x64xf32> to vector<16x64xf32>
    %cst_84 = arith.constant dense<0.000000e+00> : vector<16x64xf32>
    %134 = tpu.matmul %131, %133, %cst_84 {dimension_numbers = #tpu.dot_dimension_numbers<[1], [0], [0], [1], [0, 0, 1, 1], [], []>} : vector<16x16xf32>, vector<16x64xf32>, vector<16x64xf32> -> vector<16x64xf32>
    %c1_85 = arith.constant 1 : index
    %c0_86 = arith.constant 0 : index
    %c0_87 = arith.constant 0 : index
    %135 = vector.load %arg10[%c1_85, %c0_86, %c0_87] : memref<6x1x64xf32, #tpu.memory_space<vmem>>, vector<1x1x64xf32>
    %136 = vector.shape_cast %135 : vector<1x1x64xf32> to vector<1x64xf32>
    %137 = vector.broadcast %136 : vector<1x64xf32> to vector<16x64xf32>
    %138 = arith.addf %134, %137 : vector<16x64xf32>
    %cst_88 = arith.constant 0.000000e+00 : f32
    %139 = vector.broadcast %cst_88 : f32 to vector<16x64xf32>
    %140 = arith.maximumf %138, %139 : vector<16x64xf32>
    %c1_89 = arith.constant 1 : index
    %c0_90 = arith.constant 0 : index
    %c0_91 = arith.constant 0 : index
    %141 = vector.load %arg11[%c1_89, %c0_90, %c0_91] : memref<6x64x16xf32, #tpu.memory_space<vmem>>, vector<1x64x16xf32>
    %142 = vector.shape_cast %141 : vector<1x64x16xf32> to vector<64x16xf32>
    %cst_92 = arith.constant dense<0.000000e+00> : vector<16x16xf32>
    %143 = tpu.matmul %140, %142, %cst_92 {dimension_numbers = #tpu.dot_dimension_numbers<[1], [0], [0], [1], [0, 0, 1, 1], [], []>} : vector<16x64xf32>, vector<64x16xf32>, vector<16x16xf32> -> vector<16x16xf32>
    %c1_93 = arith.constant 1 : index
    %c0_94 = arith.constant 0 : index
    %c0_95 = arith.constant 0 : index
    %144 = vector.load %arg12[%c1_93, %c0_94, %c0_95] : memref<6x1x16xf32, #tpu.memory_space<vmem>>, vector<1x1x16xf32>
    %145 = vector.shape_cast %144 : vector<1x1x16xf32> to vector<1x16xf32>
    %146 = vector.broadcast %145 : vector<1x16xf32> to vector<16x16xf32>
    %147 = arith.addf %143, %146 : vector<16x16xf32>
    %148 = arith.addf %131, %147 : vector<16x16xf32>
    %c1_96 = arith.constant 1 : index
    %c0_97 = arith.constant 0 : index
    %c0_98 = arith.constant 0 : index
    %149 = vector.load %arg13[%c1_96, %c0_97, %c0_98] : memref<6x1x16xf32, #tpu.memory_space<vmem>>, vector<1x1x16xf32>
    %150 = vector.shape_cast %149 : vector<1x1x16xf32> to vector<1x16xf32>
    %c1_99 = arith.constant 1 : index
    %c0_100 = arith.constant 0 : index
    %c0_101 = arith.constant 0 : index
    %151 = vector.load %arg14[%c1_99, %c0_100, %c0_101] : memref<6x1x16xf32, #tpu.memory_space<vmem>>, vector<1x1x16xf32>
    %152 = vector.shape_cast %151 : vector<1x1x16xf32> to vector<1x16xf32>
    %cst_102 = arith.constant dense<0.000000e+00> : vector<16xf32>
    %153 = vector.multi_reduction <add>, %148, %cst_102 [1] : vector<16x16xf32> to vector<16xf32>
    %154 = vector.shape_cast %153 : vector<16xf32> to vector<16x1xf32>
    %cst_103 = arith.constant 1.600000e+01 : f32
    %155 = vector.broadcast %cst_103 : f32 to vector<16x1xf32>
    %156 = arith.divf %154, %155 : vector<16x1xf32>
    %157 = vector.broadcast %156 : vector<16x1xf32> to vector<16x16xf32>
    %158 = arith.subf %148, %157 : vector<16x16xf32>
    %159 = arith.mulf %158, %158 : vector<16x16xf32>
    %cst_104 = arith.constant dense<0.000000e+00> : vector<16xf32>
    %160 = vector.multi_reduction <add>, %159, %cst_104 [1] : vector<16x16xf32> to vector<16xf32>
    %161 = vector.shape_cast %160 : vector<16xf32> to vector<16x1xf32>
    %cst_105 = arith.constant 1.600000e+01 : f32
    %162 = vector.broadcast %cst_105 : f32 to vector<16x1xf32>
    %163 = arith.divf %161, %162 : vector<16x1xf32>
    %cst_106 = arith.constant 9.99999974E-6 : f32
    %164 = vector.broadcast %cst_106 : f32 to vector<16x1xf32>
    %165 = arith.addf %163, %164 : vector<16x1xf32>
    %166 = math.rsqrt %165 : vector<16x1xf32>
    %167 = vector.broadcast %166 : vector<16x1xf32> to vector<16x16xf32>
    %168 = arith.mulf %158, %167 : vector<16x16xf32>
    %169 = vector.broadcast %150 : vector<1x16xf32> to vector<16x16xf32>
    %170 = arith.mulf %168, %169 : vector<16x16xf32>
    %171 = vector.broadcast %152 : vector<1x16xf32> to vector<16x16xf32>
    %172 = arith.addf %170, %171 : vector<16x16xf32>
    %c2 = arith.constant 2 : index
    %c0_107 = arith.constant 0 : index
    %c0_108 = arith.constant 0 : index
    %173 = vector.load %arg3[%c2, %c0_107, %c0_108] : memref<6x16x16xf32, #tpu.memory_space<vmem>>, vector<1x16x16xf32>
    %174 = vector.shape_cast %173 : vector<1x16x16xf32> to vector<16x16xf32>
    %cst_109 = arith.constant dense<0.000000e+00> : vector<16x16xf32>
    %175 = tpu.matmul %172, %174, %cst_109 {dimension_numbers = #tpu.dot_dimension_numbers<[1], [0], [0], [1], [0, 0, 1, 1], [], []>} : vector<16x16xf32>, vector<16x16xf32>, vector<16x16xf32> -> vector<16x16xf32>
    %c2_110 = arith.constant 2 : index
    %c0_111 = arith.constant 0 : index
    %c0_112 = arith.constant 0 : index
    %176 = vector.load %arg4[%c2_110, %c0_111, %c0_112] : memref<6x1x16xf32, #tpu.memory_space<vmem>>, vector<1x1x16xf32>
    %177 = vector.shape_cast %176 : vector<1x1x16xf32> to vector<1x16xf32>
    %178 = vector.broadcast %177 : vector<1x16xf32> to vector<16x16xf32>
    %179 = arith.addf %175, %178 : vector<16x16xf32>
    %c2_113 = arith.constant 2 : index
    %c0_114 = arith.constant 0 : index
    %c0_115 = arith.constant 0 : index
    %180 = vector.load %arg5[%c2_113, %c0_114, %c0_115] : memref<6x16x16xf32, #tpu.memory_space<vmem>>, vector<1x16x16xf32>
    %181 = vector.shape_cast %180 : vector<1x16x16xf32> to vector<16x16xf32>
    %cst_116 = arith.constant dense<0.000000e+00> : vector<16x16xf32>
    %182 = tpu.matmul %179, %181, %cst_116 {dimension_numbers = #tpu.dot_dimension_numbers<[1], [0], [0], [1], [0, 0, 1, 1], [], []>} : vector<16x16xf32>, vector<16x16xf32>, vector<16x16xf32> -> vector<16x16xf32>
    %c2_117 = arith.constant 2 : index
    %c0_118 = arith.constant 0 : index
    %c0_119 = arith.constant 0 : index
    %183 = vector.load %arg6[%c2_117, %c0_118, %c0_119] : memref<6x1x16xf32, #tpu.memory_space<vmem>>, vector<1x1x16xf32>
    %184 = vector.shape_cast %183 : vector<1x1x16xf32> to vector<1x16xf32>
    %185 = vector.broadcast %184 : vector<1x16xf32> to vector<16x16xf32>
    %186 = arith.addf %182, %185 : vector<16x16xf32>
    %187 = arith.addf %172, %186 : vector<16x16xf32>
    %c2_120 = arith.constant 2 : index
    %c0_121 = arith.constant 0 : index
    %c0_122 = arith.constant 0 : index
    %188 = vector.load %arg7[%c2_120, %c0_121, %c0_122] : memref<6x1x16xf32, #tpu.memory_space<vmem>>, vector<1x1x16xf32>
    %189 = vector.shape_cast %188 : vector<1x1x16xf32> to vector<1x16xf32>
    %c2_123 = arith.constant 2 : index
    %c0_124 = arith.constant 0 : index
    %c0_125 = arith.constant 0 : index
    %190 = vector.load %arg8[%c2_123, %c0_124, %c0_125] : memref<6x1x16xf32, #tpu.memory_space<vmem>>, vector<1x1x16xf32>
    %191 = vector.shape_cast %190 : vector<1x1x16xf32> to vector<1x16xf32>
    %cst_126 = arith.constant dense<0.000000e+00> : vector<16xf32>
    %192 = vector.multi_reduction <add>, %187, %cst_126 [1] : vector<16x16xf32> to vector<16xf32>
    %193 = vector.shape_cast %192 : vector<16xf32> to vector<16x1xf32>
    %cst_127 = arith.constant 1.600000e+01 : f32
    %194 = vector.broadcast %cst_127 : f32 to vector<16x1xf32>
    %195 = arith.divf %193, %194 : vector<16x1xf32>
    %196 = vector.broadcast %195 : vector<16x1xf32> to vector<16x16xf32>
    %197 = arith.subf %187, %196 : vector<16x16xf32>
    %198 = arith.mulf %197, %197 : vector<16x16xf32>
    %cst_128 = arith.constant dense<0.000000e+00> : vector<16xf32>
    %199 = vector.multi_reduction <add>, %198, %cst_128 [1] : vector<16x16xf32> to vector<16xf32>
    %200 = vector.shape_cast %199 : vector<16xf32> to vector<16x1xf32>
    %cst_129 = arith.constant 1.600000e+01 : f32
    %201 = vector.broadcast %cst_129 : f32 to vector<16x1xf32>
    %202 = arith.divf %200, %201 : vector<16x1xf32>
    %cst_130 = arith.constant 9.99999974E-6 : f32
    %203 = vector.broadcast %cst_130 : f32 to vector<16x1xf32>
    %204 = arith.addf %202, %203 : vector<16x1xf32>
    %205 = math.rsqrt %204 : vector<16x1xf32>
    %206 = vector.broadcast %205 : vector<16x1xf32> to vector<16x16xf32>
    %207 = arith.mulf %197, %206 : vector<16x16xf32>
    %208 = vector.broadcast %189 : vector<1x16xf32> to vector<16x16xf32>
    %209 = arith.mulf %207, %208 : vector<16x16xf32>
    %210 = vector.broadcast %191 : vector<1x16xf32> to vector<16x16xf32>
    %211 = arith.addf %209, %210 : vector<16x16xf32>
    %c2_131 = arith.constant 2 : index
    %c0_132 = arith.constant 0 : index
    %c0_133 = arith.constant 0 : index
    %212 = vector.load %arg9[%c2_131, %c0_132, %c0_133] : memref<6x16x64xf32, #tpu.memory_space<vmem>>, vector<1x16x64xf32>
    %213 = vector.shape_cast %212 : vector<1x16x64xf32> to vector<16x64xf32>
    %cst_134 = arith.constant dense<0.000000e+00> : vector<16x64xf32>
    %214 = tpu.matmul %211, %213, %cst_134 {dimension_numbers = #tpu.dot_dimension_numbers<[1], [0], [0], [1], [0, 0, 1, 1], [], []>} : vector<16x16xf32>, vector<16x64xf32>, vector<16x64xf32> -> vector<16x64xf32>
    %c2_135 = arith.constant 2 : index
    %c0_136 = arith.constant 0 : index
    %c0_137 = arith.constant 0 : index
    %215 = vector.load %arg10[%c2_135, %c0_136, %c0_137] : memref<6x1x64xf32, #tpu.memory_space<vmem>>, vector<1x1x64xf32>
    %216 = vector.shape_cast %215 : vector<1x1x64xf32> to vector<1x64xf32>
    %217 = vector.broadcast %216 : vector<1x64xf32> to vector<16x64xf32>
    %218 = arith.addf %214, %217 : vector<16x64xf32>
    %cst_138 = arith.constant 0.000000e+00 : f32
    %219 = vector.broadcast %cst_138 : f32 to vector<16x64xf32>
    %220 = arith.maximumf %218, %219 : vector<16x64xf32>
    %c2_139 = arith.constant 2 : index
    %c0_140 = arith.constant 0 : index
    %c0_141 = arith.constant 0 : index
    %221 = vector.load %arg11[%c2_139, %c0_140, %c0_141] : memref<6x64x16xf32, #tpu.memory_space<vmem>>, vector<1x64x16xf32>
    %222 = vector.shape_cast %221 : vector<1x64x16xf32> to vector<64x16xf32>
    %cst_142 = arith.constant dense<0.000000e+00> : vector<16x16xf32>
    %223 = tpu.matmul %220, %222, %cst_142 {dimension_numbers = #tpu.dot_dimension_numbers<[1], [0], [0], [1], [0, 0, 1, 1], [], []>} : vector<16x64xf32>, vector<64x16xf32>, vector<16x16xf32> -> vector<16x16xf32>
    %c2_143 = arith.constant 2 : index
    %c0_144 = arith.constant 0 : index
    %c0_145 = arith.constant 0 : index
    %224 = vector.load %arg12[%c2_143, %c0_144, %c0_145] : memref<6x1x16xf32, #tpu.memory_space<vmem>>, vector<1x1x16xf32>
    %225 = vector.shape_cast %224 : vector<1x1x16xf32> to vector<1x16xf32>
    %226 = vector.broadcast %225 : vector<1x16xf32> to vector<16x16xf32>
    %227 = arith.addf %223, %226 : vector<16x16xf32>
    %228 = arith.addf %211, %227 : vector<16x16xf32>
    %c2_146 = arith.constant 2 : index
    %c0_147 = arith.constant 0 : index
    %c0_148 = arith.constant 0 : index
    %229 = vector.load %arg13[%c2_146, %c0_147, %c0_148] : memref<6x1x16xf32, #tpu.memory_space<vmem>>, vector<1x1x16xf32>
    %230 = vector.shape_cast %229 : vector<1x1x16xf32> to vector<1x16xf32>
    %c2_149 = arith.constant 2 : index
    %c0_150 = arith.constant 0 : index
    %c0_151 = arith.constant 0 : index
    %231 = vector.load %arg14[%c2_149, %c0_150, %c0_151] : memref<6x1x16xf32, #tpu.memory_space<vmem>>, vector<1x1x16xf32>
    %232 = vector.shape_cast %231 : vector<1x1x16xf32> to vector<1x16xf32>
    %cst_152 = arith.constant dense<0.000000e+00> : vector<16xf32>
    %233 = vector.multi_reduction <add>, %228, %cst_152 [1] : vector<16x16xf32> to vector<16xf32>
    %234 = vector.shape_cast %233 : vector<16xf32> to vector<16x1xf32>
    %cst_153 = arith.constant 1.600000e+01 : f32
    %235 = vector.broadcast %cst_153 : f32 to vector<16x1xf32>
    %236 = arith.divf %234, %235 : vector<16x1xf32>
    %237 = vector.broadcast %236 : vector<16x1xf32> to vector<16x16xf32>
    %238 = arith.subf %228, %237 : vector<16x16xf32>
    %239 = arith.mulf %238, %238 : vector<16x16xf32>
    %cst_154 = arith.constant dense<0.000000e+00> : vector<16xf32>
    %240 = vector.multi_reduction <add>, %239, %cst_154 [1] : vector<16x16xf32> to vector<16xf32>
    %241 = vector.shape_cast %240 : vector<16xf32> to vector<16x1xf32>
    %cst_155 = arith.constant 1.600000e+01 : f32
    %242 = vector.broadcast %cst_155 : f32 to vector<16x1xf32>
    %243 = arith.divf %241, %242 : vector<16x1xf32>
    %cst_156 = arith.constant 9.99999974E-6 : f32
    %244 = vector.broadcast %cst_156 : f32 to vector<16x1xf32>
    %245 = arith.addf %243, %244 : vector<16x1xf32>
    %246 = math.rsqrt %245 : vector<16x1xf32>
    %247 = vector.broadcast %246 : vector<16x1xf32> to vector<16x16xf32>
    %248 = arith.mulf %238, %247 : vector<16x16xf32>
    %249 = vector.broadcast %230 : vector<1x16xf32> to vector<16x16xf32>
    %250 = arith.mulf %248, %249 : vector<16x16xf32>
    %251 = vector.broadcast %232 : vector<1x16xf32> to vector<16x16xf32>
    %252 = arith.addf %250, %251 : vector<16x16xf32>
    %c3 = arith.constant 3 : index
    %c0_157 = arith.constant 0 : index
    %c0_158 = arith.constant 0 : index
    %253 = vector.load %arg3[%c3, %c0_157, %c0_158] : memref<6x16x16xf32, #tpu.memory_space<vmem>>, vector<1x16x16xf32>
    %254 = vector.shape_cast %253 : vector<1x16x16xf32> to vector<16x16xf32>
    %cst_159 = arith.constant dense<0.000000e+00> : vector<16x16xf32>
    %255 = tpu.matmul %252, %254, %cst_159 {dimension_numbers = #tpu.dot_dimension_numbers<[1], [0], [0], [1], [0, 0, 1, 1], [], []>} : vector<16x16xf32>, vector<16x16xf32>, vector<16x16xf32> -> vector<16x16xf32>
    %c3_160 = arith.constant 3 : index
    %c0_161 = arith.constant 0 : index
    %c0_162 = arith.constant 0 : index
    %256 = vector.load %arg4[%c3_160, %c0_161, %c0_162] : memref<6x1x16xf32, #tpu.memory_space<vmem>>, vector<1x1x16xf32>
    %257 = vector.shape_cast %256 : vector<1x1x16xf32> to vector<1x16xf32>
    %258 = vector.broadcast %257 : vector<1x16xf32> to vector<16x16xf32>
    %259 = arith.addf %255, %258 : vector<16x16xf32>
    %c3_163 = arith.constant 3 : index
    %c0_164 = arith.constant 0 : index
    %c0_165 = arith.constant 0 : index
    %260 = vector.load %arg5[%c3_163, %c0_164, %c0_165] : memref<6x16x16xf32, #tpu.memory_space<vmem>>, vector<1x16x16xf32>
    %261 = vector.shape_cast %260 : vector<1x16x16xf32> to vector<16x16xf32>
    %cst_166 = arith.constant dense<0.000000e+00> : vector<16x16xf32>
    %262 = tpu.matmul %259, %261, %cst_166 {dimension_numbers = #tpu.dot_dimension_numbers<[1], [0], [0], [1], [0, 0, 1, 1], [], []>} : vector<16x16xf32>, vector<16x16xf32>, vector<16x16xf32> -> vector<16x16xf32>
    %c3_167 = arith.constant 3 : index
    %c0_168 = arith.constant 0 : index
    %c0_169 = arith.constant 0 : index
    %263 = vector.load %arg6[%c3_167, %c0_168, %c0_169] : memref<6x1x16xf32, #tpu.memory_space<vmem>>, vector<1x1x16xf32>
    %264 = vector.shape_cast %263 : vector<1x1x16xf32> to vector<1x16xf32>
    %265 = vector.broadcast %264 : vector<1x16xf32> to vector<16x16xf32>
    %266 = arith.addf %262, %265 : vector<16x16xf32>
    %267 = arith.addf %252, %266 : vector<16x16xf32>
    %c3_170 = arith.constant 3 : index
    %c0_171 = arith.constant 0 : index
    %c0_172 = arith.constant 0 : index
    %268 = vector.load %arg7[%c3_170, %c0_171, %c0_172] : memref<6x1x16xf32, #tpu.memory_space<vmem>>, vector<1x1x16xf32>
    %269 = vector.shape_cast %268 : vector<1x1x16xf32> to vector<1x16xf32>
    %c3_173 = arith.constant 3 : index
    %c0_174 = arith.constant 0 : index
    %c0_175 = arith.constant 0 : index
    %270 = vector.load %arg8[%c3_173, %c0_174, %c0_175] : memref<6x1x16xf32, #tpu.memory_space<vmem>>, vector<1x1x16xf32>
    %271 = vector.shape_cast %270 : vector<1x1x16xf32> to vector<1x16xf32>
    %cst_176 = arith.constant dense<0.000000e+00> : vector<16xf32>
    %272 = vector.multi_reduction <add>, %267, %cst_176 [1] : vector<16x16xf32> to vector<16xf32>
    %273 = vector.shape_cast %272 : vector<16xf32> to vector<16x1xf32>
    %cst_177 = arith.constant 1.600000e+01 : f32
    %274 = vector.broadcast %cst_177 : f32 to vector<16x1xf32>
    %275 = arith.divf %273, %274 : vector<16x1xf32>
    %276 = vector.broadcast %275 : vector<16x1xf32> to vector<16x16xf32>
    %277 = arith.subf %267, %276 : vector<16x16xf32>
    %278 = arith.mulf %277, %277 : vector<16x16xf32>
    %cst_178 = arith.constant dense<0.000000e+00> : vector<16xf32>
    %279 = vector.multi_reduction <add>, %278, %cst_178 [1] : vector<16x16xf32> to vector<16xf32>
    %280 = vector.shape_cast %279 : vector<16xf32> to vector<16x1xf32>
    %cst_179 = arith.constant 1.600000e+01 : f32
    %281 = vector.broadcast %cst_179 : f32 to vector<16x1xf32>
    %282 = arith.divf %280, %281 : vector<16x1xf32>
    %cst_180 = arith.constant 9.99999974E-6 : f32
    %283 = vector.broadcast %cst_180 : f32 to vector<16x1xf32>
    %284 = arith.addf %282, %283 : vector<16x1xf32>
    %285 = math.rsqrt %284 : vector<16x1xf32>
    %286 = vector.broadcast %285 : vector<16x1xf32> to vector<16x16xf32>
    %287 = arith.mulf %277, %286 : vector<16x16xf32>
    %288 = vector.broadcast %269 : vector<1x16xf32> to vector<16x16xf32>
    %289 = arith.mulf %287, %288 : vector<16x16xf32>
    %290 = vector.broadcast %271 : vector<1x16xf32> to vector<16x16xf32>
    %291 = arith.addf %289, %290 : vector<16x16xf32>
    %c3_181 = arith.constant 3 : index
    %c0_182 = arith.constant 0 : index
    %c0_183 = arith.constant 0 : index
    %292 = vector.load %arg9[%c3_181, %c0_182, %c0_183] : memref<6x16x64xf32, #tpu.memory_space<vmem>>, vector<1x16x64xf32>
    %293 = vector.shape_cast %292 : vector<1x16x64xf32> to vector<16x64xf32>
    %cst_184 = arith.constant dense<0.000000e+00> : vector<16x64xf32>
    %294 = tpu.matmul %291, %293, %cst_184 {dimension_numbers = #tpu.dot_dimension_numbers<[1], [0], [0], [1], [0, 0, 1, 1], [], []>} : vector<16x16xf32>, vector<16x64xf32>, vector<16x64xf32> -> vector<16x64xf32>
    %c3_185 = arith.constant 3 : index
    %c0_186 = arith.constant 0 : index
    %c0_187 = arith.constant 0 : index
    %295 = vector.load %arg10[%c3_185, %c0_186, %c0_187] : memref<6x1x64xf32, #tpu.memory_space<vmem>>, vector<1x1x64xf32>
    %296 = vector.shape_cast %295 : vector<1x1x64xf32> to vector<1x64xf32>
    %297 = vector.broadcast %296 : vector<1x64xf32> to vector<16x64xf32>
    %298 = arith.addf %294, %297 : vector<16x64xf32>
    %cst_188 = arith.constant 0.000000e+00 : f32
    %299 = vector.broadcast %cst_188 : f32 to vector<16x64xf32>
    %300 = arith.maximumf %298, %299 : vector<16x64xf32>
    %c3_189 = arith.constant 3 : index
    %c0_190 = arith.constant 0 : index
    %c0_191 = arith.constant 0 : index
    %301 = vector.load %arg11[%c3_189, %c0_190, %c0_191] : memref<6x64x16xf32, #tpu.memory_space<vmem>>, vector<1x64x16xf32>
    %302 = vector.shape_cast %301 : vector<1x64x16xf32> to vector<64x16xf32>
    %cst_192 = arith.constant dense<0.000000e+00> : vector<16x16xf32>
    %303 = tpu.matmul %300, %302, %cst_192 {dimension_numbers = #tpu.dot_dimension_numbers<[1], [0], [0], [1], [0, 0, 1, 1], [], []>} : vector<16x64xf32>, vector<64x16xf32>, vector<16x16xf32> -> vector<16x16xf32>
    %c3_193 = arith.constant 3 : index
    %c0_194 = arith.constant 0 : index
    %c0_195 = arith.constant 0 : index
    %304 = vector.load %arg12[%c3_193, %c0_194, %c0_195] : memref<6x1x16xf32, #tpu.memory_space<vmem>>, vector<1x1x16xf32>
    %305 = vector.shape_cast %304 : vector<1x1x16xf32> to vector<1x16xf32>
    %306 = vector.broadcast %305 : vector<1x16xf32> to vector<16x16xf32>
    %307 = arith.addf %303, %306 : vector<16x16xf32>
    %308 = arith.addf %291, %307 : vector<16x16xf32>
    %c3_196 = arith.constant 3 : index
    %c0_197 = arith.constant 0 : index
    %c0_198 = arith.constant 0 : index
    %309 = vector.load %arg13[%c3_196, %c0_197, %c0_198] : memref<6x1x16xf32, #tpu.memory_space<vmem>>, vector<1x1x16xf32>
    %310 = vector.shape_cast %309 : vector<1x1x16xf32> to vector<1x16xf32>
    %c3_199 = arith.constant 3 : index
    %c0_200 = arith.constant 0 : index
    %c0_201 = arith.constant 0 : index
    %311 = vector.load %arg14[%c3_199, %c0_200, %c0_201] : memref<6x1x16xf32, #tpu.memory_space<vmem>>, vector<1x1x16xf32>
    %312 = vector.shape_cast %311 : vector<1x1x16xf32> to vector<1x16xf32>
    %cst_202 = arith.constant dense<0.000000e+00> : vector<16xf32>
    %313 = vector.multi_reduction <add>, %308, %cst_202 [1] : vector<16x16xf32> to vector<16xf32>
    %314 = vector.shape_cast %313 : vector<16xf32> to vector<16x1xf32>
    %cst_203 = arith.constant 1.600000e+01 : f32
    %315 = vector.broadcast %cst_203 : f32 to vector<16x1xf32>
    %316 = arith.divf %314, %315 : vector<16x1xf32>
    %317 = vector.broadcast %316 : vector<16x1xf32> to vector<16x16xf32>
    %318 = arith.subf %308, %317 : vector<16x16xf32>
    %319 = arith.mulf %318, %318 : vector<16x16xf32>
    %cst_204 = arith.constant dense<0.000000e+00> : vector<16xf32>
    %320 = vector.multi_reduction <add>, %319, %cst_204 [1] : vector<16x16xf32> to vector<16xf32>
    %321 = vector.shape_cast %320 : vector<16xf32> to vector<16x1xf32>
    %cst_205 = arith.constant 1.600000e+01 : f32
    %322 = vector.broadcast %cst_205 : f32 to vector<16x1xf32>
    %323 = arith.divf %321, %322 : vector<16x1xf32>
    %cst_206 = arith.constant 9.99999974E-6 : f32
    %324 = vector.broadcast %cst_206 : f32 to vector<16x1xf32>
    %325 = arith.addf %323, %324 : vector<16x1xf32>
    %326 = math.rsqrt %325 : vector<16x1xf32>
    %327 = vector.broadcast %326 : vector<16x1xf32> to vector<16x16xf32>
    %328 = arith.mulf %318, %327 : vector<16x16xf32>
    %329 = vector.broadcast %310 : vector<1x16xf32> to vector<16x16xf32>
    %330 = arith.mulf %328, %329 : vector<16x16xf32>
    %331 = vector.broadcast %312 : vector<1x16xf32> to vector<16x16xf32>
    %332 = arith.addf %330, %331 : vector<16x16xf32>
    %c4 = arith.constant 4 : index
    %c0_207 = arith.constant 0 : index
    %c0_208 = arith.constant 0 : index
    %333 = vector.load %arg3[%c4, %c0_207, %c0_208] : memref<6x16x16xf32, #tpu.memory_space<vmem>>, vector<1x16x16xf32>
    %334 = vector.shape_cast %333 : vector<1x16x16xf32> to vector<16x16xf32>
    %cst_209 = arith.constant dense<0.000000e+00> : vector<16x16xf32>
    %335 = tpu.matmul %332, %334, %cst_209 {dimension_numbers = #tpu.dot_dimension_numbers<[1], [0], [0], [1], [0, 0, 1, 1], [], []>} : vector<16x16xf32>, vector<16x16xf32>, vector<16x16xf32> -> vector<16x16xf32>
    %c4_210 = arith.constant 4 : index
    %c0_211 = arith.constant 0 : index
    %c0_212 = arith.constant 0 : index
    %336 = vector.load %arg4[%c4_210, %c0_211, %c0_212] : memref<6x1x16xf32, #tpu.memory_space<vmem>>, vector<1x1x16xf32>
    %337 = vector.shape_cast %336 : vector<1x1x16xf32> to vector<1x16xf32>
    %338 = vector.broadcast %337 : vector<1x16xf32> to vector<16x16xf32>
    %339 = arith.addf %335, %338 : vector<16x16xf32>
    %c4_213 = arith.constant 4 : index
    %c0_214 = arith.constant 0 : index
    %c0_215 = arith.constant 0 : index
    %340 = vector.load %arg5[%c4_213, %c0_214, %c0_215] : memref<6x16x16xf32, #tpu.memory_space<vmem>>, vector<1x16x16xf32>
    %341 = vector.shape_cast %340 : vector<1x16x16xf32> to vector<16x16xf32>
    %cst_216 = arith.constant dense<0.000000e+00> : vector<16x16xf32>
    %342 = tpu.matmul %339, %341, %cst_216 {dimension_numbers = #tpu.dot_dimension_numbers<[1], [0], [0], [1], [0, 0, 1, 1], [], []>} : vector<16x16xf32>, vector<16x16xf32>, vector<16x16xf32> -> vector<16x16xf32>
    %c4_217 = arith.constant 4 : index
    %c0_218 = arith.constant 0 : index
    %c0_219 = arith.constant 0 : index
    %343 = vector.load %arg6[%c4_217, %c0_218, %c0_219] : memref<6x1x16xf32, #tpu.memory_space<vmem>>, vector<1x1x16xf32>
    %344 = vector.shape_cast %343 : vector<1x1x16xf32> to vector<1x16xf32>
    %345 = vector.broadcast %344 : vector<1x16xf32> to vector<16x16xf32>
    %346 = arith.addf %342, %345 : vector<16x16xf32>
    %347 = arith.addf %332, %346 : vector<16x16xf32>
    %c4_220 = arith.constant 4 : index
    %c0_221 = arith.constant 0 : index
    %c0_222 = arith.constant 0 : index
    %348 = vector.load %arg7[%c4_220, %c0_221, %c0_222] : memref<6x1x16xf32, #tpu.memory_space<vmem>>, vector<1x1x16xf32>
    %349 = vector.shape_cast %348 : vector<1x1x16xf32> to vector<1x16xf32>
    %c4_223 = arith.constant 4 : index
    %c0_224 = arith.constant 0 : index
    %c0_225 = arith.constant 0 : index
    %350 = vector.load %arg8[%c4_223, %c0_224, %c0_225] : memref<6x1x16xf32, #tpu.memory_space<vmem>>, vector<1x1x16xf32>
    %351 = vector.shape_cast %350 : vector<1x1x16xf32> to vector<1x16xf32>
    %cst_226 = arith.constant dense<0.000000e+00> : vector<16xf32>
    %352 = vector.multi_reduction <add>, %347, %cst_226 [1] : vector<16x16xf32> to vector<16xf32>
    %353 = vector.shape_cast %352 : vector<16xf32> to vector<16x1xf32>
    %cst_227 = arith.constant 1.600000e+01 : f32
    %354 = vector.broadcast %cst_227 : f32 to vector<16x1xf32>
    %355 = arith.divf %353, %354 : vector<16x1xf32>
    %356 = vector.broadcast %355 : vector<16x1xf32> to vector<16x16xf32>
    %357 = arith.subf %347, %356 : vector<16x16xf32>
    %358 = arith.mulf %357, %357 : vector<16x16xf32>
    %cst_228 = arith.constant dense<0.000000e+00> : vector<16xf32>
    %359 = vector.multi_reduction <add>, %358, %cst_228 [1] : vector<16x16xf32> to vector<16xf32>
    %360 = vector.shape_cast %359 : vector<16xf32> to vector<16x1xf32>
    %cst_229 = arith.constant 1.600000e+01 : f32
    %361 = vector.broadcast %cst_229 : f32 to vector<16x1xf32>
    %362 = arith.divf %360, %361 : vector<16x1xf32>
    %cst_230 = arith.constant 9.99999974E-6 : f32
    %363 = vector.broadcast %cst_230 : f32 to vector<16x1xf32>
    %364 = arith.addf %362, %363 : vector<16x1xf32>
    %365 = math.rsqrt %364 : vector<16x1xf32>
    %366 = vector.broadcast %365 : vector<16x1xf32> to vector<16x16xf32>
    %367 = arith.mulf %357, %366 : vector<16x16xf32>
    %368 = vector.broadcast %349 : vector<1x16xf32> to vector<16x16xf32>
    %369 = arith.mulf %367, %368 : vector<16x16xf32>
    %370 = vector.broadcast %351 : vector<1x16xf32> to vector<16x16xf32>
    %371 = arith.addf %369, %370 : vector<16x16xf32>
    %c4_231 = arith.constant 4 : index
    %c0_232 = arith.constant 0 : index
    %c0_233 = arith.constant 0 : index
    %372 = vector.load %arg9[%c4_231, %c0_232, %c0_233] : memref<6x16x64xf32, #tpu.memory_space<vmem>>, vector<1x16x64xf32>
    %373 = vector.shape_cast %372 : vector<1x16x64xf32> to vector<16x64xf32>
    %cst_234 = arith.constant dense<0.000000e+00> : vector<16x64xf32>
    %374 = tpu.matmul %371, %373, %cst_234 {dimension_numbers = #tpu.dot_dimension_numbers<[1], [0], [0], [1], [0, 0, 1, 1], [], []>} : vector<16x16xf32>, vector<16x64xf32>, vector<16x64xf32> -> vector<16x64xf32>
    %c4_235 = arith.constant 4 : index
    %c0_236 = arith.constant 0 : index
    %c0_237 = arith.constant 0 : index
    %375 = vector.load %arg10[%c4_235, %c0_236, %c0_237] : memref<6x1x64xf32, #tpu.memory_space<vmem>>, vector<1x1x64xf32>
    %376 = vector.shape_cast %375 : vector<1x1x64xf32> to vector<1x64xf32>
    %377 = vector.broadcast %376 : vector<1x64xf32> to vector<16x64xf32>
    %378 = arith.addf %374, %377 : vector<16x64xf32>
    %cst_238 = arith.constant 0.000000e+00 : f32
    %379 = vector.broadcast %cst_238 : f32 to vector<16x64xf32>
    %380 = arith.maximumf %378, %379 : vector<16x64xf32>
    %c4_239 = arith.constant 4 : index
    %c0_240 = arith.constant 0 : index
    %c0_241 = arith.constant 0 : index
    %381 = vector.load %arg11[%c4_239, %c0_240, %c0_241] : memref<6x64x16xf32, #tpu.memory_space<vmem>>, vector<1x64x16xf32>
    %382 = vector.shape_cast %381 : vector<1x64x16xf32> to vector<64x16xf32>
    %cst_242 = arith.constant dense<0.000000e+00> : vector<16x16xf32>
    %383 = tpu.matmul %380, %382, %cst_242 {dimension_numbers = #tpu.dot_dimension_numbers<[1], [0], [0], [1], [0, 0, 1, 1], [], []>} : vector<16x64xf32>, vector<64x16xf32>, vector<16x16xf32> -> vector<16x16xf32>
    %c4_243 = arith.constant 4 : index
    %c0_244 = arith.constant 0 : index
    %c0_245 = arith.constant 0 : index
    %384 = vector.load %arg12[%c4_243, %c0_244, %c0_245] : memref<6x1x16xf32, #tpu.memory_space<vmem>>, vector<1x1x16xf32>
    %385 = vector.shape_cast %384 : vector<1x1x16xf32> to vector<1x16xf32>
    %386 = vector.broadcast %385 : vector<1x16xf32> to vector<16x16xf32>
    %387 = arith.addf %383, %386 : vector<16x16xf32>
    %388 = arith.addf %371, %387 : vector<16x16xf32>
    %c4_246 = arith.constant 4 : index
    %c0_247 = arith.constant 0 : index
    %c0_248 = arith.constant 0 : index
    %389 = vector.load %arg13[%c4_246, %c0_247, %c0_248] : memref<6x1x16xf32, #tpu.memory_space<vmem>>, vector<1x1x16xf32>
    %390 = vector.shape_cast %389 : vector<1x1x16xf32> to vector<1x16xf32>
    %c4_249 = arith.constant 4 : index
    %c0_250 = arith.constant 0 : index
    %c0_251 = arith.constant 0 : index
    %391 = vector.load %arg14[%c4_249, %c0_250, %c0_251] : memref<6x1x16xf32, #tpu.memory_space<vmem>>, vector<1x1x16xf32>
    %392 = vector.shape_cast %391 : vector<1x1x16xf32> to vector<1x16xf32>
    %cst_252 = arith.constant dense<0.000000e+00> : vector<16xf32>
    %393 = vector.multi_reduction <add>, %388, %cst_252 [1] : vector<16x16xf32> to vector<16xf32>
    %394 = vector.shape_cast %393 : vector<16xf32> to vector<16x1xf32>
    %cst_253 = arith.constant 1.600000e+01 : f32
    %395 = vector.broadcast %cst_253 : f32 to vector<16x1xf32>
    %396 = arith.divf %394, %395 : vector<16x1xf32>
    %397 = vector.broadcast %396 : vector<16x1xf32> to vector<16x16xf32>
    %398 = arith.subf %388, %397 : vector<16x16xf32>
    %399 = arith.mulf %398, %398 : vector<16x16xf32>
    %cst_254 = arith.constant dense<0.000000e+00> : vector<16xf32>
    %400 = vector.multi_reduction <add>, %399, %cst_254 [1] : vector<16x16xf32> to vector<16xf32>
    %401 = vector.shape_cast %400 : vector<16xf32> to vector<16x1xf32>
    %cst_255 = arith.constant 1.600000e+01 : f32
    %402 = vector.broadcast %cst_255 : f32 to vector<16x1xf32>
    %403 = arith.divf %401, %402 : vector<16x1xf32>
    %cst_256 = arith.constant 9.99999974E-6 : f32
    %404 = vector.broadcast %cst_256 : f32 to vector<16x1xf32>
    %405 = arith.addf %403, %404 : vector<16x1xf32>
    %406 = math.rsqrt %405 : vector<16x1xf32>
    %407 = vector.broadcast %406 : vector<16x1xf32> to vector<16x16xf32>
    %408 = arith.mulf %398, %407 : vector<16x16xf32>
    %409 = vector.broadcast %390 : vector<1x16xf32> to vector<16x16xf32>
    %410 = arith.mulf %408, %409 : vector<16x16xf32>
    %411 = vector.broadcast %392 : vector<1x16xf32> to vector<16x16xf32>
    %412 = arith.addf %410, %411 : vector<16x16xf32>
    %c5 = arith.constant 5 : index
    %c0_257 = arith.constant 0 : index
    %c0_258 = arith.constant 0 : index
    %413 = vector.load %arg3[%c5, %c0_257, %c0_258] : memref<6x16x16xf32, #tpu.memory_space<vmem>>, vector<1x16x16xf32>
    %414 = vector.shape_cast %413 : vector<1x16x16xf32> to vector<16x16xf32>
    %cst_259 = arith.constant dense<0.000000e+00> : vector<16x16xf32>
    %415 = tpu.matmul %412, %414, %cst_259 {dimension_numbers = #tpu.dot_dimension_numbers<[1], [0], [0], [1], [0, 0, 1, 1], [], []>} : vector<16x16xf32>, vector<16x16xf32>, vector<16x16xf32> -> vector<16x16xf32>
    %c5_260 = arith.constant 5 : index
    %c0_261 = arith.constant 0 : index
    %c0_262 = arith.constant 0 : index
    %416 = vector.load %arg4[%c5_260, %c0_261, %c0_262] : memref<6x1x16xf32, #tpu.memory_space<vmem>>, vector<1x1x16xf32>
    %417 = vector.shape_cast %416 : vector<1x1x16xf32> to vector<1x16xf32>
    %418 = vector.broadcast %417 : vector<1x16xf32> to vector<16x16xf32>
    %419 = arith.addf %415, %418 : vector<16x16xf32>
    %c5_263 = arith.constant 5 : index
    %c0_264 = arith.constant 0 : index
    %c0_265 = arith.constant 0 : index
    %420 = vector.load %arg5[%c5_263, %c0_264, %c0_265] : memref<6x16x16xf32, #tpu.memory_space<vmem>>, vector<1x16x16xf32>
    %421 = vector.shape_cast %420 : vector<1x16x16xf32> to vector<16x16xf32>
    %cst_266 = arith.constant dense<0.000000e+00> : vector<16x16xf32>
    %422 = tpu.matmul %419, %421, %cst_266 {dimension_numbers = #tpu.dot_dimension_numbers<[1], [0], [0], [1], [0, 0, 1, 1], [], []>} : vector<16x16xf32>, vector<16x16xf32>, vector<16x16xf32> -> vector<16x16xf32>
    %c5_267 = arith.constant 5 : index
    %c0_268 = arith.constant 0 : index
    %c0_269 = arith.constant 0 : index
    %423 = vector.load %arg6[%c5_267, %c0_268, %c0_269] : memref<6x1x16xf32, #tpu.memory_space<vmem>>, vector<1x1x16xf32>
    %424 = vector.shape_cast %423 : vector<1x1x16xf32> to vector<1x16xf32>
    %425 = vector.broadcast %424 : vector<1x16xf32> to vector<16x16xf32>
    %426 = arith.addf %422, %425 : vector<16x16xf32>
    %427 = arith.addf %412, %426 : vector<16x16xf32>
    %c5_270 = arith.constant 5 : index
    %c0_271 = arith.constant 0 : index
    %c0_272 = arith.constant 0 : index
    %428 = vector.load %arg7[%c5_270, %c0_271, %c0_272] : memref<6x1x16xf32, #tpu.memory_space<vmem>>, vector<1x1x16xf32>
    %429 = vector.shape_cast %428 : vector<1x1x16xf32> to vector<1x16xf32>
    %c5_273 = arith.constant 5 : index
    %c0_274 = arith.constant 0 : index
    %c0_275 = arith.constant 0 : index
    %430 = vector.load %arg8[%c5_273, %c0_274, %c0_275] : memref<6x1x16xf32, #tpu.memory_space<vmem>>, vector<1x1x16xf32>
    %431 = vector.shape_cast %430 : vector<1x1x16xf32> to vector<1x16xf32>
    %cst_276 = arith.constant dense<0.000000e+00> : vector<16xf32>
    %432 = vector.multi_reduction <add>, %427, %cst_276 [1] : vector<16x16xf32> to vector<16xf32>
    %433 = vector.shape_cast %432 : vector<16xf32> to vector<16x1xf32>
    %cst_277 = arith.constant 1.600000e+01 : f32
    %434 = vector.broadcast %cst_277 : f32 to vector<16x1xf32>
    %435 = arith.divf %433, %434 : vector<16x1xf32>
    %436 = vector.broadcast %435 : vector<16x1xf32> to vector<16x16xf32>
    %437 = arith.subf %427, %436 : vector<16x16xf32>
    %438 = arith.mulf %437, %437 : vector<16x16xf32>
    %cst_278 = arith.constant dense<0.000000e+00> : vector<16xf32>
    %439 = vector.multi_reduction <add>, %438, %cst_278 [1] : vector<16x16xf32> to vector<16xf32>
    %440 = vector.shape_cast %439 : vector<16xf32> to vector<16x1xf32>
    %cst_279 = arith.constant 1.600000e+01 : f32
    %441 = vector.broadcast %cst_279 : f32 to vector<16x1xf32>
    %442 = arith.divf %440, %441 : vector<16x1xf32>
    %cst_280 = arith.constant 9.99999974E-6 : f32
    %443 = vector.broadcast %cst_280 : f32 to vector<16x1xf32>
    %444 = arith.addf %442, %443 : vector<16x1xf32>
    %445 = math.rsqrt %444 : vector<16x1xf32>
    %446 = vector.broadcast %445 : vector<16x1xf32> to vector<16x16xf32>
    %447 = arith.mulf %437, %446 : vector<16x16xf32>
    %448 = vector.broadcast %429 : vector<1x16xf32> to vector<16x16xf32>
    %449 = arith.mulf %447, %448 : vector<16x16xf32>
    %450 = vector.broadcast %431 : vector<1x16xf32> to vector<16x16xf32>
    %451 = arith.addf %449, %450 : vector<16x16xf32>
    %c5_281 = arith.constant 5 : index
    %c0_282 = arith.constant 0 : index
    %c0_283 = arith.constant 0 : index
    %452 = vector.load %arg9[%c5_281, %c0_282, %c0_283] : memref<6x16x64xf32, #tpu.memory_space<vmem>>, vector<1x16x64xf32>
    %453 = vector.shape_cast %452 : vector<1x16x64xf32> to vector<16x64xf32>
    %cst_284 = arith.constant dense<0.000000e+00> : vector<16x64xf32>
    %454 = tpu.matmul %451, %453, %cst_284 {dimension_numbers = #tpu.dot_dimension_numbers<[1], [0], [0], [1], [0, 0, 1, 1], [], []>} : vector<16x16xf32>, vector<16x64xf32>, vector<16x64xf32> -> vector<16x64xf32>
    %c5_285 = arith.constant 5 : index
    %c0_286 = arith.constant 0 : index
    %c0_287 = arith.constant 0 : index
    %455 = vector.load %arg10[%c5_285, %c0_286, %c0_287] : memref<6x1x64xf32, #tpu.memory_space<vmem>>, vector<1x1x64xf32>
    %456 = vector.shape_cast %455 : vector<1x1x64xf32> to vector<1x64xf32>
    %457 = vector.broadcast %456 : vector<1x64xf32> to vector<16x64xf32>
    %458 = arith.addf %454, %457 : vector<16x64xf32>
    %cst_288 = arith.constant 0.000000e+00 : f32
    %459 = vector.broadcast %cst_288 : f32 to vector<16x64xf32>
    %460 = arith.maximumf %458, %459 : vector<16x64xf32>
    %c5_289 = arith.constant 5 : index
    %c0_290 = arith.constant 0 : index
    %c0_291 = arith.constant 0 : index
    %461 = vector.load %arg11[%c5_289, %c0_290, %c0_291] : memref<6x64x16xf32, #tpu.memory_space<vmem>>, vector<1x64x16xf32>
    %462 = vector.shape_cast %461 : vector<1x64x16xf32> to vector<64x16xf32>
    %cst_292 = arith.constant dense<0.000000e+00> : vector<16x16xf32>
    %463 = tpu.matmul %460, %462, %cst_292 {dimension_numbers = #tpu.dot_dimension_numbers<[1], [0], [0], [1], [0, 0, 1, 1], [], []>} : vector<16x64xf32>, vector<64x16xf32>, vector<16x16xf32> -> vector<16x16xf32>
    %c5_293 = arith.constant 5 : index
    %c0_294 = arith.constant 0 : index
    %c0_295 = arith.constant 0 : index
    %464 = vector.load %arg12[%c5_293, %c0_294, %c0_295] : memref<6x1x16xf32, #tpu.memory_space<vmem>>, vector<1x1x16xf32>
    %465 = vector.shape_cast %464 : vector<1x1x16xf32> to vector<1x16xf32>
    %466 = vector.broadcast %465 : vector<1x16xf32> to vector<16x16xf32>
    %467 = arith.addf %463, %466 : vector<16x16xf32>
    %468 = arith.addf %451, %467 : vector<16x16xf32>
    %c5_296 = arith.constant 5 : index
    %c0_297 = arith.constant 0 : index
    %c0_298 = arith.constant 0 : index
    %469 = vector.load %arg13[%c5_296, %c0_297, %c0_298] : memref<6x1x16xf32, #tpu.memory_space<vmem>>, vector<1x1x16xf32>
    %470 = vector.shape_cast %469 : vector<1x1x16xf32> to vector<1x16xf32>
    %c5_299 = arith.constant 5 : index
    %c0_300 = arith.constant 0 : index
    %c0_301 = arith.constant 0 : index
    %471 = vector.load %arg14[%c5_299, %c0_300, %c0_301] : memref<6x1x16xf32, #tpu.memory_space<vmem>>, vector<1x1x16xf32>
    %472 = vector.shape_cast %471 : vector<1x1x16xf32> to vector<1x16xf32>
    %cst_302 = arith.constant dense<0.000000e+00> : vector<16xf32>
    %473 = vector.multi_reduction <add>, %468, %cst_302 [1] : vector<16x16xf32> to vector<16xf32>
    %474 = vector.shape_cast %473 : vector<16xf32> to vector<16x1xf32>
    %cst_303 = arith.constant 1.600000e+01 : f32
    %475 = vector.broadcast %cst_303 : f32 to vector<16x1xf32>
    %476 = arith.divf %474, %475 : vector<16x1xf32>
    %477 = vector.broadcast %476 : vector<16x1xf32> to vector<16x16xf32>
    %478 = arith.subf %468, %477 : vector<16x16xf32>
    %479 = arith.mulf %478, %478 : vector<16x16xf32>
    %cst_304 = arith.constant dense<0.000000e+00> : vector<16xf32>
    %480 = vector.multi_reduction <add>, %479, %cst_304 [1] : vector<16x16xf32> to vector<16xf32>
    %481 = vector.shape_cast %480 : vector<16xf32> to vector<16x1xf32>
    %cst_305 = arith.constant 1.600000e+01 : f32
    %482 = vector.broadcast %cst_305 : f32 to vector<16x1xf32>
    %483 = arith.divf %481, %482 : vector<16x1xf32>
    %cst_306 = arith.constant 9.99999974E-6 : f32
    %484 = vector.broadcast %cst_306 : f32 to vector<16x1xf32>
    %485 = arith.addf %483, %484 : vector<16x1xf32>
    %486 = math.rsqrt %485 : vector<16x1xf32>
    %487 = vector.broadcast %486 : vector<16x1xf32> to vector<16x16xf32>
    %488 = arith.mulf %478, %487 : vector<16x16xf32>
    %489 = vector.broadcast %470 : vector<1x16xf32> to vector<16x16xf32>
    %490 = arith.mulf %488, %489 : vector<16x16xf32>
    %491 = vector.broadcast %472 : vector<1x16xf32> to vector<16x16xf32>
    %492 = arith.addf %490, %491 : vector<16x16xf32>
    %493 = vector.extract_strided_slice %492 {offsets = [0, 0], sizes = [4, 16], strides = [1, 1]} : vector<16x16xf32> to vector<4x16xf32>
    %c0_307 = arith.constant 0 : index
    %c0_308 = arith.constant 0 : index
    %494 = vector.load %arg15[%c0_307, %c0_308] : memref<64x32xf32, #tpu.memory_space<vmem>>, vector<16x32xf32>
    %cst_309 = arith.constant dense<0.000000e+00> : vector<4x32xf32>
    %495 = tpu.matmul %493, %494, %cst_309 {dimension_numbers = #tpu.dot_dimension_numbers<[1], [0], [0], [1], [0, 0, 1, 1], [], []>} : vector<4x16xf32>, vector<16x32xf32>, vector<4x32xf32> -> vector<4x32xf32>
    %c0_310 = arith.constant 0 : index
    %c0_311 = arith.constant 0 : index
    %496 = vector.load %arg16[%c0_310, %c0_311] : memref<1x32xf32, #tpu.memory_space<vmem>>, vector<1x32xf32>
    %497 = vector.broadcast %496 : vector<1x32xf32> to vector<4x32xf32>
    %498 = arith.addf %495, %497 : vector<4x32xf32>
    %499 = vector.extract_strided_slice %492 {offsets = [4, 0], sizes = [4, 16], strides = [1, 1]} : vector<16x16xf32> to vector<4x16xf32>
    %c16 = arith.constant 16 : index
    %c0_312 = arith.constant 0 : index
    %500 = vector.load %arg15[%c16, %c0_312] : memref<64x32xf32, #tpu.memory_space<vmem>>, vector<16x32xf32>
    %cst_313 = arith.constant dense<0.000000e+00> : vector<4x32xf32>
    %501 = tpu.matmul %499, %500, %cst_313 {dimension_numbers = #tpu.dot_dimension_numbers<[1], [0], [0], [1], [0, 0, 1, 1], [], []>} : vector<4x16xf32>, vector<16x32xf32>, vector<4x32xf32> -> vector<4x32xf32>
    %502 = arith.addf %498, %501 : vector<4x32xf32>
    %503 = vector.extract_strided_slice %492 {offsets = [8, 0], sizes = [4, 16], strides = [1, 1]} : vector<16x16xf32> to vector<4x16xf32>
    %c32 = arith.constant 32 : index
    %c0_314 = arith.constant 0 : index
    %504 = vector.load %arg15[%c32, %c0_314] : memref<64x32xf32, #tpu.memory_space<vmem>>, vector<16x32xf32>
    %cst_315 = arith.constant dense<0.000000e+00> : vector<4x32xf32>
    %505 = tpu.matmul %503, %504, %cst_315 {dimension_numbers = #tpu.dot_dimension_numbers<[1], [0], [0], [1], [0, 0, 1, 1], [], []>} : vector<4x16xf32>, vector<16x32xf32>, vector<4x32xf32> -> vector<4x32xf32>
    %506 = arith.addf %502, %505 : vector<4x32xf32>
    %507 = vector.extract_strided_slice %492 {offsets = [12, 0], sizes = [4, 16], strides = [1, 1]} : vector<16x16xf32> to vector<4x16xf32>
    %c48 = arith.constant 48 : index
    %c0_316 = arith.constant 0 : index
    %508 = vector.load %arg15[%c48, %c0_316] : memref<64x32xf32, #tpu.memory_space<vmem>>, vector<16x32xf32>
    %cst_317 = arith.constant dense<0.000000e+00> : vector<4x32xf32>
    %509 = tpu.matmul %507, %508, %cst_317 {dimension_numbers = #tpu.dot_dimension_numbers<[1], [0], [0], [1], [0, 0, 1, 1], [], []>} : vector<4x16xf32>, vector<16x32xf32>, vector<4x32xf32> -> vector<4x32xf32>
    %510 = arith.addf %506, %509 : vector<4x32xf32>
    %511 = vector.shape_cast %510 : vector<4x32xf32> to vector<2x2x32xf32>
    %cst_318 = arith.constant 5.65685415 : f32
    %512 = vector.broadcast %cst_318 : f32 to vector<2x2x32xf32>
    %513 = arith.mulf %511, %512 : vector<2x2x32xf32>
    %c0_319 = arith.constant 0 : index
    %c0_320 = arith.constant 0 : index
    %c0_321 = arith.constant 0 : index
    %514 = vector.load %arg17[%c0_319, %c0_320, %c0_321] : memref<2x1x32xf32, #tpu.memory_space<vmem>>, vector<2x1x32xf32>
    %515 = vector.broadcast %514 : vector<2x1x32xf32> to vector<2x2x32xf32>
    %516 = arith.addf %513, %515 : vector<2x2x32xf32>
    %517 = vector.shape_cast %516 : vector<2x2x32xf32> to vector<4x32xf32>
    %518 = tpu.iota {dimensions = array<i32: 0>} : vector<2x2x2x1xi32>
    %519 = tpu.iota {dimensions = array<i32: 1>} : vector<2x2x2x1xi32>
    %520 = arith.cmpi sle, %519, %518 : vector<2x2x2x1xi32>
    %cst_322 = arith.constant 0.000000e+00 : f32
    %cst_323 = arith.constant -1.000000e+30 : f32
    %521 = vector.broadcast %cst_322 : f32 to vector<2x2x2x1xf32>
    %522 = vector.broadcast %cst_323 : f32 to vector<2x2x2x1xf32>
    %523 = arith.select %520, %521, %522 : vector<2x2x2x1xi1>, vector<2x2x2x1xf32>
    %c0_324 = arith.constant 0 : index
    %c0_325 = arith.constant 0 : index
    %c0_326 = arith.constant 0 : index
    %524 = vector.load %arg18[%c0_324, %c0_325, %c0_326] : memref<6x32x32xf32, #tpu.memory_space<vmem>>, vector<1x32x32xf32>
    %525 = vector.shape_cast %524 : vector<1x32x32xf32> to vector<32x32xf32>
    %cst_327 = arith.constant dense<0.000000e+00> : vector<4x32xf32>
    %526 = tpu.matmul %517, %525, %cst_327 {dimension_numbers = #tpu.dot_dimension_numbers<[1], [0], [0], [1], [0, 0, 1, 1], [], []>} : vector<4x32xf32>, vector<32x32xf32>, vector<4x32xf32> -> vector<4x32xf32>
    %c0_328 = arith.constant 0 : index
    %c0_329 = arith.constant 0 : index
    %c0_330 = arith.constant 0 : index
    %527 = vector.load %arg19[%c0_328, %c0_329, %c0_330] : memref<6x1x32xf32, #tpu.memory_space<vmem>>, vector<1x1x32xf32>
    %528 = vector.shape_cast %527 : vector<1x1x32xf32> to vector<1x32xf32>
    %529 = vector.broadcast %528 : vector<1x32xf32> to vector<4x32xf32>
    %530 = arith.addf %526, %529 : vector<4x32xf32>
    %c0_331 = arith.constant 0 : index
    %c0_332 = arith.constant 0 : index
    %c0_333 = arith.constant 0 : index
    %531 = vector.load %arg20[%c0_331, %c0_332, %c0_333] : memref<6x32x32xf32, #tpu.memory_space<vmem>>, vector<1x32x32xf32>
    %532 = vector.shape_cast %531 : vector<1x32x32xf32> to vector<32x32xf32>
    %cst_334 = arith.constant dense<0.000000e+00> : vector<4x32xf32>
    %533 = tpu.matmul %517, %532, %cst_334 {dimension_numbers = #tpu.dot_dimension_numbers<[1], [0], [0], [1], [0, 0, 1, 1], [], []>} : vector<4x32xf32>, vector<32x32xf32>, vector<4x32xf32> -> vector<4x32xf32>
    %c0_335 = arith.constant 0 : index
    %c0_336 = arith.constant 0 : index
    %c0_337 = arith.constant 0 : index
    %534 = vector.load %arg21[%c0_335, %c0_336, %c0_337] : memref<6x1x32xf32, #tpu.memory_space<vmem>>, vector<1x1x32xf32>
    %535 = vector.shape_cast %534 : vector<1x1x32xf32> to vector<1x32xf32>
    %536 = vector.broadcast %535 : vector<1x32xf32> to vector<4x32xf32>
    %537 = arith.addf %533, %536 : vector<4x32xf32>
    %c0_338 = arith.constant 0 : index
    %c0_339 = arith.constant 0 : index
    %c0_340 = arith.constant 0 : index
    %538 = vector.load %arg22[%c0_338, %c0_339, %c0_340] : memref<6x32x32xf32, #tpu.memory_space<vmem>>, vector<1x32x32xf32>
    %539 = vector.shape_cast %538 : vector<1x32x32xf32> to vector<32x32xf32>
    %cst_341 = arith.constant dense<0.000000e+00> : vector<4x32xf32>
    %540 = tpu.matmul %517, %539, %cst_341 {dimension_numbers = #tpu.dot_dimension_numbers<[1], [0], [0], [1], [0, 0, 1, 1], [], []>} : vector<4x32xf32>, vector<32x32xf32>, vector<4x32xf32> -> vector<4x32xf32>
    %c0_342 = arith.constant 0 : index
    %c0_343 = arith.constant 0 : index
    %c0_344 = arith.constant 0 : index
    %541 = vector.load %arg23[%c0_342, %c0_343, %c0_344] : memref<6x1x32xf32, #tpu.memory_space<vmem>>, vector<1x1x32xf32>
    %542 = vector.shape_cast %541 : vector<1x1x32xf32> to vector<1x32xf32>
    %543 = vector.broadcast %542 : vector<1x32xf32> to vector<4x32xf32>
    %544 = arith.addf %540, %543 : vector<4x32xf32>
    %545 = vector.extract_strided_slice %530 {offsets = [0, 0], sizes = [4, 16], strides = [1, 1]} : vector<4x32xf32> to vector<4x16xf32>
    %546 = vector.shape_cast %545 : vector<4x16xf32> to vector<2x2x16xf32>
    %547 = vector.extract_strided_slice %537 {offsets = [0, 0], sizes = [4, 16], strides = [1, 1]} : vector<4x32xf32> to vector<4x16xf32>
    %548 = vector.shape_cast %547 : vector<4x16xf32> to vector<2x2x16xf32>
    %549 = vector.extract_strided_slice %544 {offsets = [0, 0], sizes = [4, 16], strides = [1, 1]} : vector<4x32xf32> to vector<4x16xf32>
    %550 = vector.shape_cast %549 : vector<4x16xf32> to vector<2x2x16xf32>
    %551 = vector.shape_cast %546 : vector<2x2x16xf32> to vector<2x1x2x16xf32>
    %552 = vector.shape_cast %548 : vector<2x2x16xf32> to vector<1x2x2x16xf32>
    %553 = vector.broadcast %551 : vector<2x1x2x16xf32> to vector<2x2x2x16xf32>
    %554 = vector.broadcast %552 : vector<1x2x2x16xf32> to vector<2x2x2x16xf32>
    %555 = arith.mulf %553, %554 : vector<2x2x2x16xf32>
    %cst_345 = arith.constant dense<0.000000e+00> : vector<2x2x2xf32>
    %556 = vector.multi_reduction <add>, %555, %cst_345 [3] : vector<2x2x2x16xf32> to vector<2x2x2xf32>
    %557 = vector.shape_cast %556 : vector<2x2x2xf32> to vector<2x2x2x1xf32>
    %558 = arith.addf %557, %523 : vector<2x2x2x1xf32>
    %cst_346 = arith.constant dense<0xFF800000> : vector<2x2x1xf32>
    %559 = vector.multi_reduction <maximumf>, %558, %cst_346 [1] : vector<2x2x2x1xf32> to vector<2x2x1xf32>
    %560 = vector.shape_cast %559 : vector<2x2x1xf32> to vector<2x1x2x1xf32>
    %561 = vector.broadcast %560 : vector<2x1x2x1xf32> to vector<2x2x2x1xf32>
    %562 = arith.subf %558, %561 : vector<2x2x2x1xf32>
    %563 = math.exp %562 : vector<2x2x2x1xf32>
    %cst_347 = arith.constant dense<0.000000e+00> : vector<2x2x1xf32>
    %564 = vector.multi_reduction <add>, %563, %cst_347 [1] : vector<2x2x2x1xf32> to vector<2x2x1xf32>
    %565 = vector.shape_cast %564 : vector<2x2x1xf32> to vector<2x1x2x1xf32>
    %566 = vector.broadcast %565 : vector<2x1x2x1xf32> to vector<2x2x2x1xf32>
    %567 = arith.divf %563, %566 : vector<2x2x2x1xf32>
    %568 = vector.shape_cast %550 : vector<2x2x16xf32> to vector<1x2x2x16xf32>
    %569 = vector.broadcast %567 : vector<2x2x2x1xf32> to vector<2x2x2x16xf32>
    %570 = vector.broadcast %568 : vector<1x2x2x16xf32> to vector<2x2x2x16xf32>
    %571 = arith.mulf %569, %570 : vector<2x2x2x16xf32>
    %cst_348 = arith.constant dense<0.000000e+00> : vector<2x2x16xf32>
    %572 = vector.multi_reduction <add>, %571, %cst_348 [1] : vector<2x2x2x16xf32> to vector<2x2x16xf32>
    %573 = vector.shape_cast %572 : vector<2x2x16xf32> to vector<4x16xf32>
    %574 = vector.extract_strided_slice %530 {offsets = [0, 16], sizes = [4, 16], strides = [1, 1]} : vector<4x32xf32> to vector<4x16xf32>
    %575 = vector.shape_cast %574 : vector<4x16xf32> to vector<2x2x16xf32>
    %576 = vector.extract_strided_slice %537 {offsets = [0, 16], sizes = [4, 16], strides = [1, 1]} : vector<4x32xf32> to vector<4x16xf32>
    %577 = vector.shape_cast %576 : vector<4x16xf32> to vector<2x2x16xf32>
    %578 = vector.extract_strided_slice %544 {offsets = [0, 16], sizes = [4, 16], strides = [1, 1]} : vector<4x32xf32> to vector<4x16xf32>
    %579 = vector.shape_cast %578 : vector<4x16xf32> to vector<2x2x16xf32>
    %580 = vector.shape_cast %575 : vector<2x2x16xf32> to vector<2x1x2x16xf32>
    %581 = vector.shape_cast %577 : vector<2x2x16xf32> to vector<1x2x2x16xf32>
    %582 = vector.broadcast %580 : vector<2x1x2x16xf32> to vector<2x2x2x16xf32>
    %583 = vector.broadcast %581 : vector<1x2x2x16xf32> to vector<2x2x2x16xf32>
    %584 = arith.mulf %582, %583 : vector<2x2x2x16xf32>
    %cst_349 = arith.constant dense<0.000000e+00> : vector<2x2x2xf32>
    %585 = vector.multi_reduction <add>, %584, %cst_349 [3] : vector<2x2x2x16xf32> to vector<2x2x2xf32>
    %586 = vector.shape_cast %585 : vector<2x2x2xf32> to vector<2x2x2x1xf32>
    %587 = arith.addf %586, %523 : vector<2x2x2x1xf32>
    %cst_350 = arith.constant dense<0xFF800000> : vector<2x2x1xf32>
    %588 = vector.multi_reduction <maximumf>, %587, %cst_350 [1] : vector<2x2x2x1xf32> to vector<2x2x1xf32>
    %589 = vector.shape_cast %588 : vector<2x2x1xf32> to vector<2x1x2x1xf32>
    %590 = vector.broadcast %589 : vector<2x1x2x1xf32> to vector<2x2x2x1xf32>
    %591 = arith.subf %587, %590 : vector<2x2x2x1xf32>
    %592 = math.exp %591 : vector<2x2x2x1xf32>
    %cst_351 = arith.constant dense<0.000000e+00> : vector<2x2x1xf32>
    %593 = vector.multi_reduction <add>, %592, %cst_351 [1] : vector<2x2x2x1xf32> to vector<2x2x1xf32>
    %594 = vector.shape_cast %593 : vector<2x2x1xf32> to vector<2x1x2x1xf32>
    %595 = vector.broadcast %594 : vector<2x1x2x1xf32> to vector<2x2x2x1xf32>
    %596 = arith.divf %592, %595 : vector<2x2x2x1xf32>
    %597 = vector.shape_cast %579 : vector<2x2x16xf32> to vector<1x2x2x16xf32>
    %598 = vector.broadcast %596 : vector<2x2x2x1xf32> to vector<2x2x2x16xf32>
    %599 = vector.broadcast %597 : vector<1x2x2x16xf32> to vector<2x2x2x16xf32>
    %600 = arith.mulf %598, %599 : vector<2x2x2x16xf32>
    %cst_352 = arith.constant dense<0.000000e+00> : vector<2x2x16xf32>
    %601 = vector.multi_reduction <add>, %600, %cst_352 [1] : vector<2x2x2x16xf32> to vector<2x2x16xf32>
    %602 = vector.shape_cast %601 : vector<2x2x16xf32> to vector<4x16xf32>
    %603 = tpu.concatenate %573, %602 in 1 : vector<4x16xf32>, vector<4x16xf32> -> vector<4x32xf32>
    %c0_353 = arith.constant 0 : index
    %c0_354 = arith.constant 0 : index
    %c0_355 = arith.constant 0 : index
    %604 = vector.load %arg24[%c0_353, %c0_354, %c0_355] : memref<6x32x32xf32, #tpu.memory_space<vmem>>, vector<1x32x32xf32>
    %605 = vector.shape_cast %604 : vector<1x32x32xf32> to vector<32x32xf32>
    %cst_356 = arith.constant dense<0.000000e+00> : vector<4x32xf32>
    %606 = tpu.matmul %603, %605, %cst_356 {dimension_numbers = #tpu.dot_dimension_numbers<[1], [0], [0], [1], [0, 0, 1, 1], [], []>} : vector<4x32xf32>, vector<32x32xf32>, vector<4x32xf32> -> vector<4x32xf32>
    %c0_357 = arith.constant 0 : index
    %c0_358 = arith.constant 0 : index
    %c0_359 = arith.constant 0 : index
    %607 = vector.load %arg25[%c0_357, %c0_358, %c0_359] : memref<6x1x32xf32, #tpu.memory_space<vmem>>, vector<1x1x32xf32>
    %608 = vector.shape_cast %607 : vector<1x1x32xf32> to vector<1x32xf32>
    %609 = vector.broadcast %608 : vector<1x32xf32> to vector<4x32xf32>
    %610 = arith.addf %606, %609 : vector<4x32xf32>
    %611 = arith.addf %517, %610 : vector<4x32xf32>
    %c0_360 = arith.constant 0 : index
    %c0_361 = arith.constant 0 : index
    %c0_362 = arith.constant 0 : index
    %612 = vector.load %arg26[%c0_360, %c0_361, %c0_362] : memref<6x1x32xf32, #tpu.memory_space<vmem>>, vector<1x1x32xf32>
    %613 = vector.shape_cast %612 : vector<1x1x32xf32> to vector<1x32xf32>
    %c0_363 = arith.constant 0 : index
    %c0_364 = arith.constant 0 : index
    %c0_365 = arith.constant 0 : index
    %614 = vector.load %arg27[%c0_363, %c0_364, %c0_365] : memref<6x1x32xf32, #tpu.memory_space<vmem>>, vector<1x1x32xf32>
    %615 = vector.shape_cast %614 : vector<1x1x32xf32> to vector<1x32xf32>
    %cst_366 = arith.constant dense<0.000000e+00> : vector<4xf32>
    %616 = vector.multi_reduction <add>, %611, %cst_366 [1] : vector<4x32xf32> to vector<4xf32>
    %617 = vector.shape_cast %616 : vector<4xf32> to vector<4x1xf32>
    %cst_367 = arith.constant 3.200000e+01 : f32
    %618 = vector.broadcast %cst_367 : f32 to vector<4x1xf32>
    %619 = arith.divf %617, %618 : vector<4x1xf32>
    %620 = vector.broadcast %619 : vector<4x1xf32> to vector<4x32xf32>
    %621 = arith.subf %611, %620 : vector<4x32xf32>
    %622 = arith.mulf %621, %621 : vector<4x32xf32>
    %cst_368 = arith.constant dense<0.000000e+00> : vector<4xf32>
    %623 = vector.multi_reduction <add>, %622, %cst_368 [1] : vector<4x32xf32> to vector<4xf32>
    %624 = vector.shape_cast %623 : vector<4xf32> to vector<4x1xf32>
    %cst_369 = arith.constant 3.200000e+01 : f32
    %625 = vector.broadcast %cst_369 : f32 to vector<4x1xf32>
    %626 = arith.divf %624, %625 : vector<4x1xf32>
    %cst_370 = arith.constant 9.99999974E-6 : f32
    %627 = vector.broadcast %cst_370 : f32 to vector<4x1xf32>
    %628 = arith.addf %626, %627 : vector<4x1xf32>
    %629 = math.rsqrt %628 : vector<4x1xf32>
    %630 = vector.broadcast %629 : vector<4x1xf32> to vector<4x32xf32>
    %631 = arith.mulf %621, %630 : vector<4x32xf32>
    %632 = vector.broadcast %613 : vector<1x32xf32> to vector<4x32xf32>
    %633 = arith.mulf %631, %632 : vector<4x32xf32>
    %634 = vector.broadcast %615 : vector<1x32xf32> to vector<4x32xf32>
    %635 = arith.addf %633, %634 : vector<4x32xf32>
    %c0_371 = arith.constant 0 : index
    %c0_372 = arith.constant 0 : index
    %c0_373 = arith.constant 0 : index
    %636 = vector.load %arg28[%c0_371, %c0_372, %c0_373] : memref<6x32x64xf32, #tpu.memory_space<vmem>>, vector<1x32x64xf32>
    %637 = vector.shape_cast %636 : vector<1x32x64xf32> to vector<32x64xf32>
    %cst_374 = arith.constant dense<0.000000e+00> : vector<4x64xf32>
    %638 = tpu.matmul %635, %637, %cst_374 {dimension_numbers = #tpu.dot_dimension_numbers<[1], [0], [0], [1], [0, 0, 1, 1], [], []>} : vector<4x32xf32>, vector<32x64xf32>, vector<4x64xf32> -> vector<4x64xf32>
    %c0_375 = arith.constant 0 : index
    %c0_376 = arith.constant 0 : index
    %c0_377 = arith.constant 0 : index
    %639 = vector.load %arg29[%c0_375, %c0_376, %c0_377] : memref<6x1x64xf32, #tpu.memory_space<vmem>>, vector<1x1x64xf32>
    %640 = vector.shape_cast %639 : vector<1x1x64xf32> to vector<1x64xf32>
    %641 = vector.broadcast %640 : vector<1x64xf32> to vector<4x64xf32>
    %642 = arith.addf %638, %641 : vector<4x64xf32>
    %cst_378 = arith.constant 0.000000e+00 : f32
    %643 = vector.broadcast %cst_378 : f32 to vector<4x64xf32>
    %644 = arith.maximumf %642, %643 : vector<4x64xf32>
    %c0_379 = arith.constant 0 : index
    %c0_380 = arith.constant 0 : index
    %c0_381 = arith.constant 0 : index
    %645 = vector.load %arg30[%c0_379, %c0_380, %c0_381] : memref<6x64x32xf32, #tpu.memory_space<vmem>>, vector<1x64x32xf32>
    %646 = vector.shape_cast %645 : vector<1x64x32xf32> to vector<64x32xf32>
    %cst_382 = arith.constant dense<0.000000e+00> : vector<4x32xf32>
    %647 = tpu.matmul %644, %646, %cst_382 {dimension_numbers = #tpu.dot_dimension_numbers<[1], [0], [0], [1], [0, 0, 1, 1], [], []>} : vector<4x64xf32>, vector<64x32xf32>, vector<4x32xf32> -> vector<4x32xf32>
    %c0_383 = arith.constant 0 : index
    %c0_384 = arith.constant 0 : index
    %c0_385 = arith.constant 0 : index
    %648 = vector.load %arg31[%c0_383, %c0_384, %c0_385] : memref<6x1x32xf32, #tpu.memory_space<vmem>>, vector<1x1x32xf32>
    %649 = vector.shape_cast %648 : vector<1x1x32xf32> to vector<1x32xf32>
    %650 = vector.broadcast %649 : vector<1x32xf32> to vector<4x32xf32>
    %651 = arith.addf %647, %650 : vector<4x32xf32>
    %652 = arith.addf %635, %651 : vector<4x32xf32>
    %c0_386 = arith.constant 0 : index
    %c0_387 = arith.constant 0 : index
    %c0_388 = arith.constant 0 : index
    %653 = vector.load %arg32[%c0_386, %c0_387, %c0_388] : memref<6x1x32xf32, #tpu.memory_space<vmem>>, vector<1x1x32xf32>
    %654 = vector.shape_cast %653 : vector<1x1x32xf32> to vector<1x32xf32>
    %c0_389 = arith.constant 0 : index
    %c0_390 = arith.constant 0 : index
    %c0_391 = arith.constant 0 : index
    %655 = vector.load %arg33[%c0_389, %c0_390, %c0_391] : memref<6x1x32xf32, #tpu.memory_space<vmem>>, vector<1x1x32xf32>
    %656 = vector.shape_cast %655 : vector<1x1x32xf32> to vector<1x32xf32>
    %cst_392 = arith.constant dense<0.000000e+00> : vector<4xf32>
    %657 = vector.multi_reduction <add>, %652, %cst_392 [1] : vector<4x32xf32> to vector<4xf32>
    %658 = vector.shape_cast %657 : vector<4xf32> to vector<4x1xf32>
    %cst_393 = arith.constant 3.200000e+01 : f32
    %659 = vector.broadcast %cst_393 : f32 to vector<4x1xf32>
    %660 = arith.divf %658, %659 : vector<4x1xf32>
    %661 = vector.broadcast %660 : vector<4x1xf32> to vector<4x32xf32>
    %662 = arith.subf %652, %661 : vector<4x32xf32>
    %663 = arith.mulf %662, %662 : vector<4x32xf32>
    %cst_394 = arith.constant dense<0.000000e+00> : vector<4xf32>
    %664 = vector.multi_reduction <add>, %663, %cst_394 [1] : vector<4x32xf32> to vector<4xf32>
    %665 = vector.shape_cast %664 : vector<4xf32> to vector<4x1xf32>
    %cst_395 = arith.constant 3.200000e+01 : f32
    %666 = vector.broadcast %cst_395 : f32 to vector<4x1xf32>
    %667 = arith.divf %665, %666 : vector<4x1xf32>
    %cst_396 = arith.constant 9.99999974E-6 : f32
    %668 = vector.broadcast %cst_396 : f32 to vector<4x1xf32>
    %669 = arith.addf %667, %668 : vector<4x1xf32>
    %670 = math.rsqrt %669 : vector<4x1xf32>
    %671 = vector.broadcast %670 : vector<4x1xf32> to vector<4x32xf32>
    %672 = arith.mulf %662, %671 : vector<4x32xf32>
    %673 = vector.broadcast %654 : vector<1x32xf32> to vector<4x32xf32>
    %674 = arith.mulf %672, %673 : vector<4x32xf32>
    %675 = vector.broadcast %656 : vector<1x32xf32> to vector<4x32xf32>
    %676 = arith.addf %674, %675 : vector<4x32xf32>
    %c1_397 = arith.constant 1 : index
    %c0_398 = arith.constant 0 : index
    %c0_399 = arith.constant 0 : index
    %677 = vector.load %arg18[%c1_397, %c0_398, %c0_399] : memref<6x32x32xf32, #tpu.memory_space<vmem>>, vector<1x32x32xf32>
    %678 = vector.shape_cast %677 : vector<1x32x32xf32> to vector<32x32xf32>
    %cst_400 = arith.constant dense<0.000000e+00> : vector<4x32xf32>
    %679 = tpu.matmul %676, %678, %cst_400 {dimension_numbers = #tpu.dot_dimension_numbers<[1], [0], [0], [1], [0, 0, 1, 1], [], []>} : vector<4x32xf32>, vector<32x32xf32>, vector<4x32xf32> -> vector<4x32xf32>
    %c1_401 = arith.constant 1 : index
    %c0_402 = arith.constant 0 : index
    %c0_403 = arith.constant 0 : index
    %680 = vector.load %arg19[%c1_401, %c0_402, %c0_403] : memref<6x1x32xf32, #tpu.memory_space<vmem>>, vector<1x1x32xf32>
    %681 = vector.shape_cast %680 : vector<1x1x32xf32> to vector<1x32xf32>
    %682 = vector.broadcast %681 : vector<1x32xf32> to vector<4x32xf32>
    %683 = arith.addf %679, %682 : vector<4x32xf32>
    %c1_404 = arith.constant 1 : index
    %c0_405 = arith.constant 0 : index
    %c0_406 = arith.constant 0 : index
    %684 = vector.load %arg20[%c1_404, %c0_405, %c0_406] : memref<6x32x32xf32, #tpu.memory_space<vmem>>, vector<1x32x32xf32>
    %685 = vector.shape_cast %684 : vector<1x32x32xf32> to vector<32x32xf32>
    %cst_407 = arith.constant dense<0.000000e+00> : vector<4x32xf32>
    %686 = tpu.matmul %676, %685, %cst_407 {dimension_numbers = #tpu.dot_dimension_numbers<[1], [0], [0], [1], [0, 0, 1, 1], [], []>} : vector<4x32xf32>, vector<32x32xf32>, vector<4x32xf32> -> vector<4x32xf32>
    %c1_408 = arith.constant 1 : index
    %c0_409 = arith.constant 0 : index
    %c0_410 = arith.constant 0 : index
    %687 = vector.load %arg21[%c1_408, %c0_409, %c0_410] : memref<6x1x32xf32, #tpu.memory_space<vmem>>, vector<1x1x32xf32>
    %688 = vector.shape_cast %687 : vector<1x1x32xf32> to vector<1x32xf32>
    %689 = vector.broadcast %688 : vector<1x32xf32> to vector<4x32xf32>
    %690 = arith.addf %686, %689 : vector<4x32xf32>
    %c1_411 = arith.constant 1 : index
    %c0_412 = arith.constant 0 : index
    %c0_413 = arith.constant 0 : index
    %691 = vector.load %arg22[%c1_411, %c0_412, %c0_413] : memref<6x32x32xf32, #tpu.memory_space<vmem>>, vector<1x32x32xf32>
    %692 = vector.shape_cast %691 : vector<1x32x32xf32> to vector<32x32xf32>
    %cst_414 = arith.constant dense<0.000000e+00> : vector<4x32xf32>
    %693 = tpu.matmul %676, %692, %cst_414 {dimension_numbers = #tpu.dot_dimension_numbers<[1], [0], [0], [1], [0, 0, 1, 1], [], []>} : vector<4x32xf32>, vector<32x32xf32>, vector<4x32xf32> -> vector<4x32xf32>
    %c1_415 = arith.constant 1 : index
    %c0_416 = arith.constant 0 : index
    %c0_417 = arith.constant 0 : index
    %694 = vector.load %arg23[%c1_415, %c0_416, %c0_417] : memref<6x1x32xf32, #tpu.memory_space<vmem>>, vector<1x1x32xf32>
    %695 = vector.shape_cast %694 : vector<1x1x32xf32> to vector<1x32xf32>
    %696 = vector.broadcast %695 : vector<1x32xf32> to vector<4x32xf32>
    %697 = arith.addf %693, %696 : vector<4x32xf32>
    %698 = vector.extract_strided_slice %683 {offsets = [0, 0], sizes = [4, 16], strides = [1, 1]} : vector<4x32xf32> to vector<4x16xf32>
    %699 = vector.shape_cast %698 : vector<4x16xf32> to vector<2x2x16xf32>
    %700 = vector.extract_strided_slice %690 {offsets = [0, 0], sizes = [4, 16], strides = [1, 1]} : vector<4x32xf32> to vector<4x16xf32>
    %701 = vector.shape_cast %700 : vector<4x16xf32> to vector<2x2x16xf32>
    %702 = vector.extract_strided_slice %697 {offsets = [0, 0], sizes = [4, 16], strides = [1, 1]} : vector<4x32xf32> to vector<4x16xf32>
    %703 = vector.shape_cast %702 : vector<4x16xf32> to vector<2x2x16xf32>
    %704 = vector.shape_cast %699 : vector<2x2x16xf32> to vector<2x1x2x16xf32>
    %705 = vector.shape_cast %701 : vector<2x2x16xf32> to vector<1x2x2x16xf32>
    %706 = vector.broadcast %704 : vector<2x1x2x16xf32> to vector<2x2x2x16xf32>
    %707 = vector.broadcast %705 : vector<1x2x2x16xf32> to vector<2x2x2x16xf32>
    %708 = arith.mulf %706, %707 : vector<2x2x2x16xf32>
    %cst_418 = arith.constant dense<0.000000e+00> : vector<2x2x2xf32>
    %709 = vector.multi_reduction <add>, %708, %cst_418 [3] : vector<2x2x2x16xf32> to vector<2x2x2xf32>
    %710 = vector.shape_cast %709 : vector<2x2x2xf32> to vector<2x2x2x1xf32>
    %711 = arith.addf %710, %523 : vector<2x2x2x1xf32>
    %cst_419 = arith.constant dense<0xFF800000> : vector<2x2x1xf32>
    %712 = vector.multi_reduction <maximumf>, %711, %cst_419 [1] : vector<2x2x2x1xf32> to vector<2x2x1xf32>
    %713 = vector.shape_cast %712 : vector<2x2x1xf32> to vector<2x1x2x1xf32>
    %714 = vector.broadcast %713 : vector<2x1x2x1xf32> to vector<2x2x2x1xf32>
    %715 = arith.subf %711, %714 : vector<2x2x2x1xf32>
    %716 = math.exp %715 : vector<2x2x2x1xf32>
    %cst_420 = arith.constant dense<0.000000e+00> : vector<2x2x1xf32>
    %717 = vector.multi_reduction <add>, %716, %cst_420 [1] : vector<2x2x2x1xf32> to vector<2x2x1xf32>
    %718 = vector.shape_cast %717 : vector<2x2x1xf32> to vector<2x1x2x1xf32>
    %719 = vector.broadcast %718 : vector<2x1x2x1xf32> to vector<2x2x2x1xf32>
    %720 = arith.divf %716, %719 : vector<2x2x2x1xf32>
    %721 = vector.shape_cast %703 : vector<2x2x16xf32> to vector<1x2x2x16xf32>
    %722 = vector.broadcast %720 : vector<2x2x2x1xf32> to vector<2x2x2x16xf32>
    %723 = vector.broadcast %721 : vector<1x2x2x16xf32> to vector<2x2x2x16xf32>
    %724 = arith.mulf %722, %723 : vector<2x2x2x16xf32>
    %cst_421 = arith.constant dense<0.000000e+00> : vector<2x2x16xf32>
    %725 = vector.multi_reduction <add>, %724, %cst_421 [1] : vector<2x2x2x16xf32> to vector<2x2x16xf32>
    %726 = vector.shape_cast %725 : vector<2x2x16xf32> to vector<4x16xf32>
    %727 = vector.extract_strided_slice %683 {offsets = [0, 16], sizes = [4, 16], strides = [1, 1]} : vector<4x32xf32> to vector<4x16xf32>
    %728 = vector.shape_cast %727 : vector<4x16xf32> to vector<2x2x16xf32>
    %729 = vector.extract_strided_slice %690 {offsets = [0, 16], sizes = [4, 16], strides = [1, 1]} : vector<4x32xf32> to vector<4x16xf32>
    %730 = vector.shape_cast %729 : vector<4x16xf32> to vector<2x2x16xf32>
    %731 = vector.extract_strided_slice %697 {offsets = [0, 16], sizes = [4, 16], strides = [1, 1]} : vector<4x32xf32> to vector<4x16xf32>
    %732 = vector.shape_cast %731 : vector<4x16xf32> to vector<2x2x16xf32>
    %733 = vector.shape_cast %728 : vector<2x2x16xf32> to vector<2x1x2x16xf32>
    %734 = vector.shape_cast %730 : vector<2x2x16xf32> to vector<1x2x2x16xf32>
    %735 = vector.broadcast %733 : vector<2x1x2x16xf32> to vector<2x2x2x16xf32>
    %736 = vector.broadcast %734 : vector<1x2x2x16xf32> to vector<2x2x2x16xf32>
    %737 = arith.mulf %735, %736 : vector<2x2x2x16xf32>
    %cst_422 = arith.constant dense<0.000000e+00> : vector<2x2x2xf32>
    %738 = vector.multi_reduction <add>, %737, %cst_422 [3] : vector<2x2x2x16xf32> to vector<2x2x2xf32>
    %739 = vector.shape_cast %738 : vector<2x2x2xf32> to vector<2x2x2x1xf32>
    %740 = arith.addf %739, %523 : vector<2x2x2x1xf32>
    %cst_423 = arith.constant dense<0xFF800000> : vector<2x2x1xf32>
    %741 = vector.multi_reduction <maximumf>, %740, %cst_423 [1] : vector<2x2x2x1xf32> to vector<2x2x1xf32>
    %742 = vector.shape_cast %741 : vector<2x2x1xf32> to vector<2x1x2x1xf32>
    %743 = vector.broadcast %742 : vector<2x1x2x1xf32> to vector<2x2x2x1xf32>
    %744 = arith.subf %740, %743 : vector<2x2x2x1xf32>
    %745 = math.exp %744 : vector<2x2x2x1xf32>
    %cst_424 = arith.constant dense<0.000000e+00> : vector<2x2x1xf32>
    %746 = vector.multi_reduction <add>, %745, %cst_424 [1] : vector<2x2x2x1xf32> to vector<2x2x1xf32>
    %747 = vector.shape_cast %746 : vector<2x2x1xf32> to vector<2x1x2x1xf32>
    %748 = vector.broadcast %747 : vector<2x1x2x1xf32> to vector<2x2x2x1xf32>
    %749 = arith.divf %745, %748 : vector<2x2x2x1xf32>
    %750 = vector.shape_cast %732 : vector<2x2x16xf32> to vector<1x2x2x16xf32>
    %751 = vector.broadcast %749 : vector<2x2x2x1xf32> to vector<2x2x2x16xf32>
    %752 = vector.broadcast %750 : vector<1x2x2x16xf32> to vector<2x2x2x16xf32>
    %753 = arith.mulf %751, %752 : vector<2x2x2x16xf32>
    %cst_425 = arith.constant dense<0.000000e+00> : vector<2x2x16xf32>
    %754 = vector.multi_reduction <add>, %753, %cst_425 [1] : vector<2x2x2x16xf32> to vector<2x2x16xf32>
    %755 = vector.shape_cast %754 : vector<2x2x16xf32> to vector<4x16xf32>
    %756 = tpu.concatenate %726, %755 in 1 : vector<4x16xf32>, vector<4x16xf32> -> vector<4x32xf32>
    %c1_426 = arith.constant 1 : index
    %c0_427 = arith.constant 0 : index
    %c0_428 = arith.constant 0 : index
    %757 = vector.load %arg24[%c1_426, %c0_427, %c0_428] : memref<6x32x32xf32, #tpu.memory_space<vmem>>, vector<1x32x32xf32>
    %758 = vector.shape_cast %757 : vector<1x32x32xf32> to vector<32x32xf32>
    %cst_429 = arith.constant dense<0.000000e+00> : vector<4x32xf32>
    %759 = tpu.matmul %756, %758, %cst_429 {dimension_numbers = #tpu.dot_dimension_numbers<[1], [0], [0], [1], [0, 0, 1, 1], [], []>} : vector<4x32xf32>, vector<32x32xf32>, vector<4x32xf32> -> vector<4x32xf32>
    %c1_430 = arith.constant 1 : index
    %c0_431 = arith.constant 0 : index
    %c0_432 = arith.constant 0 : index
    %760 = vector.load %arg25[%c1_430, %c0_431, %c0_432] : memref<6x1x32xf32, #tpu.memory_space<vmem>>, vector<1x1x32xf32>
    %761 = vector.shape_cast %760 : vector<1x1x32xf32> to vector<1x32xf32>
    %762 = vector.broadcast %761 : vector<1x32xf32> to vector<4x32xf32>
    %763 = arith.addf %759, %762 : vector<4x32xf32>
    %764 = arith.addf %676, %763 : vector<4x32xf32>
    %c1_433 = arith.constant 1 : index
    %c0_434 = arith.constant 0 : index
    %c0_435 = arith.constant 0 : index
    %765 = vector.load %arg26[%c1_433, %c0_434, %c0_435] : memref<6x1x32xf32, #tpu.memory_space<vmem>>, vector<1x1x32xf32>
    %766 = vector.shape_cast %765 : vector<1x1x32xf32> to vector<1x32xf32>
    %c1_436 = arith.constant 1 : index
    %c0_437 = arith.constant 0 : index
    %c0_438 = arith.constant 0 : index
    %767 = vector.load %arg27[%c1_436, %c0_437, %c0_438] : memref<6x1x32xf32, #tpu.memory_space<vmem>>, vector<1x1x32xf32>
    %768 = vector.shape_cast %767 : vector<1x1x32xf32> to vector<1x32xf32>
    %cst_439 = arith.constant dense<0.000000e+00> : vector<4xf32>
    %769 = vector.multi_reduction <add>, %764, %cst_439 [1] : vector<4x32xf32> to vector<4xf32>
    %770 = vector.shape_cast %769 : vector<4xf32> to vector<4x1xf32>
    %cst_440 = arith.constant 3.200000e+01 : f32
    %771 = vector.broadcast %cst_440 : f32 to vector<4x1xf32>
    %772 = arith.divf %770, %771 : vector<4x1xf32>
    %773 = vector.broadcast %772 : vector<4x1xf32> to vector<4x32xf32>
    %774 = arith.subf %764, %773 : vector<4x32xf32>
    %775 = arith.mulf %774, %774 : vector<4x32xf32>
    %cst_441 = arith.constant dense<0.000000e+00> : vector<4xf32>
    %776 = vector.multi_reduction <add>, %775, %cst_441 [1] : vector<4x32xf32> to vector<4xf32>
    %777 = vector.shape_cast %776 : vector<4xf32> to vector<4x1xf32>
    %cst_442 = arith.constant 3.200000e+01 : f32
    %778 = vector.broadcast %cst_442 : f32 to vector<4x1xf32>
    %779 = arith.divf %777, %778 : vector<4x1xf32>
    %cst_443 = arith.constant 9.99999974E-6 : f32
    %780 = vector.broadcast %cst_443 : f32 to vector<4x1xf32>
    %781 = arith.addf %779, %780 : vector<4x1xf32>
    %782 = math.rsqrt %781 : vector<4x1xf32>
    %783 = vector.broadcast %782 : vector<4x1xf32> to vector<4x32xf32>
    %784 = arith.mulf %774, %783 : vector<4x32xf32>
    %785 = vector.broadcast %766 : vector<1x32xf32> to vector<4x32xf32>
    %786 = arith.mulf %784, %785 : vector<4x32xf32>
    %787 = vector.broadcast %768 : vector<1x32xf32> to vector<4x32xf32>
    %788 = arith.addf %786, %787 : vector<4x32xf32>
    %c1_444 = arith.constant 1 : index
    %c0_445 = arith.constant 0 : index
    %c0_446 = arith.constant 0 : index
    %789 = vector.load %arg28[%c1_444, %c0_445, %c0_446] : memref<6x32x64xf32, #tpu.memory_space<vmem>>, vector<1x32x64xf32>
    %790 = vector.shape_cast %789 : vector<1x32x64xf32> to vector<32x64xf32>
    %cst_447 = arith.constant dense<0.000000e+00> : vector<4x64xf32>
    %791 = tpu.matmul %788, %790, %cst_447 {dimension_numbers = #tpu.dot_dimension_numbers<[1], [0], [0], [1], [0, 0, 1, 1], [], []>} : vector<4x32xf32>, vector<32x64xf32>, vector<4x64xf32> -> vector<4x64xf32>
    %c1_448 = arith.constant 1 : index
    %c0_449 = arith.constant 0 : index
    %c0_450 = arith.constant 0 : index
    %792 = vector.load %arg29[%c1_448, %c0_449, %c0_450] : memref<6x1x64xf32, #tpu.memory_space<vmem>>, vector<1x1x64xf32>
    %793 = vector.shape_cast %792 : vector<1x1x64xf32> to vector<1x64xf32>
    %794 = vector.broadcast %793 : vector<1x64xf32> to vector<4x64xf32>
    %795 = arith.addf %791, %794 : vector<4x64xf32>
    %cst_451 = arith.constant 0.000000e+00 : f32
    %796 = vector.broadcast %cst_451 : f32 to vector<4x64xf32>
    %797 = arith.maximumf %795, %796 : vector<4x64xf32>
    %c1_452 = arith.constant 1 : index
    %c0_453 = arith.constant 0 : index
    %c0_454 = arith.constant 0 : index
    %798 = vector.load %arg30[%c1_452, %c0_453, %c0_454] : memref<6x64x32xf32, #tpu.memory_space<vmem>>, vector<1x64x32xf32>
    %799 = vector.shape_cast %798 : vector<1x64x32xf32> to vector<64x32xf32>
    %cst_455 = arith.constant dense<0.000000e+00> : vector<4x32xf32>
    %800 = tpu.matmul %797, %799, %cst_455 {dimension_numbers = #tpu.dot_dimension_numbers<[1], [0], [0], [1], [0, 0, 1, 1], [], []>} : vector<4x64xf32>, vector<64x32xf32>, vector<4x32xf32> -> vector<4x32xf32>
    %c1_456 = arith.constant 1 : index
    %c0_457 = arith.constant 0 : index
    %c0_458 = arith.constant 0 : index
    %801 = vector.load %arg31[%c1_456, %c0_457, %c0_458] : memref<6x1x32xf32, #tpu.memory_space<vmem>>, vector<1x1x32xf32>
    %802 = vector.shape_cast %801 : vector<1x1x32xf32> to vector<1x32xf32>
    %803 = vector.broadcast %802 : vector<1x32xf32> to vector<4x32xf32>
    %804 = arith.addf %800, %803 : vector<4x32xf32>
    %805 = arith.addf %788, %804 : vector<4x32xf32>
    %c1_459 = arith.constant 1 : index
    %c0_460 = arith.constant 0 : index
    %c0_461 = arith.constant 0 : index
    %806 = vector.load %arg32[%c1_459, %c0_460, %c0_461] : memref<6x1x32xf32, #tpu.memory_space<vmem>>, vector<1x1x32xf32>
    %807 = vector.shape_cast %806 : vector<1x1x32xf32> to vector<1x32xf32>
    %c1_462 = arith.constant 1 : index
    %c0_463 = arith.constant 0 : index
    %c0_464 = arith.constant 0 : index
    %808 = vector.load %arg33[%c1_462, %c0_463, %c0_464] : memref<6x1x32xf32, #tpu.memory_space<vmem>>, vector<1x1x32xf32>
    %809 = vector.shape_cast %808 : vector<1x1x32xf32> to vector<1x32xf32>
    %cst_465 = arith.constant dense<0.000000e+00> : vector<4xf32>
    %810 = vector.multi_reduction <add>, %805, %cst_465 [1] : vector<4x32xf32> to vector<4xf32>
    %811 = vector.shape_cast %810 : vector<4xf32> to vector<4x1xf32>
    %cst_466 = arith.constant 3.200000e+01 : f32
    %812 = vector.broadcast %cst_466 : f32 to vector<4x1xf32>
    %813 = arith.divf %811, %812 : vector<4x1xf32>
    %814 = vector.broadcast %813 : vector<4x1xf32> to vector<4x32xf32>
    %815 = arith.subf %805, %814 : vector<4x32xf32>
    %816 = arith.mulf %815, %815 : vector<4x32xf32>
    %cst_467 = arith.constant dense<0.000000e+00> : vector<4xf32>
    %817 = vector.multi_reduction <add>, %816, %cst_467 [1] : vector<4x32xf32> to vector<4xf32>
    %818 = vector.shape_cast %817 : vector<4xf32> to vector<4x1xf32>
    %cst_468 = arith.constant 3.200000e+01 : f32
    %819 = vector.broadcast %cst_468 : f32 to vector<4x1xf32>
    %820 = arith.divf %818, %819 : vector<4x1xf32>
    %cst_469 = arith.constant 9.99999974E-6 : f32
    %821 = vector.broadcast %cst_469 : f32 to vector<4x1xf32>
    %822 = arith.addf %820, %821 : vector<4x1xf32>
    %823 = math.rsqrt %822 : vector<4x1xf32>
    %824 = vector.broadcast %823 : vector<4x1xf32> to vector<4x32xf32>
    %825 = arith.mulf %815, %824 : vector<4x32xf32>
    %826 = vector.broadcast %807 : vector<1x32xf32> to vector<4x32xf32>
    %827 = arith.mulf %825, %826 : vector<4x32xf32>
    %828 = vector.broadcast %809 : vector<1x32xf32> to vector<4x32xf32>
    %829 = arith.addf %827, %828 : vector<4x32xf32>
    %c2_470 = arith.constant 2 : index
    %c0_471 = arith.constant 0 : index
    %c0_472 = arith.constant 0 : index
    %830 = vector.load %arg18[%c2_470, %c0_471, %c0_472] : memref<6x32x32xf32, #tpu.memory_space<vmem>>, vector<1x32x32xf32>
    %831 = vector.shape_cast %830 : vector<1x32x32xf32> to vector<32x32xf32>
    %cst_473 = arith.constant dense<0.000000e+00> : vector<4x32xf32>
    %832 = tpu.matmul %829, %831, %cst_473 {dimension_numbers = #tpu.dot_dimension_numbers<[1], [0], [0], [1], [0, 0, 1, 1], [], []>} : vector<4x32xf32>, vector<32x32xf32>, vector<4x32xf32> -> vector<4x32xf32>
    %c2_474 = arith.constant 2 : index
    %c0_475 = arith.constant 0 : index
    %c0_476 = arith.constant 0 : index
    %833 = vector.load %arg19[%c2_474, %c0_475, %c0_476] : memref<6x1x32xf32, #tpu.memory_space<vmem>>, vector<1x1x32xf32>
    %834 = vector.shape_cast %833 : vector<1x1x32xf32> to vector<1x32xf32>
    %835 = vector.broadcast %834 : vector<1x32xf32> to vector<4x32xf32>
    %836 = arith.addf %832, %835 : vector<4x32xf32>
    %c2_477 = arith.constant 2 : index
    %c0_478 = arith.constant 0 : index
    %c0_479 = arith.constant 0 : index
    %837 = vector.load %arg20[%c2_477, %c0_478, %c0_479] : memref<6x32x32xf32, #tpu.memory_space<vmem>>, vector<1x32x32xf32>
    %838 = vector.shape_cast %837 : vector<1x32x32xf32> to vector<32x32xf32>
    %cst_480 = arith.constant dense<0.000000e+00> : vector<4x32xf32>
    %839 = tpu.matmul %829, %838, %cst_480 {dimension_numbers = #tpu.dot_dimension_numbers<[1], [0], [0], [1], [0, 0, 1, 1], [], []>} : vector<4x32xf32>, vector<32x32xf32>, vector<4x32xf32> -> vector<4x32xf32>
    %c2_481 = arith.constant 2 : index
    %c0_482 = arith.constant 0 : index
    %c0_483 = arith.constant 0 : index
    %840 = vector.load %arg21[%c2_481, %c0_482, %c0_483] : memref<6x1x32xf32, #tpu.memory_space<vmem>>, vector<1x1x32xf32>
    %841 = vector.shape_cast %840 : vector<1x1x32xf32> to vector<1x32xf32>
    %842 = vector.broadcast %841 : vector<1x32xf32> to vector<4x32xf32>
    %843 = arith.addf %839, %842 : vector<4x32xf32>
    %c2_484 = arith.constant 2 : index
    %c0_485 = arith.constant 0 : index
    %c0_486 = arith.constant 0 : index
    %844 = vector.load %arg22[%c2_484, %c0_485, %c0_486] : memref<6x32x32xf32, #tpu.memory_space<vmem>>, vector<1x32x32xf32>
    %845 = vector.shape_cast %844 : vector<1x32x32xf32> to vector<32x32xf32>
    %cst_487 = arith.constant dense<0.000000e+00> : vector<4x32xf32>
    %846 = tpu.matmul %829, %845, %cst_487 {dimension_numbers = #tpu.dot_dimension_numbers<[1], [0], [0], [1], [0, 0, 1, 1], [], []>} : vector<4x32xf32>, vector<32x32xf32>, vector<4x32xf32> -> vector<4x32xf32>
    %c2_488 = arith.constant 2 : index
    %c0_489 = arith.constant 0 : index
    %c0_490 = arith.constant 0 : index
    %847 = vector.load %arg23[%c2_488, %c0_489, %c0_490] : memref<6x1x32xf32, #tpu.memory_space<vmem>>, vector<1x1x32xf32>
    %848 = vector.shape_cast %847 : vector<1x1x32xf32> to vector<1x32xf32>
    %849 = vector.broadcast %848 : vector<1x32xf32> to vector<4x32xf32>
    %850 = arith.addf %846, %849 : vector<4x32xf32>
    %851 = vector.extract_strided_slice %836 {offsets = [0, 0], sizes = [4, 16], strides = [1, 1]} : vector<4x32xf32> to vector<4x16xf32>
    %852 = vector.shape_cast %851 : vector<4x16xf32> to vector<2x2x16xf32>
    %853 = vector.extract_strided_slice %843 {offsets = [0, 0], sizes = [4, 16], strides = [1, 1]} : vector<4x32xf32> to vector<4x16xf32>
    %854 = vector.shape_cast %853 : vector<4x16xf32> to vector<2x2x16xf32>
    %855 = vector.extract_strided_slice %850 {offsets = [0, 0], sizes = [4, 16], strides = [1, 1]} : vector<4x32xf32> to vector<4x16xf32>
    %856 = vector.shape_cast %855 : vector<4x16xf32> to vector<2x2x16xf32>
    %857 = vector.shape_cast %852 : vector<2x2x16xf32> to vector<2x1x2x16xf32>
    %858 = vector.shape_cast %854 : vector<2x2x16xf32> to vector<1x2x2x16xf32>
    %859 = vector.broadcast %857 : vector<2x1x2x16xf32> to vector<2x2x2x16xf32>
    %860 = vector.broadcast %858 : vector<1x2x2x16xf32> to vector<2x2x2x16xf32>
    %861 = arith.mulf %859, %860 : vector<2x2x2x16xf32>
    %cst_491 = arith.constant dense<0.000000e+00> : vector<2x2x2xf32>
    %862 = vector.multi_reduction <add>, %861, %cst_491 [3] : vector<2x2x2x16xf32> to vector<2x2x2xf32>
    %863 = vector.shape_cast %862 : vector<2x2x2xf32> to vector<2x2x2x1xf32>
    %864 = arith.addf %863, %523 : vector<2x2x2x1xf32>
    %cst_492 = arith.constant dense<0xFF800000> : vector<2x2x1xf32>
    %865 = vector.multi_reduction <maximumf>, %864, %cst_492 [1] : vector<2x2x2x1xf32> to vector<2x2x1xf32>
    %866 = vector.shape_cast %865 : vector<2x2x1xf32> to vector<2x1x2x1xf32>
    %867 = vector.broadcast %866 : vector<2x1x2x1xf32> to vector<2x2x2x1xf32>
    %868 = arith.subf %864, %867 : vector<2x2x2x1xf32>
    %869 = math.exp %868 : vector<2x2x2x1xf32>
    %cst_493 = arith.constant dense<0.000000e+00> : vector<2x2x1xf32>
    %870 = vector.multi_reduction <add>, %869, %cst_493 [1] : vector<2x2x2x1xf32> to vector<2x2x1xf32>
    %871 = vector.shape_cast %870 : vector<2x2x1xf32> to vector<2x1x2x1xf32>
    %872 = vector.broadcast %871 : vector<2x1x2x1xf32> to vector<2x2x2x1xf32>
    %873 = arith.divf %869, %872 : vector<2x2x2x1xf32>
    %874 = vector.shape_cast %856 : vector<2x2x16xf32> to vector<1x2x2x16xf32>
    %875 = vector.broadcast %873 : vector<2x2x2x1xf32> to vector<2x2x2x16xf32>
    %876 = vector.broadcast %874 : vector<1x2x2x16xf32> to vector<2x2x2x16xf32>
    %877 = arith.mulf %875, %876 : vector<2x2x2x16xf32>
    %cst_494 = arith.constant dense<0.000000e+00> : vector<2x2x16xf32>
    %878 = vector.multi_reduction <add>, %877, %cst_494 [1] : vector<2x2x2x16xf32> to vector<2x2x16xf32>
    %879 = vector.shape_cast %878 : vector<2x2x16xf32> to vector<4x16xf32>
    %880 = vector.extract_strided_slice %836 {offsets = [0, 16], sizes = [4, 16], strides = [1, 1]} : vector<4x32xf32> to vector<4x16xf32>
    %881 = vector.shape_cast %880 : vector<4x16xf32> to vector<2x2x16xf32>
    %882 = vector.extract_strided_slice %843 {offsets = [0, 16], sizes = [4, 16], strides = [1, 1]} : vector<4x32xf32> to vector<4x16xf32>
    %883 = vector.shape_cast %882 : vector<4x16xf32> to vector<2x2x16xf32>
    %884 = vector.extract_strided_slice %850 {offsets = [0, 16], sizes = [4, 16], strides = [1, 1]} : vector<4x32xf32> to vector<4x16xf32>
    %885 = vector.shape_cast %884 : vector<4x16xf32> to vector<2x2x16xf32>
    %886 = vector.shape_cast %881 : vector<2x2x16xf32> to vector<2x1x2x16xf32>
    %887 = vector.shape_cast %883 : vector<2x2x16xf32> to vector<1x2x2x16xf32>
    %888 = vector.broadcast %886 : vector<2x1x2x16xf32> to vector<2x2x2x16xf32>
    %889 = vector.broadcast %887 : vector<1x2x2x16xf32> to vector<2x2x2x16xf32>
    %890 = arith.mulf %888, %889 : vector<2x2x2x16xf32>
    %cst_495 = arith.constant dense<0.000000e+00> : vector<2x2x2xf32>
    %891 = vector.multi_reduction <add>, %890, %cst_495 [3] : vector<2x2x2x16xf32> to vector<2x2x2xf32>
    %892 = vector.shape_cast %891 : vector<2x2x2xf32> to vector<2x2x2x1xf32>
    %893 = arith.addf %892, %523 : vector<2x2x2x1xf32>
    %cst_496 = arith.constant dense<0xFF800000> : vector<2x2x1xf32>
    %894 = vector.multi_reduction <maximumf>, %893, %cst_496 [1] : vector<2x2x2x1xf32> to vector<2x2x1xf32>
    %895 = vector.shape_cast %894 : vector<2x2x1xf32> to vector<2x1x2x1xf32>
    %896 = vector.broadcast %895 : vector<2x1x2x1xf32> to vector<2x2x2x1xf32>
    %897 = arith.subf %893, %896 : vector<2x2x2x1xf32>
    %898 = math.exp %897 : vector<2x2x2x1xf32>
    %cst_497 = arith.constant dense<0.000000e+00> : vector<2x2x1xf32>
    %899 = vector.multi_reduction <add>, %898, %cst_497 [1] : vector<2x2x2x1xf32> to vector<2x2x1xf32>
    %900 = vector.shape_cast %899 : vector<2x2x1xf32> to vector<2x1x2x1xf32>
    %901 = vector.broadcast %900 : vector<2x1x2x1xf32> to vector<2x2x2x1xf32>
    %902 = arith.divf %898, %901 : vector<2x2x2x1xf32>
    %903 = vector.shape_cast %885 : vector<2x2x16xf32> to vector<1x2x2x16xf32>
    %904 = vector.broadcast %902 : vector<2x2x2x1xf32> to vector<2x2x2x16xf32>
    %905 = vector.broadcast %903 : vector<1x2x2x16xf32> to vector<2x2x2x16xf32>
    %906 = arith.mulf %904, %905 : vector<2x2x2x16xf32>
    %cst_498 = arith.constant dense<0.000000e+00> : vector<2x2x16xf32>
    %907 = vector.multi_reduction <add>, %906, %cst_498 [1] : vector<2x2x2x16xf32> to vector<2x2x16xf32>
    %908 = vector.shape_cast %907 : vector<2x2x16xf32> to vector<4x16xf32>
    %909 = tpu.concatenate %879, %908 in 1 : vector<4x16xf32>, vector<4x16xf32> -> vector<4x32xf32>
    %c2_499 = arith.constant 2 : index
    %c0_500 = arith.constant 0 : index
    %c0_501 = arith.constant 0 : index
    %910 = vector.load %arg24[%c2_499, %c0_500, %c0_501] : memref<6x32x32xf32, #tpu.memory_space<vmem>>, vector<1x32x32xf32>
    %911 = vector.shape_cast %910 : vector<1x32x32xf32> to vector<32x32xf32>
    %cst_502 = arith.constant dense<0.000000e+00> : vector<4x32xf32>
    %912 = tpu.matmul %909, %911, %cst_502 {dimension_numbers = #tpu.dot_dimension_numbers<[1], [0], [0], [1], [0, 0, 1, 1], [], []>} : vector<4x32xf32>, vector<32x32xf32>, vector<4x32xf32> -> vector<4x32xf32>
    %c2_503 = arith.constant 2 : index
    %c0_504 = arith.constant 0 : index
    %c0_505 = arith.constant 0 : index
    %913 = vector.load %arg25[%c2_503, %c0_504, %c0_505] : memref<6x1x32xf32, #tpu.memory_space<vmem>>, vector<1x1x32xf32>
    %914 = vector.shape_cast %913 : vector<1x1x32xf32> to vector<1x32xf32>
    %915 = vector.broadcast %914 : vector<1x32xf32> to vector<4x32xf32>
    %916 = arith.addf %912, %915 : vector<4x32xf32>
    %917 = arith.addf %829, %916 : vector<4x32xf32>
    %c2_506 = arith.constant 2 : index
    %c0_507 = arith.constant 0 : index
    %c0_508 = arith.constant 0 : index
    %918 = vector.load %arg26[%c2_506, %c0_507, %c0_508] : memref<6x1x32xf32, #tpu.memory_space<vmem>>, vector<1x1x32xf32>
    %919 = vector.shape_cast %918 : vector<1x1x32xf32> to vector<1x32xf32>
    %c2_509 = arith.constant 2 : index
    %c0_510 = arith.constant 0 : index
    %c0_511 = arith.constant 0 : index
    %920 = vector.load %arg27[%c2_509, %c0_510, %c0_511] : memref<6x1x32xf32, #tpu.memory_space<vmem>>, vector<1x1x32xf32>
    %921 = vector.shape_cast %920 : vector<1x1x32xf32> to vector<1x32xf32>
    %cst_512 = arith.constant dense<0.000000e+00> : vector<4xf32>
    %922 = vector.multi_reduction <add>, %917, %cst_512 [1] : vector<4x32xf32> to vector<4xf32>
    %923 = vector.shape_cast %922 : vector<4xf32> to vector<4x1xf32>
    %cst_513 = arith.constant 3.200000e+01 : f32
    %924 = vector.broadcast %cst_513 : f32 to vector<4x1xf32>
    %925 = arith.divf %923, %924 : vector<4x1xf32>
    %926 = vector.broadcast %925 : vector<4x1xf32> to vector<4x32xf32>
    %927 = arith.subf %917, %926 : vector<4x32xf32>
    %928 = arith.mulf %927, %927 : vector<4x32xf32>
    %cst_514 = arith.constant dense<0.000000e+00> : vector<4xf32>
    %929 = vector.multi_reduction <add>, %928, %cst_514 [1] : vector<4x32xf32> to vector<4xf32>
    %930 = vector.shape_cast %929 : vector<4xf32> to vector<4x1xf32>
    %cst_515 = arith.constant 3.200000e+01 : f32
    %931 = vector.broadcast %cst_515 : f32 to vector<4x1xf32>
    %932 = arith.divf %930, %931 : vector<4x1xf32>
    %cst_516 = arith.constant 9.99999974E-6 : f32
    %933 = vector.broadcast %cst_516 : f32 to vector<4x1xf32>
    %934 = arith.addf %932, %933 : vector<4x1xf32>
    %935 = math.rsqrt %934 : vector<4x1xf32>
    %936 = vector.broadcast %935 : vector<4x1xf32> to vector<4x32xf32>
    %937 = arith.mulf %927, %936 : vector<4x32xf32>
    %938 = vector.broadcast %919 : vector<1x32xf32> to vector<4x32xf32>
    %939 = arith.mulf %937, %938 : vector<4x32xf32>
    %940 = vector.broadcast %921 : vector<1x32xf32> to vector<4x32xf32>
    %941 = arith.addf %939, %940 : vector<4x32xf32>
    %c2_517 = arith.constant 2 : index
    %c0_518 = arith.constant 0 : index
    %c0_519 = arith.constant 0 : index
    %942 = vector.load %arg28[%c2_517, %c0_518, %c0_519] : memref<6x32x64xf32, #tpu.memory_space<vmem>>, vector<1x32x64xf32>
    %943 = vector.shape_cast %942 : vector<1x32x64xf32> to vector<32x64xf32>
    %cst_520 = arith.constant dense<0.000000e+00> : vector<4x64xf32>
    %944 = tpu.matmul %941, %943, %cst_520 {dimension_numbers = #tpu.dot_dimension_numbers<[1], [0], [0], [1], [0, 0, 1, 1], [], []>} : vector<4x32xf32>, vector<32x64xf32>, vector<4x64xf32> -> vector<4x64xf32>
    %c2_521 = arith.constant 2 : index
    %c0_522 = arith.constant 0 : index
    %c0_523 = arith.constant 0 : index
    %945 = vector.load %arg29[%c2_521, %c0_522, %c0_523] : memref<6x1x64xf32, #tpu.memory_space<vmem>>, vector<1x1x64xf32>
    %946 = vector.shape_cast %945 : vector<1x1x64xf32> to vector<1x64xf32>
    %947 = vector.broadcast %946 : vector<1x64xf32> to vector<4x64xf32>
    %948 = arith.addf %944, %947 : vector<4x64xf32>
    %cst_524 = arith.constant 0.000000e+00 : f32
    %949 = vector.broadcast %cst_524 : f32 to vector<4x64xf32>
    %950 = arith.maximumf %948, %949 : vector<4x64xf32>
    %c2_525 = arith.constant 2 : index
    %c0_526 = arith.constant 0 : index
    %c0_527 = arith.constant 0 : index
    %951 = vector.load %arg30[%c2_525, %c0_526, %c0_527] : memref<6x64x32xf32, #tpu.memory_space<vmem>>, vector<1x64x32xf32>
    %952 = vector.shape_cast %951 : vector<1x64x32xf32> to vector<64x32xf32>
    %cst_528 = arith.constant dense<0.000000e+00> : vector<4x32xf32>
    %953 = tpu.matmul %950, %952, %cst_528 {dimension_numbers = #tpu.dot_dimension_numbers<[1], [0], [0], [1], [0, 0, 1, 1], [], []>} : vector<4x64xf32>, vector<64x32xf32>, vector<4x32xf32> -> vector<4x32xf32>
    %c2_529 = arith.constant 2 : index
    %c0_530 = arith.constant 0 : index
    %c0_531 = arith.constant 0 : index
    %954 = vector.load %arg31[%c2_529, %c0_530, %c0_531] : memref<6x1x32xf32, #tpu.memory_space<vmem>>, vector<1x1x32xf32>
    %955 = vector.shape_cast %954 : vector<1x1x32xf32> to vector<1x32xf32>
    %956 = vector.broadcast %955 : vector<1x32xf32> to vector<4x32xf32>
    %957 = arith.addf %953, %956 : vector<4x32xf32>
    %958 = arith.addf %941, %957 : vector<4x32xf32>
    %c2_532 = arith.constant 2 : index
    %c0_533 = arith.constant 0 : index
    %c0_534 = arith.constant 0 : index
    %959 = vector.load %arg32[%c2_532, %c0_533, %c0_534] : memref<6x1x32xf32, #tpu.memory_space<vmem>>, vector<1x1x32xf32>
    %960 = vector.shape_cast %959 : vector<1x1x32xf32> to vector<1x32xf32>
    %c2_535 = arith.constant 2 : index
    %c0_536 = arith.constant 0 : index
    %c0_537 = arith.constant 0 : index
    %961 = vector.load %arg33[%c2_535, %c0_536, %c0_537] : memref<6x1x32xf32, #tpu.memory_space<vmem>>, vector<1x1x32xf32>
    %962 = vector.shape_cast %961 : vector<1x1x32xf32> to vector<1x32xf32>
    %cst_538 = arith.constant dense<0.000000e+00> : vector<4xf32>
    %963 = vector.multi_reduction <add>, %958, %cst_538 [1] : vector<4x32xf32> to vector<4xf32>
    %964 = vector.shape_cast %963 : vector<4xf32> to vector<4x1xf32>
    %cst_539 = arith.constant 3.200000e+01 : f32
    %965 = vector.broadcast %cst_539 : f32 to vector<4x1xf32>
    %966 = arith.divf %964, %965 : vector<4x1xf32>
    %967 = vector.broadcast %966 : vector<4x1xf32> to vector<4x32xf32>
    %968 = arith.subf %958, %967 : vector<4x32xf32>
    %969 = arith.mulf %968, %968 : vector<4x32xf32>
    %cst_540 = arith.constant dense<0.000000e+00> : vector<4xf32>
    %970 = vector.multi_reduction <add>, %969, %cst_540 [1] : vector<4x32xf32> to vector<4xf32>
    %971 = vector.shape_cast %970 : vector<4xf32> to vector<4x1xf32>
    %cst_541 = arith.constant 3.200000e+01 : f32
    %972 = vector.broadcast %cst_541 : f32 to vector<4x1xf32>
    %973 = arith.divf %971, %972 : vector<4x1xf32>
    %cst_542 = arith.constant 9.99999974E-6 : f32
    %974 = vector.broadcast %cst_542 : f32 to vector<4x1xf32>
    %975 = arith.addf %973, %974 : vector<4x1xf32>
    %976 = math.rsqrt %975 : vector<4x1xf32>
    %977 = vector.broadcast %976 : vector<4x1xf32> to vector<4x32xf32>
    %978 = arith.mulf %968, %977 : vector<4x32xf32>
    %979 = vector.broadcast %960 : vector<1x32xf32> to vector<4x32xf32>
    %980 = arith.mulf %978, %979 : vector<4x32xf32>
    %981 = vector.broadcast %962 : vector<1x32xf32> to vector<4x32xf32>
    %982 = arith.addf %980, %981 : vector<4x32xf32>
    %c3_543 = arith.constant 3 : index
    %c0_544 = arith.constant 0 : index
    %c0_545 = arith.constant 0 : index
    %983 = vector.load %arg18[%c3_543, %c0_544, %c0_545] : memref<6x32x32xf32, #tpu.memory_space<vmem>>, vector<1x32x32xf32>
    %984 = vector.shape_cast %983 : vector<1x32x32xf32> to vector<32x32xf32>
    %cst_546 = arith.constant dense<0.000000e+00> : vector<4x32xf32>
    %985 = tpu.matmul %982, %984, %cst_546 {dimension_numbers = #tpu.dot_dimension_numbers<[1], [0], [0], [1], [0, 0, 1, 1], [], []>} : vector<4x32xf32>, vector<32x32xf32>, vector<4x32xf32> -> vector<4x32xf32>
    %c3_547 = arith.constant 3 : index
    %c0_548 = arith.constant 0 : index
    %c0_549 = arith.constant 0 : index
    %986 = vector.load %arg19[%c3_547, %c0_548, %c0_549] : memref<6x1x32xf32, #tpu.memory_space<vmem>>, vector<1x1x32xf32>
    %987 = vector.shape_cast %986 : vector<1x1x32xf32> to vector<1x32xf32>
    %988 = vector.broadcast %987 : vector<1x32xf32> to vector<4x32xf32>
    %989 = arith.addf %985, %988 : vector<4x32xf32>
    %c3_550 = arith.constant 3 : index
    %c0_551 = arith.constant 0 : index
    %c0_552 = arith.constant 0 : index
    %990 = vector.load %arg20[%c3_550, %c0_551, %c0_552] : memref<6x32x32xf32, #tpu.memory_space<vmem>>, vector<1x32x32xf32>
    %991 = vector.shape_cast %990 : vector<1x32x32xf32> to vector<32x32xf32>
    %cst_553 = arith.constant dense<0.000000e+00> : vector<4x32xf32>
    %992 = tpu.matmul %982, %991, %cst_553 {dimension_numbers = #tpu.dot_dimension_numbers<[1], [0], [0], [1], [0, 0, 1, 1], [], []>} : vector<4x32xf32>, vector<32x32xf32>, vector<4x32xf32> -> vector<4x32xf32>
    %c3_554 = arith.constant 3 : index
    %c0_555 = arith.constant 0 : index
    %c0_556 = arith.constant 0 : index
    %993 = vector.load %arg21[%c3_554, %c0_555, %c0_556] : memref<6x1x32xf32, #tpu.memory_space<vmem>>, vector<1x1x32xf32>
    %994 = vector.shape_cast %993 : vector<1x1x32xf32> to vector<1x32xf32>
    %995 = vector.broadcast %994 : vector<1x32xf32> to vector<4x32xf32>
    %996 = arith.addf %992, %995 : vector<4x32xf32>
    %c3_557 = arith.constant 3 : index
    %c0_558 = arith.constant 0 : index
    %c0_559 = arith.constant 0 : index
    %997 = vector.load %arg22[%c3_557, %c0_558, %c0_559] : memref<6x32x32xf32, #tpu.memory_space<vmem>>, vector<1x32x32xf32>
    %998 = vector.shape_cast %997 : vector<1x32x32xf32> to vector<32x32xf32>
    %cst_560 = arith.constant dense<0.000000e+00> : vector<4x32xf32>
    %999 = tpu.matmul %982, %998, %cst_560 {dimension_numbers = #tpu.dot_dimension_numbers<[1], [0], [0], [1], [0, 0, 1, 1], [], []>} : vector<4x32xf32>, vector<32x32xf32>, vector<4x32xf32> -> vector<4x32xf32>
    %c3_561 = arith.constant 3 : index
    %c0_562 = arith.constant 0 : index
    %c0_563 = arith.constant 0 : index
    %1000 = vector.load %arg23[%c3_561, %c0_562, %c0_563] : memref<6x1x32xf32, #tpu.memory_space<vmem>>, vector<1x1x32xf32>
    %1001 = vector.shape_cast %1000 : vector<1x1x32xf32> to vector<1x32xf32>
    %1002 = vector.broadcast %1001 : vector<1x32xf32> to vector<4x32xf32>
    %1003 = arith.addf %999, %1002 : vector<4x32xf32>
    %1004 = vector.extract_strided_slice %989 {offsets = [0, 0], sizes = [4, 16], strides = [1, 1]} : vector<4x32xf32> to vector<4x16xf32>
    %1005 = vector.shape_cast %1004 : vector<4x16xf32> to vector<2x2x16xf32>
    %1006 = vector.extract_strided_slice %996 {offsets = [0, 0], sizes = [4, 16], strides = [1, 1]} : vector<4x32xf32> to vector<4x16xf32>
    %1007 = vector.shape_cast %1006 : vector<4x16xf32> to vector<2x2x16xf32>
    %1008 = vector.extract_strided_slice %1003 {offsets = [0, 0], sizes = [4, 16], strides = [1, 1]} : vector<4x32xf32> to vector<4x16xf32>
    %1009 = vector.shape_cast %1008 : vector<4x16xf32> to vector<2x2x16xf32>
    %1010 = vector.shape_cast %1005 : vector<2x2x16xf32> to vector<2x1x2x16xf32>
    %1011 = vector.shape_cast %1007 : vector<2x2x16xf32> to vector<1x2x2x16xf32>
    %1012 = vector.broadcast %1010 : vector<2x1x2x16xf32> to vector<2x2x2x16xf32>
    %1013 = vector.broadcast %1011 : vector<1x2x2x16xf32> to vector<2x2x2x16xf32>
    %1014 = arith.mulf %1012, %1013 : vector<2x2x2x16xf32>
    %cst_564 = arith.constant dense<0.000000e+00> : vector<2x2x2xf32>
    %1015 = vector.multi_reduction <add>, %1014, %cst_564 [3] : vector<2x2x2x16xf32> to vector<2x2x2xf32>
    %1016 = vector.shape_cast %1015 : vector<2x2x2xf32> to vector<2x2x2x1xf32>
    %1017 = arith.addf %1016, %523 : vector<2x2x2x1xf32>
    %cst_565 = arith.constant dense<0xFF800000> : vector<2x2x1xf32>
    %1018 = vector.multi_reduction <maximumf>, %1017, %cst_565 [1] : vector<2x2x2x1xf32> to vector<2x2x1xf32>
    %1019 = vector.shape_cast %1018 : vector<2x2x1xf32> to vector<2x1x2x1xf32>
    %1020 = vector.broadcast %1019 : vector<2x1x2x1xf32> to vector<2x2x2x1xf32>
    %1021 = arith.subf %1017, %1020 : vector<2x2x2x1xf32>
    %1022 = math.exp %1021 : vector<2x2x2x1xf32>
    %cst_566 = arith.constant dense<0.000000e+00> : vector<2x2x1xf32>
    %1023 = vector.multi_reduction <add>, %1022, %cst_566 [1] : vector<2x2x2x1xf32> to vector<2x2x1xf32>
    %1024 = vector.shape_cast %1023 : vector<2x2x1xf32> to vector<2x1x2x1xf32>
    %1025 = vector.broadcast %1024 : vector<2x1x2x1xf32> to vector<2x2x2x1xf32>
    %1026 = arith.divf %1022, %1025 : vector<2x2x2x1xf32>
    %1027 = vector.shape_cast %1009 : vector<2x2x16xf32> to vector<1x2x2x16xf32>
    %1028 = vector.broadcast %1026 : vector<2x2x2x1xf32> to vector<2x2x2x16xf32>
    %1029 = vector.broadcast %1027 : vector<1x2x2x16xf32> to vector<2x2x2x16xf32>
    %1030 = arith.mulf %1028, %1029 : vector<2x2x2x16xf32>
    %cst_567 = arith.constant dense<0.000000e+00> : vector<2x2x16xf32>
    %1031 = vector.multi_reduction <add>, %1030, %cst_567 [1] : vector<2x2x2x16xf32> to vector<2x2x16xf32>
    %1032 = vector.shape_cast %1031 : vector<2x2x16xf32> to vector<4x16xf32>
    %1033 = vector.extract_strided_slice %989 {offsets = [0, 16], sizes = [4, 16], strides = [1, 1]} : vector<4x32xf32> to vector<4x16xf32>
    %1034 = vector.shape_cast %1033 : vector<4x16xf32> to vector<2x2x16xf32>
    %1035 = vector.extract_strided_slice %996 {offsets = [0, 16], sizes = [4, 16], strides = [1, 1]} : vector<4x32xf32> to vector<4x16xf32>
    %1036 = vector.shape_cast %1035 : vector<4x16xf32> to vector<2x2x16xf32>
    %1037 = vector.extract_strided_slice %1003 {offsets = [0, 16], sizes = [4, 16], strides = [1, 1]} : vector<4x32xf32> to vector<4x16xf32>
    %1038 = vector.shape_cast %1037 : vector<4x16xf32> to vector<2x2x16xf32>
    %1039 = vector.shape_cast %1034 : vector<2x2x16xf32> to vector<2x1x2x16xf32>
    %1040 = vector.shape_cast %1036 : vector<2x2x16xf32> to vector<1x2x2x16xf32>
    %1041 = vector.broadcast %1039 : vector<2x1x2x16xf32> to vector<2x2x2x16xf32>
    %1042 = vector.broadcast %1040 : vector<1x2x2x16xf32> to vector<2x2x2x16xf32>
    %1043 = arith.mulf %1041, %1042 : vector<2x2x2x16xf32>
    %cst_568 = arith.constant dense<0.000000e+00> : vector<2x2x2xf32>
    %1044 = vector.multi_reduction <add>, %1043, %cst_568 [3] : vector<2x2x2x16xf32> to vector<2x2x2xf32>
    %1045 = vector.shape_cast %1044 : vector<2x2x2xf32> to vector<2x2x2x1xf32>
    %1046 = arith.addf %1045, %523 : vector<2x2x2x1xf32>
    %cst_569 = arith.constant dense<0xFF800000> : vector<2x2x1xf32>
    %1047 = vector.multi_reduction <maximumf>, %1046, %cst_569 [1] : vector<2x2x2x1xf32> to vector<2x2x1xf32>
    %1048 = vector.shape_cast %1047 : vector<2x2x1xf32> to vector<2x1x2x1xf32>
    %1049 = vector.broadcast %1048 : vector<2x1x2x1xf32> to vector<2x2x2x1xf32>
    %1050 = arith.subf %1046, %1049 : vector<2x2x2x1xf32>
    %1051 = math.exp %1050 : vector<2x2x2x1xf32>
    %cst_570 = arith.constant dense<0.000000e+00> : vector<2x2x1xf32>
    %1052 = vector.multi_reduction <add>, %1051, %cst_570 [1] : vector<2x2x2x1xf32> to vector<2x2x1xf32>
    %1053 = vector.shape_cast %1052 : vector<2x2x1xf32> to vector<2x1x2x1xf32>
    %1054 = vector.broadcast %1053 : vector<2x1x2x1xf32> to vector<2x2x2x1xf32>
    %1055 = arith.divf %1051, %1054 : vector<2x2x2x1xf32>
    %1056 = vector.shape_cast %1038 : vector<2x2x16xf32> to vector<1x2x2x16xf32>
    %1057 = vector.broadcast %1055 : vector<2x2x2x1xf32> to vector<2x2x2x16xf32>
    %1058 = vector.broadcast %1056 : vector<1x2x2x16xf32> to vector<2x2x2x16xf32>
    %1059 = arith.mulf %1057, %1058 : vector<2x2x2x16xf32>
    %cst_571 = arith.constant dense<0.000000e+00> : vector<2x2x16xf32>
    %1060 = vector.multi_reduction <add>, %1059, %cst_571 [1] : vector<2x2x2x16xf32> to vector<2x2x16xf32>
    %1061 = vector.shape_cast %1060 : vector<2x2x16xf32> to vector<4x16xf32>
    %1062 = tpu.concatenate %1032, %1061 in 1 : vector<4x16xf32>, vector<4x16xf32> -> vector<4x32xf32>
    %c3_572 = arith.constant 3 : index
    %c0_573 = arith.constant 0 : index
    %c0_574 = arith.constant 0 : index
    %1063 = vector.load %arg24[%c3_572, %c0_573, %c0_574] : memref<6x32x32xf32, #tpu.memory_space<vmem>>, vector<1x32x32xf32>
    %1064 = vector.shape_cast %1063 : vector<1x32x32xf32> to vector<32x32xf32>
    %cst_575 = arith.constant dense<0.000000e+00> : vector<4x32xf32>
    %1065 = tpu.matmul %1062, %1064, %cst_575 {dimension_numbers = #tpu.dot_dimension_numbers<[1], [0], [0], [1], [0, 0, 1, 1], [], []>} : vector<4x32xf32>, vector<32x32xf32>, vector<4x32xf32> -> vector<4x32xf32>
    %c3_576 = arith.constant 3 : index
    %c0_577 = arith.constant 0 : index
    %c0_578 = arith.constant 0 : index
    %1066 = vector.load %arg25[%c3_576, %c0_577, %c0_578] : memref<6x1x32xf32, #tpu.memory_space<vmem>>, vector<1x1x32xf32>
    %1067 = vector.shape_cast %1066 : vector<1x1x32xf32> to vector<1x32xf32>
    %1068 = vector.broadcast %1067 : vector<1x32xf32> to vector<4x32xf32>
    %1069 = arith.addf %1065, %1068 : vector<4x32xf32>
    %1070 = arith.addf %982, %1069 : vector<4x32xf32>
    %c3_579 = arith.constant 3 : index
    %c0_580 = arith.constant 0 : index
    %c0_581 = arith.constant 0 : index
    %1071 = vector.load %arg26[%c3_579, %c0_580, %c0_581] : memref<6x1x32xf32, #tpu.memory_space<vmem>>, vector<1x1x32xf32>
    %1072 = vector.shape_cast %1071 : vector<1x1x32xf32> to vector<1x32xf32>
    %c3_582 = arith.constant 3 : index
    %c0_583 = arith.constant 0 : index
    %c0_584 = arith.constant 0 : index
    %1073 = vector.load %arg27[%c3_582, %c0_583, %c0_584] : memref<6x1x32xf32, #tpu.memory_space<vmem>>, vector<1x1x32xf32>
    %1074 = vector.shape_cast %1073 : vector<1x1x32xf32> to vector<1x32xf32>
    %cst_585 = arith.constant dense<0.000000e+00> : vector<4xf32>
    %1075 = vector.multi_reduction <add>, %1070, %cst_585 [1] : vector<4x32xf32> to vector<4xf32>
    %1076 = vector.shape_cast %1075 : vector<4xf32> to vector<4x1xf32>
    %cst_586 = arith.constant 3.200000e+01 : f32
    %1077 = vector.broadcast %cst_586 : f32 to vector<4x1xf32>
    %1078 = arith.divf %1076, %1077 : vector<4x1xf32>
    %1079 = vector.broadcast %1078 : vector<4x1xf32> to vector<4x32xf32>
    %1080 = arith.subf %1070, %1079 : vector<4x32xf32>
    %1081 = arith.mulf %1080, %1080 : vector<4x32xf32>
    %cst_587 = arith.constant dense<0.000000e+00> : vector<4xf32>
    %1082 = vector.multi_reduction <add>, %1081, %cst_587 [1] : vector<4x32xf32> to vector<4xf32>
    %1083 = vector.shape_cast %1082 : vector<4xf32> to vector<4x1xf32>
    %cst_588 = arith.constant 3.200000e+01 : f32
    %1084 = vector.broadcast %cst_588 : f32 to vector<4x1xf32>
    %1085 = arith.divf %1083, %1084 : vector<4x1xf32>
    %cst_589 = arith.constant 9.99999974E-6 : f32
    %1086 = vector.broadcast %cst_589 : f32 to vector<4x1xf32>
    %1087 = arith.addf %1085, %1086 : vector<4x1xf32>
    %1088 = math.rsqrt %1087 : vector<4x1xf32>
    %1089 = vector.broadcast %1088 : vector<4x1xf32> to vector<4x32xf32>
    %1090 = arith.mulf %1080, %1089 : vector<4x32xf32>
    %1091 = vector.broadcast %1072 : vector<1x32xf32> to vector<4x32xf32>
    %1092 = arith.mulf %1090, %1091 : vector<4x32xf32>
    %1093 = vector.broadcast %1074 : vector<1x32xf32> to vector<4x32xf32>
    %1094 = arith.addf %1092, %1093 : vector<4x32xf32>
    %c3_590 = arith.constant 3 : index
    %c0_591 = arith.constant 0 : index
    %c0_592 = arith.constant 0 : index
    %1095 = vector.load %arg28[%c3_590, %c0_591, %c0_592] : memref<6x32x64xf32, #tpu.memory_space<vmem>>, vector<1x32x64xf32>
    %1096 = vector.shape_cast %1095 : vector<1x32x64xf32> to vector<32x64xf32>
    %cst_593 = arith.constant dense<0.000000e+00> : vector<4x64xf32>
    %1097 = tpu.matmul %1094, %1096, %cst_593 {dimension_numbers = #tpu.dot_dimension_numbers<[1], [0], [0], [1], [0, 0, 1, 1], [], []>} : vector<4x32xf32>, vector<32x64xf32>, vector<4x64xf32> -> vector<4x64xf32>
    %c3_594 = arith.constant 3 : index
    %c0_595 = arith.constant 0 : index
    %c0_596 = arith.constant 0 : index
    %1098 = vector.load %arg29[%c3_594, %c0_595, %c0_596] : memref<6x1x64xf32, #tpu.memory_space<vmem>>, vector<1x1x64xf32>
    %1099 = vector.shape_cast %1098 : vector<1x1x64xf32> to vector<1x64xf32>
    %1100 = vector.broadcast %1099 : vector<1x64xf32> to vector<4x64xf32>
    %1101 = arith.addf %1097, %1100 : vector<4x64xf32>
    %cst_597 = arith.constant 0.000000e+00 : f32
    %1102 = vector.broadcast %cst_597 : f32 to vector<4x64xf32>
    %1103 = arith.maximumf %1101, %1102 : vector<4x64xf32>
    %c3_598 = arith.constant 3 : index
    %c0_599 = arith.constant 0 : index
    %c0_600 = arith.constant 0 : index
    %1104 = vector.load %arg30[%c3_598, %c0_599, %c0_600] : memref<6x64x32xf32, #tpu.memory_space<vmem>>, vector<1x64x32xf32>
    %1105 = vector.shape_cast %1104 : vector<1x64x32xf32> to vector<64x32xf32>
    %cst_601 = arith.constant dense<0.000000e+00> : vector<4x32xf32>
    %1106 = tpu.matmul %1103, %1105, %cst_601 {dimension_numbers = #tpu.dot_dimension_numbers<[1], [0], [0], [1], [0, 0, 1, 1], [], []>} : vector<4x64xf32>, vector<64x32xf32>, vector<4x32xf32> -> vector<4x32xf32>
    %c3_602 = arith.constant 3 : index
    %c0_603 = arith.constant 0 : index
    %c0_604 = arith.constant 0 : index
    %1107 = vector.load %arg31[%c3_602, %c0_603, %c0_604] : memref<6x1x32xf32, #tpu.memory_space<vmem>>, vector<1x1x32xf32>
    %1108 = vector.shape_cast %1107 : vector<1x1x32xf32> to vector<1x32xf32>
    %1109 = vector.broadcast %1108 : vector<1x32xf32> to vector<4x32xf32>
    %1110 = arith.addf %1106, %1109 : vector<4x32xf32>
    %1111 = arith.addf %1094, %1110 : vector<4x32xf32>
    %c3_605 = arith.constant 3 : index
    %c0_606 = arith.constant 0 : index
    %c0_607 = arith.constant 0 : index
    %1112 = vector.load %arg32[%c3_605, %c0_606, %c0_607] : memref<6x1x32xf32, #tpu.memory_space<vmem>>, vector<1x1x32xf32>
    %1113 = vector.shape_cast %1112 : vector<1x1x32xf32> to vector<1x32xf32>
    %c3_608 = arith.constant 3 : index
    %c0_609 = arith.constant 0 : index
    %c0_610 = arith.constant 0 : index
    %1114 = vector.load %arg33[%c3_608, %c0_609, %c0_610] : memref<6x1x32xf32, #tpu.memory_space<vmem>>, vector<1x1x32xf32>
    %1115 = vector.shape_cast %1114 : vector<1x1x32xf32> to vector<1x32xf32>
    %cst_611 = arith.constant dense<0.000000e+00> : vector<4xf32>
    %1116 = vector.multi_reduction <add>, %1111, %cst_611 [1] : vector<4x32xf32> to vector<4xf32>
    %1117 = vector.shape_cast %1116 : vector<4xf32> to vector<4x1xf32>
    %cst_612 = arith.constant 3.200000e+01 : f32
    %1118 = vector.broadcast %cst_612 : f32 to vector<4x1xf32>
    %1119 = arith.divf %1117, %1118 : vector<4x1xf32>
    %1120 = vector.broadcast %1119 : vector<4x1xf32> to vector<4x32xf32>
    %1121 = arith.subf %1111, %1120 : vector<4x32xf32>
    %1122 = arith.mulf %1121, %1121 : vector<4x32xf32>
    %cst_613 = arith.constant dense<0.000000e+00> : vector<4xf32>
    %1123 = vector.multi_reduction <add>, %1122, %cst_613 [1] : vector<4x32xf32> to vector<4xf32>
    %1124 = vector.shape_cast %1123 : vector<4xf32> to vector<4x1xf32>
    %cst_614 = arith.constant 3.200000e+01 : f32
    %1125 = vector.broadcast %cst_614 : f32 to vector<4x1xf32>
    %1126 = arith.divf %1124, %1125 : vector<4x1xf32>
    %cst_615 = arith.constant 9.99999974E-6 : f32
    %1127 = vector.broadcast %cst_615 : f32 to vector<4x1xf32>
    %1128 = arith.addf %1126, %1127 : vector<4x1xf32>
    %1129 = math.rsqrt %1128 : vector<4x1xf32>
    %1130 = vector.broadcast %1129 : vector<4x1xf32> to vector<4x32xf32>
    %1131 = arith.mulf %1121, %1130 : vector<4x32xf32>
    %1132 = vector.broadcast %1113 : vector<1x32xf32> to vector<4x32xf32>
    %1133 = arith.mulf %1131, %1132 : vector<4x32xf32>
    %1134 = vector.broadcast %1115 : vector<1x32xf32> to vector<4x32xf32>
    %1135 = arith.addf %1133, %1134 : vector<4x32xf32>
    %c4_616 = arith.constant 4 : index
    %c0_617 = arith.constant 0 : index
    %c0_618 = arith.constant 0 : index
    %1136 = vector.load %arg18[%c4_616, %c0_617, %c0_618] : memref<6x32x32xf32, #tpu.memory_space<vmem>>, vector<1x32x32xf32>
    %1137 = vector.shape_cast %1136 : vector<1x32x32xf32> to vector<32x32xf32>
    %cst_619 = arith.constant dense<0.000000e+00> : vector<4x32xf32>
    %1138 = tpu.matmul %1135, %1137, %cst_619 {dimension_numbers = #tpu.dot_dimension_numbers<[1], [0], [0], [1], [0, 0, 1, 1], [], []>} : vector<4x32xf32>, vector<32x32xf32>, vector<4x32xf32> -> vector<4x32xf32>
    %c4_620 = arith.constant 4 : index
    %c0_621 = arith.constant 0 : index
    %c0_622 = arith.constant 0 : index
    %1139 = vector.load %arg19[%c4_620, %c0_621, %c0_622] : memref<6x1x32xf32, #tpu.memory_space<vmem>>, vector<1x1x32xf32>
    %1140 = vector.shape_cast %1139 : vector<1x1x32xf32> to vector<1x32xf32>
    %1141 = vector.broadcast %1140 : vector<1x32xf32> to vector<4x32xf32>
    %1142 = arith.addf %1138, %1141 : vector<4x32xf32>
    %c4_623 = arith.constant 4 : index
    %c0_624 = arith.constant 0 : index
    %c0_625 = arith.constant 0 : index
    %1143 = vector.load %arg20[%c4_623, %c0_624, %c0_625] : memref<6x32x32xf32, #tpu.memory_space<vmem>>, vector<1x32x32xf32>
    %1144 = vector.shape_cast %1143 : vector<1x32x32xf32> to vector<32x32xf32>
    %cst_626 = arith.constant dense<0.000000e+00> : vector<4x32xf32>
    %1145 = tpu.matmul %1135, %1144, %cst_626 {dimension_numbers = #tpu.dot_dimension_numbers<[1], [0], [0], [1], [0, 0, 1, 1], [], []>} : vector<4x32xf32>, vector<32x32xf32>, vector<4x32xf32> -> vector<4x32xf32>
    %c4_627 = arith.constant 4 : index
    %c0_628 = arith.constant 0 : index
    %c0_629 = arith.constant 0 : index
    %1146 = vector.load %arg21[%c4_627, %c0_628, %c0_629] : memref<6x1x32xf32, #tpu.memory_space<vmem>>, vector<1x1x32xf32>
    %1147 = vector.shape_cast %1146 : vector<1x1x32xf32> to vector<1x32xf32>
    %1148 = vector.broadcast %1147 : vector<1x32xf32> to vector<4x32xf32>
    %1149 = arith.addf %1145, %1148 : vector<4x32xf32>
    %c4_630 = arith.constant 4 : index
    %c0_631 = arith.constant 0 : index
    %c0_632 = arith.constant 0 : index
    %1150 = vector.load %arg22[%c4_630, %c0_631, %c0_632] : memref<6x32x32xf32, #tpu.memory_space<vmem>>, vector<1x32x32xf32>
    %1151 = vector.shape_cast %1150 : vector<1x32x32xf32> to vector<32x32xf32>
    %cst_633 = arith.constant dense<0.000000e+00> : vector<4x32xf32>
    %1152 = tpu.matmul %1135, %1151, %cst_633 {dimension_numbers = #tpu.dot_dimension_numbers<[1], [0], [0], [1], [0, 0, 1, 1], [], []>} : vector<4x32xf32>, vector<32x32xf32>, vector<4x32xf32> -> vector<4x32xf32>
    %c4_634 = arith.constant 4 : index
    %c0_635 = arith.constant 0 : index
    %c0_636 = arith.constant 0 : index
    %1153 = vector.load %arg23[%c4_634, %c0_635, %c0_636] : memref<6x1x32xf32, #tpu.memory_space<vmem>>, vector<1x1x32xf32>
    %1154 = vector.shape_cast %1153 : vector<1x1x32xf32> to vector<1x32xf32>
    %1155 = vector.broadcast %1154 : vector<1x32xf32> to vector<4x32xf32>
    %1156 = arith.addf %1152, %1155 : vector<4x32xf32>
    %1157 = vector.extract_strided_slice %1142 {offsets = [0, 0], sizes = [4, 16], strides = [1, 1]} : vector<4x32xf32> to vector<4x16xf32>
    %1158 = vector.shape_cast %1157 : vector<4x16xf32> to vector<2x2x16xf32>
    %1159 = vector.extract_strided_slice %1149 {offsets = [0, 0], sizes = [4, 16], strides = [1, 1]} : vector<4x32xf32> to vector<4x16xf32>
    %1160 = vector.shape_cast %1159 : vector<4x16xf32> to vector<2x2x16xf32>
    %1161 = vector.extract_strided_slice %1156 {offsets = [0, 0], sizes = [4, 16], strides = [1, 1]} : vector<4x32xf32> to vector<4x16xf32>
    %1162 = vector.shape_cast %1161 : vector<4x16xf32> to vector<2x2x16xf32>
    %1163 = vector.shape_cast %1158 : vector<2x2x16xf32> to vector<2x1x2x16xf32>
    %1164 = vector.shape_cast %1160 : vector<2x2x16xf32> to vector<1x2x2x16xf32>
    %1165 = vector.broadcast %1163 : vector<2x1x2x16xf32> to vector<2x2x2x16xf32>
    %1166 = vector.broadcast %1164 : vector<1x2x2x16xf32> to vector<2x2x2x16xf32>
    %1167 = arith.mulf %1165, %1166 : vector<2x2x2x16xf32>
    %cst_637 = arith.constant dense<0.000000e+00> : vector<2x2x2xf32>
    %1168 = vector.multi_reduction <add>, %1167, %cst_637 [3] : vector<2x2x2x16xf32> to vector<2x2x2xf32>
    %1169 = vector.shape_cast %1168 : vector<2x2x2xf32> to vector<2x2x2x1xf32>
    %1170 = arith.addf %1169, %523 : vector<2x2x2x1xf32>
    %cst_638 = arith.constant dense<0xFF800000> : vector<2x2x1xf32>
    %1171 = vector.multi_reduction <maximumf>, %1170, %cst_638 [1] : vector<2x2x2x1xf32> to vector<2x2x1xf32>
    %1172 = vector.shape_cast %1171 : vector<2x2x1xf32> to vector<2x1x2x1xf32>
    %1173 = vector.broadcast %1172 : vector<2x1x2x1xf32> to vector<2x2x2x1xf32>
    %1174 = arith.subf %1170, %1173 : vector<2x2x2x1xf32>
    %1175 = math.exp %1174 : vector<2x2x2x1xf32>
    %cst_639 = arith.constant dense<0.000000e+00> : vector<2x2x1xf32>
    %1176 = vector.multi_reduction <add>, %1175, %cst_639 [1] : vector<2x2x2x1xf32> to vector<2x2x1xf32>
    %1177 = vector.shape_cast %1176 : vector<2x2x1xf32> to vector<2x1x2x1xf32>
    %1178 = vector.broadcast %1177 : vector<2x1x2x1xf32> to vector<2x2x2x1xf32>
    %1179 = arith.divf %1175, %1178 : vector<2x2x2x1xf32>
    %1180 = vector.shape_cast %1162 : vector<2x2x16xf32> to vector<1x2x2x16xf32>
    %1181 = vector.broadcast %1179 : vector<2x2x2x1xf32> to vector<2x2x2x16xf32>
    %1182 = vector.broadcast %1180 : vector<1x2x2x16xf32> to vector<2x2x2x16xf32>
    %1183 = arith.mulf %1181, %1182 : vector<2x2x2x16xf32>
    %cst_640 = arith.constant dense<0.000000e+00> : vector<2x2x16xf32>
    %1184 = vector.multi_reduction <add>, %1183, %cst_640 [1] : vector<2x2x2x16xf32> to vector<2x2x16xf32>
    %1185 = vector.shape_cast %1184 : vector<2x2x16xf32> to vector<4x16xf32>
    %1186 = vector.extract_strided_slice %1142 {offsets = [0, 16], sizes = [4, 16], strides = [1, 1]} : vector<4x32xf32> to vector<4x16xf32>
    %1187 = vector.shape_cast %1186 : vector<4x16xf32> to vector<2x2x16xf32>
    %1188 = vector.extract_strided_slice %1149 {offsets = [0, 16], sizes = [4, 16], strides = [1, 1]} : vector<4x32xf32> to vector<4x16xf32>
    %1189 = vector.shape_cast %1188 : vector<4x16xf32> to vector<2x2x16xf32>
    %1190 = vector.extract_strided_slice %1156 {offsets = [0, 16], sizes = [4, 16], strides = [1, 1]} : vector<4x32xf32> to vector<4x16xf32>
    %1191 = vector.shape_cast %1190 : vector<4x16xf32> to vector<2x2x16xf32>
    %1192 = vector.shape_cast %1187 : vector<2x2x16xf32> to vector<2x1x2x16xf32>
    %1193 = vector.shape_cast %1189 : vector<2x2x16xf32> to vector<1x2x2x16xf32>
    %1194 = vector.broadcast %1192 : vector<2x1x2x16xf32> to vector<2x2x2x16xf32>
    %1195 = vector.broadcast %1193 : vector<1x2x2x16xf32> to vector<2x2x2x16xf32>
    %1196 = arith.mulf %1194, %1195 : vector<2x2x2x16xf32>
    %cst_641 = arith.constant dense<0.000000e+00> : vector<2x2x2xf32>
    %1197 = vector.multi_reduction <add>, %1196, %cst_641 [3] : vector<2x2x2x16xf32> to vector<2x2x2xf32>
    %1198 = vector.shape_cast %1197 : vector<2x2x2xf32> to vector<2x2x2x1xf32>
    %1199 = arith.addf %1198, %523 : vector<2x2x2x1xf32>
    %cst_642 = arith.constant dense<0xFF800000> : vector<2x2x1xf32>
    %1200 = vector.multi_reduction <maximumf>, %1199, %cst_642 [1] : vector<2x2x2x1xf32> to vector<2x2x1xf32>
    %1201 = vector.shape_cast %1200 : vector<2x2x1xf32> to vector<2x1x2x1xf32>
    %1202 = vector.broadcast %1201 : vector<2x1x2x1xf32> to vector<2x2x2x1xf32>
    %1203 = arith.subf %1199, %1202 : vector<2x2x2x1xf32>
    %1204 = math.exp %1203 : vector<2x2x2x1xf32>
    %cst_643 = arith.constant dense<0.000000e+00> : vector<2x2x1xf32>
    %1205 = vector.multi_reduction <add>, %1204, %cst_643 [1] : vector<2x2x2x1xf32> to vector<2x2x1xf32>
    %1206 = vector.shape_cast %1205 : vector<2x2x1xf32> to vector<2x1x2x1xf32>
    %1207 = vector.broadcast %1206 : vector<2x1x2x1xf32> to vector<2x2x2x1xf32>
    %1208 = arith.divf %1204, %1207 : vector<2x2x2x1xf32>
    %1209 = vector.shape_cast %1191 : vector<2x2x16xf32> to vector<1x2x2x16xf32>
    %1210 = vector.broadcast %1208 : vector<2x2x2x1xf32> to vector<2x2x2x16xf32>
    %1211 = vector.broadcast %1209 : vector<1x2x2x16xf32> to vector<2x2x2x16xf32>
    %1212 = arith.mulf %1210, %1211 : vector<2x2x2x16xf32>
    %cst_644 = arith.constant dense<0.000000e+00> : vector<2x2x16xf32>
    %1213 = vector.multi_reduction <add>, %1212, %cst_644 [1] : vector<2x2x2x16xf32> to vector<2x2x16xf32>
    %1214 = vector.shape_cast %1213 : vector<2x2x16xf32> to vector<4x16xf32>
    %1215 = tpu.concatenate %1185, %1214 in 1 : vector<4x16xf32>, vector<4x16xf32> -> vector<4x32xf32>
    %c4_645 = arith.constant 4 : index
    %c0_646 = arith.constant 0 : index
    %c0_647 = arith.constant 0 : index
    %1216 = vector.load %arg24[%c4_645, %c0_646, %c0_647] : memref<6x32x32xf32, #tpu.memory_space<vmem>>, vector<1x32x32xf32>
    %1217 = vector.shape_cast %1216 : vector<1x32x32xf32> to vector<32x32xf32>
    %cst_648 = arith.constant dense<0.000000e+00> : vector<4x32xf32>
    %1218 = tpu.matmul %1215, %1217, %cst_648 {dimension_numbers = #tpu.dot_dimension_numbers<[1], [0], [0], [1], [0, 0, 1, 1], [], []>} : vector<4x32xf32>, vector<32x32xf32>, vector<4x32xf32> -> vector<4x32xf32>
    %c4_649 = arith.constant 4 : index
    %c0_650 = arith.constant 0 : index
    %c0_651 = arith.constant 0 : index
    %1219 = vector.load %arg25[%c4_649, %c0_650, %c0_651] : memref<6x1x32xf32, #tpu.memory_space<vmem>>, vector<1x1x32xf32>
    %1220 = vector.shape_cast %1219 : vector<1x1x32xf32> to vector<1x32xf32>
    %1221 = vector.broadcast %1220 : vector<1x32xf32> to vector<4x32xf32>
    %1222 = arith.addf %1218, %1221 : vector<4x32xf32>
    %1223 = arith.addf %1135, %1222 : vector<4x32xf32>
    %c4_652 = arith.constant 4 : index
    %c0_653 = arith.constant 0 : index
    %c0_654 = arith.constant 0 : index
    %1224 = vector.load %arg26[%c4_652, %c0_653, %c0_654] : memref<6x1x32xf32, #tpu.memory_space<vmem>>, vector<1x1x32xf32>
    %1225 = vector.shape_cast %1224 : vector<1x1x32xf32> to vector<1x32xf32>
    %c4_655 = arith.constant 4 : index
    %c0_656 = arith.constant 0 : index
    %c0_657 = arith.constant 0 : index
    %1226 = vector.load %arg27[%c4_655, %c0_656, %c0_657] : memref<6x1x32xf32, #tpu.memory_space<vmem>>, vector<1x1x32xf32>
    %1227 = vector.shape_cast %1226 : vector<1x1x32xf32> to vector<1x32xf32>
    %cst_658 = arith.constant dense<0.000000e+00> : vector<4xf32>
    %1228 = vector.multi_reduction <add>, %1223, %cst_658 [1] : vector<4x32xf32> to vector<4xf32>
    %1229 = vector.shape_cast %1228 : vector<4xf32> to vector<4x1xf32>
    %cst_659 = arith.constant 3.200000e+01 : f32
    %1230 = vector.broadcast %cst_659 : f32 to vector<4x1xf32>
    %1231 = arith.divf %1229, %1230 : vector<4x1xf32>
    %1232 = vector.broadcast %1231 : vector<4x1xf32> to vector<4x32xf32>
    %1233 = arith.subf %1223, %1232 : vector<4x32xf32>
    %1234 = arith.mulf %1233, %1233 : vector<4x32xf32>
    %cst_660 = arith.constant dense<0.000000e+00> : vector<4xf32>
    %1235 = vector.multi_reduction <add>, %1234, %cst_660 [1] : vector<4x32xf32> to vector<4xf32>
    %1236 = vector.shape_cast %1235 : vector<4xf32> to vector<4x1xf32>
    %cst_661 = arith.constant 3.200000e+01 : f32
    %1237 = vector.broadcast %cst_661 : f32 to vector<4x1xf32>
    %1238 = arith.divf %1236, %1237 : vector<4x1xf32>
    %cst_662 = arith.constant 9.99999974E-6 : f32
    %1239 = vector.broadcast %cst_662 : f32 to vector<4x1xf32>
    %1240 = arith.addf %1238, %1239 : vector<4x1xf32>
    %1241 = math.rsqrt %1240 : vector<4x1xf32>
    %1242 = vector.broadcast %1241 : vector<4x1xf32> to vector<4x32xf32>
    %1243 = arith.mulf %1233, %1242 : vector<4x32xf32>
    %1244 = vector.broadcast %1225 : vector<1x32xf32> to vector<4x32xf32>
    %1245 = arith.mulf %1243, %1244 : vector<4x32xf32>
    %1246 = vector.broadcast %1227 : vector<1x32xf32> to vector<4x32xf32>
    %1247 = arith.addf %1245, %1246 : vector<4x32xf32>
    %c4_663 = arith.constant 4 : index
    %c0_664 = arith.constant 0 : index
    %c0_665 = arith.constant 0 : index
    %1248 = vector.load %arg28[%c4_663, %c0_664, %c0_665] : memref<6x32x64xf32, #tpu.memory_space<vmem>>, vector<1x32x64xf32>
    %1249 = vector.shape_cast %1248 : vector<1x32x64xf32> to vector<32x64xf32>
    %cst_666 = arith.constant dense<0.000000e+00> : vector<4x64xf32>
    %1250 = tpu.matmul %1247, %1249, %cst_666 {dimension_numbers = #tpu.dot_dimension_numbers<[1], [0], [0], [1], [0, 0, 1, 1], [], []>} : vector<4x32xf32>, vector<32x64xf32>, vector<4x64xf32> -> vector<4x64xf32>
    %c4_667 = arith.constant 4 : index
    %c0_668 = arith.constant 0 : index
    %c0_669 = arith.constant 0 : index
    %1251 = vector.load %arg29[%c4_667, %c0_668, %c0_669] : memref<6x1x64xf32, #tpu.memory_space<vmem>>, vector<1x1x64xf32>
    %1252 = vector.shape_cast %1251 : vector<1x1x64xf32> to vector<1x64xf32>
    %1253 = vector.broadcast %1252 : vector<1x64xf32> to vector<4x64xf32>
    %1254 = arith.addf %1250, %1253 : vector<4x64xf32>
    %cst_670 = arith.constant 0.000000e+00 : f32
    %1255 = vector.broadcast %cst_670 : f32 to vector<4x64xf32>
    %1256 = arith.maximumf %1254, %1255 : vector<4x64xf32>
    %c4_671 = arith.constant 4 : index
    %c0_672 = arith.constant 0 : index
    %c0_673 = arith.constant 0 : index
    %1257 = vector.load %arg30[%c4_671, %c0_672, %c0_673] : memref<6x64x32xf32, #tpu.memory_space<vmem>>, vector<1x64x32xf32>
    %1258 = vector.shape_cast %1257 : vector<1x64x32xf32> to vector<64x32xf32>
    %cst_674 = arith.constant dense<0.000000e+00> : vector<4x32xf32>
    %1259 = tpu.matmul %1256, %1258, %cst_674 {dimension_numbers = #tpu.dot_dimension_numbers<[1], [0], [0], [1], [0, 0, 1, 1], [], []>} : vector<4x64xf32>, vector<64x32xf32>, vector<4x32xf32> -> vector<4x32xf32>
    %c4_675 = arith.constant 4 : index
    %c0_676 = arith.constant 0 : index
    %c0_677 = arith.constant 0 : index
    %1260 = vector.load %arg31[%c4_675, %c0_676, %c0_677] : memref<6x1x32xf32, #tpu.memory_space<vmem>>, vector<1x1x32xf32>
    %1261 = vector.shape_cast %1260 : vector<1x1x32xf32> to vector<1x32xf32>
    %1262 = vector.broadcast %1261 : vector<1x32xf32> to vector<4x32xf32>
    %1263 = arith.addf %1259, %1262 : vector<4x32xf32>
    %1264 = arith.addf %1247, %1263 : vector<4x32xf32>
    %c4_678 = arith.constant 4 : index
    %c0_679 = arith.constant 0 : index
    %c0_680 = arith.constant 0 : index
    %1265 = vector.load %arg32[%c4_678, %c0_679, %c0_680] : memref<6x1x32xf32, #tpu.memory_space<vmem>>, vector<1x1x32xf32>
    %1266 = vector.shape_cast %1265 : vector<1x1x32xf32> to vector<1x32xf32>
    %c4_681 = arith.constant 4 : index
    %c0_682 = arith.constant 0 : index
    %c0_683 = arith.constant 0 : index
    %1267 = vector.load %arg33[%c4_681, %c0_682, %c0_683] : memref<6x1x32xf32, #tpu.memory_space<vmem>>, vector<1x1x32xf32>
    %1268 = vector.shape_cast %1267 : vector<1x1x32xf32> to vector<1x32xf32>
    %cst_684 = arith.constant dense<0.000000e+00> : vector<4xf32>
    %1269 = vector.multi_reduction <add>, %1264, %cst_684 [1] : vector<4x32xf32> to vector<4xf32>
    %1270 = vector.shape_cast %1269 : vector<4xf32> to vector<4x1xf32>
    %cst_685 = arith.constant 3.200000e+01 : f32
    %1271 = vector.broadcast %cst_685 : f32 to vector<4x1xf32>
    %1272 = arith.divf %1270, %1271 : vector<4x1xf32>
    %1273 = vector.broadcast %1272 : vector<4x1xf32> to vector<4x32xf32>
    %1274 = arith.subf %1264, %1273 : vector<4x32xf32>
    %1275 = arith.mulf %1274, %1274 : vector<4x32xf32>
    %cst_686 = arith.constant dense<0.000000e+00> : vector<4xf32>
    %1276 = vector.multi_reduction <add>, %1275, %cst_686 [1] : vector<4x32xf32> to vector<4xf32>
    %1277 = vector.shape_cast %1276 : vector<4xf32> to vector<4x1xf32>
    %cst_687 = arith.constant 3.200000e+01 : f32
    %1278 = vector.broadcast %cst_687 : f32 to vector<4x1xf32>
    %1279 = arith.divf %1277, %1278 : vector<4x1xf32>
    %cst_688 = arith.constant 9.99999974E-6 : f32
    %1280 = vector.broadcast %cst_688 : f32 to vector<4x1xf32>
    %1281 = arith.addf %1279, %1280 : vector<4x1xf32>
    %1282 = math.rsqrt %1281 : vector<4x1xf32>
    %1283 = vector.broadcast %1282 : vector<4x1xf32> to vector<4x32xf32>
    %1284 = arith.mulf %1274, %1283 : vector<4x32xf32>
    %1285 = vector.broadcast %1266 : vector<1x32xf32> to vector<4x32xf32>
    %1286 = arith.mulf %1284, %1285 : vector<4x32xf32>
    %1287 = vector.broadcast %1268 : vector<1x32xf32> to vector<4x32xf32>
    %1288 = arith.addf %1286, %1287 : vector<4x32xf32>
    %c5_689 = arith.constant 5 : index
    %c0_690 = arith.constant 0 : index
    %c0_691 = arith.constant 0 : index
    %1289 = vector.load %arg18[%c5_689, %c0_690, %c0_691] : memref<6x32x32xf32, #tpu.memory_space<vmem>>, vector<1x32x32xf32>
    %1290 = vector.shape_cast %1289 : vector<1x32x32xf32> to vector<32x32xf32>
    %cst_692 = arith.constant dense<0.000000e+00> : vector<4x32xf32>
    %1291 = tpu.matmul %1288, %1290, %cst_692 {dimension_numbers = #tpu.dot_dimension_numbers<[1], [0], [0], [1], [0, 0, 1, 1], [], []>} : vector<4x32xf32>, vector<32x32xf32>, vector<4x32xf32> -> vector<4x32xf32>
    %c5_693 = arith.constant 5 : index
    %c0_694 = arith.constant 0 : index
    %c0_695 = arith.constant 0 : index
    %1292 = vector.load %arg19[%c5_693, %c0_694, %c0_695] : memref<6x1x32xf32, #tpu.memory_space<vmem>>, vector<1x1x32xf32>
    %1293 = vector.shape_cast %1292 : vector<1x1x32xf32> to vector<1x32xf32>
    %1294 = vector.broadcast %1293 : vector<1x32xf32> to vector<4x32xf32>
    %1295 = arith.addf %1291, %1294 : vector<4x32xf32>
    %c5_696 = arith.constant 5 : index
    %c0_697 = arith.constant 0 : index
    %c0_698 = arith.constant 0 : index
    %1296 = vector.load %arg20[%c5_696, %c0_697, %c0_698] : memref<6x32x32xf32, #tpu.memory_space<vmem>>, vector<1x32x32xf32>
    %1297 = vector.shape_cast %1296 : vector<1x32x32xf32> to vector<32x32xf32>
    %cst_699 = arith.constant dense<0.000000e+00> : vector<4x32xf32>
    %1298 = tpu.matmul %1288, %1297, %cst_699 {dimension_numbers = #tpu.dot_dimension_numbers<[1], [0], [0], [1], [0, 0, 1, 1], [], []>} : vector<4x32xf32>, vector<32x32xf32>, vector<4x32xf32> -> vector<4x32xf32>
    %c5_700 = arith.constant 5 : index
    %c0_701 = arith.constant 0 : index
    %c0_702 = arith.constant 0 : index
    %1299 = vector.load %arg21[%c5_700, %c0_701, %c0_702] : memref<6x1x32xf32, #tpu.memory_space<vmem>>, vector<1x1x32xf32>
    %1300 = vector.shape_cast %1299 : vector<1x1x32xf32> to vector<1x32xf32>
    %1301 = vector.broadcast %1300 : vector<1x32xf32> to vector<4x32xf32>
    %1302 = arith.addf %1298, %1301 : vector<4x32xf32>
    %c5_703 = arith.constant 5 : index
    %c0_704 = arith.constant 0 : index
    %c0_705 = arith.constant 0 : index
    %1303 = vector.load %arg22[%c5_703, %c0_704, %c0_705] : memref<6x32x32xf32, #tpu.memory_space<vmem>>, vector<1x32x32xf32>
    %1304 = vector.shape_cast %1303 : vector<1x32x32xf32> to vector<32x32xf32>
    %cst_706 = arith.constant dense<0.000000e+00> : vector<4x32xf32>
    %1305 = tpu.matmul %1288, %1304, %cst_706 {dimension_numbers = #tpu.dot_dimension_numbers<[1], [0], [0], [1], [0, 0, 1, 1], [], []>} : vector<4x32xf32>, vector<32x32xf32>, vector<4x32xf32> -> vector<4x32xf32>
    %c5_707 = arith.constant 5 : index
    %c0_708 = arith.constant 0 : index
    %c0_709 = arith.constant 0 : index
    %1306 = vector.load %arg23[%c5_707, %c0_708, %c0_709] : memref<6x1x32xf32, #tpu.memory_space<vmem>>, vector<1x1x32xf32>
    %1307 = vector.shape_cast %1306 : vector<1x1x32xf32> to vector<1x32xf32>
    %1308 = vector.broadcast %1307 : vector<1x32xf32> to vector<4x32xf32>
    %1309 = arith.addf %1305, %1308 : vector<4x32xf32>
    %1310 = vector.extract_strided_slice %1295 {offsets = [0, 0], sizes = [4, 16], strides = [1, 1]} : vector<4x32xf32> to vector<4x16xf32>
    %1311 = vector.shape_cast %1310 : vector<4x16xf32> to vector<2x2x16xf32>
    %1312 = vector.extract_strided_slice %1302 {offsets = [0, 0], sizes = [4, 16], strides = [1, 1]} : vector<4x32xf32> to vector<4x16xf32>
    %1313 = vector.shape_cast %1312 : vector<4x16xf32> to vector<2x2x16xf32>
    %1314 = vector.extract_strided_slice %1309 {offsets = [0, 0], sizes = [4, 16], strides = [1, 1]} : vector<4x32xf32> to vector<4x16xf32>
    %1315 = vector.shape_cast %1314 : vector<4x16xf32> to vector<2x2x16xf32>
    %1316 = vector.shape_cast %1311 : vector<2x2x16xf32> to vector<2x1x2x16xf32>
    %1317 = vector.shape_cast %1313 : vector<2x2x16xf32> to vector<1x2x2x16xf32>
    %1318 = vector.broadcast %1316 : vector<2x1x2x16xf32> to vector<2x2x2x16xf32>
    %1319 = vector.broadcast %1317 : vector<1x2x2x16xf32> to vector<2x2x2x16xf32>
    %1320 = arith.mulf %1318, %1319 : vector<2x2x2x16xf32>
    %cst_710 = arith.constant dense<0.000000e+00> : vector<2x2x2xf32>
    %1321 = vector.multi_reduction <add>, %1320, %cst_710 [3] : vector<2x2x2x16xf32> to vector<2x2x2xf32>
    %1322 = vector.shape_cast %1321 : vector<2x2x2xf32> to vector<2x2x2x1xf32>
    %1323 = arith.addf %1322, %523 : vector<2x2x2x1xf32>
    %cst_711 = arith.constant dense<0xFF800000> : vector<2x2x1xf32>
    %1324 = vector.multi_reduction <maximumf>, %1323, %cst_711 [1] : vector<2x2x2x1xf32> to vector<2x2x1xf32>
    %1325 = vector.shape_cast %1324 : vector<2x2x1xf32> to vector<2x1x2x1xf32>
    %1326 = vector.broadcast %1325 : vector<2x1x2x1xf32> to vector<2x2x2x1xf32>
    %1327 = arith.subf %1323, %1326 : vector<2x2x2x1xf32>
    %1328 = math.exp %1327 : vector<2x2x2x1xf32>
    %cst_712 = arith.constant dense<0.000000e+00> : vector<2x2x1xf32>
    %1329 = vector.multi_reduction <add>, %1328, %cst_712 [1] : vector<2x2x2x1xf32> to vector<2x2x1xf32>
    %1330 = vector.shape_cast %1329 : vector<2x2x1xf32> to vector<2x1x2x1xf32>
    %1331 = vector.broadcast %1330 : vector<2x1x2x1xf32> to vector<2x2x2x1xf32>
    %1332 = arith.divf %1328, %1331 : vector<2x2x2x1xf32>
    %1333 = vector.shape_cast %1315 : vector<2x2x16xf32> to vector<1x2x2x16xf32>
    %1334 = vector.broadcast %1332 : vector<2x2x2x1xf32> to vector<2x2x2x16xf32>
    %1335 = vector.broadcast %1333 : vector<1x2x2x16xf32> to vector<2x2x2x16xf32>
    %1336 = arith.mulf %1334, %1335 : vector<2x2x2x16xf32>
    %cst_713 = arith.constant dense<0.000000e+00> : vector<2x2x16xf32>
    %1337 = vector.multi_reduction <add>, %1336, %cst_713 [1] : vector<2x2x2x16xf32> to vector<2x2x16xf32>
    %1338 = vector.shape_cast %1337 : vector<2x2x16xf32> to vector<4x16xf32>
    %1339 = vector.extract_strided_slice %1295 {offsets = [0, 16], sizes = [4, 16], strides = [1, 1]} : vector<4x32xf32> to vector<4x16xf32>
    %1340 = vector.shape_cast %1339 : vector<4x16xf32> to vector<2x2x16xf32>
    %1341 = vector.extract_strided_slice %1302 {offsets = [0, 16], sizes = [4, 16], strides = [1, 1]} : vector<4x32xf32> to vector<4x16xf32>
    %1342 = vector.shape_cast %1341 : vector<4x16xf32> to vector<2x2x16xf32>
    %1343 = vector.extract_strided_slice %1309 {offsets = [0, 16], sizes = [4, 16], strides = [1, 1]} : vector<4x32xf32> to vector<4x16xf32>
    %1344 = vector.shape_cast %1343 : vector<4x16xf32> to vector<2x2x16xf32>
    %1345 = vector.shape_cast %1340 : vector<2x2x16xf32> to vector<2x1x2x16xf32>
    %1346 = vector.shape_cast %1342 : vector<2x2x16xf32> to vector<1x2x2x16xf32>
    %1347 = vector.broadcast %1345 : vector<2x1x2x16xf32> to vector<2x2x2x16xf32>
    %1348 = vector.broadcast %1346 : vector<1x2x2x16xf32> to vector<2x2x2x16xf32>
    %1349 = arith.mulf %1347, %1348 : vector<2x2x2x16xf32>
    %cst_714 = arith.constant dense<0.000000e+00> : vector<2x2x2xf32>
    %1350 = vector.multi_reduction <add>, %1349, %cst_714 [3] : vector<2x2x2x16xf32> to vector<2x2x2xf32>
    %1351 = vector.shape_cast %1350 : vector<2x2x2xf32> to vector<2x2x2x1xf32>
    %1352 = arith.addf %1351, %523 : vector<2x2x2x1xf32>
    %cst_715 = arith.constant dense<0xFF800000> : vector<2x2x1xf32>
    %1353 = vector.multi_reduction <maximumf>, %1352, %cst_715 [1] : vector<2x2x2x1xf32> to vector<2x2x1xf32>
    %1354 = vector.shape_cast %1353 : vector<2x2x1xf32> to vector<2x1x2x1xf32>
    %1355 = vector.broadcast %1354 : vector<2x1x2x1xf32> to vector<2x2x2x1xf32>
    %1356 = arith.subf %1352, %1355 : vector<2x2x2x1xf32>
    %1357 = math.exp %1356 : vector<2x2x2x1xf32>
    %cst_716 = arith.constant dense<0.000000e+00> : vector<2x2x1xf32>
    %1358 = vector.multi_reduction <add>, %1357, %cst_716 [1] : vector<2x2x2x1xf32> to vector<2x2x1xf32>
    %1359 = vector.shape_cast %1358 : vector<2x2x1xf32> to vector<2x1x2x1xf32>
    %1360 = vector.broadcast %1359 : vector<2x1x2x1xf32> to vector<2x2x2x1xf32>
    %1361 = arith.divf %1357, %1360 : vector<2x2x2x1xf32>
    %1362 = vector.shape_cast %1344 : vector<2x2x16xf32> to vector<1x2x2x16xf32>
    %1363 = vector.broadcast %1361 : vector<2x2x2x1xf32> to vector<2x2x2x16xf32>
    %1364 = vector.broadcast %1362 : vector<1x2x2x16xf32> to vector<2x2x2x16xf32>
    %1365 = arith.mulf %1363, %1364 : vector<2x2x2x16xf32>
    %cst_717 = arith.constant dense<0.000000e+00> : vector<2x2x16xf32>
    %1366 = vector.multi_reduction <add>, %1365, %cst_717 [1] : vector<2x2x2x16xf32> to vector<2x2x16xf32>
    %1367 = vector.shape_cast %1366 : vector<2x2x16xf32> to vector<4x16xf32>
    %1368 = tpu.concatenate %1338, %1367 in 1 : vector<4x16xf32>, vector<4x16xf32> -> vector<4x32xf32>
    %c5_718 = arith.constant 5 : index
    %c0_719 = arith.constant 0 : index
    %c0_720 = arith.constant 0 : index
    %1369 = vector.load %arg24[%c5_718, %c0_719, %c0_720] : memref<6x32x32xf32, #tpu.memory_space<vmem>>, vector<1x32x32xf32>
    %1370 = vector.shape_cast %1369 : vector<1x32x32xf32> to vector<32x32xf32>
    %cst_721 = arith.constant dense<0.000000e+00> : vector<4x32xf32>
    %1371 = tpu.matmul %1368, %1370, %cst_721 {dimension_numbers = #tpu.dot_dimension_numbers<[1], [0], [0], [1], [0, 0, 1, 1], [], []>} : vector<4x32xf32>, vector<32x32xf32>, vector<4x32xf32> -> vector<4x32xf32>
    %c5_722 = arith.constant 5 : index
    %c0_723 = arith.constant 0 : index
    %c0_724 = arith.constant 0 : index
    %1372 = vector.load %arg25[%c5_722, %c0_723, %c0_724] : memref<6x1x32xf32, #tpu.memory_space<vmem>>, vector<1x1x32xf32>
    %1373 = vector.shape_cast %1372 : vector<1x1x32xf32> to vector<1x32xf32>
    %1374 = vector.broadcast %1373 : vector<1x32xf32> to vector<4x32xf32>
    %1375 = arith.addf %1371, %1374 : vector<4x32xf32>
    %1376 = arith.addf %1288, %1375 : vector<4x32xf32>
    %c5_725 = arith.constant 5 : index
    %c0_726 = arith.constant 0 : index
    %c0_727 = arith.constant 0 : index
    %1377 = vector.load %arg26[%c5_725, %c0_726, %c0_727] : memref<6x1x32xf32, #tpu.memory_space<vmem>>, vector<1x1x32xf32>
    %1378 = vector.shape_cast %1377 : vector<1x1x32xf32> to vector<1x32xf32>
    %c5_728 = arith.constant 5 : index
    %c0_729 = arith.constant 0 : index
    %c0_730 = arith.constant 0 : index
    %1379 = vector.load %arg27[%c5_728, %c0_729, %c0_730] : memref<6x1x32xf32, #tpu.memory_space<vmem>>, vector<1x1x32xf32>
    %1380 = vector.shape_cast %1379 : vector<1x1x32xf32> to vector<1x32xf32>
    %cst_731 = arith.constant dense<0.000000e+00> : vector<4xf32>
    %1381 = vector.multi_reduction <add>, %1376, %cst_731 [1] : vector<4x32xf32> to vector<4xf32>
    %1382 = vector.shape_cast %1381 : vector<4xf32> to vector<4x1xf32>
    %cst_732 = arith.constant 3.200000e+01 : f32
    %1383 = vector.broadcast %cst_732 : f32 to vector<4x1xf32>
    %1384 = arith.divf %1382, %1383 : vector<4x1xf32>
    %1385 = vector.broadcast %1384 : vector<4x1xf32> to vector<4x32xf32>
    %1386 = arith.subf %1376, %1385 : vector<4x32xf32>
    %1387 = arith.mulf %1386, %1386 : vector<4x32xf32>
    %cst_733 = arith.constant dense<0.000000e+00> : vector<4xf32>
    %1388 = vector.multi_reduction <add>, %1387, %cst_733 [1] : vector<4x32xf32> to vector<4xf32>
    %1389 = vector.shape_cast %1388 : vector<4xf32> to vector<4x1xf32>
    %cst_734 = arith.constant 3.200000e+01 : f32
    %1390 = vector.broadcast %cst_734 : f32 to vector<4x1xf32>
    %1391 = arith.divf %1389, %1390 : vector<4x1xf32>
    %cst_735 = arith.constant 9.99999974E-6 : f32
    %1392 = vector.broadcast %cst_735 : f32 to vector<4x1xf32>
    %1393 = arith.addf %1391, %1392 : vector<4x1xf32>
    %1394 = math.rsqrt %1393 : vector<4x1xf32>
    %1395 = vector.broadcast %1394 : vector<4x1xf32> to vector<4x32xf32>
    %1396 = arith.mulf %1386, %1395 : vector<4x32xf32>
    %1397 = vector.broadcast %1378 : vector<1x32xf32> to vector<4x32xf32>
    %1398 = arith.mulf %1396, %1397 : vector<4x32xf32>
    %1399 = vector.broadcast %1380 : vector<1x32xf32> to vector<4x32xf32>
    %1400 = arith.addf %1398, %1399 : vector<4x32xf32>
    %c5_736 = arith.constant 5 : index
    %c0_737 = arith.constant 0 : index
    %c0_738 = arith.constant 0 : index
    %1401 = vector.load %arg28[%c5_736, %c0_737, %c0_738] : memref<6x32x64xf32, #tpu.memory_space<vmem>>, vector<1x32x64xf32>
    %1402 = vector.shape_cast %1401 : vector<1x32x64xf32> to vector<32x64xf32>
    %cst_739 = arith.constant dense<0.000000e+00> : vector<4x64xf32>
    %1403 = tpu.matmul %1400, %1402, %cst_739 {dimension_numbers = #tpu.dot_dimension_numbers<[1], [0], [0], [1], [0, 0, 1, 1], [], []>} : vector<4x32xf32>, vector<32x64xf32>, vector<4x64xf32> -> vector<4x64xf32>
    %c5_740 = arith.constant 5 : index
    %c0_741 = arith.constant 0 : index
    %c0_742 = arith.constant 0 : index
    %1404 = vector.load %arg29[%c5_740, %c0_741, %c0_742] : memref<6x1x64xf32, #tpu.memory_space<vmem>>, vector<1x1x64xf32>
    %1405 = vector.shape_cast %1404 : vector<1x1x64xf32> to vector<1x64xf32>
    %1406 = vector.broadcast %1405 : vector<1x64xf32> to vector<4x64xf32>
    %1407 = arith.addf %1403, %1406 : vector<4x64xf32>
    %cst_743 = arith.constant 0.000000e+00 : f32
    %1408 = vector.broadcast %cst_743 : f32 to vector<4x64xf32>
    %1409 = arith.maximumf %1407, %1408 : vector<4x64xf32>
    %c5_744 = arith.constant 5 : index
    %c0_745 = arith.constant 0 : index
    %c0_746 = arith.constant 0 : index
    %1410 = vector.load %arg30[%c5_744, %c0_745, %c0_746] : memref<6x64x32xf32, #tpu.memory_space<vmem>>, vector<1x64x32xf32>
    %1411 = vector.shape_cast %1410 : vector<1x64x32xf32> to vector<64x32xf32>
    %cst_747 = arith.constant dense<0.000000e+00> : vector<4x32xf32>
    %1412 = tpu.matmul %1409, %1411, %cst_747 {dimension_numbers = #tpu.dot_dimension_numbers<[1], [0], [0], [1], [0, 0, 1, 1], [], []>} : vector<4x64xf32>, vector<64x32xf32>, vector<4x32xf32> -> vector<4x32xf32>
    %c5_748 = arith.constant 5 : index
    %c0_749 = arith.constant 0 : index
    %c0_750 = arith.constant 0 : index
    %1413 = vector.load %arg31[%c5_748, %c0_749, %c0_750] : memref<6x1x32xf32, #tpu.memory_space<vmem>>, vector<1x1x32xf32>
    %1414 = vector.shape_cast %1413 : vector<1x1x32xf32> to vector<1x32xf32>
    %1415 = vector.broadcast %1414 : vector<1x32xf32> to vector<4x32xf32>
    %1416 = arith.addf %1412, %1415 : vector<4x32xf32>
    %1417 = arith.addf %1400, %1416 : vector<4x32xf32>
    %c5_751 = arith.constant 5 : index
    %c0_752 = arith.constant 0 : index
    %c0_753 = arith.constant 0 : index
    %1418 = vector.load %arg32[%c5_751, %c0_752, %c0_753] : memref<6x1x32xf32, #tpu.memory_space<vmem>>, vector<1x1x32xf32>
    %1419 = vector.shape_cast %1418 : vector<1x1x32xf32> to vector<1x32xf32>
    %c5_754 = arith.constant 5 : index
    %c0_755 = arith.constant 0 : index
    %c0_756 = arith.constant 0 : index
    %1420 = vector.load %arg33[%c5_754, %c0_755, %c0_756] : memref<6x1x32xf32, #tpu.memory_space<vmem>>, vector<1x1x32xf32>
    %1421 = vector.shape_cast %1420 : vector<1x1x32xf32> to vector<1x32xf32>
    %cst_757 = arith.constant dense<0.000000e+00> : vector<4xf32>
    %1422 = vector.multi_reduction <add>, %1417, %cst_757 [1] : vector<4x32xf32> to vector<4xf32>
    %1423 = vector.shape_cast %1422 : vector<4xf32> to vector<4x1xf32>
    %cst_758 = arith.constant 3.200000e+01 : f32
    %1424 = vector.broadcast %cst_758 : f32 to vector<4x1xf32>
    %1425 = arith.divf %1423, %1424 : vector<4x1xf32>
    %1426 = vector.broadcast %1425 : vector<4x1xf32> to vector<4x32xf32>
    %1427 = arith.subf %1417, %1426 : vector<4x32xf32>
    %1428 = arith.mulf %1427, %1427 : vector<4x32xf32>
    %cst_759 = arith.constant dense<0.000000e+00> : vector<4xf32>
    %1429 = vector.multi_reduction <add>, %1428, %cst_759 [1] : vector<4x32xf32> to vector<4xf32>
    %1430 = vector.shape_cast %1429 : vector<4xf32> to vector<4x1xf32>
    %cst_760 = arith.constant 3.200000e+01 : f32
    %1431 = vector.broadcast %cst_760 : f32 to vector<4x1xf32>
    %1432 = arith.divf %1430, %1431 : vector<4x1xf32>
    %cst_761 = arith.constant 9.99999974E-6 : f32
    %1433 = vector.broadcast %cst_761 : f32 to vector<4x1xf32>
    %1434 = arith.addf %1432, %1433 : vector<4x1xf32>
    %1435 = math.rsqrt %1434 : vector<4x1xf32>
    %1436 = vector.broadcast %1435 : vector<4x1xf32> to vector<4x32xf32>
    %1437 = arith.mulf %1427, %1436 : vector<4x32xf32>
    %1438 = vector.broadcast %1419 : vector<1x32xf32> to vector<4x32xf32>
    %1439 = arith.mulf %1437, %1438 : vector<4x32xf32>
    %1440 = vector.broadcast %1421 : vector<1x32xf32> to vector<4x32xf32>
    %1441 = arith.addf %1439, %1440 : vector<4x32xf32>
    %c0_762 = arith.constant 0 : index
    %c0_763 = arith.constant 0 : index
    %1442 = vector.load %arg36[%c0_762, %c0_763] : memref<4x32xf32, #tpu.memory_space<vmem>>, vector<4x32xf32>
    tpu.vector_store %arg36[%c0_762, %c0_763], %1441 {strides = array<i32>} : memref<4x32xf32, #tpu.memory_space<vmem>>, vector<4x32xf32>,
    %c0_764 = arith.constant 0 : index
    %c0_765 = arith.constant 0 : index
    %1443 = vector.load %arg34[%c0_764, %c0_765] : memref<32x128xf32, #tpu.memory_space<vmem>>, vector<32x128xf32>
    %cst_766 = arith.constant dense<0.000000e+00> : vector<4x128xf32>
    %1444 = tpu.matmul %1441, %1443, %cst_766 {dimension_numbers = #tpu.dot_dimension_numbers<[1], [0], [0], [1], [0, 0, 1, 1], [], []>} : vector<4x32xf32>, vector<32x128xf32>, vector<4x128xf32> -> vector<4x128xf32>
    %c0_767 = arith.constant 0 : index
    %c0_768 = arith.constant 0 : index
    %1445 = vector.load %arg35[%c0_767, %c0_768] : memref<1x128xf32, #tpu.memory_space<vmem>>, vector<1x128xf32>
    %1446 = vector.broadcast %1445 : vector<1x128xf32> to vector<4x128xf32>
    %1447 = arith.addf %1444, %1446 : vector<4x128xf32>
    %c0_769 = arith.constant 0 : index
    %c0_770 = arith.constant 0 : index
    %1448 = vector.load %arg37[%c0_769, %c0_770] : memref<4x128xf32, #tpu.memory_space<vmem>>, vector<4x128xf32>
    tpu.vector_store %arg37[%c0_769, %c0_770], %1447 {strides = array<i32>} : memref<4x128xf32, #tpu.memory_space<vmem>>, vector<4x128xf32>,
    return
  }
}

</mosaic_0001>

<bundles_post_ra>
// kernel: persona_classifier_forward.1
= control target key start
LH: loop header
LB: loop body
LE: loop exit
PB: predicated region body
PF: predicated region fallthrough
CT: control target
= control target key end

     0   :  { %s12595_s6 = smov 1   ;;  %s12596_s10 = smov 2   ;;  %s14156_s0 = inlined_call_operand.smem [shape: u32[38], index: -1, kind: input, shape index: {}] }
   0x1   :  { %s12670_s5 = sld [smem:[%s14156_s0]]   ;;  %s12597_s14 = smov 3  }
   0x2   :  { %s12675_s9 = sld [smem:[%s14156_s0 + %s12595_s6]]   ;;  %s12598_s18 = smov 4  }
   0x3   :  { %s12680_s13 = sld [smem:[%s14156_s0 + %s12596_s10]]   ;;  %s12599_s22 = smov 5  }
   0x4   :  { %s12685_s17 = sld [smem:[%s14156_s0 + %s12597_s14]]   ;;  %s12600_s26 = smov 6  }
   0x5   :  { %s12690_s21 = sld [smem:[%s14156_s0 + %s12598_s18]]   ;;  %s12601_s30 = smov 7  }
   0x6   :  { %s12695_s25 = sld [smem:[%s14156_s0 + %s12599_s22]]   ;;  %s12602_s4 = smov 8  }
   0x7   :  { %14175 = sst [smem:[#allocation42_spill]] %s12670_s5  ;;  %s12603_s10 = smov 9  }
   0x8   :  { %14176 = sst [smem:[#allocation43_spill]] %s12675_s9  ;;  %s12604_s15 = smov 10  }
   0x9   :  { %14177 = sst [smem:[#allocation44_spill]] %s12680_s13  ;;  %s12605_s20 = smov 11  }
   0xa   :  { %14178 = sst [smem:[#allocation45_spill]] %s12685_s17  ;;  %s12607_s1 = smov 13  }
   0xb   :  { %s12700_s29 = sld [smem:[%s14156_s0 + %s12600_s26]]   ;;  %s12606_s26 = smov 12  }
   0xc   :  { %s12705_s3 = sld [smem:[%s14156_s0 + %s12601_s30]]   ;;  %s12608_s7 = smov 14  }
   0xd   :  { %s12710_s8 = sld [smem:[%s14156_s0 + %s12602_s4]]   ;;  %s12610_s22 = smov 16  }
   0xe   :  { %s12715_s14 = sld [smem:[%s14156_s0 + %s12603_s10]]   ;;  %s12611_s28 = smov 17  }
   0xf   :  { %s12720_s19 = sld [smem:[%s14156_s0 + %s12604_s15]]   ;;  %s12609_s15 = smov 15  }
  0x10   :  { %s12725_s24 = sld [smem:[%s14156_s0 + %s12605_s20]]  }
  0x11   :  { %s12730_s30 = sld [smem:[%s14156_s0 + %s12606_s26]]  }
  0x12   :  { %s12735_s6 = sld [smem:[%s14156_s0 + %s12607_s1]]  }
  0x13   :  { %s12740_s12 = sld [smem:[%s14156_s0 + %s12608_s7]]   ;;  %s12612_s7 = smov 18  }
  0x14   :  { %s12745_s20 = sld [smem:[%s14156_s0 + %s12609_s15]]   ;;  %s12613_s15 = smov 19  }
  0x15   :  { %s12750_s27 = sld [smem:[%s14156_s0 + %s12610_s22]]   ;;  %s12614_s22 = smov 20  }
  0x16   :  { %14179 = sst [smem:[#allocation46_spill]] %s12725_s24 }
  0x17   :  { %s12755_s4 = sld [smem:[%s14156_s0 + %s12611_s28]]   ;;  %s12615_s28 = smov 21  }
  0x18   :  { %s12760_s24 = sld [smem:[%s14156_s0 + %s12612_s7]]   ;;  %s12616_s7 = smov 22  }
  0x1a   :  { %14180 = sst [smem:[#allocation47_spill]] %s12745_s20 }
  0x1b   :  { %14181 = sst [smem:[#allocation48_spill]] %s12750_s27 }
  0x1c   :  { %s12765_s20 = sld [smem:[%s14156_s0 + %s12613_s15]]   ;;  %s12617_s15 = smov 23  }
  0x1d   :  { %14182 = sst [smem:[#allocation49_spill]] %s12755_s4 }
  0x1e   :  { %14183 = sst [smem:[#allocation50_spill]] %s12760_s24 }
  0x1f   :  { %s12770_s27 = sld [smem:[%s14156_s0 + %s12614_s22]]   ;;  %s12618_s22 = smov 24  }
  0x20   :  { %s12775_s4 = sld [smem:[%s14156_s0 + %s12615_s28]]   ;;  %s12619_s28 = smov 25  }
  0x21   :  { %s12780_s24 = sld [smem:[%s14156_s0 + %s12616_s7]]   ;;  %s12620_s7 = smov 26  }
  0x22   :  { %14184 = sst [smem:[#allocation51_spill]] %s12765_s20 }
  0x23   :  { %s12785_s20 = sld [smem:[%s14156_s0 + %s12617_s15]]   ;;  %s12621_s15 = smov 27  }
  0x24   :  { %s12795_s13 = sld [smem:[%s14156_s0 + %s12619_s28]]   ;;  %s12623_s28 = smov 29  }
  0x25   :  { %14185 = sst [smem:[#allocation52_spill]] %s12770_s27 }
  0x26   :  { %s12790_s27 = sld [smem:[%s14156_s0 + %s12618_s22]]   ;;  %s12622_s22 = smov 28  }
  0x27   :  { %14186 = sst [smem:[#allocation53_spill]] %s12780_s24 }
  0x28   :  { %s12800_s24 = sld [smem:[%s14156_s0 + %s12620_s7]]   ;;  %s12624_s7 = smov 30  }
  0x29   :  { %14187 = sst [smem:[#allocation54_spill]] %s12785_s20 }
  0x2a   :  { %14189 = sst [smem:[#allocation56_spill]] %s12795_s13 }
  0x2b   :  { %s12805_s20 = sld [smem:[%s14156_s0 + %s12621_s15]]   ;;  %s12625_s15 = smov 31  }
  0x2c   :  { %14188 = sst [smem:[#allocation55_spill]] %s12790_s27 }
  0x2d   :  { %s12810_s27 = sld [smem:[%s14156_s0 + %s12622_s22]]   ;;  %s12626_s22 = smov 32  }
  0x2e   :  { %14190 = sst [smem:[#allocation57_spill]] %s12800_s24 }
  0x2f   :  { %s12815_s13 = sld [smem:[%s14156_s0 + %s12623_s28]]   ;;  %s12627_s28 = smov 33  }
  0x30   :  { %s12820_s24 = sld [smem:[%s14156_s0 + %s12624_s7]]   ;;  %s12628_s7 = smov 34  }
  0x31   :  { %s12825_s17 = sld [smem:[%s14156_s0 + %s12625_s15]]   ;;  %s12629_s15 = smov 35  }
  0x32   :  { %s12835_s9 = sld [smem:[%s14156_s0 + %s12627_s28]]   ;;  %s12631_s28 = smov 37  }
  0x33   :  { %14191 = sst [smem:[#allocation58_spill]] %s12810_s27 }
  0x34   :  { %s12830_s27 = sld [smem:[%s14156_s0 + %s12626_s22]]   ;;  %s12630_s22 = smov 36  }
  0x35   :  { %s12845_s5 = sld [smem:[%s14156_s0 + %s12629_s15]]  }
  0x36   :  { %14192 = sst [smem:[#allocation59_spill]] %s12820_s24 }
  0x37   :  { %s12840_s24 = sld [smem:[%s14156_s0 + %s12628_s7]]  }
  0x38   :  { %14194 = sst [smem:[#allocation61_spill]] %s12835_s9 }
  0x39   :  { %s12855_s9 = sld [smem:[%s14156_s0 + %s12631_s28]]  }
  0x3a   :  { %14193 = sst [smem:[#allocation60_spill]] %s12830_s27 }
  0x3b   :  { %s12850_s27 = sld [smem:[%s14156_s0 + %s12630_s22]]  }
  0x3c   :  { %81 = vsyncpa [#allocation3], 0 }
  0x3d   :  { %82 = vsyncpa [#allocation6], 0 }
  0x3e   :  { %83 = vsyncpa [#allocation9], 0 }
  0x3f   :  { %84 = vsyncpa [#allocation12], 0 }
  0x40   :  { %85 = vsyncpa [#allocation15], 0 }
  0x41   :  { %86 = vsyncpa [#allocation18], 0 }
  0x42   :  { %87 = vsyncpa [#allocation21], 0 }
  0x43   :  { %88 = vsyncpa [#allocation24], 0 }
  0x44   :  { %89 = vsyncpa [#allocation27], 0 }
  0x45   :  { %90 = vsyncpa [#allocation4], 0 }
  0x46   :  { %91 = vsyncpa [#allocation30], 0  ;;  %s12632_s7 = smov [#allocation5]   ;;  %s12177_s11 = scalar_lea.hbm %s12695_s25, 1536 }
  0x47   :  { %s117_s10 = sshll.u32 %s12632_s7, 4  ;;  %p12178_p0 = scmp.ne.s32.totalorder %s12695_s25, %s12177_s11  ;;  %s118_s10 = int_to_ptr.vmem [resolvable:$true] %s117_s10 }
  0x48   :  { %p12181_p1 = scmp.lt.u32.totalorder %s12177_s11, %s12695_s25 }
  0x4a   :  { %p12183_p2 = pnand %p12181_p1, %p12178_p0 }
  0x4c   :  { %12186 = shalt.err (!%p12183_p2)
}
  0x4d   :  { %s12187_s0 = scalar_lea.vmem %s118_s10, 1536  ;;  %p12192_p4 = scmp.lt.s32.totalorder %s118_s10, %s118_s10 }
  0x4e   :  { %p12188_p3 = scmp.ne.s32.totalorder %s118_s10, %s12187_s0  ;;  %p12193_p5 = scmp.lt.s32.totalorder %s12187_s0, %s12187_s0 }
  0x50   :  { %p12194_p6 = por %p12193_p5, %p12192_p4 }
  0x52   :  { %p12195_p7 = pnand %p12194_p6, %p12188_p3 }
  0x54   :  { %12198 = shalt.err (!%p12195_p7)
}
  0x55   :  { %s12633_s15 = smov 128   ;;  %s12634_s16 = smov 8  }
  0x56   :  { %123 = dma.hbm_to_vmem [thread:$0]  %s12695_s25, 1536, %s118_s10, [#allocation6], %s12633_s15, %s12633_s15, %s12634_s16  }
  0x57   :  { %s12635_s18 = smov [#allocation8]   ;;  %s12636_s23 = smov [#allocation11]  }
  0x58   :  { %s141_s22 = sshll.u32 %s12635_s18, 4  ;;  %s165_s26 = sshll.u32 %s12636_s23, 4  ;;  %s142_s22 = int_to_ptr.vmem [resolvable:$true] %s141_s22  ;;  %s166_s26 = int_to_ptr.vmem [resolvable:$true] %s165_s26 }
  0x59   :  { %s12199_s28 = scalar_lea.hbm %s12705_s3, 96 }
  0x5a   :  { %p12200_p8 = scmp.ne.s32.totalorder %s12705_s3, %s12199_s28  ;;  %p12203_p9 = scmp.lt.u32.totalorder %s12199_s28, %s12705_s3 }
  0x5c   :  { %p12205_p10 = pnand %p12203_p9, %p12200_p8 }
  0x5e   :  { %12208 = shalt.err (!%p12205_p10)
}
  0x5f   :  { %s12209_s1 = scalar_lea.vmem %s142_s22, 96  ;;  %p12214_p12 = scmp.lt.s32.totalorder %s142_s22, %s142_s22 }
  0x60   :  { %p12210_p11 = scmp.ne.s32.totalorder %s142_s22, %s12209_s1  ;;  %p12215_p13 = scmp.lt.s32.totalorder %s12209_s1, %s12209_s1 }
  0x62   :  { %p12216_p0 = por %p12215_p13, %p12214_p12 }
  0x64   :  { %p12217_p1 = pnand %p12216_p0, %p12210_p11 }
  0x66   :  { %12220 = shalt.err (!%p12217_p1)
}
  0x67   :  { %s12637_s2 = smov 16   ;;  %s12638_s25 = smov 1  }
  0x68   :  { %147 = dma.hbm_to_vmem [thread:$0]  %s12705_s3, 96, %s142_s22, [#allocation9], %s12637_s2, %s12637_s2, %s12638_s25  }
  0x69   :  { %s12221_s7 = scalar_lea.hbm %s12715_s14, 1536 }
  0x6a   :  { %p12222_p2 = scmp.ne.s32.totalorder %s12715_s14, %s12221_s7  ;;  %p12225_p3 = scmp.lt.u32.totalorder %s12221_s7, %s12715_s14 }
  0x6c   :  { %p12227_p4 = pnand %p12225_p3, %p12222_p2 }
  0x6e   :  { %12230 = shalt.err (!%p12227_p4)
}
  0x6f   :  { %s12231_s10 = scalar_lea.vmem %s166_s26, 1536  ;;  %p12236_p6 = scmp.lt.s32.totalorder %s166_s26, %s166_s26 }
  0x70   :  { %p12232_p5 = scmp.ne.s32.totalorder %s166_s26, %s12231_s10  ;;  %p12237_p7 = scmp.lt.s32.totalorder %s12231_s10, %s12231_s10 }
  0x72   :  { %p12238_p8 = por %p12237_p7, %p12236_p6 }
  0x74   :  { %p12239_p9 = pnand %p12238_p8, %p12232_p5 }
  0x76   :  { %12242 = shalt.err (!%p12239_p9)
}
  0x77   :  { %171 = dma.hbm_to_vmem [thread:$0]  %s12715_s14, 1536, %s166_s26, [#allocation12], %s12633_s15, %s12633_s15, %s12634_s16  }
  0x78   :  { %s12639_s3 = smov [#allocation14]   ;;  %s12640_s0 = smov [#allocation17]  }
  0x79   :  { %s191_s11 = sshll.u32 %s12639_s3, 4  ;;  %s215_s18 = sshll.u32 %s12640_s0, 4  ;;  %s192_s11 = int_to_ptr.vmem [resolvable:$true] %s191_s11  ;;  %s216_s18 = int_to_ptr.vmem [resolvable:$true] %s215_s18 }
  0x7a   :  { %s12243_s22 = scalar_lea.hbm %s12730_s30, 96 }
  0x7b   :  { %p12244_p10 = scmp.ne.s32.totalorder %s12730_s30, %s12243_s22  ;;  %p12247_p11 = scmp.lt.u32.totalorder %s12243_s22, %s12730_s30 }
  0x7d   :  { %p12249_p12 = pnand %p12247_p11, %p12244_p10 }
  0x7f   :  { %12252 = shalt.err (!%p12249_p12)
}
  0x80   :  { %s12253_s23 = scalar_lea.vmem %s192_s11, 96  ;;  %p12258_p0 = scmp.lt.s32.totalorder %s192_s11, %s192_s11 }
  0x81   :  { %p12254_p13 = scmp.ne.s32.totalorder %s192_s11, %s12253_s23  ;;  %p12259_p1 = scmp.lt.s32.totalorder %s12253_s23, %s12253_s23 }
  0x83   :  { %p12260_p2 = por %p12259_p1, %p12258_p0 }
  0x85   :  { %p12261_p3 = pnand %p12260_p2, %p12254_p13 }
  0x87   :  { %12264 = shalt.err (!%p12261_p3)
}
  0x88   :  { %197 = dma.hbm_to_vmem [thread:$0]  %s12730_s30, 96, %s192_s11, [#allocation15], %s12637_s2, %s12637_s2, %s12638_s25  }
  0x89   :  { %s12265_s14 = scalar_lea.hbm %s12740_s12, 96 }
  0x8a   :  { %p12266_p4 = scmp.ne.s32.totalorder %s12740_s12, %s12265_s14  ;;  %p12269_p5 = scmp.lt.u32.totalorder %s12265_s14, %s12740_s12 }
  0x8c   :  { %p12271_p6 = pnand %p12269_p5, %p12266_p4 }
  0x8e   :  { %12274 = shalt.err (!%p12271_p6)
}
  0x8f   :  { %s12275_s15 = scalar_lea.vmem %s216_s18, 96  ;;  %p12280_p8 = scmp.lt.s32.totalorder %s216_s18, %s216_s18 }
  0x90   :  { %p12276_p7 = scmp.ne.s32.totalorder %s216_s18, %s12275_s15  ;;  %p12281_p9 = scmp.lt.s32.totalorder %s12275_s15, %s12275_s15 }
  0x92   :  { %p12282_p10 = por %p12281_p9, %p12280_p8 }
  0x94   :  { %p12283_p11 = pnand %p12282_p10, %p12276_p7 }
  0x96   :  { %12286 = shalt.err (!%p12283_p11)
}
  0x97   :  { %221 = dma.hbm_to_vmem [thread:$0]  %s12740_s12, 96, %s216_s18, [#allocation18], %s12637_s2, %s12637_s2, %s12638_s25  }
  0x98   :  { %s12641_s30 = smov [#allocation20]   ;;  %s12642_s26 = smov [#allocation23]  }
  0x99   :  { %s261_s16 = sshll.u32 %s12641_s30, 4  ;;  %s289_s28 = sshll.u32 %s12642_s26, 4  ;;  %s262_s16 = int_to_ptr.vmem [resolvable:$true] %s261_s16  ;;  %s290_s28 = int_to_ptr.vmem [resolvable:$true] %s289_s28 }
  0x9a   :  { %s12287_s1 = scalar_lea.hbm %s12805_s20, 96 }
  0x9b   :  { %p12288_p12 = scmp.ne.s32.totalorder %s12805_s20, %s12287_s1  ;;  %p12291_p13 = scmp.lt.u32.totalorder %s12287_s1, %s12805_s20 }
  0x9d   :  { %p12293_p0 = pnand %p12291_p13, %p12288_p12 }
  0x9f   :  { %12296 = shalt.err (!%p12293_p0)
}
  0xa0   :  { %s12297_s7 = scalar_lea.vmem %s262_s16, 96  ;;  %p12302_p2 = scmp.lt.s32.totalorder %s262_s16, %s262_s16 }
  0xa1   :  { %p12298_p1 = scmp.ne.s32.totalorder %s262_s16, %s12297_s7  ;;  %p12303_p3 = scmp.lt.s32.totalorder %s12297_s7, %s12297_s7 }
  0xa3   :  { %p12304_p4 = por %p12303_p3, %p12302_p2 }
  0xa5   :  { %p12305_p5 = pnand %p12304_p4, %p12298_p1 }
  0xa7   :  { %12308 = shalt.err (!%p12305_p5)
}
  0xa8   :  { %267 = dma.hbm_to_vmem [thread:$0]  %s12805_s20, 96, %s262_s16, [#allocation21], %s12637_s2, %s12637_s2, %s12638_s25  }
  0xa9   :  { %s12309_s12 = scalar_lea.hbm %s12825_s17, 96 }
  0xaa   :  { %p12310_p6 = scmp.ne.s32.totalorder %s12825_s17, %s12309_s12  ;;  %p12313_p7 = scmp.lt.u32.totalorder %s12309_s12, %s12825_s17 }
  0xac   :  { %p12315_p8 = pnand %p12313_p7, %p12310_p6 }
  0xae   :  { %12318 = shalt.err (!%p12315_p8)
}
  0xaf   :  { %s12319_s10 = scalar_lea.vmem %s290_s28, 96  ;;  %p12324_p10 = scmp.lt.s32.totalorder %s290_s28, %s290_s28 }
  0xb0   :  { %p12320_p9 = scmp.ne.s32.totalorder %s290_s28, %s12319_s10  ;;  %p12325_p11 = scmp.lt.s32.totalorder %s12319_s10, %s12319_s10 }
  0xb2   :  { %p12326_p12 = por %p12325_p11, %p12324_p10 }
  0xb4   :  { %p12327_p13 = pnand %p12326_p12, %p12320_p9 }
  0xb6   :  { %12330 = shalt.err (!%p12327_p13)
}
  0xb7   :  { %295 = dma.hbm_to_vmem [thread:$0]  %s12825_s17, 96, %s290_s28, [#allocation24], %s12637_s2, %s12637_s2, %s12638_s25  }
  0xb8   :  { %s12643_s20 = smov [#allocation2]   ;;  %s12644_s11 = smov [#allocation7]  }
  0xb9   :  { %s105_s3 = sshll.u32 %s12643_s20, 4  ;;  %s129_s0 = sshll.u32 %s12644_s11, 4  ;;  %s106_s3 = int_to_ptr.vmem [resolvable:$true] %s105_s3  ;;  %s130_s0 = int_to_ptr.vmem [resolvable:$true] %s129_s0 }
  0xba   :  { %s12331_s18 = scalar_lea.hbm %s12690_s21, 96 }
  0xbb   :  { %p12332_p0 = scmp.ne.s32.totalorder %s12690_s21, %s12331_s18  ;;  %p12335_p1 = scmp.lt.u32.totalorder %s12331_s18, %s12690_s21 }
  0xbd   :  { %p12337_p2 = pnand %p12335_p1, %p12332_p0 }
  0xbf   :  { %12340 = shalt.err (!%p12337_p2)
}
  0xc0   :  { %s12341_s22 = scalar_lea.vmem %s106_s3, 96  ;;  %p12346_p4 = scmp.lt.s32.totalorder %s106_s3, %s106_s3 }
  0xc1   :  { %p12342_p3 = scmp.ne.s32.totalorder %s106_s3, %s12341_s22  ;;  %p12347_p5 = scmp.lt.s32.totalorder %s12341_s22, %s12341_s22 }
  0xc3   :  { %p12348_p6 = por %p12347_p5, %p12346_p4 }
  0xc5   :  { %p12349_p7 = pnand %p12348_p6, %p12342_p3 }
  0xc7   :  { %12352 = shalt.err (!%p12349_p7)
}
  0xc8   :  { %111 = dma.hbm_to_vmem [thread:$0]  %s12690_s21, 96, %s106_s3, [#allocation3], %s12637_s2, %s12637_s2, %s12638_s25  }
  0xc9   :  { %s12353_s17 = scalar_lea.hbm %s12700_s29, 96 }
  0xca   :  { %p12354_p8 = scmp.ne.s32.totalorder %s12700_s29, %s12353_s17  ;;  %p12357_p9 = scmp.lt.u32.totalorder %s12353_s17, %s12700_s29 }
  0xcc   :  { %p12359_p10 = pnand %p12357_p9, %p12354_p8 }
  0xce   :  { %12362 = shalt.err (!%p12359_p10)
}
  0xcf   :  { %s12363_s23 = scalar_lea.vmem %s130_s0, 96  ;;  %p12368_p12 = scmp.lt.s32.totalorder %s130_s0, %s130_s0 }
  0xd0   :  { %p12364_p11 = scmp.ne.s32.totalorder %s130_s0, %s12363_s23  ;;  %p12369_p13 = scmp.lt.s32.totalorder %s12363_s23, %s12363_s23 }
  0xd2   :  { %p12370_p0 = por %p12369_p13, %p12368_p12 }
  0xd4   :  { %p12371_p1 = pnand %p12370_p0, %p12364_p11 }
  0xd6   :  { %12374 = shalt.err (!%p12371_p1)
}
  0xd7   :  { %135 = dma.hbm_to_vmem [thread:$0]  %s12700_s29, 96, %s130_s0, [#allocation6], %s12637_s2, %s12637_s2, %s12638_s25  }
  0xd8   :  { %s12645_s21 = smov [#allocation10]   ;;  %s12646_s15 = smov [#allocation13]  }
  0xd9   :  { %s153_s14 = sshll.u32 %s12645_s21, 4  ;;  %s177_s30 = sshll.u32 %s12646_s15, 4  ;;  %s154_s14 = int_to_ptr.vmem [resolvable:$true] %s153_s14  ;;  %s178_s30 = int_to_ptr.vmem [resolvable:$true] %s177_s30 }
  0xda   :  { %s12375_s16 = scalar_lea.hbm %s12710_s8, 96 }
  0xdb   :  { %p12376_p2 = scmp.ne.s32.totalorder %s12710_s8, %s12375_s16  ;;  %p12379_p3 = scmp.lt.u32.totalorder %s12375_s16, %s12710_s8 }
  0xdd   :  { %p12381_p4 = pnand %p12379_p3, %p12376_p2 }
  0xdf   :  { %12384 = shalt.err (!%p12381_p4)
}
  0xe0   :  { %s12385_s26 = scalar_lea.vmem %s154_s14, 96  ;;  %p12390_p6 = scmp.lt.s32.totalorder %s154_s14, %s154_s14 }
  0xe1   :  { %p12386_p5 = scmp.ne.s32.totalorder %s154_s14, %s12385_s26  ;;  %p12391_p7 = scmp.lt.s32.totalorder %s12385_s26, %s12385_s26 }
  0xe3   :  { %p12392_p8 = por %p12391_p7, %p12390_p6 }
  0xe5   :  { %p12393_p9 = pnand %p12392_p8, %p12386_p5 }
  0xe7   :  { %12396 = shalt.err (!%p12393_p9)
}
  0xe8   :  { %159 = dma.hbm_to_vmem [thread:$0]  %s12710_s8, 96, %s154_s14, [#allocation9], %s12637_s2, %s12637_s2, %s12638_s25  }
  0xe9   :  { %s12397_s29 = scalar_lea.hbm %s12720_s19, 96 }
  0xea   :  { %p12398_p10 = scmp.ne.s32.totalorder %s12720_s19, %s12397_s29  ;;  %p12401_p11 = scmp.lt.u32.totalorder %s12397_s29, %s12720_s19 }
  0xec   :  { %p12403_p12 = pnand %p12401_p11, %p12398_p10 }
  0xee   :  { %12406 = shalt.err (!%p12403_p12)
}
  0xef   :  { %s12407_s28 = scalar_lea.vmem %s178_s30, 96  ;;  %p12412_p0 = scmp.lt.s32.totalorder %s178_s30, %s178_s30 }
  0xf0   :  { %p12408_p13 = scmp.ne.s32.totalorder %s178_s30, %s12407_s28  ;;  %p12413_p1 = scmp.lt.s32.totalorder %s12407_s28, %s12407_s28 }
  0xf2   :  { %p12414_p2 = por %p12413_p1, %p12412_p0 }
  0xf4   :  { %p12415_p3 = pnand %p12414_p2, %p12408_p13 }
  0xf6   :  { %12418 = shalt.err (!%p12415_p3)
}
  0xf7   :  { %183 = dma.hbm_to_vmem [thread:$0]  %s12720_s19, 96, %s178_s30, [#allocation12], %s12637_s2, %s12637_s2, %s12638_s25  }
  0xf8   :  { %s12647_s8 = smov [#allocation16]   ;;  %s12648_s7 = smov [#allocation19]  }
  0xf9   :  { %s203_s1 = sshll.u32 %s12647_s8, 4  ;;  %s239_s12 = sshll.u32 %s12648_s7, 4  ;;  %s204_s1 = int_to_ptr.vmem [resolvable:$true] %s203_s1  ;;  %s240_s12 = int_to_ptr.vmem [resolvable:$true] %s239_s12 }
  0xfa   :  { %s12419_s10 = scalar_lea.hbm %s12735_s6, 96 }
  0xfb   :  { %p12420_p4 = scmp.ne.s32.totalorder %s12735_s6, %s12419_s10  ;;  %p12423_p5 = scmp.lt.u32.totalorder %s12419_s10, %s12735_s6 }
  0xfd   :  { %p12425_p6 = pnand %p12423_p5, %p12420_p4 }
  0xff   :  { %12428 = shalt.err (!%p12425_p6)
}
 0x100   :  { %s12429_s20 = scalar_lea.vmem %s204_s1, 96  ;;  %p12434_p8 = scmp.lt.s32.totalorder %s204_s1, %s204_s1 }
 0x101   :  { %p12430_p7 = scmp.ne.s32.totalorder %s204_s1, %s12429_s20  ;;  %p12435_p9 = scmp.lt.s32.totalorder %s12429_s20, %s12429_s20 }
 0x103   :  { %p12436_p10 = por %p12435_p9, %p12434_p8 }
 0x105   :  { %p12437_p11 = pnand %p12436_p10, %p12430_p7 }
 0x107   :  { %12440 = shalt.err (!%p12437_p11)
}
 0x108   :  { %209 = dma.hbm_to_vmem [thread:$0]  %s12735_s6, 96, %s204_s1, [#allocation15], %s12637_s2, %s12637_s2, %s12638_s25  }
 0x109   :  { %s12441_s19 = scalar_lea.hbm %s12775_s4, 96 }
 0x10a   :  { %p12442_p12 = scmp.ne.s32.totalorder %s12775_s4, %s12441_s19  ;;  %p12445_p13 = scmp.lt.u32.totalorder %s12441_s19, %s12775_s4 }
 0x10c   :  { %p12447_p0 = pnand %p12445_p13, %p12442_p12 }
 0x10e   :  { %12450 = shalt.err (!%p12447_p0)
}
 0x10f   :  { %s12451_s3 = scalar_lea.vmem %s240_s12, 96  ;;  %p12456_p2 = scmp.lt.s32.totalorder %s240_s12, %s240_s12 }
 0x110   :  { %p12452_p1 = scmp.ne.s32.totalorder %s240_s12, %s12451_s3  ;;  %p12457_p3 = scmp.lt.s32.totalorder %s12451_s3, %s12451_s3 }
 0x112   :  { %p12458_p4 = por %p12457_p3, %p12456_p2 }
 0x114   :  { %p12459_p5 = pnand %p12458_p4, %p12452_p1 }
 0x116   :  { %12462 = shalt.err (!%p12459_p5)
}
 0x117   :  { %245 = dma.hbm_to_vmem [thread:$0]  %s12775_s4, 96, %s240_s12, [#allocation18], %s12637_s2, %s12637_s2, %s12638_s25  }
 0x118   :  { %s12649_s6 = smov [#allocation22]   ;;  %s12650_s0 = smov [#allocation25]  }
 0x119   :  { %s275_s11 = sshll.u32 %s12649_s6, 4  ;;  %s303_s18 = sshll.u32 %s12650_s0, 4  ;;  %s276_s11 = int_to_ptr.vmem [resolvable:$true] %s275_s11  ;;  %s304_s18 = int_to_ptr.vmem [resolvable:$true] %s303_s18 }
 0x11a   :  { %s12463_s22 = scalar_lea.hbm %s12815_s13, 96 }
 0x11b   :  { %p12464_p6 = scmp.ne.s32.totalorder %s12815_s13, %s12463_s22  ;;  %p12467_p7 = scmp.lt.u32.totalorder %s12463_s22, %s12815_s13 }
 0x11d   :  { %p12469_p8 = pnand %p12467_p7, %p12464_p6 }
 0x11f   :  { %12472 = shalt.err (!%p12469_p8)
}
 0x120   :  { %s12473_s17 = scalar_lea.vmem %s276_s11, 96  ;;  %p12478_p10 = scmp.lt.s32.totalorder %s276_s11, %s276_s11 }
 0x121   :  { %p12474_p9 = scmp.ne.s32.totalorder %s276_s11, %s12473_s17  ;;  %p12479_p11 = scmp.lt.s32.totalorder %s12473_s17, %s12473_s17 }
 0x123   :  { %p12480_p12 = por %p12479_p11, %p12478_p10 }
 0x125   :  { %p12481_p13 = pnand %p12480_p12, %p12474_p9 }
 0x127   :  { %12484 = shalt.err (!%p12481_p13)
}
 0x128   :  { %s14195_s4 = sld [smem:[#allocation61_spill]] }
 0x129   :  { %281 = dma.hbm_to_vmem [thread:$0]  %s12815_s13, 96, %s276_s11, [#allocation21], %s12637_s2, %s12637_s2, %s12638_s25  }
 0x12e   :  { %s12485_s23 = scalar_lea.hbm %s14195_s4, 96 }
 0x12f   :  { %p12486_p0 = scmp.ne.s32.totalorder %s14195_s4, %s12485_s23  ;;  %p12489_p1 = scmp.lt.u32.totalorder %s12485_s23, %s14195_s4 }
 0x131   :  { %p12491_p2 = pnand %p12489_p1, %p12486_p0 }
 0x133   :  { %12494 = shalt.err (!%p12491_p2)
}
 0x134   :  { %s12495_s21 = scalar_lea.vmem %s304_s18, 96  ;;  %p12500_p4 = scmp.lt.s32.totalorder %s304_s18, %s304_s18 }
 0x135   :  { %p12496_p3 = scmp.ne.s32.totalorder %s304_s18, %s12495_s21  ;;  %p12501_p5 = scmp.lt.s32.totalorder %s12495_s21, %s12495_s21 }
 0x137   :  { %p12502_p6 = por %p12501_p5, %p12500_p4 }
 0x139   :  { %p12503_p7 = pnand %p12502_p6, %p12496_p3 }
 0x13b   :  { %12506 = shalt.err (!%p12503_p7)
}
 0x13c   :  { %309 = dma.hbm_to_vmem [thread:$0]  %s14195_s4, 96, %s304_s18, [#allocation24], %s12637_s2, %s12637_s2, %s12638_s25  }
 0x13d   :  { %s12651_s13 = smov [#allocation26]   ;;  %s12507_s15 = scalar_lea.hbm %s12845_s5, 16 }
 0x13e   :  { %s318_s14 = sshll.u32 %s12651_s13, 4  ;;  %p12508_p8 = scmp.ne.s32.totalorder %s12845_s5, %s12507_s15  ;;  %s319_s14 = int_to_ptr.vmem [resolvable:$true] %s318_s14 }
 0x13f   :  { %p12511_p9 = scmp.lt.u32.totalorder %s12507_s15, %s12845_s5 }
 0x141   :  { %p12513_p10 = pnand %p12511_p9, %p12508_p8 }
 0x143   :  { %12516 = shalt.err (!%p12513_p10)
}
 0x144   :  { %s12517_s30 = scalar_lea.vmem %s319_s14, 16  ;;  %s12521_s16 = scalar_lea.vmem %s319_s14, 32 }
 0x145   :  { %p12518_p11 = scmp.ne.s32.totalorder %s319_s14, %s12517_s30  ;;  %p12522_p12 = scmp.lt.s32.totalorder %s319_s14, %s319_s14 }
 0x146   :  { %p12523_p13 = scmp.lt.s32.totalorder %s12521_s16, %s12517_s30 }
 0x148   :  { %p12524_p0 = por %p12523_p13, %p12522_p12 }
 0x14a   :  { %p12525_p1 = pnand %p12524_p0, %p12518_p11 }
 0x14c   :  { %12528 = shalt.err (!%p12525_p1)
}
 0x14d   :  { %321 = dma.hbm_to_vmem [thread:$0]  %s12845_s5, 16, %s319_s14, [#allocation27]  }
 0x14e   :  { %12573 = dma.done.wait [#allocation3], 96  }
 0x14f   :  { %12574 = vsyncadd [#allocation3], 4294967200 }
 0x150   :  { %12575 = dma.done.wait [#allocation6], 1632  }
 0x151   :  { %12576 = vsyncadd [#allocation6], 4294965664 }
 0x152   :  { %12577 = dma.done.wait [#allocation9], 192  }
 0x153   :  { %12578 = vsyncadd [#allocation9], 4294967104 }
 0x154   :  { %12579 = dma.done.wait [#allocation12], 1632  }
 0x155   :  { %12580 = vsyncadd [#allocation12], 4294965664 }
 0x156   :  { %12581 = dma.done.wait [#allocation15], 192  }
 0x157   :  { %12582 = vsyncadd [#allocation15], 4294967104 }
 0x158   :  { %12583 = dma.done.wait [#allocation18], 192  }
 0x159   :  { %12584 = vsyncadd [#allocation18], 4294967104 }
 0x15a   :  { %12585 = dma.done.wait [#allocation21], 192  }
 0x15b   :  { %12586 = vsyncadd [#allocation21], 4294967104 }
 0x15c   :  { %12587 = dma.done.wait [#allocation24], 192  }
 0x15d   :  { %12588 = vsyncadd [#allocation24], 4294967104 }
 0x15e   :  { %12589 = dma.done.wait [#allocation27], 16  }
 0x15f   :  { %12590 = vsyncadd [#allocation27], 4294967280  ;;  %s14196_s25 = sld [smem:[#allocation42_spill]]  ;;  %s14197_s5 = sld [smem:[#allocation43_spill]]  ;;  %v12652_v0 = vmov 0   ;;  %vm400_vm0 = vcmask 1041408   ;;  %v372_v13 = vlaneseq }
 0x160   :  { %11960 = vset.pattern.permute.xlu0 %v12652_v0  ;;  %s14198_s26 = sld [smem:[#allocation45_spill]]  ;;  %vm393_vm1 = vcmask 408576   ;;  %s14199_s29 = sld [smem:[#allocation44_spill]]  ;;  %v12653_v16 = vmov 0.0   ;;  %vm499_vm4 = vcmask 130048   ;;  %v581_v30 = vld [vmem:[#allocation5] sm:$0xff] }
 0x161   :  { %v373_v14 = vand.u32 127, %v372_v13  ;;  %v582_v31 = vld [vmem:[#allocation5 + $0x8] sm:$0xff]  ;;  %v9918_v33 = vld [vmem:[#allocation2] ss:$0 sm:$0xff]  ;;  %v9921_v38 = vld [vmem:[#allocation7] ss:$0 sm:$0xff] }
 0x162   :  { %v11452_v32 = vpack.c.bf16 %v582_v31, %v581_v30  ;;  %s14200_s28 = sld [smem:[#allocation46_spill]]  ;;  %v718_v57 = vld [vmem:[#allocation11] sm:$0xff]  ;;  %v719_v58 = vld [vmem:[#allocation11 + $0x8] sm:$0xff]  ;;  %vm825_vm5 = vcmask 523264   ;;  %s14201_s8 = sld [smem:[#allocation47_spill]]  ;;  %vm12655_vm6 = vmmov 0  }
 0x163   :  { %v11456_v59 = vpack.c.bf16 %v719_v58, %v718_v57  ;;  %s14202_s1 = sld [smem:[#allocation50_spill]]  ;;  %s14203_s7 = sld [smem:[#allocation52_spill]]  ;;  %vm3673_vm7 = vcmask 261120   ;;  %vm3934_vm8 = vcmask 123904   ;;  %vm4257_vm9 = vcmask 257024  }
 0x164   :  { %s14204_s12 = sld [smem:[#allocation48_spill]]  ;;  %s14205_s10 = sld [smem:[#allocation49_spill]] }
 0x165   :  { %v370_v1 = vld [vmem:[%s14196_s25] sm:$0xff]  ;;  %v387_v3 = vld [vmem:[%s14197_s5 + $0x8] sm:$0xff]  ;;  %v388_v4 = vld [vmem:[%s14197_s5 + $0x10] sm:$0xff]  ;;  %s14206_s20 = sld [smem:[#allocation53_spill]]  ;;  %s14207_s19 = sld [smem:[#allocation51_spill]] }
 0x166   :  { %v386_v2 = vld [vmem:[%s14197_s5] sm:$0xff]  ;;  %375 = vperm.xlu0 %11960, %v370_v1   ;;  %v389_v5 = vld [vmem:[%s14197_s5 + $0x18] sm:$0xff]  ;;  %v371_v6 = vld [vmem:[%s14196_s25 + $0x8] sm:$0xff]  ;;  %s14208_s3 = sld [smem:[#allocation54_spill]]  ;;  %s12657_s6 = smov 112  }
 0x167   :  { %v11436_v7 = vpack.c.bf16 %v387_v3, %v386_v2  ;;  %v11440_v8 = vpack.c.bf16 %v389_v5, %v388_v4  ;;  %v390_v9 = vld [vmem:[%s14197_s5 + $0x20] sm:$0xff]  ;;  %v391_v10 = vld [vmem:[%s14197_s5 + $0x28] sm:$0xff]  ;;  %v392_v12 = vld [vmem:[%s14197_s5 + $0x30] sm:$0x3]  ;;  %s14209_s11 = sld [smem:[#allocation55_spill]]  ;;  %s14210_s0 = sld [smem:[#allocation56_spill]] }
 0x168   :  { %v11444_v11 = vpack.c.bf16 %v391_v10, %v390_v9  ;;  %v490_v20 = vld [vmem:[%s14198_s26] sm:$0xff]  ;;  %v491_v21 = vld [vmem:[%s14198_s26 + $0x8] sm:$0xff]  ;;  %s14211_s18 = sld [smem:[#allocation58_spill]]  ;;  %s14212_s22 = sld [smem:[#allocation59_spill]] }
 0x169   :  { %11437 = vmatprep.subr.bf16.mxu0 %v11436_v7  ;;  %v11448_v22 = vpack.c.bf16 %v491_v21, %v490_v20  ;;  %v9917_v25 = vld [vmem:[%s14199_s29] ss:$0 sm:$0xff]  ;;  %v811_v61 = vld [vmem:[%s14200_s28 + $0x8] sm:$0xff]  ;;  %s14213_s17 = sld [smem:[#allocation57_spill]]  ;;  %s14214_s4 = sld [smem:[#allocation60_spill]] }
 0x16a   :  { %378 = vperm.xlu0 %11960, %v371_v6   ;;  %11439 = vmatpush3.bf16.msra.mxu0 %v11436_v7  ;;  %v810_v60 = vld [vmem:[%s14200_s28] sm:$0xff]  ;;  %v9924_v6 = vld [vmem:[#allocation8] ss:$0 sm:$0xff] }
 0x16b   :  { %11441 = vmatprep.subr.bf16.mxu0 %v11440_v8  ;;  %11449 = vmatprep.subr.bf16.mxu1 %v11448_v22  ;;  %v11460_v62 = vpack.c.bf16 %v811_v61, %v810_v60  ;;  %v814_v20 = vld [vmem:[%s14200_s28 + $0x20] sm:$0xff]  ;;  %v815_v21 = vld [vmem:[%s14200_s28 + $0x28] sm:$0xff] }
 0x16c   :  { %11451 = vmatpush3.bf16.msra.mxu1 %v11448_v22  ;;  %v11468_v22 = vpack.c.bf16 %v815_v21, %v814_v20 }
 0x16d   :  { %11453 = vmatprep.subr.bf16.mxu1 %v11452_v32 }
 0x16e   :  { %11443 = vmatpush3.bf16.msra.mxu0 %v11440_v8  ;;  %v9925_v8 = vld [vmem:[#allocation10] ss:$0 sm:$0xff] }
 0x16f   :  { %11445 = vmatprep.subr.bf16.mxu0 %v11444_v11 }
 0x172   :  { %11447 = vmatpush3.bf16.msra.mxu0 %v11444_v11 }
 0x173   :  { %10708 = vmatprep.subr.msk.mxu0 %vm400_vm0, %v392_v12 }
 0x176   :  { %10709 = vmatpush3.msk.msra.mxu0 %vm400_vm0, %v392_v12 }
 0x1e5   :  { %v376_v15 = vpop.permute.xlu0 %375 }
 0x1e6   :  { %vm380_vm2 = vcmp.eq.s32.totalorder %v373_v14, %v376_v15  ;;  %v813_v15 = vld [vmem:[%s14200_s28 + $0x18] sm:$0xff] }
 0x1e7   :  { %v9912_v17 = vsel %vm380_vm2, 1.0, %v12653_v16 }
 0x1e8   :  { %10710 = vmatprep.mubr.msk.f32.mxu0 %vm393_vm1, %v9912_v17 }
 0x1e9   :  { %v379_v18 = vpop.permute.xlu0 %378 }
 0x1ea   :  { %vm381_vm3 = vcmp.eq.s32.totalorder %v373_v14, %v379_v18  ;;  %v812_v14 = vld [vmem:[%s14200_s28 + $0x10] sm:$0xff] }
 0x1eb   :  { %v9913_v19 = vsel %vm381_vm3, 1.0, %v12653_v16 }
 0x1ec   :  { %10711 = vmatmul.mubr.msk.f32.vlgmr.msra.gmra.mrb[0].mxu0 %vm393_vm1, %v9913_v19  ;;  %v11464_v19 = vpack.c.bf16 %v813_v15, %v812_v14 }
 0x2bf   :  { %v10712_v23 = vpop.f32.mrb[0].mxu0 }
 0x2c0   :  { %v480_v24 = vmul.f32 4.0, %v10712_v23  ;;  %v470_v26 = vpop.f32.mrb[1].mxu0  ;;  %v816_v23 = vld [vmem:[%s14200_s28 + $0x30] sm:$0xff] }
 0x2c1   :  { %v479_v27 = vmul.f32 4.0, %v470_v26  ;;  %v9926_v26 = vld [vmem:[#allocation13] ss:$0 sm:$0xff] }
 0x2c2   :  { %v489_v29 = vadd.f32 %v9917_v25, %v480_v24  ;;  %v817_v24 = vld [vmem:[%s14200_s28 + $0x38] sm:$0xff] }
 0x2c3   :  { %v488_v28 = vadd.f32 %v9917_v25, %v479_v27  ;;  %v11472_v25 = vpack.c.bf16 %v817_v24, %v816_v23 }
 0x2c5   :  { %10717 = vmatprep.mubr.msk.f32.mxu1 %vm499_vm4, %v488_v28 }
 0x2c6   :  { %10718 = vmatmul.mubr.msk.f32.vlgmr.msra.gmra.mrb[0].mxu1 %vm499_vm4, %v489_v29 }
 0x2c7   :  { %11455 = vmatpush3.bf16.msra.mxu1 %v11452_v32 }
 0x2c8   :  { %11457 = vmatprep.subr.bf16.mxu1 %v11456_v59 }
 0x399   :  { %v10719_v34 = vpop.f32.mrb[0].mxu1 }
 0x39a   :  { %v572_v35 = vpop.f32.mrb[1].mxu1  ;;  %v578_v37 = vadd.f32 %v10719_v34, %v9918_v33 }
 0x39b   :  { %v573_v36 = vadd.f32 %v9918_v33, %v572_v35  ;;  %v9929_v33 = vld [vmem:[#allocation14] ss:$0 sm:$0xff] }
 0x39d   :  { %10724 = vmatprep.mubr.msk.f32.mxu1 %vm499_vm4, %v573_v36 }
 0x39e   :  { %10725 = vmatmul.mubr.msk.f32.vlgmr.msra.gmra.mrb[2].mxu1 %vm499_vm4, %v578_v37 }
 0x39f   :  { %11459 = vmatpush3.bf16.msra.mxu1 %v11456_v59 }
 0x3a0   :  { %11461 = vmatprep.subr.bf16.mxu1 %v11460_v62 }
 0x471   :  { %v10726_v39 = vpop.f32.mrb[2].mxu1 }
 0x472   :  { %v662_v40 = vpop.f32.mrb[3].mxu1  ;;  %v668_v41 = vadd.f32 %v10726_v39, %v9921_v38 }
 0x473   :  { %v663_v42 = vadd.f32 %v9921_v38, %v662_v40 }
 0x474   :  { %v672_v45 = vadd.f32 %v668_v41, %v489_v29 }
 0x475   :  { %v671_v43 = vadd.f32 %v663_v42, %v488_v28 }
 0x476   :  { %v678_v46 = vsel %vm499_vm4, %v672_v45, 0.0 }
 0x477   :  { %v675_v44 = vsel %vm499_vm4, %v671_v43, 0.0 }
 0x478   :  { %676 = vadd.xlane.f32.xlu1 %v675_v44 }
 0x47c   :  { %679 = vadd.xlane.f32.xlu1 %v678_v46 }
 0x505   :  { %v677_v47 = vpop.xlane.xlu1 %676 }
 0x506   :  { %v682_v48 = vmul.f32 0.0625, %v677_v47 }
 0x508   :  { %v684_v49 = vsub.f32 %v671_v43, %v682_v48 }
 0x509   :  { %v680_v50 = vpop.xlane.xlu1 %679 }
 0x50a   :  { %v683_v51 = vmul.f32 0.0625, %v680_v50  ;;  %v686_v52 = vmul.f32 %v684_v49, %v684_v49 }
 0x50c   :  { %v685_v53 = vsub.f32 %v672_v45, %v683_v51  ;;  %v688_v54 = vsel %vm499_vm4, %v686_v52, 0.0  ;;  %v9934_v52 = vld [vmem:[%s14198_s26 + $0x10] sm:$0xff] }
 0x50d   :  { %689 = vadd.xlane.f32.xlu0 %v688_v54 }
 0x50e   :  { %v687_v55 = vmul.f32 %v685_v53, %v685_v53 }
 0x510   :  { %v691_v56 = vsel %vm499_vm4, %v687_v55, 0.0 }
 0x511   :  { %692 = vadd.xlane.f32.xlu1 %v691_v56 }
 0x59a   :  { %v690_v63 = vpop.xlane.xlu0 %689 }
 0x59b   :  { %v694_v0 = vmul.f32 0.0625, %v690_v63 }
 0x59d   :  { %v696_v1 = vadd.f32 1e-05, %v694_v0  ;;  %v9933_v0 = vld [vmem:[#allocation17] ss:$0 sm:$0xff] }
 0x59e   :  { %v693_v2 = vpop.xlane.xlu1 %692 }
 0x59f   :  { %11961 = vrsqrt.f32 %v696_v1  ;;  %v695_v3 = vmul.f32 0.0625, %v693_v2 }
 0x5a1   :  { %v697_v4 = vadd.f32 1e-05, %v695_v3 }
 0x5a3   :  { %11963 = vrsqrt.f32 %v697_v4 }
 0x5a9   :  { %v11962_v5 = vpop.eup %11961 }
 0x5aa   :  { %v700_v7 = vmul.f32 %v11962_v5, %v684_v49 }
 0x5ac   :  { %v708_v9 = vmul.f32 %v9924_v6, %v700_v7  ;;  %v1046_v7 = vld [vmem:[#allocation5 + $0x10] sm:$0xff] }
 0x5ad   :  { %v11964_v10 = vpop.eup %11963 }
 0x5ae   :  { %v701_v11 = vmul.f32 %v11964_v10, %v685_v53  ;;  %v716_v12 = vadd.f32 %v9925_v8, %v708_v9  ;;  %v9935_v53 = vld [vmem:[%s14198_s26 + $0x18] sm:$0xff]  ;;  %v9936_v10 = vld [vmem:[#allocation2 + $0x1] ss:$0 sm:$0xff] }
 0x5af   :  { %v11476_v54 = vpack.c.bf16 %v9935_v53, %v9934_v52 }
 0x5b0   :  { %v709_v17 = vmul.f32 %v9924_v6, %v701_v11  ;;  %10731 = vmatprep.mubr.msk.f32.mxu1 %vm499_vm4, %v716_v12 }
 0x5b2   :  { %v717_v18 = vadd.f32 %v9925_v8, %v709_v17  ;;  %v1047_v8 = vld [vmem:[#allocation5 + $0x18] sm:$0xff]  ;;  %v9939_v17 = vld [vmem:[#allocation7 + $0x1] ss:$0 sm:$0xff] }
 0x5b3   :  { %v11480_v9 = vpack.c.bf16 %v1047_v8, %v1046_v7 }
 0x5b4   :  { %10732 = vmatmul.mubr.msk.f32.vlgmr.msra.gmra.mrb[4].mxu1 %vm499_vm4, %v717_v18 }
 0x5b5   :  { %11463 = vmatpush3.bf16.msra.mxu1 %v11460_v62  ;;  %v9932_v62 = vld [vmem:[#allocation16] ss:$0 sm:$0xff]  ;;  %11481 = vmatprep.subr.bf16.mxu0 %v11480_v9 }
 0x5b6   :  { %11465 = vmatprep.subr.bf16.mxu1 %v11464_v19  ;;  %11483 = vmatpush3.bf16.msra.mxu0 %v11480_v9 }
 0x5b9   :  { %11467 = vmatpush3.bf16.msra.mxu1 %v11464_v19 }
 0x5ba   :  { %11469 = vmatprep.subr.bf16.mxu1 %v11468_v22 }
 0x5bd   :  { %11471 = vmatpush3.bf16.msra.mxu1 %v11468_v22 }
 0x5be   :  { %11473 = vmatprep.subr.bf16.mxu1 %v11472_v25 }
 0x5c1   :  { %11475 = vmatpush3.bf16.msra.mxu1 %v11472_v25 }
 0x5c2   :  { %11477 = vmatprep.subr.bf16.mxu1 %v11476_v54 }
 0x687   :  { %v10733_v27 = vpop.f32.mrb[4].mxu1 }
 0x688   :  { %v805_v28 = vadd.f32 %v10733_v27, %v9926_v26  ;;  %v799_v29 = vpop.f32.mrb[5].mxu1 }
 0x689   :  { %v800_v30 = vadd.f32 %v9926_v26, %v799_v29 }
 0x68a   :  { %v809_v32 = vmax.f32 %v805_v28, 0.0 }
 0x68b   :  { %v808_v31 = vmax.f32 %v800_v30, 0.0 }
 0x68d   :  { %10750 = vmatprep.mubr.msk.f32.mxu1 %vm825_vm5, %v808_v31 }
 0x68e   :  { %10751 = vmatmul.mubr.msk.f32.vlgmr.msra.gmra.mrb[6].mxu1 %vm825_vm5, %v809_v32 }
 0x68f   :  { %11479 = vmatpush3.bf16.msra.mxu1 %v11476_v54 }
 0x761   :  { %v10752_v34 = vpop.f32.mrb[6].mxu1 }
 0x762   :  { %v898_v35 = vpop.f32.mrb[7].mxu1  ;;  %v904_v36 = vadd.f32 %v10752_v34, %v9929_v33 }
 0x763   :  { %v899_v37 = vadd.f32 %v9929_v33, %v898_v35 }
 0x764   :  { %v908_v40 = vadd.f32 %v904_v36, %v717_v18  ;;  %v1186_v36 = vld [vmem:[#allocation11 + $0x10] sm:$0xff] }
 0x765   :  { %v907_v38 = vadd.f32 %v899_v37, %v716_v12  ;;  %v1187_v37 = vld [vmem:[#allocation11 + $0x18] sm:$0xff] }
 0x766   :  { %v914_v41 = vsel %vm499_vm4, %v908_v40, 0.0 }
 0x767   :  { %v911_v39 = vsel %vm499_vm4, %v907_v38, 0.0 }
 0x768   :  { %912 = vadd.xlane.f32.xlu1 %v911_v39  ;;  %v9947_v39 = vld [vmem:[%s14200_s28 + $0x40] sm:$0xff] }
 0x76c   :  { %915 = vadd.xlane.f32.xlu1 %v914_v41 }
 0x7f5   :  { %v913_v42 = vpop.xlane.xlu1 %912 }
 0x7f6   :  { %v917_v43 = vmul.f32 0.0625, %v913_v42 }
 0x7f8   :  { %v919_v44 = vsub.f32 %v907_v38, %v917_v43  ;;  %v11484_v38 = vpack.c.bf16 %v1187_v37, %v1186_v36 }
 0x7f9   :  { %v916_v45 = vpop.xlane.xlu1 %915 }
 0x7fa   :  { %v918_v46 = vmul.f32 0.0625, %v916_v45  ;;  %v921_v47 = vmul.f32 %v919_v44, %v919_v44  ;;  %11485 = vmatprep.subr.bf16.mxu0 %v11484_v38 }
 0x7fc   :  { %v920_v48 = vsub.f32 %v908_v40, %v918_v46  ;;  %v923_v49 = vsel %vm499_vm4, %v921_v47, 0.0  ;;  %v9948_v40 = vld [vmem:[%s14200_s28 + $0x48] sm:$0xff] }
 0x7fd   :  { %924 = vadd.xlane.f32.xlu1 %v923_v49  ;;  %v11488_v41 = vpack.c.bf16 %v9948_v40, %v9947_v39  ;;  %v9942_v49 = vld [vmem:[#allocation8 + $0x1] ss:$0 sm:$0xff] }
 0x7fe   :  { %v922_v50 = vmul.f32 %v920_v48, %v920_v48 }
 0x800   :  { %v926_v51 = vsel %vm499_vm4, %v922_v50, 0.0 }
 0x801   :  { %927 = vadd.xlane.f32.xlu1 %v926_v51  ;;  %v9943_v51 = vld [vmem:[#allocation10 + $0x1] ss:$0 sm:$0xff] }
 0x88a   :  { %v925_v55 = vpop.xlane.xlu1 %924 }
 0x88b   :  { %v929_v56 = vmul.f32 0.0625, %v925_v55 }
 0x88d   :  { %v931_v57 = vadd.f32 1e-05, %v929_v56  ;;  %v9949_v56 = vld [vmem:[%s14200_s28 + $0x50] sm:$0xff] }
 0x88e   :  { %v928_v58 = vpop.xlane.xlu1 %927 }
 0x88f   :  { %11965 = vrsqrt.f32 %v931_v57  ;;  %v930_v59 = vmul.f32 0.0625, %v928_v58  ;;  %v9950_v57 = vld [vmem:[%s14200_s28 + $0x58] sm:$0xff] }
 0x891   :  { %v932_v60 = vadd.f32 1e-05, %v930_v59 }
 0x893   :  { %11967 = vrsqrt.f32 %v932_v60  ;;  %v11492_v60 = vpack.c.bf16 %v9950_v57, %v9949_v56 }
 0x899   :  { %v11966_v61 = vpop.eup %11965 }
 0x89a   :  { %v935_v63 = vmul.f32 %v11966_v61, %v919_v44  ;;  %v9951_v61 = vld [vmem:[%s14200_s28 + $0x60] sm:$0xff] }
 0x89c   :  { %v943_v1 = vmul.f32 %v9932_v62, %v935_v63 }
 0x89d   :  { %v11968_v2 = vpop.eup %11967 }
 0x89e   :  { %v936_v3 = vmul.f32 %v11968_v2, %v920_v48  ;;  %v951_v4 = vadd.f32 %v9933_v0, %v943_v1  ;;  %v9954_v1 = vld [vmem:[%s14200_s28 + $0x78] sm:$0xff] }
 0x8a0   :  { %v944_v5 = vmul.f32 %v9932_v62, %v936_v3  ;;  %10757 = vmatprep.mubr.msk.f32.mxu1 %vm499_vm4, %v951_v4  ;;  %v9952_v62 = vld [vmem:[%s14200_s28 + $0x68] sm:$0xff]  ;;  %v9944_v3 = vld [vmem:[#allocation13 + $0x1] ss:$0 sm:$0xff] }
 0x8a1   :  { %v11496_v63 = vpack.c.bf16 %v9952_v62, %v9951_v61 }
 0x8a2   :  { %v952_v6 = vadd.f32 %v9933_v0, %v944_v5  ;;  %v9953_v0 = vld [vmem:[%s14200_s28 + $0x70] sm:$0xff] }
 0x8a3   :  { %v11500_v2 = vpack.c.bf16 %v9954_v1, %v9953_v0 }
 0x8a4   :  { %10758 = vmatmul.mubr.msk.f32.vlgmr.msra.gmra.mrb[8].mxu1 %vm499_vm4, %v952_v6 }
 0x977   :  { %v10759_v11 = vpop.f32.mrb[8].mxu1 }
 0x978   :  { %v1036_v12 = vpop.f32.mrb[9].mxu1  ;;  %v1042_v15 = vadd.f32 %v10759_v11, %v9936_v10 }
 0x979   :  { %v1037_v14 = vadd.f32 %v9936_v10, %v1036_v12  ;;  %v9955_v10 = vld [vmem:[#allocation14 + $0x1] ss:$0 sm:$0xff] }
 0x97b   :  { %10764 = vmatprep.mubr.msk.f32.mxu0 %vm499_vm4, %v1037_v14 }
 0x97c   :  { %10765 = vmatmul.mubr.msk.f32.vlgmr.msra.gmra.mrb[2].mxu0 %vm499_vm4, %v1042_v15 }
 0x97d   :  { %11487 = vmatpush3.bf16.msra.mxu0 %v11484_v38 }
 0x97e   :  { %11489 = vmatprep.subr.bf16.mxu0 %v11488_v41 }
 0xa4f   :  { %v10766_v18 = vpop.f32.mrb[2].mxu0 }
 0xa50   :  { %v1128_v19 = vpop.f32.mrb[3].mxu0  ;;  %v1134_v20 = vadd.f32 %v10766_v18, %v9939_v17 }
 0xa51   :  { %v1129_v21 = vadd.f32 %v9939_v17, %v1128_v19 }
 0xa52   :  { %v1138_v24 = vadd.f32 %v1134_v20, %v952_v6 }
 0xa53   :  { %v1137_v22 = vadd.f32 %v1129_v21, %v951_v4 }
 0xa54   :  { %v1146_v25 = vsel %vm499_vm4, %v1138_v24, 0.0 }
 0xa55   :  { %v1143_v23 = vsel %vm499_vm4, %v1137_v22, 0.0 }
 0xa56   :  { %1144 = vadd.xlane.f32.xlu1 %v1143_v23 }
 0xa5a   :  { %1147 = vadd.xlane.f32.xlu1 %v1146_v25 }
 0xae3   :  { %v1145_v26 = vpop.xlane.xlu1 %1144 }
 0xae4   :  { %v1149_v27 = vmul.f32 0.0625, %v1145_v26 }
 0xae6   :  { %v1151_v28 = vsub.f32 %v1137_v22, %v1149_v27 }
 0xae7   :  { %v1148_v29 = vpop.xlane.xlu1 %1147 }
 0xae8   :  { %v1150_v30 = vmul.f32 0.0625, %v1148_v29  ;;  %v1153_v31 = vmul.f32 %v1151_v28, %v1151_v28 }
 0xaea   :  { %v1152_v32 = vsub.f32 %v1138_v24, %v1150_v30  ;;  %v1155_v33 = vsel %vm499_vm4, %v1153_v31, 0.0  ;;  %v9960_v31 = vld [vmem:[%s14198_s26 + $0x20] sm:$0xff] }
 0xaeb   :  { %1156 = vadd.xlane.f32.xlu1 %v1155_v33 }
 0xaec   :  { %v1154_v34 = vmul.f32 %v1152_v32, %v1152_v32 }
 0xaee   :  { %v1158_v35 = vsel %vm499_vm4, %v1154_v34, 0.0 }
 0xaef   :  { %1159 = vadd.xlane.f32.xlu0 %v1158_v35 }
 0xb78   :  { %v1157_v42 = vpop.xlane.xlu1 %1156 }
 0xb79   :  { %v1161_v43 = vmul.f32 0.0625, %v1157_v42 }
 0xb7b   :  { %v1163_v44 = vadd.f32 1e-05, %v1161_v43 }
 0xb7c   :  { %v1160_v45 = vpop.xlane.xlu0 %1159 }
 0xb7d   :  { %11969 = vrsqrt.f32 %v1163_v44  ;;  %v1162_v46 = vmul.f32 0.0625, %v1160_v45  ;;  %v9959_v45 = vld [vmem:[#allocation17 + $0x1] ss:$0 sm:$0xff] }
 0xb7f   :  { %v1164_v47 = vadd.f32 1e-05, %v1162_v46 }
 0xb81   :  { %11971 = vrsqrt.f32 %v1164_v47 }
 0xb87   :  { %v11970_v48 = vpop.eup %11969 }
 0xb88   :  { %v1167_v50 = vmul.f32 %v11970_v48, %v1151_v28 }
 0xb8a   :  { %v1175_v52 = vmul.f32 %v9942_v49, %v1167_v50  ;;  %v1518_v50 = vld [vmem:[#allocation5 + $0x20] sm:$0xff] }
 0xb8b   :  { %v11972_v53 = vpop.eup %11971 }
 0xb8c   :  { %v1168_v54 = vmul.f32 %v11972_v53, %v1152_v32  ;;  %v1183_v55 = vadd.f32 %v9943_v51, %v1175_v52  ;;  %v9961_v32 = vld [vmem:[%s14198_s26 + $0x28] sm:$0xff]  ;;  %v9962_v53 = vld [vmem:[#allocation2 + $0x2] ss:$0 sm:$0xff] }
 0xb8d   :  { %v11504_v33 = vpack.c.bf16 %v9961_v32, %v9960_v31  ;;  %v9969_v32 = vld [vmem:[#allocation10 + $0x2] ss:$0 sm:$0xff] }
 0xb8e   :  { %v1176_v58 = vmul.f32 %v9942_v49, %v1168_v54  ;;  %10771 = vmatprep.mubr.msk.f32.mxu0 %vm499_vm4, %v1183_v55 }
 0xb8f   :  { %11505 = vmatprep.subr.bf16.mxu1 %v11504_v33 }
 0xb90   :  { %v1184_v59 = vadd.f32 %v9943_v51, %v1176_v58  ;;  %11507 = vmatpush3.bf16.msra.mxu1 %v11504_v33  ;;  %v1519_v51 = vld [vmem:[#allocation5 + $0x28] sm:$0xff]  ;;  %v9965_v58 = vld [vmem:[#allocation7 + $0x2] ss:$0 sm:$0xff] }
 0xb91   :  { %v11508_v52 = vpack.c.bf16 %v1519_v51, %v1518_v50 }
 0xb92   :  { %10772 = vmatmul.mubr.msk.f32.vlgmr.msra.gmra.mrb[4].mxu0 %vm499_vm4, %v1184_v59 }
 0xb93   :  { %11491 = vmatpush3.bf16.msra.mxu0 %v11488_v41  ;;  %v9958_v41 = vld [vmem:[#allocation16 + $0x1] ss:$0 sm:$0xff]  ;;  %11509 = vmatprep.subr.bf16.mxu1 %v11508_v52 }
 0xb94   :  { %11493 = vmatprep.subr.bf16.mxu0 %v11492_v60 }
 0xb97   :  { %11495 = vmatpush3.bf16.msra.mxu0 %v11492_v60 }
 0xb98   :  { %11497 = vmatprep.subr.bf16.mxu0 %v11496_v63 }
 0xb9b   :  { %11499 = vmatpush3.bf16.msra.mxu0 %v11496_v63 }
 0xb9c   :  { %11501 = vmatprep.subr.bf16.mxu0 %v11500_v2 }
 0xb9f   :  { %11503 = vmatpush3.bf16.msra.mxu0 %v11500_v2 }
 0xc65   :  { %v10773_v4 = vpop.f32.mrb[4].mxu0 }
 0xc66   :  { %v1274_v5 = vadd.f32 %v10773_v4, %v9944_v3  ;;  %v1268_v6 = vpop.f32.mrb[5].mxu0 }
 0xc67   :  { %v1269_v7 = vadd.f32 %v9944_v3, %v1268_v6 }
 0xc68   :  { %v1278_v9 = vmax.f32 %v1274_v5, 0.0 }
 0xc69   :  { %v1277_v8 = vmax.f32 %v1269_v7, 0.0 }
 0xc6b   :  { %10790 = vmatprep.mubr.msk.f32.mxu0 %vm825_vm5, %v1277_v8 }
 0xc6c   :  { %10791 = vmatmul.mubr.msk.f32.vlgmr.msra.gmra.mrb[6].mxu0 %vm825_vm5, %v1278_v9 }
 0xd3f   :  { %v10792_v11 = vpop.f32.mrb[6].mxu0 }
 0xd40   :  { %v1374_v12 = vadd.f32 %v10792_v11, %v9955_v10  ;;  %v1368_v14 = vpop.f32.mrb[7].mxu0 }
 0xd41   :  { %v1369_v15 = vadd.f32 %v9955_v10, %v1368_v14  ;;  %v1658_v14 = vld [vmem:[#allocation11 + $0x20] sm:$0xff] }
 0xd42   :  { %v1378_v17 = vadd.f32 %v1374_v12, %v1184_v59 }
 0xd43   :  { %v1377_v18 = vadd.f32 %v1369_v15, %v1183_v55  ;;  %v1659_v15 = vld [vmem:[#allocation11 + $0x28] sm:$0xff] }
 0xd44   :  { %v1386_v19 = vsel %vm499_vm4, %v1378_v17, 0.0 }
 0xd45   :  { %1387 = vadd.xlane.f32.xlu0 %v1386_v19  ;;  %v1383_v20 = vsel %vm499_vm4, %v1377_v18, 0.0  ;;  %v9974_v19 = vld [vmem:[%s14200_s28 + $0x88] sm:$0xff] }
 0xd46   :  { %1384 = vadd.xlane.f32.xlu1 %v1383_v20 }
 0xdd2   :  { %v1388_v21 = vpop.xlane.xlu0 %1387 }
 0xdd3   :  { %v1390_v22 = vmul.f32 0.0625, %v1388_v21  ;;  %v1385_v23 = vpop.xlane.xlu1 %1384 }
 0xdd4   :  { %v1389_v24 = vmul.f32 0.0625, %v1385_v23 }
 0xdd5   :  { %v1392_v25 = vsub.f32 %v1378_v17, %v1390_v22  ;;  %v11512_v17 = vpack.c.bf16 %v1659_v15, %v1658_v14 }
 0xdd6   :  { %v1391_v26 = vsub.f32 %v1377_v18, %v1389_v24  ;;  %v9973_v18 = vld [vmem:[%s14200_s28 + $0x80] sm:$0xff] }
 0xdd7   :  { %v1394_v27 = vmul.f32 %v1392_v25, %v1392_v25  ;;  %v11516_v20 = vpack.c.bf16 %v9974_v19, %v9973_v18 }
 0xdd8   :  { %v1393_v28 = vmul.f32 %v1391_v26, %v1391_v26 }
 0xdd9   :  { %v1398_v29 = vsel %vm499_vm4, %v1394_v27, 0.0 }
 0xdda   :  { %1399 = vadd.xlane.f32.xlu0 %v1398_v29  ;;  %v1395_v30 = vsel %vm499_vm4, %v1393_v28, 0.0  ;;  %v9968_v28 = vld [vmem:[#allocation8 + $0x2] ss:$0 sm:$0xff] }
 0xddb   :  { %1396 = vadd.xlane.f32.xlu1 %v1395_v30 }
 0xe67   :  { %v1400_v34 = vpop.xlane.xlu0 %1399 }
 0xe68   :  { %v1402_v35 = vmul.f32 0.0625, %v1400_v34  ;;  %v1397_v36 = vpop.xlane.xlu1 %1396 }
 0xe69   :  { %v1401_v37 = vmul.f32 0.0625, %v1397_v36  ;;  %v9976_v36 = vld [vmem:[%s14200_s28 + $0x98] sm:$0xff] }
 0xe6a   :  { %v1404_v38 = vadd.f32 1e-05, %v1402_v35  ;;  %v9975_v35 = vld [vmem:[%s14200_s28 + $0x90] sm:$0xff] }
 0xe6b   :  { %v1403_v39 = vadd.f32 1e-05, %v1401_v37 }
 0xe6c   :  { %11973 = vrsqrt.f32 %v1404_v38 }
 0xe6d   :  { %11975 = vrsqrt.f32 %v1403_v39  ;;  %v11520_v39 = vpack.c.bf16 %v9976_v36, %v9975_v35 }
 0xe76   :  { %v11974_v40 = vpop.eup %11973 }
 0xe77   :  { %v11976_v42 = vpop.eup %11975  ;;  %v1408_v43 = vmul.f32 %v11974_v40, %v1392_v25  ;;  %v9977_v40 = vld [vmem:[%s14200_s28 + $0xa0] sm:$0xff] }
 0xe78   :  { %v1407_v44 = vmul.f32 %v11976_v42, %v1391_v26 }
 0xe79   :  { %v1416_v46 = vmul.f32 %v9958_v41, %v1408_v43  ;;  %v9979_v43 = vld [vmem:[%s14200_s28 + $0xb0] sm:$0xff] }
 0xe7a   :  { %v1415_v47 = vmul.f32 %v9958_v41, %v1407_v44  ;;  %v9978_v41 = vld [vmem:[%s14200_s28 + $0xa8] sm:$0xff]  ;;  %v9980_v44 = vld [vmem:[%s14200_s28 + $0xb8] sm:$0xff] }
 0xe7b   :  { %v1424_v49 = vadd.f32 %v9959_v45, %v1416_v46  ;;  %v11524_v42 = vpack.c.bf16 %v9978_v41, %v9977_v40  ;;  %v9970_v46 = vld [vmem:[#allocation13 + $0x2] ss:$0 sm:$0xff] }
 0xe7c   :  { %v1423_v48 = vadd.f32 %v9959_v45, %v1415_v47  ;;  %v11528_v45 = vpack.c.bf16 %v9980_v44, %v9979_v43 }
 0xe7e   :  { %10797 = vmatprep.mubr.msk.f32.mxu1 %vm499_vm4, %v1423_v48 }
 0xe7f   :  { %10798 = vmatmul.mubr.msk.f32.vlgmr.msra.gmra.mrb[10].mxu1 %vm499_vm4, %v1424_v49 }
 0xe80   :  { %11511 = vmatpush3.bf16.msra.mxu1 %v11508_v52 }
 0xe81   :  { %11513 = vmatprep.subr.bf16.mxu1 %v11512_v17 }
 0xf52   :  { %v10799_v54 = vpop.f32.mrb[10].mxu1 }
 0xf53   :  { %v1508_v55 = vpop.f32.mrb[11].mxu1  ;;  %v1514_v57 = vadd.f32 %v10799_v54, %v9962_v53 }
 0xf54   :  { %v1509_v56 = vadd.f32 %v9962_v53, %v1508_v55  ;;  %v9981_v53 = vld [vmem:[#allocation14 + $0x2] ss:$0 sm:$0xff] }
 0xf56   :  { %10804 = vmatprep.mubr.msk.f32.mxu1 %vm499_vm4, %v1509_v56 }
 0xf57   :  { %10805 = vmatmul.mubr.msk.f32.vlgmr.msra.gmra.mrb[12].mxu1 %vm499_vm4, %v1514_v57 }
 0xf58   :  { %11515 = vmatpush3.bf16.msra.mxu1 %v11512_v17 }
 0xf59   :  { %11517 = vmatprep.subr.bf16.mxu1 %v11516_v20 }
0x102a   :  { %v10806_v59 = vpop.f32.mrb[12].mxu1 }
0x102b   :  { %v1606_v60 = vadd.f32 %v10806_v59, %v9965_v58  ;;  %v1600_v61 = vpop.f32.mrb[13].mxu1 }
0x102c   :  { %v1601_v62 = vadd.f32 %v9965_v58, %v1600_v61 }
0x102d   :  { %v1610_v63 = vadd.f32 %v1606_v60, %v1424_v49 }
0x102e   :  { %v1609_v0 = vadd.f32 %v1601_v62, %v1423_v48 }
0x102f   :  { %v1618_v1 = vsel %vm499_vm4, %v1610_v63, 0.0 }
0x1030   :  { %1619 = vadd.xlane.f32.xlu0 %v1618_v1  ;;  %v1615_v2 = vsel %vm499_vm4, %v1609_v0, 0.0 }
0x1031   :  { %1616 = vadd.xlane.f32.xlu1 %v1615_v2 }
0x10bd   :  { %v1620_v3 = vpop.xlane.xlu0 %1619 }
0x10be   :  { %v1622_v4 = vmul.f32 0.0625, %v1620_v3  ;;  %v1617_v5 = vpop.xlane.xlu1 %1616 }
0x10bf   :  { %v1621_v6 = vmul.f32 0.0625, %v1617_v5 }
0x10c0   :  { %v1624_v7 = vsub.f32 %v1610_v63, %v1622_v4 }
0x10c1   :  { %v1623_v8 = vsub.f32 %v1609_v0, %v1621_v6 }
0x10c2   :  { %v1626_v9 = vmul.f32 %v1624_v7, %v1624_v7 }
0x10c3   :  { %v1625_v10 = vmul.f32 %v1623_v8, %v1623_v8 }
0x10c4   :  { %v1630_v11 = vsel %vm499_vm4, %v1626_v9, 0.0  ;;  %v9987_v9 = vld [vmem:[%s14198_s26 + $0x38] sm:$0xff] }
0x10c5   :  { %1631 = vadd.xlane.f32.xlu0 %v1630_v11  ;;  %v1627_v12 = vsel %vm499_vm4, %v1625_v10, 0.0 }
0x10c6   :  { %1628 = vadd.xlane.f32.xlu1 %v1627_v12 }
0x1152   :  { %v1632_v21 = vpop.xlane.xlu0 %1631 }
0x1153   :  { %v1634_v22 = vmul.f32 0.0625, %v1632_v21  ;;  %v1629_v23 = vpop.xlane.xlu1 %1628 }
0x1154   :  { %v1633_v24 = vmul.f32 0.0625, %v1629_v23 }
0x1155   :  { %v1636_v25 = vadd.f32 1e-05, %v1634_v22 }
0x1156   :  { %v1635_v26 = vadd.f32 1e-05, %v1633_v24  ;;  %v9985_v24 = vld [vmem:[#allocation17 + $0x2] ss:$0 sm:$0xff] }
0x1157   :  { %11977 = vrsqrt.f32 %v1636_v25 }
0x1158   :  { %11979 = vrsqrt.f32 %v1635_v26 }
0x1161   :  { %v11978_v27 = vpop.eup %11977 }
0x1162   :  { %v11980_v29 = vpop.eup %11979  ;;  %v1640_v30 = vmul.f32 %v11978_v27, %v1624_v7 }
0x1163   :  { %v1639_v31 = vmul.f32 %v11980_v29, %v1623_v8  ;;  %v9986_v8 = vld [vmem:[%s14198_s26 + $0x30] sm:$0xff] }
0x1164   :  { %v1648_v33 = vmul.f32 %v9968_v28, %v1640_v30  ;;  %v11532_v10 = vpack.c.bf16 %v9987_v9, %v9986_v8  ;;  %v1990_v29 = vld [vmem:[#allocation5 + $0x30] sm:$0xff]  ;;  %v1991_v30 = vld [vmem:[#allocation5 + $0x38] sm:$0xff]  ;;  %v9995_v9 = vld [vmem:[#allocation10 + $0x3] ss:$0 sm:$0xff] }
0x1165   :  { %v1647_v34 = vmul.f32 %v9968_v28, %v1639_v31  ;;  %v11536_v31 = vpack.c.bf16 %v1991_v30, %v1990_v29 }
0x1166   :  { %v1656_v38 = vadd.f32 %v9969_v32, %v1648_v33  ;;  %11533 = vmatprep.subr.bf16.mxu0 %v11532_v10 }
0x1167   :  { %v1655_v37 = vadd.f32 %v9969_v32, %v1647_v34  ;;  %11535 = vmatpush3.bf16.msra.mxu0 %v11532_v10  ;;  %v9988_v32 = vld [vmem:[#allocation2 + $0x3] ss:$0 sm:$0xff] }
0x1168   :  { %11537 = vmatprep.subr.bf16.mxu0 %v11536_v31 }
0x1169   :  { %10811 = vmatprep.mubr.msk.f32.mxu1 %vm499_vm4, %v1655_v37 }
0x116a   :  { %10812 = vmatmul.mubr.msk.f32.vlgmr.msra.gmra.mrb[14].mxu1 %vm499_vm4, %v1656_v38 }
0x116b   :  { %11519 = vmatpush3.bf16.msra.mxu1 %v11516_v20  ;;  %v9984_v20 = vld [vmem:[#allocation16 + $0x2] ss:$0 sm:$0xff] }
0x116c   :  { %11521 = vmatprep.subr.bf16.mxu1 %v11520_v39 }
0x116f   :  { %11523 = vmatpush3.bf16.msra.mxu1 %v11520_v39 }
0x1170   :  { %11525 = vmatprep.subr.bf16.mxu1 %v11524_v42 }
0x1173   :  { %11527 = vmatpush3.bf16.msra.mxu1 %v11524_v42 }
0x1174   :  { %11529 = vmatprep.subr.bf16.mxu1 %v11528_v45 }
0x1177   :  { %11531 = vmatpush3.bf16.msra.mxu1 %v11528_v45 }
0x123d   :  { %v10813_v47 = vpop.f32.mrb[14].mxu1 }
0x123e   :  { %v1746_v48 = vadd.f32 %v10813_v47, %v9970_v46  ;;  %v1740_v49 = vpop.f32.mrb[15].mxu1 }
0x123f   :  { %v1741_v50 = vadd.f32 %v9970_v46, %v1740_v49 }
0x1240   :  { %v1750_v52 = vmax.f32 %v1746_v48, 0.0 }
0x1241   :  { %v1749_v51 = vmax.f32 %v1741_v50, 0.0 }
0x1243   :  { %10830 = vmatprep.mubr.msk.f32.mxu1 %vm825_vm5, %v1749_v51 }
0x1244   :  { %10831 = vmatmul.mubr.msk.f32.vlgmr.msra.gmra.mrb[16].mxu1 %vm825_vm5, %v1750_v52 }
0x1317   :  { %v10832_v54 = vpop.f32.mrb[16].mxu1 }
0x1318   :  { %v1846_v55 = vadd.f32 %v10832_v54, %v9981_v53  ;;  %v1840_v56 = vpop.f32.mrb[17].mxu1 }
0x1319   :  { %v1841_v57 = vadd.f32 %v9981_v53, %v1840_v56  ;;  %v2130_v56 = vld [vmem:[#allocation11 + $0x30] sm:$0xff] }
0x131a   :  { %v1850_v58 = vadd.f32 %v1846_v55, %v1656_v38 }
0x131b   :  { %v1849_v59 = vadd.f32 %v1841_v57, %v1655_v37  ;;  %v9991_v37 = vld [vmem:[#allocation7 + $0x3] ss:$0 sm:$0xff]  ;;  %v2131_v57 = vld [vmem:[#allocation11 + $0x38] sm:$0xff] }
0x131c   :  { %v1858_v60 = vsel %vm499_vm4, %v1850_v58, 0.0 }
0x131d   :  { %1859 = vadd.xlane.f32.xlu0 %v1858_v60  ;;  %v1855_v61 = vsel %vm499_vm4, %v1849_v59, 0.0  ;;  %v10000_v60 = vld [vmem:[%s14200_s28 + $0xc8] sm:$0xff] }
0x131e   :  { %1856 = vadd.xlane.f32.xlu1 %v1855_v61 }
0x13aa   :  { %v1860_v62 = vpop.xlane.xlu0 %1859 }
0x13ab   :  { %v1862_v63 = vmul.f32 0.0625, %v1860_v62  ;;  %v1857_v0 = vpop.xlane.xlu1 %1856 }
0x13ac   :  { %v1861_v1 = vmul.f32 0.0625, %v1857_v0 }
0x13ad   :  { %v1864_v2 = vsub.f32 %v1850_v58, %v1862_v63  ;;  %v11540_v58 = vpack.c.bf16 %v2131_v57, %v2130_v56 }
0x13ae   :  { %v1863_v3 = vsub.f32 %v1849_v59, %v1861_v1  ;;  %v9999_v59 = vld [vmem:[%s14200_s28 + $0xc0] sm:$0xff] }
0x13af   :  { %v1866_v4 = vmul.f32 %v1864_v2, %v1864_v2  ;;  %v11544_v61 = vpack.c.bf16 %v10000_v60, %v9999_v59 }
0x13b0   :  { %v1865_v5 = vmul.f32 %v1863_v3, %v1863_v3 }
0x13b1   :  { %v1870_v6 = vsel %vm499_vm4, %v1866_v4, 0.0 }
0x13b2   :  { %1871 = vadd.xlane.f32.xlu0 %v1870_v6  ;;  %v1867_v7 = vsel %vm499_vm4, %v1865_v5, 0.0  ;;  %v9994_v5 = vld [vmem:[#allocation8 + $0x3] ss:$0 sm:$0xff] }
0x13b3   :  { %1868 = vadd.xlane.f32.xlu1 %v1867_v7 }
0x143f   :  { %v1872_v11 = vpop.xlane.xlu0 %1871 }
0x1440   :  { %v1874_v12 = vmul.f32 0.0625, %v1872_v11  ;;  %v1869_v14 = vpop.xlane.xlu1 %1868 }
0x1441   :  { %v1873_v15 = vmul.f32 0.0625, %v1869_v14  ;;  %v10002_v14 = vld [vmem:[%s14200_s28 + $0xd8] sm:$0xff] }
0x1442   :  { %v1876_v17 = vadd.f32 1e-05, %v1874_v12  ;;  %v10001_v12 = vld [vmem:[%s14200_s28 + $0xd0] sm:$0xff] }
0x1443   :  { %v1875_v18 = vadd.f32 1e-05, %v1873_v15 }
0x1444   :  { %11981 = vrsqrt.f32 %v1876_v17 }
0x1445   :  { %11983 = vrsqrt.f32 %v1875_v18  ;;  %v11548_v18 = vpack.c.bf16 %v10002_v14, %v10001_v12 }
0x144e   :  { %v11982_v19 = vpop.eup %11981 }
0x144f   :  { %v11984_v21 = vpop.eup %11983  ;;  %v1880_v22 = vmul.f32 %v11982_v19, %v1864_v2  ;;  %v10003_v19 = vld [vmem:[%s14200_s28 + $0xe0] sm:$0xff] }
0x1450   :  { %v1879_v23 = vmul.f32 %v11984_v21, %v1863_v3 }
0x1451   :  { %v1888_v25 = vmul.f32 %v9984_v20, %v1880_v22  ;;  %v10005_v22 = vld [vmem:[%s14200_s28 + $0xf0] sm:$0xff] }
0x1452   :  { %v1887_v26 = vmul.f32 %v9984_v20, %v1879_v23  ;;  %v10004_v20 = vld [vmem:[%s14200_s28 + $0xe8] sm:$0xff]  ;;  %v10006_v23 = vld [vmem:[%s14200_s28 + $0xf8] sm:$0xff] }
0x1453   :  { %v1896_v28 = vadd.f32 %v9985_v24, %v1888_v25  ;;  %v11552_v21 = vpack.c.bf16 %v10004_v20, %v10003_v19  ;;  %v9996_v25 = vld [vmem:[#allocation13 + $0x3] ss:$0 sm:$0xff] }
0x1454   :  { %v1895_v27 = vadd.f32 %v9985_v24, %v1887_v26  ;;  %v11556_v24 = vpack.c.bf16 %v10006_v23, %v10005_v22 }
0x1456   :  { %10837 = vmatprep.mubr.msk.f32.mxu0 %vm499_vm4, %v1895_v27 }
0x1457   :  { %10838 = vmatmul.mubr.msk.f32.vlgmr.msra.gmra.mrb[8].mxu0 %vm499_vm4, %v1896_v28 }
0x1458   :  { %11539 = vmatpush3.bf16.msra.mxu0 %v11536_v31 }
0x1459   :  { %11541 = vmatprep.subr.bf16.mxu0 %v11540_v58 }
0x152a   :  { %v10839_v33 = vpop.f32.mrb[8].mxu0 }
0x152b   :  { %v1980_v34 = vpop.f32.mrb[9].mxu0  ;;  %v1986_v36 = vadd.f32 %v10839_v33, %v9988_v32 }
0x152c   :  { %v1981_v35 = vadd.f32 %v9988_v32, %v1980_v34  ;;  %v10007_v32 = vld [vmem:[#allocation14 + $0x3] ss:$0 sm:$0xff] }
0x152e   :  { %10844 = vmatprep.mubr.msk.f32.mxu0 %vm499_vm4, %v1981_v35 }
0x152f   :  { %10845 = vmatmul.mubr.msk.f32.vlgmr.msra.gmra.mrb[10].mxu0 %vm499_vm4, %v1986_v36 }
0x1530   :  { %11543 = vmatpush3.bf16.msra.mxu0 %v11540_v58 }
0x1531   :  { %11545 = vmatprep.subr.bf16.mxu0 %v11544_v61 }
0x1602   :  { %v10846_v38 = vpop.f32.mrb[10].mxu0 }
0x1603   :  { %v2078_v39 = vadd.f32 %v10846_v38, %v9991_v37  ;;  %v2072_v40 = vpop.f32.mrb[11].mxu0 }
0x1604   :  { %v2073_v41 = vadd.f32 %v9991_v37, %v2072_v40 }
0x1605   :  { %v2082_v42 = vadd.f32 %v2078_v39, %v1896_v28 }
0x1606   :  { %v2081_v43 = vadd.f32 %v2073_v41, %v1895_v27 }
0x1607   :  { %v2090_v44 = vsel %vm499_vm4, %v2082_v42, 0.0 }
0x1608   :  { %2091 = vadd.xlane.f32.xlu0 %v2090_v44  ;;  %v2087_v45 = vsel %vm499_vm4, %v2081_v43, 0.0 }
0x1609   :  { %2088 = vadd.xlane.f32.xlu1 %v2087_v45 }
0x1695   :  { %v2092_v46 = vpop.xlane.xlu0 %2091 }
0x1696   :  { %v2094_v47 = vmul.f32 0.0625, %v2092_v46  ;;  %v2089_v48 = vpop.xlane.xlu1 %2088 }
0x1697   :  { %v2093_v49 = vmul.f32 0.0625, %v2089_v48 }
0x1698   :  { %v2096_v50 = vsub.f32 %v2082_v42, %v2094_v47 }
0x1699   :  { %v2095_v51 = vsub.f32 %v2081_v43, %v2093_v49 }
0x169a   :  { %v2098_v52 = vmul.f32 %v2096_v50, %v2096_v50 }
0x169b   :  { %v2097_v53 = vmul.f32 %v2095_v51, %v2095_v51 }
0x169c   :  { %v2102_v54 = vsel %vm499_vm4, %v2098_v52, 0.0  ;;  %v10013_v52 = vld [vmem:[%s14198_s26 + $0x48] sm:$0xff] }
0x169d   :  { %2103 = vadd.xlane.f32.xlu0 %v2102_v54  ;;  %v2099_v55 = vsel %vm499_vm4, %v2097_v53, 0.0 }
0x169e   :  { %2100 = vadd.xlane.f32.xlu1 %v2099_v55 }
0x172a   :  { %v2104_v62 = vpop.xlane.xlu0 %2103 }
0x172b   :  { %v2106_v63 = vmul.f32 0.0625, %v2104_v62  ;;  %v2101_v0 = vpop.xlane.xlu1 %2100 }
0x172c   :  { %v2105_v1 = vmul.f32 0.0625, %v2101_v0 }
0x172d   :  { %v2108_v2 = vadd.f32 1e-05, %v2106_v63 }
0x172e   :  { %v2107_v3 = vadd.f32 1e-05, %v2105_v1  ;;  %v10011_v1 = vld [vmem:[#allocation17 + $0x3] ss:$0 sm:$0xff] }
0x172f   :  { %11985 = vrsqrt.f32 %v2108_v2 }
0x1730   :  { %11987 = vrsqrt.f32 %v2107_v3 }
0x1739   :  { %v11986_v4 = vpop.eup %11985 }
0x173a   :  { %v11988_v6 = vpop.eup %11987  ;;  %v2112_v7 = vmul.f32 %v11986_v4, %v2096_v50 }
0x173b   :  { %v2111_v8 = vmul.f32 %v11988_v6, %v2095_v51  ;;  %v10012_v51 = vld [vmem:[%s14198_s26 + $0x40] sm:$0xff] }
0x173c   :  { %v2120_v10 = vmul.f32 %v9994_v5, %v2112_v7  ;;  %v11560_v53 = vpack.c.bf16 %v10013_v52, %v10012_v51  ;;  %v2462_v6 = vld [vmem:[#allocation5 + $0x40] sm:$0xff]  ;;  %v2463_v7 = vld [vmem:[#allocation5 + $0x48] sm:$0xff]  ;;  %v10021_v52 = vld [vmem:[#allocation10 + $0x4] ss:$0 sm:$0xff] }
0x173d   :  { %v2119_v11 = vmul.f32 %v9994_v5, %v2111_v8  ;;  %v11564_v8 = vpack.c.bf16 %v2463_v7, %v2462_v6 }
0x173e   :  { %v2128_v17 = vadd.f32 %v9995_v9, %v2120_v10  ;;  %11561 = vmatprep.subr.bf16.mxu1 %v11560_v53 }
0x173f   :  { %v2127_v15 = vadd.f32 %v9995_v9, %v2119_v11  ;;  %11563 = vmatpush3.bf16.msra.mxu1 %v11560_v53  ;;  %v10014_v9 = vld [vmem:[#allocation2 + $0x4] ss:$0 sm:$0xff] }
0x1740   :  { %11565 = vmatprep.subr.bf16.mxu1 %v11564_v8 }
0x1741   :  { %10851 = vmatprep.mubr.msk.f32.mxu0 %vm499_vm4, %v2127_v15 }
0x1742   :  { %10852 = vmatmul.mubr.msk.f32.vlgmr.msra.gmra.mrb[12].mxu0 %vm499_vm4, %v2128_v17 }
0x1743   :  { %11547 = vmatpush3.bf16.msra.mxu0 %v11544_v61  ;;  %v10010_v61 = vld [vmem:[#allocation16 + $0x3] ss:$0 sm:$0xff] }
0x1744   :  { %11549 = vmatprep.subr.bf16.mxu0 %v11548_v18 }
0x1747   :  { %11551 = vmatpush3.bf16.msra.mxu0 %v11548_v18 }
0x1748   :  { %11553 = vmatprep.subr.bf16.mxu0 %v11552_v21 }
0x174b   :  { %11555 = vmatpush3.bf16.msra.mxu0 %v11552_v21 }
0x174c   :  { %11557 = vmatprep.subr.bf16.mxu0 %v11556_v24 }
0x174f   :  { %11559 = vmatpush3.bf16.msra.mxu0 %v11556_v24 }
0x1815   :  { %v10853_v26 = vpop.f32.mrb[12].mxu0 }
0x1816   :  { %v2218_v27 = vadd.f32 %v10853_v26, %v9996_v25  ;;  %v2212_v28 = vpop.f32.mrb[13].mxu0 }
0x1817   :  { %v2213_v29 = vadd.f32 %v9996_v25, %v2212_v28 }
0x1818   :  { %v2222_v31 = vmax.f32 %v2218_v27, 0.0 }
0x1819   :  { %v2221_v30 = vmax.f32 %v2213_v29, 0.0 }
0x181b   :  { %10870 = vmatprep.mubr.msk.f32.mxu0 %vm825_vm5, %v2221_v30 }
0x181c   :  { %10871 = vmatmul.mubr.msk.f32.vlgmr.msra.gmra.mrb[14].mxu0 %vm825_vm5, %v2222_v31 }
0x18ef   :  { %v10872_v33 = vpop.f32.mrb[14].mxu0 }
0x18f0   :  { %v2318_v34 = vadd.f32 %v10872_v33, %v10007_v32  ;;  %v2312_v35 = vpop.f32.mrb[15].mxu0 }
0x18f1   :  { %v2313_v36 = vadd.f32 %v10007_v32, %v2312_v35  ;;  %v2602_v35 = vld [vmem:[#allocation11 + $0x40] sm:$0xff] }
0x18f2   :  { %v2322_v37 = vadd.f32 %v2318_v34, %v2128_v17 }
0x18f3   :  { %v2321_v38 = vadd.f32 %v2313_v36, %v2127_v15  ;;  %v10017_v15 = vld [vmem:[#allocation7 + $0x4] ss:$0 sm:$0xff]  ;;  %v2603_v36 = vld [vmem:[#allocation11 + $0x48] sm:$0xff] }
0x18f4   :  { %v2330_v39 = vsel %vm499_vm4, %v2322_v37, 0.0 }
0x18f5   :  { %2331 = vadd.xlane.f32.xlu0 %v2330_v39  ;;  %v2327_v40 = vsel %vm499_vm4, %v2321_v38, 0.0  ;;  %v10026_v39 = vld [vmem:[%s14200_s28 + $0x108] sm:$0xff] }
0x18f6   :  { %2328 = vadd.xlane.f32.xlu1 %v2327_v40 }
0x1982   :  { %v2332_v41 = vpop.xlane.xlu0 %2331 }
0x1983   :  { %v2334_v42 = vmul.f32 0.0625, %v2332_v41  ;;  %v2329_v43 = vpop.xlane.xlu1 %2328 }
0x1984   :  { %v2333_v44 = vmul.f32 0.0625, %v2329_v43 }
0x1985   :  { %v2336_v45 = vsub.f32 %v2322_v37, %v2334_v42  ;;  %v11568_v37 = vpack.c.bf16 %v2603_v36, %v2602_v35 }
0x1986   :  { %v2335_v46 = vsub.f32 %v2321_v38, %v2333_v44  ;;  %v10025_v38 = vld [vmem:[%s14200_s28 + $0x100] sm:$0xff] }
0x1987   :  { %v2338_v47 = vmul.f32 %v2336_v45, %v2336_v45  ;;  %v11572_v40 = vpack.c.bf16 %v10026_v39, %v10025_v38 }
0x1988   :  { %v2337_v48 = vmul.f32 %v2335_v46, %v2335_v46 }
0x1989   :  { %v2342_v49 = vsel %vm499_vm4, %v2338_v47, 0.0 }
0x198a   :  { %2343 = vadd.xlane.f32.xlu0 %v2342_v49  ;;  %v2339_v50 = vsel %vm499_vm4, %v2337_v48, 0.0  ;;  %v10020_v48 = vld [vmem:[#allocation8 + $0x4] ss:$0 sm:$0xff] }
0x198b   :  { %2340 = vadd.xlane.f32.xlu1 %v2339_v50 }
0x1a17   :  { %v2344_v54 = vpop.xlane.xlu0 %2343 }
0x1a18   :  { %v2346_v55 = vmul.f32 0.0625, %v2344_v54  ;;  %v2341_v56 = vpop.xlane.xlu1 %2340 }
0x1a19   :  { %v2345_v57 = vmul.f32 0.0625, %v2341_v56  ;;  %v10028_v56 = vld [vmem:[%s14200_s28 + $0x118] sm:$0xff] }
0x1a1a   :  { %v2348_v58 = vadd.f32 1e-05, %v2346_v55  ;;  %v10027_v55 = vld [vmem:[%s14200_s28 + $0x110] sm:$0xff] }
0x1a1b   :  { %v2347_v59 = vadd.f32 1e-05, %v2345_v57 }
0x1a1c   :  { %11989 = vrsqrt.f32 %v2348_v58 }
0x1a1d   :  { %11991 = vrsqrt.f32 %v2347_v59  ;;  %v11576_v59 = vpack.c.bf16 %v10028_v56, %v10027_v55 }
0x1a26   :  { %v11990_v60 = vpop.eup %11989 }
0x1a27   :  { %v11992_v62 = vpop.eup %11991  ;;  %v2352_v63 = vmul.f32 %v11990_v60, %v2336_v45  ;;  %v10029_v60 = vld [vmem:[%s14200_s28 + $0x120] sm:$0xff] }
0x1a28   :  { %v2351_v0 = vmul.f32 %v11992_v62, %v2335_v46 }
0x1a29   :  { %v2360_v2 = vmul.f32 %v10010_v61, %v2352_v63  ;;  %v10031_v63 = vld [vmem:[%s14200_s28 + $0x130] sm:$0xff] }
0x1a2a   :  { %v2359_v3 = vmul.f32 %v10010_v61, %v2351_v0  ;;  %v10030_v61 = vld [vmem:[%s14200_s28 + $0x128] sm:$0xff]  ;;  %v10032_v0 = vld [vmem:[%s14200_s28 + $0x138] sm:$0xff] }
0x1a2b   :  { %v2368_v5 = vadd.f32 %v10011_v1, %v2360_v2  ;;  %v11580_v62 = vpack.c.bf16 %v10030_v61, %v10029_v60  ;;  %v10022_v2 = vld [vmem:[#allocation13 + $0x4] ss:$0 sm:$0xff] }
0x1a2c   :  { %v2367_v4 = vadd.f32 %v10011_v1, %v2359_v3  ;;  %v11584_v1 = vpack.c.bf16 %v10032_v0, %v10031_v63 }
0x1a2e   :  { %10877 = vmatprep.mubr.msk.f32.mxu1 %vm499_vm4, %v2367_v4 }
0x1a2f   :  { %10878 = vmatmul.mubr.msk.f32.vlgmr.msra.gmra.mrb[18].mxu1 %vm499_vm4, %v2368_v5 }
0x1a30   :  { %11567 = vmatpush3.bf16.msra.mxu1 %v11564_v8 }
0x1a31   :  { %11569 = vmatprep.subr.bf16.mxu1 %v11568_v37 }
0x1b02   :  { %v10879_v10 = vpop.f32.mrb[18].mxu1 }
0x1b03   :  { %v2452_v11 = vpop.f32.mrb[19].mxu1  ;;  %v2458_v14 = vadd.f32 %v10879_v10, %v10014_v9 }
0x1b04   :  { %v2453_v12 = vadd.f32 %v10014_v9, %v2452_v11  ;;  %v10033_v9 = vld [vmem:[#allocation14 + $0x4] ss:$0 sm:$0xff] }
0x1b06   :  { %10884 = vmatprep.mubr.msk.f32.mxu1 %vm499_vm4, %v2453_v12 }
0x1b07   :  { %10885 = vmatmul.mubr.msk.f32.vlgmr.msra.gmra.mrb[20].mxu1 %vm499_vm4, %v2458_v14 }
0x1b08   :  { %11571 = vmatpush3.bf16.msra.mxu1 %v11568_v37 }
0x1b09   :  { %11573 = vmatprep.subr.bf16.mxu1 %v11572_v40 }
0x1bda   :  { %v10886_v17 = vpop.f32.mrb[20].mxu1 }
0x1bdb   :  { %v2550_v18 = vadd.f32 %v10886_v17, %v10017_v15  ;;  %v2544_v19 = vpop.f32.mrb[21].mxu1 }
0x1bdc   :  { %v2545_v20 = vadd.f32 %v10017_v15, %v2544_v19 }
0x1bdd   :  { %v2554_v21 = vadd.f32 %v2550_v18, %v2368_v5 }
0x1bde   :  { %v2553_v22 = vadd.f32 %v2545_v20, %v2367_v4 }
0x1bdf   :  { %v2562_v23 = vsel %vm499_vm4, %v2554_v21, 0.0 }
0x1be0   :  { %2563 = vadd.xlane.f32.xlu0 %v2562_v23  ;;  %v2559_v24 = vsel %vm499_vm4, %v2553_v22, 0.0 }
0x1be1   :  { %2560 = vadd.xlane.f32.xlu1 %v2559_v24 }
0x1c6d   :  { %v2564_v25 = vpop.xlane.xlu0 %2563 }
0x1c6e   :  { %v2566_v26 = vmul.f32 0.0625, %v2564_v25  ;;  %v2561_v27 = vpop.xlane.xlu1 %2560 }
0x1c6f   :  { %v2565_v28 = vmul.f32 0.0625, %v2561_v27 }
0x1c70   :  { %v2568_v29 = vsub.f32 %v2554_v21, %v2566_v26 }
0x1c71   :  { %v2567_v30 = vsub.f32 %v2553_v22, %v2565_v28 }
0x1c72   :  { %v2570_v31 = vmul.f32 %v2568_v29, %v2568_v29 }
0x1c73   :  { %v2569_v32 = vmul.f32 %v2567_v30, %v2567_v30 }
0x1c74   :  { %v2574_v33 = vsel %vm499_vm4, %v2570_v31, 0.0  ;;  %v10039_v31 = vld [vmem:[%s14198_s26 + $0x58] sm:$0xff] }
0x1c75   :  { %2575 = vadd.xlane.f32.xlu0 %v2574_v33  ;;  %v2571_v34 = vsel %vm499_vm4, %v2569_v32, 0.0 }
0x1c76   :  { %2572 = vadd.xlane.f32.xlu1 %v2571_v34 }
0x1d02   :  { %v2576_v41 = vpop.xlane.xlu0 %2575 }
0x1d03   :  { %v2578_v42 = vmul.f32 0.0625, %v2576_v41  ;;  %v2573_v43 = vpop.xlane.xlu1 %2572 }
0x1d04   :  { %v2577_v44 = vmul.f32 0.0625, %v2573_v43 }
0x1d05   :  { %v2580_v45 = vadd.f32 1e-05, %v2578_v42 }
0x1d06   :  { %v2579_v46 = vadd.f32 1e-05, %v2577_v44  ;;  %v10037_v44 = vld [vmem:[#allocation17 + $0x4] ss:$0 sm:$0xff] }
0x1d07   :  { %11993 = vrsqrt.f32 %v2580_v45 }
0x1d08   :  { %11995 = vrsqrt.f32 %v2579_v46 }
0x1d11   :  { %v11994_v47 = vpop.eup %11993 }
0x1d12   :  { %v11996_v49 = vpop.eup %11995  ;;  %v2584_v50 = vmul.f32 %v11994_v47, %v2568_v29 }
0x1d13   :  { %v2583_v51 = vmul.f32 %v11996_v49, %v2567_v30  ;;  %v10038_v30 = vld [vmem:[%s14198_s26 + $0x50] sm:$0xff] }
0x1d14   :  { %v2592_v53 = vmul.f32 %v10020_v48, %v2584_v50  ;;  %v11588_v32 = vpack.c.bf16 %v10039_v31, %v10038_v30  ;;  %v2934_v49 = vld [vmem:[#allocation5 + $0x50] sm:$0xff]  ;;  %v2935_v50 = vld [vmem:[#allocation5 + $0x58] sm:$0xff] }
0x1d15   :  { %v2591_v54 = vmul.f32 %v10020_v48, %v2583_v51  ;;  %v11592_v51 = vpack.c.bf16 %v2935_v50, %v2934_v49  ;;  %v10047_v31 = vld [vmem:[#allocation10 + $0x5] ss:$0 sm:$0xff] }
0x1d16   :  { %v2600_v58 = vadd.f32 %v10021_v52, %v2592_v53  ;;  %11589 = vmatprep.subr.bf16.mxu0 %v11588_v32 }
0x1d17   :  { %v2599_v57 = vadd.f32 %v10021_v52, %v2591_v54  ;;  %11591 = vmatpush3.bf16.msra.mxu0 %v11588_v32  ;;  %v10040_v52 = vld [vmem:[#allocation2 + $0x5] ss:$0 sm:$0xff] }
0x1d18   :  { %11593 = vmatprep.subr.bf16.mxu0 %v11592_v51 }
0x1d19   :  { %10891 = vmatprep.mubr.msk.f32.mxu1 %vm499_vm4, %v2599_v57 }
0x1d1a   :  { %10892 = vmatmul.mubr.msk.f32.vlgmr.msra.gmra.mrb[22].mxu1 %vm499_vm4, %v2600_v58 }
0x1d1b   :  { %11575 = vmatpush3.bf16.msra.mxu1 %v11572_v40  ;;  %v10036_v40 = vld [vmem:[#allocation16 + $0x4] ss:$0 sm:$0xff] }
0x1d1c   :  { %11577 = vmatprep.subr.bf16.mxu1 %v11576_v59 }
0x1d1f   :  { %11579 = vmatpush3.bf16.msra.mxu1 %v11576_v59 }
0x1d20   :  { %11581 = vmatprep.subr.bf16.mxu1 %v11580_v62 }
0x1d23   :  { %11583 = vmatpush3.bf16.msra.mxu1 %v11580_v62 }
0x1d24   :  { %11585 = vmatprep.subr.bf16.mxu1 %v11584_v1 }
0x1d27   :  { %11587 = vmatpush3.bf16.msra.mxu1 %v11584_v1 }
0x1ded   :  { %v10893_v3 = vpop.f32.mrb[22].mxu1 }
0x1dee   :  { %v2690_v4 = vadd.f32 %v10893_v3, %v10022_v2  ;;  %v2684_v5 = vpop.f32.mrb[23].mxu1 }
0x1def   :  { %v2685_v6 = vadd.f32 %v10022_v2, %v2684_v5 }
0x1df0   :  { %v2694_v8 = vmax.f32 %v2690_v4, 0.0 }
0x1df1   :  { %v2693_v7 = vmax.f32 %v2685_v6, 0.0 }
0x1df3   :  { %10910 = vmatprep.mubr.msk.f32.mxu1 %vm825_vm5, %v2693_v7 }
0x1df4   :  { %10911 = vmatmul.mubr.msk.f32.vlgmr.msra.gmra.mrb[24].mxu1 %vm825_vm5, %v2694_v8 }
0x1df5   :  { %10957 = vmatprep.mubr.msk.f32.mxu1 %vm12655_vm6, %v12653_v16 }
0x1ec7   :  { %v10912_v10 = vpop.f32.mrb[24].mxu1 }
0x1ec8   :  { %v2790_v11 = vadd.f32 %v10912_v10, %v10033_v9  ;;  %v2784_v12 = vpop.f32.mrb[25].mxu1 }
0x1ec9   :  { %v2785_v14 = vadd.f32 %v10033_v9, %v2784_v12  ;;  %v3074_v12 = vld [vmem:[#allocation11 + $0x50] sm:$0xff] }
0x1eca   :  { %v2794_v15 = vadd.f32 %v2790_v11, %v2600_v58 }
0x1ecb   :  { %v2793_v17 = vadd.f32 %v2785_v14, %v2599_v57  ;;  %v10043_v57 = vld [vmem:[#allocation7 + $0x5] ss:$0 sm:$0xff]  ;;  %v3075_v14 = vld [vmem:[#allocation11 + $0x58] sm:$0xff] }
0x1ecc   :  { %v2802_v18 = vsel %vm499_vm4, %v2794_v15, 0.0 }
0x1ecd   :  { %2803 = vadd.xlane.f32.xlu0 %v2802_v18  ;;  %v2799_v19 = vsel %vm499_vm4, %v2793_v17, 0.0  ;;  %v10052_v18 = vld [vmem:[%s14200_s28 + $0x148] sm:$0xff] }
0x1ece   :  { %2800 = vadd.xlane.f32.xlu1 %v2799_v19 }
0x1f5a   :  { %v2804_v20 = vpop.xlane.xlu0 %2803 }
0x1f5b   :  { %v2806_v21 = vmul.f32 0.0625, %v2804_v20  ;;  %v2801_v22 = vpop.xlane.xlu1 %2800 }
0x1f5c   :  { %v2805_v23 = vmul.f32 0.0625, %v2801_v22 }
0x1f5d   :  { %v2808_v24 = vsub.f32 %v2794_v15, %v2806_v21  ;;  %v11596_v15 = vpack.c.bf16 %v3075_v14, %v3074_v12 }
0x1f5e   :  { %v2807_v25 = vsub.f32 %v2793_v17, %v2805_v23  ;;  %v10051_v17 = vld [vmem:[%s14200_s28 + $0x140] sm:$0xff] }
0x1f5f   :  { %v2810_v26 = vmul.f32 %v2808_v24, %v2808_v24  ;;  %v11600_v19 = vpack.c.bf16 %v10052_v18, %v10051_v17 }
0x1f60   :  { %v2809_v27 = vmul.f32 %v2807_v25, %v2807_v25 }
0x1f61   :  { %v2814_v28 = vsel %vm499_vm4, %v2810_v26, 0.0 }
0x1f62   :  { %2815 = vadd.xlane.f32.xlu0 %v2814_v28  ;;  %v2811_v29 = vsel %vm499_vm4, %v2809_v27, 0.0  ;;  %v10046_v27 = vld [vmem:[#allocation8 + $0x5] ss:$0 sm:$0xff] }
0x1f63   :  { %2812 = vadd.xlane.f32.xlu1 %v2811_v29 }
0x1fef   :  { %v2816_v33 = vpop.xlane.xlu0 %2815 }
0x1ff0   :  { %v2818_v34 = vmul.f32 0.0625, %v2816_v33  ;;  %v2813_v35 = vpop.xlane.xlu1 %2812 }
0x1ff1   :  { %v2817_v36 = vmul.f32 0.0625, %v2813_v35  ;;  %v10054_v35 = vld [vmem:[%s14200_s28 + $0x158] sm:$0xff] }
0x1ff2   :  { %v2820_v37 = vadd.f32 1e-05, %v2818_v34  ;;  %v10053_v34 = vld [vmem:[%s14200_s28 + $0x150] sm:$0xff] }
0x1ff3   :  { %v2819_v38 = vadd.f32 1e-05, %v2817_v36 }
0x1ff4   :  { %11997 = vrsqrt.f32 %v2820_v37 }
0x1ff5   :  { %11999 = vrsqrt.f32 %v2819_v38  ;;  %v11604_v38 = vpack.c.bf16 %v10054_v35, %v10053_v34  ;;  %v3547_v35 = vld [vmem:[%s14201_s8 + $0x30] sm:$0xff] }
0x1ffe   :  { %v11998_v39 = vpop.eup %11997 }
0x1fff   :  { %v12000_v41 = vpop.eup %11999  ;;  %v2824_v42 = vmul.f32 %v11998_v39, %v2808_v24  ;;  %v10055_v39 = vld [vmem:[%s14200_s28 + $0x160] sm:$0xff] }
0x2000   :  { %v2823_v43 = vmul.f32 %v12000_v41, %v2807_v25 }
0x2001   :  { %v2832_v45 = vmul.f32 %v10036_v40, %v2824_v42  ;;  %v10057_v42 = vld [vmem:[%s14200_s28 + $0x170] sm:$0xff] }
0x2002   :  { %v2831_v46 = vmul.f32 %v10036_v40, %v2823_v43  ;;  %v10056_v40 = vld [vmem:[%s14200_s28 + $0x168] sm:$0xff]  ;;  %v10058_v43 = vld [vmem:[%s14200_s28 + $0x178] sm:$0xff] }
0x2003   :  { %v2840_v48 = vadd.f32 %v10037_v44, %v2832_v45  ;;  %v11608_v41 = vpack.c.bf16 %v10056_v40, %v10055_v39  ;;  %v10048_v45 = vld [vmem:[#allocation13 + $0x5] ss:$0 sm:$0xff]  ;;  %v3652_v40 = vld [vmem:[%s14202_s1] sm:$0xff] }
0x2004   :  { %v2839_v47 = vadd.f32 %v10037_v44, %v2831_v46  ;;  %v11612_v44 = vpack.c.bf16 %v10058_v43, %v10057_v42  ;;  %v3746_v43 = vld [vmem:[%s14203_s7] sm:$0xff] }
0x2006   :  { %10917 = vmatprep.mubr.msk.f32.mxu0 %vm499_vm4, %v2839_v47 }
0x2007   :  { %10918 = vmatmul.mubr.msk.f32.vlgmr.msra.gmra.mrb[16].mxu0 %vm499_vm4, %v2840_v48 }
0x2008   :  { %11595 = vmatpush3.bf16.msra.mxu0 %v11592_v51 }
0x2009   :  { %11597 = vmatprep.subr.bf16.mxu0 %v11596_v15 }
0x20da   :  { %v10919_v53 = vpop.f32.mrb[16].mxu0 }
0x20db   :  { %v2924_v54 = vpop.f32.mrb[17].mxu0  ;;  %v2930_v56 = vadd.f32 %v10919_v53, %v10040_v52 }
0x20dc   :  { %v2925_v55 = vadd.f32 %v10040_v52, %v2924_v54  ;;  %v10059_v52 = vld [vmem:[#allocation14 + $0x5] ss:$0 sm:$0xff] }
0x20de   :  { %10924 = vmatprep.mubr.msk.f32.mxu0 %vm499_vm4, %v2925_v55 }
0x20df   :  { %10925 = vmatmul.mubr.msk.f32.vlgmr.msra.gmra.mrb[18].mxu0 %vm499_vm4, %v2930_v56 }
0x20e0   :  { %11599 = vmatpush3.bf16.msra.mxu0 %v11596_v15 }
0x20e1   :  { %11601 = vmatprep.subr.bf16.mxu0 %v11600_v19 }
0x21b2   :  { %v10926_v58 = vpop.f32.mrb[18].mxu0 }
0x21b3   :  { %v3022_v59 = vadd.f32 %v10926_v58, %v10043_v57  ;;  %v3016_v60 = vpop.f32.mrb[19].mxu0 }
0x21b4   :  { %v3017_v61 = vadd.f32 %v10043_v57, %v3016_v60 }
0x21b5   :  { %v3026_v62 = vadd.f32 %v3022_v59, %v2840_v48 }
0x21b6   :  { %v3025_v63 = vadd.f32 %v3017_v61, %v2839_v47 }
0x21b7   :  { %v3034_v0 = vsel %vm499_vm4, %v3026_v62, 0.0 }
0x21b8   :  { %3035 = vadd.xlane.f32.xlu0 %v3034_v0  ;;  %v3031_v1 = vsel %vm499_vm4, %v3025_v63, 0.0 }
0x21b9   :  { %3032 = vadd.xlane.f32.xlu1 %v3031_v1 }
0x2245   :  { %v3036_v2 = vpop.xlane.xlu0 %3035 }
0x2246   :  { %v3038_v3 = vmul.f32 0.0625, %v3036_v2  ;;  %v3033_v4 = vpop.xlane.xlu1 %3032 }
0x2247   :  { %v3037_v5 = vmul.f32 0.0625, %v3033_v4 }
0x2248   :  { %v3040_v6 = vsub.f32 %v3026_v62, %v3038_v3 }
0x2249   :  { %v3039_v7 = vsub.f32 %v3025_v63, %v3037_v5 }
0x224a   :  { %v3042_v8 = vmul.f32 %v3040_v6, %v3040_v6 }
0x224b   :  { %v3041_v9 = vmul.f32 %v3039_v7, %v3039_v7 }
0x224c   :  { %v3046_v10 = vsel %vm499_vm4, %v3042_v8, 0.0  ;;  %v3314_v8 = vld [vmem:[%s14201_s8 + $0x8] sm:$0xff] }
0x224d   :  { %3047 = vadd.xlane.f32.xlu0 %v3046_v10  ;;  %v3043_v11 = vsel %vm499_vm4, %v3041_v9, 0.0  ;;  %v12654_v9 = vmov 0.0|0.0  }
0x224e   :  { %3044 = vadd.xlane.f32.xlu1 %v3043_v11  ;;  %11616 = vmatprep.subr.bf16.mxu1 %v12654_v9 }
0x22da   :  { %v3048_v20 = vpop.xlane.xlu0 %3047 }
0x22db   :  { %v3050_v21 = vmul.f32 0.0625, %v3048_v20  ;;  %v3045_v22 = vpop.xlane.xlu1 %3044  ;;  %v10062_v20 = vld [vmem:[#allocation16 + $0x5] ss:$0 sm:$0xff] }
0x22dc   :  { %v3049_v23 = vmul.f32 0.0625, %v3045_v22  ;;  %v3395_v22 = vld [vmem:[%s14201_s8 + $0x10] sm:$0xff] }
0x22dd   :  { %v3052_v24 = vadd.f32 1e-05, %v3050_v21 }
0x22de   :  { %v3051_v25 = vadd.f32 1e-05, %v3049_v23  ;;  %v3396_v23 = vld [vmem:[%s14201_s8 + $0x18] sm:$0xff] }
0x22df   :  { %12001 = vrsqrt.f32 %v3052_v24  ;;  %v10063_v24 = vld [vmem:[#allocation17 + $0x5] ss:$0 sm:$0xff] }
0x22e0   :  { %12003 = vrsqrt.f32 %v3051_v25 }
0x22e9   :  { %v12002_v26 = vpop.eup %12001 }
0x22ea   :  { %v12004_v28 = vpop.eup %12003  ;;  %v3056_v29 = vmul.f32 %v12002_v26, %v3040_v6  ;;  %v11620_v26 = vpack.c.bf16 %v3396_v23, %v3395_v22 }
0x22eb   :  { %v3055_v30 = vmul.f32 %v12004_v28, %v3039_v7  ;;  %v3313_v7 = vld [vmem:[%s14201_s8] sm:$0xff] }
0x22ec   :  { %v3064_v32 = vmul.f32 %v10046_v27, %v3056_v29  ;;  %v11617_v10 = vpack.c.bf16 %v3314_v8, %v3313_v7  ;;  %v3471_v28 = vld [vmem:[%s14201_s8 + $0x20] sm:$0xff]  ;;  %v3472_v29 = vld [vmem:[%s14201_s8 + $0x28] sm:$0xff] }
0x22ed   :  { %v3063_v33 = vmul.f32 %v10046_v27, %v3055_v30 }
0x22ee   :  { %v3072_v37 = vadd.f32 %v10047_v31, %v3064_v32  ;;  %11618 = vmatpush3.bf16.msra.mxu1 %v11617_v10  ;;  %v3829_v10 = vld [vmem:[%s14206_s20 + $0x10] sm:$0xff] }
0x22ef   :  { %v3071_v36 = vadd.f32 %v10047_v31, %v3063_v33  ;;  %11619 = vmatprep.subr.bf16.mxu1 %v12654_v9  ;;  %v11623_v31 = vpack.c.bf16 %v3472_v29, %v3471_v28 }
0x22f1   :  { %10931 = vmatprep.mubr.msk.f32.mxu0 %vm499_vm4, %v3071_v36 }
0x22f2   :  { %10932 = vmatmul.mubr.msk.f32.vlgmr.msra.gmra.mrb[20].mxu0 %vm499_vm4, %v3072_v37 }
0x22f3   :  { %11603 = vmatpush3.bf16.msra.mxu0 %v11600_v19 }
0x22f4   :  { %11605 = vmatprep.subr.bf16.mxu0 %v11604_v38 }
0x22f7   :  { %11607 = vmatpush3.bf16.msra.mxu0 %v11604_v38 }
0x22f8   :  { %11609 = vmatprep.subr.bf16.mxu0 %v11608_v41 }
0x22fb   :  { %11611 = vmatpush3.bf16.msra.mxu0 %v11608_v41  ;;  %v3653_v41 = vld [vmem:[%s14202_s1 + $0x8] sm:$0xff] }
0x22fc   :  { %11613 = vmatprep.subr.bf16.mxu0 %v11612_v44  ;;  %v11629_v42 = vpack.c.bf16 %v3653_v41, %v3652_v40  ;;  %v10075_v41 = vld [vmem:[%s14208_s3] ss:$0 sm:$0xff] }
0x22ff   :  { %11615 = vmatpush3.bf16.msra.mxu0 %v11612_v44  ;;  %v3747_v44 = vld [vmem:[%s14203_s7 + $0x8] sm:$0xff] }
0x2300   :  { %11628 = vmatprep.subr.bf16.mxu0 %v12654_v9 }
0x23c5   :  { %v10933_v46 = vpop.f32.mrb[20].mxu0 }
0x23c6   :  { %v3162_v47 = vadd.f32 %v10933_v46, %v10048_v45  ;;  %v3156_v48 = vpop.f32.mrb[21].mxu0  ;;  %v3654_v46 = vld [vmem:[%s14202_s1 + $0x10] sm:$0xff] }
0x23c7   :  { %v3157_v49 = vadd.f32 %v10048_v45, %v3156_v48  ;;  %v11635_v45 = vpack.c.bf16 %v3747_v44, %v3746_v43 }
0x23c8   :  { %v3166_v51 = vmax.f32 %v3162_v47, 0.0  ;;  %v3655_v47 = vld [vmem:[%s14202_s1 + $0x18] sm:$0xff] }
0x23c9   :  { %v3165_v50 = vmax.f32 %v3157_v49, 0.0  ;;  %v11632_v48 = vpack.c.bf16 %v3655_v47, %v3654_v46  ;;  %v3748_v49 = vld [vmem:[%s14203_s7 + $0x10] sm:$0xff] }
0x23cb   :  { %10950 = vmatprep.mubr.msk.f32.mxu0 %vm825_vm5, %v3165_v50  ;;  %v3749_v50 = vld [vmem:[%s14203_s7 + $0x18] sm:$0xff] }
0x23cc   :  { %10951 = vmatmul.mubr.msk.f32.vlgmr.msra.gmra.mrb[22].mxu0 %vm825_vm5, %v3166_v51  ;;  %v11638_v51 = vpack.c.bf16 %v3749_v50, %v3748_v49 }
0x23cd   :  { %10989 = vmatprep.mubr.msk.f32.mxu0 %vm12655_vm6, %v12653_v16  ;;  %11630 = vmatpush3.bf16.msra.mxu0 %v11629_v42 }
0x23ce   :  { %11631 = vmatprep.subr.bf16.mxu0 %v12654_v9 }
0x23d1   :  { %11633 = vmatpush3.bf16.msra.mxu0 %v11632_v48 }
0x23d2   :  { %11640 = vmatprep.subr.bf16.mxu0 %v12654_v9 }
0x249f   :  { %v10952_v53 = vpop.f32.mrb[22].mxu0 }
0x24a0   :  { %v3262_v54 = vadd.f32 %v10952_v53, %v10059_v52  ;;  %v3256_v55 = vpop.f32.mrb[23].mxu0 }
0x24a1   :  { %v3257_v56 = vadd.f32 %v10059_v52, %v3256_v55  ;;  %v12656_v52 = vmov 1983009808   ;;  %v13180_v55 = vshrl.u32 %v372_v13, 7 }
0x24a2   :  { %v3266_v57 = vadd.f32 %v3262_v54, %v3072_v37  ;;  %v3625_v53 = vunpack.c.l.s4 %v12656_v52 }
0x24a3   :  { %v3265_v58 = vadd.f32 %v3257_v56, %v3071_v36  ;;  %v3548_v36 = vld [vmem:[%s14201_s8 + $0x38] sm:$0xff]  ;;  %v10064_v56 = vld [vmem:[%s14204_s12] ss:$0 sm:$0xff] }
0x24a4   :  { %v3274_v59 = vsel %vm499_vm4, %v3266_v57, 0.0  ;;  %v11626_v37 = vpack.c.bf16 %v3548_v36, %v3547_v35  ;;  %v3626_v54 = vunpack.c.0.s8 %v3625_v53 }
0x24a5   :  { %3275 = vadd.xlane.f32.xlu0 %v3274_v59  ;;  %v3271_v60 = vsel %vm499_vm4, %v3265_v58, 0.0 }
0x24a6   :  { %3272 = vadd.xlane.f32.xlu1 %v3271_v60 }
0x2532   :  { %v3276_v61 = vpop.xlane.xlu0 %3275 }
0x2533   :  { %v3278_v62 = vmul.f32 0.0625, %v3276_v61  ;;  %v3273_v63 = vpop.xlane.xlu1 %3272 }
0x2534   :  { %v3277_v0 = vmul.f32 0.0625, %v3273_v63 }
0x2535   :  { %v3280_v1 = vsub.f32 %v3266_v57, %v3278_v62  ;;  %v13184_v57 = vsub.s32 %v3626_v54, %v13180_v55 }
0x2536   :  { %v3279_v2 = vsub.f32 %v3265_v58, %v3277_v0  ;;  %v10069_v0 = vld [vmem:[%s14205_s10] ss:$0 sm:$0xff] }
0x2537   :  { %v3282_v3 = vmul.f32 %v3280_v1, %v3280_v1 }
0x2538   :  { %v3281_v4 = vmul.f32 %v3279_v2, %v3279_v2 }
0x2539   :  { %v3286_v5 = vsel %vm499_vm4, %v3282_v3, 0.0 }
0x253a   :  { %3287 = vadd.xlane.f32.xlu0 %v3286_v5  ;;  %v3283_v6 = vsel %vm499_vm4, %v3281_v4, 0.0  ;;  %v3827_v4 = vld [vmem:[%s14206_s20] sm:$0xff]  ;;  %v3828_v5 = vld [vmem:[%s14206_s20 + $0x8] sm:$0xff] }
0x253b   :  { %3284 = vadd.xlane.f32.xlu1 %v3283_v6  ;;  %v11641_v7 = vpack.c.bf16 %v3828_v5, %v3827_v4 }
0x25c7   :  { %v3288_v15 = vpop.xlane.xlu0 %3287 }
0x25c8   :  { %v3285_v11 = vpop.xlane.xlu1 %3284  ;;  %v3290_v17 = vmul.f32 0.0625, %v3288_v15  ;;  %v10073_v15 = vld [vmem:[#allocation19] ss:$0 sm:$0xff] }
0x25c9   :  { %v3289_v12 = vmul.f32 0.0625, %v3285_v11  ;;  %v3830_v11 = vld [vmem:[%s14206_s20 + $0x18] sm:$0xff] }
0x25ca   :  { %v3292_v18 = vadd.f32 1e-05, %v3290_v17 }
0x25cb   :  { %v3291_v14 = vadd.f32 1e-05, %v3289_v12  ;;  %v11644_v12 = vpack.c.bf16 %v3830_v11, %v3829_v10 }
0x25cd   :  { %12005 = vrsqrt.f32 %v3291_v14  ;;  %v10071_v14 = vld [vmem:[%s14207_s19] ss:$0 sm:$0xff] }
0x25ce   :  { %12007 = vrsqrt.f32 %v3292_v18 }
0x25d7   :  { %v12006_v19 = vpop.eup %12005 }
0x25d8   :  { %v3295_v21 = vmul.f32 %v12006_v19, %v3279_v2  ;;  %v12008_v30 = vpop.eup %12007 }
0x25d9   :  { %v3296_v32 = vmul.f32 %v12008_v30, %v3280_v1  ;;  %v10070_v1 = vld [vmem:[%s14205_s10 + $0x1] ss:$0 sm:$0xff] }
0x25da   :  { %v3303_v25 = vmul.f32 %v10062_v20, %v3295_v21 }
0x25db   :  { %v3304_v34 = vmul.f32 %v10062_v20, %v3296_v32 }
0x25dc   :  { %v3311_v27 = vadd.f32 %v10063_v24, %v3303_v25 }
0x25dd   :  { %v3312_v38 = vadd.f32 %v10063_v24, %v3304_v34 }
0x25de   :  { %10958 = vmatmul.mubr.msk.f32.vlgmr.msra.gmra.mrb[26].mxu1 %vm499_vm4, %v3311_v27  ;;  %v3397_v33 = vrot.slane %v3311_v27, 4 }
0x25df   :  { %11621 = vmatpush3.bf16.msra.mxu1 %v11620_v26  ;;  %10964 = vmatprep.mubr.msk.f32.mxu1 %vm12655_vm6, %v12653_v16  ;;  %v3549_v39 = vrot.slane %v3312_v38, 4 }
0x25e0   :  { %11622 = vmatprep.subr.bf16.mxu1 %v12654_v9 }
0x25e6   :  { %10965 = vmatmul.mubr.msk.f32.vlgmr.msra.gmra.mrb[26].mxu1 %vm499_vm4, %v3397_v33 }
0x25e7   :  { %11624 = vmatpush3.bf16.msra.mxu1 %v11623_v31  ;;  %10971 = vmatprep.mubr.msk.f32.mxu1 %vm12655_vm6, %v12653_v16 }
0x25e8   :  { %11625 = vmatprep.subr.bf16.mxu1 %v12654_v9 }
0x25ee   :  { %10972 = vmatmul.mubr.msk.f32.vlgmr.msra.gmra.mrb[26].mxu1 %vm499_vm4, %v3312_v38 }
0x25ef   :  { %11627 = vmatpush3.bf16.msra.mxu1 %v11626_v37  ;;  %10978 = vmatprep.mubr.msk.f32.mxu1 %vm12655_vm6, %v12653_v16 }
0x25f0   :  { %11634 = vmatprep.subr.bf16.mxu1 %v12654_v9 }
0x25f6   :  { %10979 = vmatmul.mubr.msk.f32.vlgmr.msra.gmra.mrb[26].mxu1 %vm499_vm4, %v3549_v39 }
0x25f7   :  { %11000 = vmatprep.mubr.msk.f32.mxu1 %vm12655_vm6, %v12653_v16  ;;  %11636 = vmatpush3.bf16.msra.mxu1 %v11635_v45 }
0x25f8   :  { %11637 = vmatprep.subr.bf16.mxu1 %v12654_v9 }
0x25fb   :  { %11639 = vmatpush3.bf16.msra.mxu1 %v11638_v51 }
0x25fc   :  { %11646 = vmatprep.subr.bf16.mxu1 %v12654_v9 }
0x26c9   :  { %v3618_v58 = vpop.f32.mrb[26].mxu1 }
0x26ca   :  { %v11886_v59 = vadd.f32 %v10064_v56, %v3618_v58  ;;  %v10980_v60 = vpop.f32.mrb[27].mxu1  ;;  %v4147_v56 = vld [vmem:[%s14209_s11] sm:$0xff]  ;;  %v4148_v58 = vld [vmem:[%s14209_s11 + $0x8] sm:$0xff] }
0x26cb   :  { %v11647_v60 = vpack.c.bf16 %v4148_v58, %v4147_v56 }
0x26cc   :  { %v3630_v61 = vrot.slane %v11886_v59, %v13184_v57  ;;  %v4149_v59 = vld [vmem:[%s14209_s11 + $0x10] sm:$0xff] }
0x26ce   :  { %v3631_v62 = vcombine.high %v3630_v61, %v3630_v61  ;;  %v3634_v63 = vmul.f32 5.656854, %v3630_v61  ;;  %v4150_v61 = vld [vmem:[%s14209_s11 + $0x18] sm:$0xff] }
0x26d0   :  { %v3635_v2 = vmul.f32 5.656854, %v3631_v62  ;;  %v13189_v3 = vadd.f32 %v10069_v0, %v3634_v63  ;;  %v11650_v62 = vpack.c.bf16 %v4150_v61, %v4149_v59 }
0x26d2   :  { %v13191_v13 = vadd.f32 %v10070_v1, %v3635_v2 }
0x26d4   :  { %v3665_v6 = vcombine.low %v13189_v3, %v13191_v13 }
0x26d6   :  { %v3672_v8 = vrot.slane %v3665_v6, %v13184_v57 }
0x26d8   :  { %10990 = vmatmul.mubr.msk.f32.vlgmr.msra.gmra.mrb[24].mxu0 %vm3673_vm7, %v3672_v8  ;;  %11001 = vmatmul.mubr.msk.f32.vlgmr.msra.gmra.mrb[28].mxu1 %vm3673_vm7, %v3672_v8 }
0x26d9   :  { %11642 = vmatpush3.bf16.msra.mxu0 %v11641_v7  ;;  %11011 = vmatprep.mubr.msk.f32.mxu0 %vm12655_vm6, %v12653_v16 }
0x26da   :  { %11643 = vmatprep.subr.bf16.mxu0 %v12654_v9  ;;  %11022 = vmatprep.mubr.msk.f32.mxu1 %vm12655_vm6, %v12653_v16 }
0x26db   :  { %11648 = vmatpush3.bf16.msra.mxu1 %v11647_v60 }
0x26dc   :  { %11649 = vmatprep.subr.bf16.mxu1 %v12654_v9 }
0x26dd   :  { %11645 = vmatpush3.bf16.msra.mxu0 %v11644_v12 }
0x26de   :  { %11652 = vmatprep.subr.bf16.mxu0 %v12654_v9 }
0x26df   :  { %11651 = vmatpush3.bf16.msra.mxu1 %v11650_v62 }
0x26e0   :  { %11012 = vmatmul.mubr.msk.f32.vlgmr.msra.gmra.mrb[26].mxu0 %vm3673_vm7, %v3672_v8  ;;  %11658 = vmatprep.subr.bf16.mxu1 %v12654_v9 }
0x26e1   :  { %11033 = vmatprep.mubr.msk.f32.mxu0 %vm12655_vm6, %v12653_v16 }
0x27ab   :  { %v3742_v17 = vpop.f32.mrb[24].mxu0  ;;  %v3823_v18 = vpop.f32.mrb[28].mxu1 }
0x27ac   :  { %v3743_v19 = vadd.f32 %v10071_v14, %v3742_v17  ;;  %v3824_v20 = vadd.f32 %v10073_v15, %v3823_v18  ;;  %v10991_v21 = vpop.f32.mrb[25].mxu0  ;;  %v11002_v22 = vpop.f32.mrb[29].mxu1 }
0x27ae   :  { %v3915_v23 = vrot.slane %v3743_v19, %v13184_v57  ;;  %v3926_v24 = vrot.slane %v3824_v20, %v13184_v57 }
0x27b0   :  { %v3916_v25 = vcombine.high %v3915_v23, %v3915_v23  ;;  %v3927_v26 = vcombine.high %v3926_v24, %v3926_v24  ;;  %v3930_v27 = vmul.f32 %v3926_v24, %v3915_v23 }
0x27b2   :  { %v4012_v28 = vrot.slane %v3930_v27, %v13184_v57  ;;  %v3931_v29 = vmul.f32 %v3927_v26, %v3915_v23  ;;  %v3932_v30 = vmul.f32 %v3926_v24, %v3916_v25  ;;  %v3933_v31 = vmul.f32 %v3927_v26, %v3916_v25 }
0x27b3   :  { %v3904_v32 = vpop.f32.mrb[26].mxu0  ;;  %v3935_v53 = vsel %vm3934_vm8, %v3930_v27, 0.0 }
0x27b4   :  { %v11013_v33 = vpop.f32.mrb[27].mxu0  ;;  %4034 = vrot.lane.b32.xlu0 %v4012_v28, %s12657_s6  ;;  %v4019_v34 = vrot.slane %v3931_v29, %v13184_v57  ;;  %v4026_v35 = vrot.slane %v3932_v30, %v13184_v57  ;;  %v4033_v36 = vrot.slane %v3933_v31, %v13184_v57  ;;  %v3905_v44 = vadd.f32 %v10075_v41, %v3904_v32 }
0x27b5   :  { %v3938_v51 = vsel %vm3934_vm8, %v3931_v29, 0.0  ;;  %v3941_v52 = vsel %vm3934_vm8, %v3932_v30, 0.0  ;;  %v3944_v54 = vsel %vm3934_vm8, %v3933_v31, 0.0 }
0x27b6   :  { %4036 = vrot.lane.b32.xlu1 %v4019_v34, %s12657_s6  ;;  %v13228_v47 = vrot.slane %v3905_v44, %v13184_v57 }
0x27b8   :  { %v4098_v48 = vrot.slane %v13228_v47, %v13184_v57  ;;  %v13235_v49 = vcombine.high %v13228_v47, %v13228_v47 }
0x27ba   :  { %4038 = vrot.lane.b32.xlu1 %v4026_v35, %s12657_s6  ;;  %v4105_v50 = vrot.slane %v13235_v49, %v13184_v57 }
0x27be   :  { %4040 = vrot.lane.b32.xlu1 %v4033_v36, %s12657_s6 }
0x2826   :  { %v4035_v37 = vpop.permute.xlu0 %4034 }
0x2827   :  { %v4046_v38 = vsel %vm3934_vm8, %v4035_v37, 0.0 }
0x2828   :  { %4047 = vadd.xlane.f32.xlu1 %v4046_v38  ;;  %v4037_v39 = vpop.permute.xlu1 %4036 }
0x2829   :  { %v4049_v40 = vsel %vm3934_vm8, %v4037_v39, 0.0 }
0x282a   :  { %4050 = vadd.xlane.f32.xlu0 %v4049_v40 }
0x282c   :  { %v4039_v42 = vpop.permute.xlu1 %4038 }
0x282d   :  { %v4052_v43 = vsel %vm3934_vm8, %v4039_v42, 0.0 }
0x282e   :  { %4053 = vadd.xlane.f32.xlu0 %v4052_v43 }
0x2830   :  { %v4041_v45 = vpop.permute.xlu1 %4040 }
0x2831   :  { %v4055_v46 = vsel %vm3934_vm8, %v4041_v45, 0.0 }
0x2832   :  { %4056 = vadd.xlane.f32.xlu0 %v4055_v46 }
0x2839   :  { %4106 = vrot.lane.b32.xlu1 %v4098_v48, %s12657_s6 }
0x2848   :  { %4108 = vrot.lane.b32.xlu0 %v4105_v50, %s12657_s6 }
0x285d   :  { %3939 = vadd.xlane.f32.xlu1 %v3938_v51 }
0x2861   :  { %3942 = vadd.xlane.f32.xlu1 %v3941_v52 }
0x2867   :  { %3936 = vadd.xlane.f32.xlu0 %v3935_v53 }
0x286b   :  { %3945 = vadd.xlane.f32.xlu0 %v3944_v54 }
0x28b5   :  { %v4048_v63 = vpop.xlane.xlu1 %4047 }
0x28b6   :  { %v4062_v2 = vsel %vm400_vm0, %v4048_v63, -inf }
0x28b7   :  { %v4051_v0 = vpop.xlane.xlu0 %4050 }
0x28b8   :  { %v4059_v1 = vadd.f32 -1e+30, %v4051_v0 }
0x28b9   :  { %v4107_v35 = vpop.permute.xlu1 %4106 }
0x28ba   :  { %v4063_v4 = vsel %vm400_vm0, %v4059_v1, -inf }
0x28bb   :  { %v4064_v5 = vmax.f32 %v4062_v2, %v4063_v4  ;;  %v4054_v6 = vpop.xlane.xlu0 %4053 }
0x28bc   :  { %v4065_v14 = vsel %vm400_vm0, %v4054_v6, -inf }
0x28bd   :  { %v4068_v7 = vsub.f32 %v4048_v63, %v4064_v5  ;;  %v4069_v8 = vsub.f32 %v4059_v1, %v4064_v5 }
0x28bf   :  { %v4072_v10 = vmul.f32 1.442695, %v4068_v7  ;;  %v4074_v11 = vmul.f32 1.442695, %v4069_v8  ;;  %v4057_v12 = vpop.xlane.xlu0 %4056 }
0x28c0   :  { %v4066_v15 = vsel %vm400_vm0, %v4057_v12, -inf }
0x28c1   :  { %12009 = vpow2.f32 %v4072_v10  ;;  %v4067_v17 = vmax.f32 %v4065_v14, %v4066_v15 }
0x28c2   :  { %12011 = vpow2.f32 %v4074_v11 }
0x28c3   :  { %v4070_v18 = vsub.f32 %v4054_v6, %v4067_v17  ;;  %v4071_v19 = vsub.f32 %v4057_v12, %v4067_v17  ;;  %v4109_v36 = vpop.permute.xlu0 %4108 }
0x28c5   :  { %v4076_v20 = vmul.f32 1.442695, %v4070_v18  ;;  %v4078_v21 = vmul.f32 1.442695, %v4071_v19 }
0x28c7   :  { %12013 = vpow2.f32 %v4076_v20 }
0x28c8   :  { %12015 = vpow2.f32 %v4078_v21 }
0x28cb   :  { %v12010_v22 = vpop.eup %12009 }
0x28cc   :  { %v12012_v23 = vpop.eup %12011  ;;  %v4080_v24 = vsel %vm400_vm0, %v12010_v22, 0.0 }
0x28cd   :  { %v4081_v25 = vsel %vm400_vm0, %v12012_v23, 0.0 }
0x28ce   :  { %v4082_v26 = vadd.f32 %v4081_v25, %v4080_v24 }
0x28d0   :  { %12017 = vrcp.f32 %v4082_v26 }
0x28d1   :  { %v12014_v27 = vpop.eup %12013 }
0x28d2   :  { %v12016_v28 = vpop.eup %12015  ;;  %v4083_v29 = vsel %vm400_vm0, %v12014_v27, 0.0 }
0x28d3   :  { %v4084_v30 = vsel %vm400_vm0, %v12016_v28, 0.0 }
0x28d4   :  { %v4085_v31 = vadd.f32 %v4084_v30, %v4083_v29 }
0x28d6   :  { %12019 = vrcp.f32 %v4085_v31 }
0x28da   :  { %v12018_v32 = vpop.eup %12017 }
0x28db   :  { %v4087_v33 = vmul.f32 %v12018_v32, %v12010_v22  ;;  %v4088_v34 = vmul.f32 %v12018_v32, %v12012_v23 }
0x28dd   :  { %v4112_v37 = vmul.f32 %v4107_v35, %v4087_v33  ;;  %v4113_v38 = vmul.f32 %v4109_v36, %v4088_v34 }
0x28df   :  { %v4116_v42 = vsel %vm3934_vm8, %v4112_v37, 0.0  ;;  %v4117_v44 = vsel %vm3934_vm8, %v4113_v38, 0.0 }
0x28e0   :  { %v12020_v39 = vpop.eup %12019  ;;  %v4118_v50 = vadd.f32 %v4117_v44, %v4116_v42 }
0x28e1   :  { %v4091_v40 = vmul.f32 %v12020_v39, %v12016_v28  ;;  %v4090_v41 = vmul.f32 %v12020_v39, %v12014_v27 }
0x28e3   :  { %v4115_v43 = vmul.f32 %v4109_v36, %v4091_v40  ;;  %v4114_v45 = vmul.f32 %v4107_v35, %v4090_v41 }
0x28e5   :  { %v4120_v46 = vsel %vm3934_vm8, %v4115_v43, 0.0  ;;  %v4119_v48 = vsel %vm3934_vm8, %v4114_v45, 0.0 }
0x28e6   :  { %v4121_v51 = vadd.f32 %v4120_v46, %v4119_v48 }
0x28e8   :  { %v4135_v52 = vcombine.low %v4118_v50, %v4121_v51 }
0x28ea   :  { %v4142_v53 = vrot.slane %v4135_v52, %v13184_v57  ;;  %v3940_v56 = vpop.xlane.xlu1 %3939 }
0x28eb   :  { %v3948_v60 = vadd.f32 -1e+30, %v3940_v56 }
0x28ec   :  { %4143 = vrot.lane.b32.xlu1 %v4142_v53, %s12637_s2 }
0x28ed   :  { %v3952_v1 = vsel %vm400_vm0, %v3948_v60, -inf }
0x28ee   :  { %v3943_v59 = vpop.xlane.xlu1 %3942 }
0x28ef   :  { %v3954_v62 = vsel %vm400_vm0, %v3943_v59, -inf }
0x28f4   :  { %v3937_v54 = vpop.xlane.xlu0 %3936 }
0x28f5   :  { %v3951_v63 = vsel %vm400_vm0, %v3937_v54, -inf }
0x28f6   :  { %v3953_v2 = vmax.f32 %v3951_v63, %v3952_v1 }
0x28f8   :  { %v3946_v58 = vpop.xlane.xlu0 %3945  ;;  %v3957_v6 = vsub.f32 %v3937_v54, %v3953_v2  ;;  %v3958_v7 = vsub.f32 %v3948_v60, %v3953_v2  ;;  %v12659_v60 = vmov 842150450  }
0x28f9   :  { %v3955_v61 = vsel %vm400_vm0, %v3946_v58, -inf }
0x28fa   :  { %v3956_v0 = vmax.f32 %v3954_v62, %v3955_v61  ;;  %v3961_v11 = vmul.f32 1.442695, %v3957_v6  ;;  %v3963_v12 = vmul.f32 1.442695, %v3958_v7  ;;  %v4272_v61 = vunpack.c.l.s4 %v12659_v60 }
0x28fc   :  { %v3959_v4 = vsub.f32 %v3943_v59, %v3956_v0  ;;  %v3960_v5 = vsub.f32 %v3946_v58, %v3956_v0  ;;  %v12658_v58 = vmov 269488144   ;;  %v4273_v63 = vunpack.c.0.s8 %v4272_v61 }
0x28fd   :  { %v4265_v59 = vunpack.c.l.s4 %v12658_v58 }
0x28fe   :  { %v3965_v8 = vmul.f32 1.442695, %v3959_v4  ;;  %v3967_v10 = vmul.f32 1.442695, %v3960_v5 }
0x28ff   :  { %v4266_v62 = vunpack.c.0.s8 %v4265_v59  ;;  %v10083_v59 = vld [vmem:[#allocation23] ss:$0 sm:$0xff] }
0x2900   :  { %12021 = vpow2.f32 %v3965_v8 }
0x2901   :  { %12023 = vpow2.f32 %v3967_v10  ;;  %v13292_v0 = vsub.s32 %v4266_v62, %v13180_v55 }
0x2902   :  { %12025 = vpow2.f32 %v3961_v11 }
0x2903   :  { %12027 = vpow2.f32 %v3963_v12  ;;  %v4354_v12 = vld [vmem:[%s14211_s18] sm:$0xff] }
0x290a   :  { %v12022_v14 = vpop.eup %12021 }
0x290b   :  { %v12024_v15 = vpop.eup %12023  ;;  %v3972_v19 = vsel %vm400_vm0, %v12022_v14, 0.0 }
0x290c   :  { %v12026_v17 = vpop.eup %12025  ;;  %v3973_v20 = vsel %vm400_vm0, %v12024_v15, 0.0 }
0x290d   :  { %v12028_v18 = vpop.eup %12027  ;;  %v3969_v21 = vsel %vm400_vm0, %v12026_v17, 0.0  ;;  %v3974_v23 = vadd.f32 %v3973_v20, %v3972_v19  ;;  %v4448_v20 = vld [vmem:[%s14212_s22] sm:$0xff] }
0x290e   :  { %v3970_v22 = vsel %vm400_vm0, %v12028_v18, 0.0 }
0x290f   :  { %v3971_v24 = vadd.f32 %v3970_v22, %v3969_v21  ;;  %12029 = vrcp.f32 %v3974_v23  ;;  %v4449_v21 = vld [vmem:[%s14212_s22 + $0x8] sm:$0xff]  ;;  %v4450_v22 = vld [vmem:[%s14212_s22 + $0x10] sm:$0xff] }
0x2910   :  { %v11659_v23 = vpack.c.bf16 %v4449_v21, %v4448_v20  ;;  %v10087_v20 = vld [vmem:[%s14202_s1 + $0x20] sm:$0xff]  ;;  %v10088_v21 = vld [vmem:[%s14202_s1 + $0x28] sm:$0xff] }
0x2911   :  { %12031 = vrcp.f32 %v3971_v24  ;;  %v4451_v24 = vld [vmem:[%s14212_s22 + $0x18] sm:$0xff] }
0x2919   :  { %v12030_v25 = vpop.eup %12029 }
0x291a   :  { %v3980_v27 = vmul.f32 %v12030_v25, %v12024_v15  ;;  %v3979_v28 = vmul.f32 %v12030_v25, %v12022_v14  ;;  %v4355_v14 = vld [vmem:[%s14211_s18 + $0x8] sm:$0xff]  ;;  %v11662_v25 = vpack.c.bf16 %v4451_v24, %v4450_v22  ;;  %v11671_v22 = vpack.c.bf16 %v10088_v21, %v10087_v20 }
0x291b   :  { %v12032_v26 = vpop.eup %12031  ;;  %v11653_v15 = vpack.c.bf16 %v4355_v14, %v4354_v12  ;;  %v10101_v24 = vld [vmem:[%s14206_s20 + $0x28] sm:$0xff] }
0x291c   :  { %v3976_v29 = vmul.f32 %v12032_v26, %v12026_v17  ;;  %v3977_v30 = vmul.f32 %v12032_v26, %v12028_v18  ;;  %v3994_v31 = vmul.f32 %v13228_v47, %v3979_v28  ;;  %v3995_v32 = vmul.f32 %v13235_v49, %v3980_v27  ;;  %v4356_v17 = vld [vmem:[%s14211_s18 + $0x10] sm:$0xff]  ;;  %v4357_v18 = vld [vmem:[%s14211_s18 + $0x18] sm:$0xff]  ;;  %v4452_v26 = vld [vmem:[%s14212_s22 + $0x20] sm:$0xff] }
0x291d   :  { %11654 = vmatpush3.bf16.msra.mxu0 %v11653_v15  ;;  %v11656_v19 = vpack.c.bf16 %v4357_v18, %v4356_v17  ;;  %v4453_v27 = vld [vmem:[%s14212_s22 + $0x28] sm:$0xff] }
0x291e   :  { %v3992_v33 = vmul.f32 %v13228_v47, %v3976_v29  ;;  %v3993_v34 = vmul.f32 %v13235_v49, %v3977_v30  ;;  %v3999_v35 = vsel %vm3934_vm8, %v3994_v31, 0.0  ;;  %v4000_v36 = vsel %vm3934_vm8, %v3995_v32, 0.0  ;;  %v10077_v47 = vld [vmem:[%s14210_s0] ss:$0 sm:$0xff]  ;;  %11655 = vmatprep.subr.bf16.mxu0 %v12654_v9 }
0x291f   :  { %v4001_v39 = vadd.f32 %v4000_v36, %v3999_v35  ;;  %v11665_v28 = vpack.c.bf16 %v4453_v27, %v4452_v26  ;;  %v10079_v32 = vld [vmem:[%s14213_s17] ss:$0 sm:$0xff]  ;;  %v10089_v26 = vld [vmem:[%s14202_s1 + $0x30] sm:$0xff]  ;;  %v10090_v27 = vld [vmem:[%s14202_s1 + $0x38] sm:$0xff] }
0x2920   :  { %v3996_v37 = vsel %vm3934_vm8, %v3992_v33, 0.0  ;;  %v3997_v38 = vsel %vm3934_vm8, %v3993_v34, 0.0  ;;  %v10080_v33 = vld [vmem:[#allocation20] ss:$0 sm:$0xff]  ;;  %v4331_v34 = vrot.slane %v10079_v32, %v13184_v57 }
0x2921   :  { %v3998_v40 = vadd.f32 %v3997_v38, %v3996_v37  ;;  %11657 = vmatpush3.bf16.msra.mxu0 %v11656_v19  ;;  %v4348_v35 = vrot.slane %v10080_v33, %v13184_v57 }
0x2922   :  { %11670 = vmatprep.subr.bf16.mxu0 %v12654_v9  ;;  %v4332_v37 = vcombine.high %v4331_v34, %v4331_v34 }
0x2923   :  { %v4124_v41 = vcombine.low %v3998_v40, %v4001_v39 }
0x2925   :  { %v4131_v42 = vrot.slane %v4124_v41, %v13184_v57 }
0x295e   :  { %v4144_v43 = vpop.permute.xlu1 %4143 }
0x295f   :  { %v4146_v44 = vsel %vm499_vm4, %v4131_v42, %v4144_v43  ;;  %v4349_v42 = vcombine.high %v4348_v35, %v4348_v35 }
0x2960   :  { %11023 = vmatmul.mubr.msk.f32.vlgmr.msra.gmra.mrb[30].mxu1 %vm3673_vm7, %v4146_v44 }
0x2961   :  { %11052 = vmatprep.mubr.msk.f32.mxu1 %vm12655_vm6, %v12653_v16  ;;  %11660 = vmatpush3.bf16.msra.mxu1 %v11659_v23  ;;  %v10100_v23 = vld [vmem:[%s14206_s20 + $0x20] sm:$0xff] }
0x2962   :  { %11661 = vmatprep.subr.bf16.mxu1 %v12654_v9 }
0x2965   :  { %11663 = vmatpush3.bf16.msra.mxu1 %v11662_v25  ;;  %v11683_v25 = vpack.c.bf16 %v10101_v24, %v10100_v23 }
0x2966   :  { %11664 = vmatprep.subr.bf16.mxu1 %v12654_v9 }
0x2969   :  { %11666 = vmatpush3.bf16.msra.mxu1 %v11665_v28  ;;  %v10102_v28 = vld [vmem:[%s14206_s20 + $0x30] sm:$0xff] }
0x296a   :  { %11667 = vmatprep.subr.bf16.mxu1 %v12654_v9 }
0x2a33   :  { %v4227_v49 = vpop.f32.mrb[30].mxu1 }
0x2a34   :  { %v4228_v45 = vadd.f32 %v10077_v47, %v4227_v49  ;;  %v11024_v46 = vpop.f32.mrb[31].mxu1 }
0x2a36   :  { %v4238_v48 = vrot.slane %v4228_v45, %v13184_v57 }
0x2a38   :  { %v4239_v50 = vcombine.high %v4238_v48, %v4238_v48  ;;  %v4242_v51 = vadd.f32 %v4238_v48, %v13189_v3  ;;  %v13295_v3 = vsub.s32 %v4273_v63, %v13180_v55  ;;  %v4454_v48 = vld [vmem:[%s14212_s22 + $0x30] sm:$0xff] }
0x2a3a   :  { %v4243_v52 = vadd.f32 %v4239_v50, %v13191_v13  ;;  %v4455_v50 = vld [vmem:[%s14212_s22 + $0x38] sm:$0xff] }
0x2a3c   :  { %v4248_v53 = vcombine.low %v4242_v51, %v4243_v52 }
0x2a3e   :  { %v4255_v54 = vrot.slane %v4248_v53, %v13184_v57 }
0x2a40   :  { %v4258_v56 = vsel %vm4257_vm9, %v4255_v54, 0.0 }
0x2a41   :  { %4259 = vadd.xlane.f32.xlu0 %v4258_v56 }
0x2ace   :  { %v4260_v13 = vpop.xlane.xlu0 %4259 }
0x2acf   :  { %v4262_v1 = vmul.f32 0.03125, %v4260_v13 }
0x2ad1   :  { %v4270_v2 = vrot.slane %v4262_v1, %v13292_v0  ;;  %v4277_v4 = vrot.slane %v4262_v1, %v13295_v3 }
0x2ad3   :  { %v4280_v5 = vsub.f32 %v4242_v51, %v4270_v2  ;;  %v4281_v6 = vsub.f32 %v4243_v52, %v4277_v4  ;;  %v11668_v51 = vpack.c.bf16 %v4455_v50, %v4454_v48  ;;  %v10081_v52 = vld [vmem:[#allocation22] ss:$0 sm:$0xff]  ;;  %v10094_v50 = vld [vmem:[%s14203_s7 + $0x20] sm:$0xff] }
0x2ad5   :  { %v4282_v7 = vmul.f32 %v4280_v5, %v4280_v5  ;;  %v4283_v8 = vmul.f32 %v4281_v6, %v4281_v6  ;;  %11669 = vmatpush3.bf16.msra.mxu1 %v11668_v51  ;;  %v10095_v51 = vld [vmem:[%s14203_s7 + $0x28] sm:$0xff] }
0x2ad6   :  { %11682 = vmatprep.subr.bf16.mxu1 %v12654_v9 }
0x2ad7   :  { %v4286_v10 = vcombine.low %v4282_v7, %v4283_v8 }
0x2ad9   :  { %v4293_v11 = vrot.slane %v4286_v10, %v13184_v57 }
0x2adb   :  { %v4295_v55 = vsel %vm4257_vm9, %v4293_v11, 0.0 }
0x2adc   :  { %4296 = vadd.xlane.f32.xlu0 %v4295_v55 }
0x2b69   :  { %v4297_v29 = vpop.xlane.xlu0 %4296 }
0x2b6a   :  { %v4298_v30 = vmul.f32 0.03125, %v4297_v29  ;;  %v11674_v29 = vpack.c.bf16 %v10090_v27, %v10089_v26 }
0x2b6c   :  { %v4299_v31 = vadd.f32 1e-05, %v4298_v30  ;;  %v10103_v30 = vld [vmem:[%s14206_s20 + $0x38] sm:$0xff] }
0x2b6e   :  { %12033 = vrsqrt.f32 %v4299_v31  ;;  %v11686_v31 = vpack.c.bf16 %v10103_v30, %v10102_v28 }
0x2b78   :  { %v12034_v36 = vpop.eup %12033 }
0x2b79   :  { %v4308_v38 = vrot.slane %v12034_v36, %v13292_v0  ;;  %v4315_v39 = vrot.slane %v12034_v36, %v13295_v3  ;;  %v10086_v36 = vld [vmem:[#allocation25] ss:$0 sm:$0xff] }
0x2b7b   :  { %v4318_v40 = vmul.f32 %v4308_v38, %v4280_v5  ;;  %v4319_v41 = vmul.f32 %v4315_v39, %v4281_v6  ;;  %v4651_v38 = vrot.slane %v10086_v36, %v13184_v57 }
0x2b7d   :  { %v4335_v43 = vmul.f32 %v4331_v34, %v4318_v40  ;;  %v4336_v44 = vmul.f32 %v4332_v37, %v4319_v41 }
0x2b7f   :  { %v4352_v47 = vadd.f32 %v4348_v35, %v4335_v43  ;;  %v4353_v49 = vadd.f32 %v4349_v42, %v4336_v44  ;;  %v10085_v35 = vld [vmem:[%s14214_s4] ss:$0 sm:$0xff] }
0x2b80   :  { %v4634_v37 = vrot.slane %v10085_v35, %v13184_v57 }
0x2b81   :  { %v4367_v45 = vcombine.low %v4352_v47, %v4353_v49 }
0x2b82   :  { %v4635_v40 = vcombine.high %v4634_v37, %v4634_v37 }
0x2b83   :  { %v4374_v46 = vrot.slane %v4367_v45, %v13184_v57 }
0x2b85   :  { %11034 = vmatmul.mubr.msk.f32.vlgmr.msra.gmra.mrb[28].mxu0 %vm3673_vm7, %v4374_v46 }
0x2b86   :  { %11063 = vmatprep.mubr.msk.f32.mxu0 %vm12655_vm6, %v12653_v16  ;;  %11672 = vmatpush3.bf16.msra.mxu0 %v11671_v22 }
0x2b87   :  { %11673 = vmatprep.subr.bf16.mxu0 %v12654_v9 }
0x2b8a   :  { %11675 = vmatpush3.bf16.msra.mxu0 %v11674_v29  ;;  %v10105_v29 = vld [vmem:[%s14208_s3 + $0x1] ss:$0 sm:$0xff] }
0x2b8b   :  { %11676 = vmatprep.subr.bf16.mxu0 %v12654_v9 }
0x2c58   :  { %v4443_v53 = vpop.f32.mrb[28].mxu0 }
0x2c59   :  { %v4444_v54 = vadd.f32 %v10081_v52, %v4443_v53  ;;  %v11035_v56 = vpop.f32.mrb[29].mxu0  ;;  %v11677_v53 = vpack.c.bf16 %v10095_v51, %v10094_v50 }
0x2c5a   :  { %v10096_v56 = vld [vmem:[%s14203_s7 + $0x30] sm:$0xff] }
0x2c5b   :  { %v4447_v58 = vmax.f32 %v4444_v54, 0.0 }
0x2c5d   :  { %11053 = vmatmul.mubr.msk.f32.vlgmr.msra.gmra.mrb[32].mxu1 %vm825_vm5, %v4447_v58  ;;  %v10097_v58 = vld [vmem:[%s14203_s7 + $0x38] sm:$0xff] }
0x2c5e   :  { %11085 = vmatprep.mubr.msk.f32.mxu1 %vm12655_vm6, %v12653_v16  ;;  %11684 = vmatpush3.bf16.msra.mxu1 %v11683_v25 }
0x2c5f   :  { %11685 = vmatprep.subr.bf16.mxu1 %v12654_v9 }
0x2c62   :  { %11687 = vmatpush3.bf16.msra.mxu1 %v11686_v31 }
0x2c63   :  { %11694 = vmatprep.subr.bf16.mxu1 %v12654_v9 }
0x2d30   :  { %v4532_v60 = vpop.f32.mrb[32].mxu1 }
0x2d31   :  { %v4533_v61 = vadd.f32 %v10083_v59, %v4532_v60  ;;  %v11054_v62 = vpop.f32.mrb[33].mxu1  ;;  %v11680_v59 = vpack.c.bf16 %v10097_v58, %v10096_v56  ;;  %v10092_v60 = vld [vmem:[%s14207_s19 + $0x1] ss:$0 sm:$0xff] }
0x2d33   :  { %v4543_v63 = vrot.slane %v4533_v61, %v13184_v57 }
0x2d35   :  { %v4544_v13 = vcombine.high %v4543_v63, %v4543_v63  ;;  %v4547_v1 = vadd.f32 %v4543_v63, %v4352_v47  ;;  %v4652_v47 = vcombine.high %v4651_v38, %v4651_v38 }
0x2d37   :  { %v4548_v2 = vadd.f32 %v4544_v13, %v4353_v49 }
0x2d39   :  { %v4553_v4 = vcombine.low %v4547_v1, %v4548_v2 }
0x2d3b   :  { %v4560_v5 = vrot.slane %v4553_v4, %v13184_v57 }
0x2d3d   :  { %v4562_v6 = vsel %vm4257_vm9, %v4560_v5, 0.0 }
0x2d3e   :  { %4563 = vadd.xlane.f32.xlu0 %v4562_v6 }
0x2dcb   :  { %v4564_v7 = vpop.xlane.xlu0 %4563 }
0x2dcc   :  { %v4565_v8 = vmul.f32 0.03125, %v4564_v7 }
0x2dce   :  { %v4573_v10 = vrot.slane %v4565_v8, %v13292_v0  ;;  %v4580_v11 = vrot.slane %v4565_v8, %v13295_v3 }
0x2dd0   :  { %v4583_v55 = vsub.f32 %v4547_v1, %v4573_v10  ;;  %v4584_v12 = vsub.f32 %v4548_v2, %v4580_v11  ;;  %v10098_v2 = vld [vmem:[#allocation19 + $0x1] ss:$0 sm:$0xff] }
0x2dd2   :  { %v4585_v14 = vmul.f32 %v4583_v55, %v4583_v55  ;;  %v4586_v15 = vmul.f32 %v4584_v12, %v4584_v12 }
0x2dd4   :  { %v4589_v17 = vcombine.low %v4585_v14, %v4586_v15 }
0x2dd6   :  { %v4596_v18 = vrot.slane %v4589_v17, %v13184_v57 }
0x2dd8   :  { %v4598_v19 = vsel %vm4257_vm9, %v4596_v18, 0.0 }
0x2dd9   :  { %4599 = vadd.xlane.f32.xlu0 %v4598_v19 }
0x2e66   :  { %v4600_v32 = vpop.xlane.xlu0 %4599 }
0x2e67   :  { %v4601_v33 = vmul.f32 0.03125, %v4600_v32 }
0x2e69   :  { %v4602_v34 = vadd.f32 1e-05, %v4601_v33 }
0x2e6b   :  { %12035 = vrsqrt.f32 %v4602_v34 }
0x2e75   :  { %v12036_v39 = vpop.eup %12035 }
0x2e76   :  { %v4611_v41 = vrot.slane %v12036_v39, %v13292_v0  ;;  %v4618_v42 = vrot.slane %v12036_v39, %v13295_v3  ;;  %v10107_v39 = vld [vmem:[%s14209_s11 + $0x20] sm:$0xff] }
0x2e78   :  { %v4621_v43 = vmul.f32 %v4611_v41, %v4583_v55  ;;  %v4622_v44 = vmul.f32 %v4618_v42, %v4584_v12  ;;  %v10109_v41 = vld [vmem:[%s14209_s11 + $0x30] sm:$0xff] }
0x2e7a   :  { %v4638_v49 = vmul.f32 %v4634_v37, %v4621_v43  ;;  %v4639_v45 = vmul.f32 %v4635_v40, %v4622_v44  ;;  %v10108_v40 = vld [vmem:[%s14209_s11 + $0x28] sm:$0xff]  ;;  %v10110_v43 = vld [vmem:[%s14209_s11 + $0x38] sm:$0xff] }
0x2e7b   :  { %v11689_v42 = vpack.c.bf16 %v10108_v40, %v10107_v39  ;;  %v11692_v44 = vpack.c.bf16 %v10110_v43, %v10109_v41 }
0x2e7c   :  { %v13355_v46 = vadd.f32 %v4651_v38, %v4638_v49  ;;  %v13357_v48 = vadd.f32 %v4652_v47, %v4639_v45 }
0x2e7e   :  { %v4672_v52 = vcombine.low %v13355_v46, %v13357_v48 }
0x2e80   :  { %v4679_v54 = vrot.slane %v4672_v52, %v13184_v57 }
0x2e82   :  { %11064 = vmatmul.mubr.msk.f32.vlgmr.msra.gmra.mrb[30].mxu0 %vm3673_vm7, %v4679_v54  ;;  %11086 = vmatmul.mubr.msk.f32.vlgmr.msra.gmra.mrb[34].mxu1 %vm3673_vm7, %v4679_v54 }
0x2e83   :  { %11678 = vmatpush3.bf16.msra.mxu0 %v11677_v53  ;;  %11074 = vmatprep.mubr.msk.f32.mxu0 %vm12655_vm6, %v12653_v16 }
0x2e84   :  { %11679 = vmatprep.subr.bf16.mxu0 %v12654_v9  ;;  %11107 = vmatprep.mubr.msk.f32.mxu1 %vm12655_vm6, %v12653_v16 }
0x2e87   :  { %11681 = vmatpush3.bf16.msra.mxu0 %v11680_v59 }
0x2e88   :  { %11688 = vmatprep.subr.bf16.mxu0 %v12654_v9 }
0x2e8a   :  { %11075 = vmatmul.mubr.msk.f32.vlgmr.msra.gmra.mrb[32].mxu0 %vm3673_vm7, %v4679_v54 }
0x2e8b   :  { %11096 = vmatprep.mubr.msk.f32.mxu0 %vm12655_vm6, %v12653_v16  ;;  %11690 = vmatpush3.bf16.msra.mxu0 %v11689_v42 }
0x2e8c   :  { %11691 = vmatprep.subr.bf16.mxu0 %v12654_v9 }
0x2e8f   :  { %11693 = vmatpush3.bf16.msra.mxu0 %v11692_v44 }
0x2e90   :  { %11700 = vmatprep.subr.bf16.mxu0 %v12654_v9 }
0x2f55   :  { %v4748_v61 = vpop.f32.mrb[30].mxu0  ;;  %v4914_v62 = vpop.f32.mrb[34].mxu1 }
0x2f56   :  { %v11065_v63 = vpop.f32.mrb[31].mxu0  ;;  %v11087_v13 = vpop.f32.mrb[35].mxu1  ;;  %v4749_v1 = vadd.f32 %v10092_v60, %v4748_v61  ;;  %v4915_v30 = vadd.f32 %v10105_v29, %v4914_v62 }
0x2f58   :  { %v4925_v4 = vrot.slane %v4749_v1, %v13184_v57  ;;  %v13394_v31 = vrot.slane %v4915_v30, %v13184_v57 }
0x2f5a   :  { %v4926_v8 = vcombine.high %v4925_v4, %v4925_v4  ;;  %v13398_v32 = vcombine.high %v13394_v31, %v13394_v31  ;;  %v5107_v33 = vrot.slane %v13394_v31, %v13184_v57 }
0x2f5c   :  { %v5114_v34 = vrot.slane %v13398_v32, %v13184_v57 }
0x2f5d   :  { %v4831_v5 = vpop.f32.mrb[32].mxu0 }
0x2f5e   :  { %v4832_v6 = vadd.f32 %v10098_v2, %v4831_v5  ;;  %v11076_v7 = vpop.f32.mrb[33].mxu0 }
0x2f60   :  { %v4936_v10 = vrot.slane %v4832_v6, %v13184_v57 }
0x2f62   :  { %v4937_v11 = vcombine.high %v4936_v10, %v4936_v10  ;;  %v4942_v55 = vmul.f32 %v4936_v10, %v4926_v8  ;;  %v4940_v12 = vmul.f32 %v4936_v10, %v4925_v4 }
0x2f64   :  { %v5035_v14 = vrot.slane %v4942_v55, %v13184_v57  ;;  %v5021_v15 = vrot.slane %v4940_v12, %v13184_v57  ;;  %v4941_v17 = vmul.f32 %v4937_v11, %v4925_v4  ;;  %v4943_v18 = vmul.f32 %v4937_v11, %v4926_v8 }
0x2f65   :  { %v4944_v35 = vsel %vm3934_vm8, %v4940_v12, 0.0  ;;  %v4950_v36 = vsel %vm3934_vm8, %v4942_v55, 0.0 }
0x2f66   :  { %5047 = vrot.lane.b32.xlu1 %v5035_v14, %s12657_s6  ;;  %5043 = vrot.lane.b32.xlu0 %v5021_v15, %s12657_s6  ;;  %v5028_v19 = vrot.slane %v4941_v17, %v13184_v57  ;;  %v5042_v20 = vrot.slane %v4943_v18, %v13184_v57  ;;  %v4947_v37 = vsel %vm3934_vm8, %v4941_v17, 0.0  ;;  %v4953_v38 = vsel %vm3934_vm8, %v4943_v18, 0.0 }
0x2f6a   :  { %5045 = vrot.lane.b32.xlu1 %v5028_v19, %s12657_s6 }
0x2f6e   :  { %5049 = vrot.lane.b32.xlu1 %v5042_v20, %s12657_s6 }
0x2fd8   :  { %v5048_v21 = vpop.permute.xlu1 %5047  ;;  %v5044_v22 = vpop.permute.xlu0 %5043 }
0x2fd9   :  { %v5055_v23 = vsel %vm3934_vm8, %v5044_v22, 0.0  ;;  %v5061_v24 = vsel %vm3934_vm8, %v5048_v21, 0.0 }
0x2fda   :  { %5056 = vadd.xlane.f32.xlu0 %v5055_v23  ;;  %5062 = vadd.xlane.f32.xlu1 %v5061_v24 }
0x2fdc   :  { %v5046_v25 = vpop.permute.xlu1 %5045 }
0x2fdd   :  { %v5058_v26 = vsel %vm3934_vm8, %v5046_v25, 0.0 }
0x2fde   :  { %5059 = vadd.xlane.f32.xlu1 %v5058_v26 }
0x2fe0   :  { %v5050_v27 = vpop.permute.xlu1 %5049 }
0x2fe1   :  { %v5064_v28 = vsel %vm3934_vm8, %v5050_v27, 0.0 }
0x2fe2   :  { %5065 = vadd.xlane.f32.xlu1 %v5064_v28 }
0x2ff0   :  { %5115 = vrot.lane.b32.xlu0 %v5107_v33, %s12657_s6 }
0x2ff3   :  { %5117 = vrot.lane.b32.xlu1 %v5114_v34, %s12657_s6 }
0x300f   :  { %4945 = vadd.xlane.f32.xlu0 %v4944_v35 }
0x3013   :  { %4951 = vadd.xlane.f32.xlu0 %v4950_v36 }
0x3017   :  { %4948 = vadd.xlane.f32.xlu1 %v4947_v37 }
0x301b   :  { %4954 = vadd.xlane.f32.xlu1 %v4953_v38 }
0x3067   :  { %v5063_v47 = vpop.xlane.xlu1 %5062  ;;  %v5057_v49 = vpop.xlane.xlu0 %5056 }
0x3068   :  { %v5071_v51 = vsel %vm400_vm0, %v5057_v49, -inf  ;;  %v5074_v56 = vsel %vm400_vm0, %v5063_v47, -inf }
0x306b   :  { %v5060_v45 = vpop.xlane.xlu1 %5059  ;;  %v5116_v21 = vpop.permute.xlu0 %5115 }
0x306c   :  { %v5068_v50 = vadd.f32 -1e+30, %v5060_v45 }
0x306e   :  { %v5072_v52 = vsel %vm400_vm0, %v5068_v50, -inf }
0x306f   :  { %v5073_v53 = vmax.f32 %v5071_v51, %v5072_v52  ;;  %v5066_v54 = vpop.xlane.xlu1 %5065 }
0x3070   :  { %v5075_v58 = vsel %vm400_vm0, %v5066_v54, -inf }
0x3071   :  { %v5077_v59 = vsub.f32 %v5057_v49, %v5073_v53  ;;  %v5078_v60 = vsub.f32 %v5068_v50, %v5073_v53  ;;  %v5076_v61 = vmax.f32 %v5074_v56, %v5075_v58 }
0x3073   :  { %v5081_v62 = vmul.f32 1.442695, %v5077_v59  ;;  %v5083_v63 = vmul.f32 1.442695, %v5078_v60  ;;  %v5079_v13 = vsub.f32 %v5063_v47, %v5076_v61  ;;  %v5080_v1 = vsub.f32 %v5066_v54, %v5076_v61  ;;  %v5118_v22 = vpop.permute.xlu1 %5117 }
0x3075   :  { %12037 = vpow2.f32 %v5081_v62  ;;  %v5085_v2 = vmul.f32 1.442695, %v5079_v13  ;;  %v5087_v4 = vmul.f32 1.442695, %v5080_v1 }
0x3076   :  { %12039 = vpow2.f32 %v5083_v63 }
0x3077   :  { %12041 = vpow2.f32 %v5085_v2 }
0x3078   :  { %12043 = vpow2.f32 %v5087_v4 }
0x307f   :  { %v12038_v5 = vpop.eup %12037 }
0x3080   :  { %v12040_v6 = vpop.eup %12039  ;;  %v5089_v7 = vsel %vm400_vm0, %v12038_v5, 0.0 }
0x3081   :  { %v12042_v8 = vpop.eup %12041  ;;  %v5090_v10 = vsel %vm400_vm0, %v12040_v6, 0.0 }
0x3082   :  { %v12044_v11 = vpop.eup %12043  ;;  %v5091_v55 = vadd.f32 %v5090_v10, %v5089_v7  ;;  %v5092_v12 = vsel %vm400_vm0, %v12042_v8, 0.0 }
0x3083   :  { %v5093_v14 = vsel %vm400_vm0, %v12044_v11, 0.0 }
0x3084   :  { %12045 = vrcp.f32 %v5091_v55  ;;  %v5094_v15 = vadd.f32 %v5093_v14, %v5092_v12 }
0x3086   :  { %12047 = vrcp.f32 %v5094_v15 }
0x308e   :  { %v12046_v17 = vpop.eup %12045 }
0x308f   :  { %v5096_v18 = vmul.f32 %v12046_v17, %v12038_v5  ;;  %v5097_v19 = vmul.f32 %v12046_v17, %v12040_v6 }
0x3090   :  { %v12048_v20 = vpop.eup %12047 }
0x3091   :  { %v5121_v23 = vmul.f32 %v5116_v21, %v5096_v18  ;;  %v5099_v24 = vmul.f32 %v12048_v20, %v12042_v8  ;;  %v5100_v25 = vmul.f32 %v12048_v20, %v12044_v11  ;;  %v5122_v26 = vmul.f32 %v5118_v22, %v5097_v19 }
0x3093   :  { %v5125_v27 = vsel %vm3934_vm8, %v5121_v23, 0.0  ;;  %v5123_v28 = vmul.f32 %v5116_v21, %v5099_v24  ;;  %v5124_v29 = vmul.f32 %v5118_v22, %v5100_v25  ;;  %v5126_v30 = vsel %vm3934_vm8, %v5122_v26, 0.0 }
0x3094   :  { %v5127_v35 = vadd.f32 %v5126_v30, %v5125_v27 }
0x3095   :  { %v5128_v33 = vsel %vm3934_vm8, %v5123_v28, 0.0  ;;  %v5129_v34 = vsel %vm3934_vm8, %v5124_v29, 0.0 }
0x3096   :  { %v5130_v36 = vadd.f32 %v5129_v34, %v5128_v33 }
0x3098   :  { %v5144_v37 = vcombine.low %v5127_v35, %v5130_v36 }
0x309a   :  { %v5151_v38 = vrot.slane %v5144_v37, %v13184_v57 }
0x309c   :  { %5152 = vrot.lane.b32.xlu0 %v5151_v38, %s12637_s2  ;;  %v4946_v40 = vpop.xlane.xlu0 %4945 }
0x309d   :  { %v4960_v50 = vsel %vm400_vm0, %v4946_v40, -inf }
0x30a0   :  { %v4952_v43 = vpop.xlane.xlu0 %4951 }
0x30a1   :  { %v4963_v47 = vsel %vm400_vm0, %v4952_v43, -inf }
0x30a4   :  { %v4949_v39 = vpop.xlane.xlu1 %4948 }
0x30a5   :  { %v4957_v42 = vadd.f32 -1e+30, %v4949_v39 }
0x30a7   :  { %v4961_v49 = vsel %vm400_vm0, %v4957_v42, -inf }
0x30a8   :  { %v4955_v41 = vpop.xlane.xlu1 %4954  ;;  %v4962_v51 = vmax.f32 %v4960_v50, %v4961_v49 }
0x30a9   :  { %v4964_v44 = vsel %vm400_vm0, %v4955_v41, -inf }
0x30aa   :  { %v4965_v45 = vmax.f32 %v4963_v47, %v4964_v44  ;;  %v4966_v54 = vsub.f32 %v4946_v40, %v4962_v51  ;;  %v4967_v56 = vsub.f32 %v4957_v42, %v4962_v51 }
0x30ac   :  { %v4968_v52 = vsub.f32 %v4952_v43, %v4965_v45  ;;  %v4969_v53 = vsub.f32 %v4955_v41, %v4965_v45  ;;  %v4970_v60 = vmul.f32 1.442695, %v4966_v54  ;;  %v4972_v61 = vmul.f32 1.442695, %v4967_v56  ;;  %v10118_v54 = vld [vmem:[%s14211_s18 + $0x28] sm:$0xff] }
0x30ae   :  { %v4974_v58 = vmul.f32 1.442695, %v4968_v52  ;;  %v4976_v59 = vmul.f32 1.442695, %v4969_v53  ;;  %v10117_v53 = vld [vmem:[%s14211_s18 + $0x20] sm:$0xff] }
0x30af   :  { %v11695_v56 = vpack.c.bf16 %v10118_v54, %v10117_v53 }
0x30b0   :  { %12049 = vpow2.f32 %v4974_v58  ;;  %v10119_v58 = vld [vmem:[%s14211_s18 + $0x30] sm:$0xff] }
0x30b1   :  { %12051 = vpow2.f32 %v4976_v59  ;;  %v10120_v59 = vld [vmem:[%s14211_s18 + $0x38] sm:$0xff]  ;;  %11696 = vmatpush3.bf16.msra.mxu1 %v11695_v56 }
0x30b2   :  { %12053 = vpow2.f32 %v4970_v60  ;;  %v11698_v60 = vpack.c.bf16 %v10120_v59, %v10119_v58  ;;  %11697 = vmatprep.subr.bf16.mxu1 %v12654_v9 }
0x30b3   :  { %12055 = vpow2.f32 %v4972_v61  ;;  %v10123_v61 = vld [vmem:[%s14212_s22 + $0x40] sm:$0xff] }
0x30b5   :  { %11699 = vmatpush3.bf16.msra.mxu1 %v11698_v60 }
0x30b6   :  { %11712 = vmatprep.subr.bf16.mxu1 %v12654_v9 }
0x30ba   :  { %v12050_v62 = vpop.eup %12049 }
0x30bb   :  { %v12052_v63 = vpop.eup %12051  ;;  %v4981_v2 = vsel %vm400_vm0, %v12050_v62, 0.0 }
0x30bc   :  { %v12054_v13 = vpop.eup %12053  ;;  %v4982_v4 = vsel %vm400_vm0, %v12052_v63, 0.0 }
0x30bd   :  { %v12056_v1 = vpop.eup %12055  ;;  %v4978_v5 = vsel %vm400_vm0, %v12054_v13, 0.0  ;;  %v4983_v7 = vadd.f32 %v4982_v4, %v4981_v2  ;;  %v10127_v4 = vld [vmem:[%s14212_s22 + $0x60] sm:$0xff] }
0x30be   :  { %v4979_v6 = vsel %vm400_vm0, %v12056_v1, 0.0 }
0x30bf   :  { %v4980_v8 = vadd.f32 %v4979_v6, %v4978_v5  ;;  %12057 = vrcp.f32 %v4983_v7  ;;  %v10128_v5 = vld [vmem:[%s14212_s22 + $0x68] sm:$0xff] }
0x30c0   :  { %v11707_v6 = vpack.c.bf16 %v10128_v5, %v10127_v4  ;;  %v10138_v4 = vld [vmem:[%s14202_s1 + $0x50] sm:$0xff]  ;;  %v10139_v5 = vld [vmem:[%s14202_s1 + $0x58] sm:$0xff] }
0x30c1   :  { %12059 = vrcp.f32 %v4980_v8 }
0x30c9   :  { %v12058_v10 = vpop.eup %12057 }
0x30ca   :  { %v4989_v55 = vmul.f32 %v12058_v10, %v12052_v63  ;;  %v4988_v12 = vmul.f32 %v12058_v10, %v12050_v62  ;;  %v10124_v62 = vld [vmem:[%s14212_s22 + $0x48] sm:$0xff]  ;;  %v10125_v63 = vld [vmem:[%s14212_s22 + $0x50] sm:$0xff] }
0x30cb   :  { %v12060_v11 = vpop.eup %12059 }
0x30cc   :  { %v4986_v14 = vmul.f32 %v12060_v11, %v12056_v1  ;;  %v4985_v15 = vmul.f32 %v12060_v11, %v12054_v13  ;;  %v5003_v17 = vmul.f32 %v13394_v31, %v4988_v12  ;;  %v5004_v18 = vmul.f32 %v13398_v32, %v4989_v55  ;;  %v10126_v1 = vld [vmem:[%s14212_s22 + $0x58] sm:$0xff]  ;;  %v10115_v11 = vld [vmem:[%s14213_s17 + $0x1] ss:$0 sm:$0xff]  ;;  %v10116_v55 = vld [vmem:[#allocation20 + $0x1] ss:$0 sm:$0xff] }
0x30cd   :  { %v11701_v13 = vpack.c.bf16 %v10124_v62, %v10123_v61  ;;  %v11704_v2 = vpack.c.bf16 %v10126_v1, %v10125_v63  ;;  %v5342_v12 = vrot.slane %v10115_v11, %v13184_v57  ;;  %v10136_v61 = vld [vmem:[%s14202_s1 + $0x40] sm:$0xff]  ;;  %v10137_v62 = vld [vmem:[%s14202_s1 + $0x48] sm:$0xff] }
0x30ce   :  { %v5001_v19 = vmul.f32 %v13394_v31, %v4985_v15  ;;  %v5002_v20 = vmul.f32 %v13398_v32, %v4986_v14  ;;  %v5008_v21 = vsel %vm3934_vm8, %v5003_v17, 0.0  ;;  %v5009_v22 = vsel %vm3934_vm8, %v5004_v18, 0.0  ;;  %v10112_v31 = vld [vmem:[%s14210_s0 + $0x1] ss:$0 sm:$0xff]  ;;  %v10150_v1 = vld [vmem:[%s14206_s20 + $0x48] sm:$0xff] }
0x30cf   :  { %v5010_v25 = vadd.f32 %v5009_v22, %v5008_v21  ;;  %v5359_v14 = vrot.slane %v10116_v55, %v13184_v57  ;;  %v5343_v17 = vcombine.high %v5342_v12, %v5342_v12  ;;  %v11713_v63 = vpack.c.bf16 %v10137_v62, %v10136_v61 }
0x30d0   :  { %v5005_v23 = vsel %vm3934_vm8, %v5001_v19, 0.0  ;;  %v5006_v24 = vsel %vm3934_vm8, %v5002_v20, 0.0 }
0x30d1   :  { %v5007_v26 = vadd.f32 %v5006_v24, %v5005_v23  ;;  %v5360_v22 = vcombine.high %v5359_v14, %v5359_v14 }
0x30d3   :  { %v5133_v27 = vcombine.low %v5007_v26, %v5010_v25 }
0x30d5   :  { %v5140_v28 = vrot.slane %v5133_v27, %v13184_v57 }
0x310e   :  { %v5153_v29 = vpop.permute.xlu0 %5152 }
0x310f   :  { %v5155_v30 = vsel %vm499_vm4, %v5140_v28, %v5153_v29  ;;  %v10129_v29 = vld [vmem:[%s14212_s22 + $0x70] sm:$0xff] }
0x3110   :  { %11097 = vmatmul.mubr.msk.f32.vlgmr.msra.gmra.mrb[34].mxu0 %vm3673_vm7, %v5155_v30  ;;  %v10130_v30 = vld [vmem:[%s14212_s22 + $0x78] sm:$0xff] }
0x3111   :  { %11126 = vmatprep.mubr.msk.f32.mxu0 %vm12655_vm6, %v12653_v16  ;;  %11702 = vmatpush3.bf16.msra.mxu0 %v11701_v13  ;;  %v10149_v13 = vld [vmem:[%s14206_s20 + $0x40] sm:$0xff] }
0x3112   :  { %11703 = vmatprep.subr.bf16.mxu0 %v12654_v9 }
0x3115   :  { %11705 = vmatpush3.bf16.msra.mxu0 %v11704_v2  ;;  %v11725_v2 = vpack.c.bf16 %v10150_v1, %v10149_v13 }
0x3116   :  { %11706 = vmatprep.subr.bf16.mxu0 %v12654_v9 }
0x3119   :  { %11708 = vmatpush3.bf16.msra.mxu0 %v11707_v6  ;;  %v10151_v6 = vld [vmem:[%s14206_s20 + $0x50] sm:$0xff] }
0x311a   :  { %11709 = vmatprep.subr.bf16.mxu0 %v12654_v9 }
0x31e3   :  { %v5238_v32 = vpop.f32.mrb[34].mxu0 }
0x31e4   :  { %v5239_v33 = vadd.f32 %v10112_v31, %v5238_v32  ;;  %v11098_v34 = vpop.f32.mrb[35].mxu0  ;;  %v11710_v31 = vpack.c.bf16 %v10130_v30, %v10129_v29  ;;  %v10121_v32 = vld [vmem:[#allocation22 + $0x1] ss:$0 sm:$0xff]  ;;  %v10143_v30 = vld [vmem:[%s14203_s7 + $0x40] sm:$0xff] }
0x31e6   :  { %v5249_v35 = vrot.slane %v5239_v33, %v13184_v57  ;;  %11711 = vmatpush3.bf16.msra.mxu0 %v11710_v31  ;;  %v10144_v31 = vld [vmem:[%s14203_s7 + $0x48] sm:$0xff] }
0x31e7   :  { %11724 = vmatprep.subr.bf16.mxu0 %v12654_v9 }
0x31e8   :  { %v5250_v36 = vcombine.high %v5249_v35, %v5249_v35  ;;  %v5253_v37 = vadd.f32 %v5249_v35, %v13355_v46 }
0x31ea   :  { %v5254_v38 = vadd.f32 %v5250_v36, %v13357_v48 }
0x31ec   :  { %v5261_v39 = vcombine.low %v5253_v37, %v5254_v38 }
0x31ee   :  { %v5268_v40 = vrot.slane %v5261_v39, %v13184_v57 }
0x31f0   :  { %v5270_v41 = vsel %vm4257_vm9, %v5268_v40, 0.0 }
0x31f1   :  { %5271 = vadd.xlane.f32.xlu1 %v5270_v41 }
0x327e   :  { %v5272_v42 = vpop.xlane.xlu1 %5271 }
0x327f   :  { %v5273_v43 = vmul.f32 0.03125, %v5272_v42 }
0x3281   :  { %v5281_v44 = vrot.slane %v5273_v43, %v13292_v0  ;;  %v5288_v47 = vrot.slane %v5273_v43, %v13295_v3 }
0x3283   :  { %v5291_v49 = vsub.f32 %v5253_v37, %v5281_v44  ;;  %v5292_v46 = vsub.f32 %v5254_v38, %v5288_v47  ;;  %v10131_v37 = vld [vmem:[#allocation23 + $0x1] ss:$0 sm:$0xff] }
0x3285   :  { %v5293_v45 = vmul.f32 %v5291_v49, %v5291_v49  ;;  %v5294_v48 = vmul.f32 %v5292_v46, %v5292_v46 }
0x3287   :  { %v5297_v50 = vcombine.low %v5293_v45, %v5294_v48 }
0x3289   :  { %v5304_v51 = vrot.slane %v5297_v50, %v13184_v57 }
0x328b   :  { %v5306_v52 = vsel %vm4257_vm9, %v5304_v51, 0.0 }
0x328c   :  { %5307 = vadd.xlane.f32.xlu1 %v5306_v52 }
0x3319   :  { %v5308_v7 = vpop.xlane.xlu1 %5307 }
0x331a   :  { %v5309_v8 = vmul.f32 0.03125, %v5308_v7  ;;  %v11716_v7 = vpack.c.bf16 %v10139_v5, %v10138_v4 }
0x331c   :  { %v5310_v10 = vadd.f32 1e-05, %v5309_v8  ;;  %v10152_v8 = vld [vmem:[%s14206_s20 + $0x58] sm:$0xff] }
0x331e   :  { %12061 = vrsqrt.f32 %v5310_v10  ;;  %v11728_v10 = vpack.c.bf16 %v10152_v8, %v10151_v6 }
0x3328   :  { %v12062_v15 = vpop.eup %12061 }
0x3329   :  { %v5319_v18 = vrot.slane %v12062_v15, %v13292_v0  ;;  %v5326_v19 = vrot.slane %v12062_v15, %v13295_v3  ;;  %v10135_v15 = vld [vmem:[#allocation25 + $0x1] ss:$0 sm:$0xff] }
0x332b   :  { %v5329_v20 = vmul.f32 %v5319_v18, %v5291_v49  ;;  %v5330_v21 = vmul.f32 %v5326_v19, %v5292_v46  ;;  %v5668_v18 = vrot.slane %v10135_v15, %v13184_v57 }
0x332d   :  { %v5346_v23 = vmul.f32 %v5342_v12, %v5329_v20  ;;  %v5347_v24 = vmul.f32 %v5343_v17, %v5330_v21 }
0x332f   :  { %v5363_v25 = vadd.f32 %v5359_v14, %v5346_v23  ;;  %v5364_v26 = vadd.f32 %v5360_v22, %v5347_v24  ;;  %v10134_v14 = vld [vmem:[%s14214_s4 + $0x1] ss:$0 sm:$0xff] }
0x3330   :  { %v5651_v17 = vrot.slane %v10134_v14, %v13184_v57 }
0x3331   :  { %v5380_v27 = vcombine.low %v5363_v25, %v5364_v26 }
0x3332   :  { %v5652_v20 = vcombine.high %v5651_v17, %v5651_v17 }
0x3333   :  { %v5387_v28 = vrot.slane %v5380_v27, %v13184_v57 }
0x3335   :  { %11108 = vmatmul.mubr.msk.f32.vlgmr.msra.gmra.mrb[36].mxu1 %vm3673_vm7, %v5387_v28 }
0x3336   :  { %11137 = vmatprep.mubr.msk.f32.mxu1 %vm12655_vm6, %v12653_v16  ;;  %11714 = vmatpush3.bf16.msra.mxu1 %v11713_v63 }
0x3337   :  { %11715 = vmatprep.subr.bf16.mxu1 %v12654_v9 }
0x333a   :  { %11717 = vmatpush3.bf16.msra.mxu1 %v11716_v7 }
0x333b   :  { %11718 = vmatprep.subr.bf16.mxu1 %v12654_v9 }
0x3408   :  { %v5456_v33 = vpop.f32.mrb[36].mxu1 }
0x3409   :  { %v5457_v34 = vadd.f32 %v10121_v32, %v5456_v33  ;;  %v11109_v35 = vpop.f32.mrb[37].mxu1  ;;  %v11719_v33 = vpack.c.bf16 %v10144_v31, %v10143_v30 }
0x340a   :  { %v10145_v35 = vld [vmem:[%s14203_s7 + $0x50] sm:$0xff] }
0x340b   :  { %v5460_v36 = vmax.f32 %v5457_v34, 0.0 }
0x340d   :  { %11127 = vmatmul.mubr.msk.f32.vlgmr.msra.gmra.mrb[36].mxu0 %vm825_vm5, %v5460_v36  ;;  %v10146_v36 = vld [vmem:[%s14203_s7 + $0x58] sm:$0xff] }
0x340e   :  { %11159 = vmatprep.mubr.msk.f32.mxu0 %vm12655_vm6, %v12653_v16  ;;  %11726 = vmatpush3.bf16.msra.mxu0 %v11725_v2  ;;  %v10154_v2 = vld [vmem:[%s14208_s3 + $0x2] ss:$0 sm:$0xff] }
0x340f   :  { %11727 = vmatprep.subr.bf16.mxu0 %v12654_v9 }
0x3412   :  { %11729 = vmatpush3.bf16.msra.mxu0 %v11728_v10 }
0x3413   :  { %11736 = vmatprep.subr.bf16.mxu0 %v12654_v9 }
0x34e0   :  { %v5547_v38 = vpop.f32.mrb[36].mxu0 }
0x34e1   :  { %v5548_v39 = vadd.f32 %v10131_v37, %v5547_v38  ;;  %v11128_v40 = vpop.f32.mrb[37].mxu0  ;;  %v11722_v37 = vpack.c.bf16 %v10146_v36, %v10145_v35  ;;  %v10141_v38 = vld [vmem:[%s14207_s19 + $0x2] ss:$0 sm:$0xff] }
0x34e3   :  { %v5558_v41 = vrot.slane %v5548_v39, %v13184_v57 }
0x34e5   :  { %v5559_v42 = vcombine.high %v5558_v41, %v5558_v41  ;;  %v5562_v43 = vadd.f32 %v5558_v41, %v5363_v25  ;;  %v5669_v25 = vcombine.high %v5668_v18, %v5668_v18 }
0x34e7   :  { %v5563_v44 = vadd.f32 %v5559_v42, %v5364_v26 }
0x34e9   :  { %v5570_v47 = vcombine.low %v5562_v43, %v5563_v44 }
0x34eb   :  { %v5577_v49 = vrot.slane %v5570_v47, %v13184_v57 }
0x34ed   :  { %v5579_v46 = vsel %vm4257_vm9, %v5577_v49, 0.0 }
0x34ee   :  { %5580 = vadd.xlane.f32.xlu1 %v5579_v46 }
0x357b   :  { %v5581_v45 = vpop.xlane.xlu1 %5580 }
0x357c   :  { %v5582_v48 = vmul.f32 0.03125, %v5581_v45 }
0x357e   :  { %v5590_v50 = vrot.slane %v5582_v48, %v13292_v0  ;;  %v5597_v51 = vrot.slane %v5582_v48, %v13295_v3 }
0x3580   :  { %v5600_v52 = vsub.f32 %v5562_v43, %v5590_v50  ;;  %v5601_v53 = vsub.f32 %v5563_v44, %v5597_v51  ;;  %v10147_v44 = vld [vmem:[#allocation19 + $0x2] ss:$0 sm:$0xff] }
0x3582   :  { %v5602_v54 = vmul.f32 %v5600_v52, %v5600_v52  ;;  %v5603_v56 = vmul.f32 %v5601_v53, %v5601_v53 }
0x3584   :  { %v5606_v58 = vcombine.low %v5602_v54, %v5603_v56 }
0x3586   :  { %v5613_v59 = vrot.slane %v5606_v58, %v13184_v57 }
0x3588   :  { %v5615_v60 = vsel %vm4257_vm9, %v5613_v59, 0.0 }
0x3589   :  { %5616 = vadd.xlane.f32.xlu1 %v5615_v60 }
0x3616   :  { %v5617_v11 = vpop.xlane.xlu1 %5616 }
0x3617   :  { %v5618_v55 = vmul.f32 0.03125, %v5617_v11 }
0x3619   :  { %v5619_v12 = vadd.f32 1e-05, %v5618_v55 }
0x361b   :  { %12063 = vrsqrt.f32 %v5619_v12 }
0x3625   :  { %v12064_v19 = vpop.eup %12063 }
0x3626   :  { %v5628_v21 = vrot.slane %v12064_v19, %v13292_v0  ;;  %v5635_v22 = vrot.slane %v12064_v19, %v13295_v3  ;;  %v10156_v19 = vld [vmem:[%s14209_s11 + $0x40] sm:$0xff] }
0x3628   :  { %v5638_v23 = vmul.f32 %v5628_v21, %v5600_v52  ;;  %v5639_v24 = vmul.f32 %v5635_v22, %v5601_v53  ;;  %v10158_v21 = vld [vmem:[%s14209_s11 + $0x50] sm:$0xff] }
0x362a   :  { %v5655_v26 = vmul.f32 %v5651_v17, %v5638_v23  ;;  %v5656_v27 = vmul.f32 %v5652_v20, %v5639_v24  ;;  %v10157_v20 = vld [vmem:[%s14209_s11 + $0x48] sm:$0xff]  ;;  %v10159_v23 = vld [vmem:[%s14209_s11 + $0x58] sm:$0xff] }
0x362b   :  { %v11731_v22 = vpack.c.bf16 %v10157_v20, %v10156_v19  ;;  %v11734_v24 = vpack.c.bf16 %v10159_v23, %v10158_v21 }
0x362c   :  { %v13515_v28 = vadd.f32 %v5668_v18, %v5655_v26  ;;  %v13517_v29 = vadd.f32 %v5669_v25, %v5656_v27 }
0x362e   :  { %v5689_v32 = vcombine.low %v13515_v28, %v13517_v29 }
0x3630   :  { %v5696_v34 = vrot.slane %v5689_v32, %v13184_v57 }
0x3632   :  { %11138 = vmatmul.mubr.msk.f32.vlgmr.msra.gmra.mrb[38].mxu1 %vm3673_vm7, %v5696_v34  ;;  %11160 = vmatmul.mubr.msk.f32.vlgmr.msra.gmra.mrb[38].mxu0 %vm3673_vm7, %v5696_v34 }
0x3633   :  { %11720 = vmatpush3.bf16.msra.mxu1 %v11719_v33  ;;  %11148 = vmatprep.mubr.msk.f32.mxu1 %vm12655_vm6, %v12653_v16 }
0x3634   :  { %11721 = vmatprep.subr.bf16.mxu1 %v12654_v9  ;;  %11181 = vmatprep.mubr.msk.f32.mxu0 %vm12655_vm6, %v12653_v16 }
0x3637   :  { %11723 = vmatpush3.bf16.msra.mxu1 %v11722_v37 }
0x3638   :  { %11730 = vmatprep.subr.bf16.mxu1 %v12654_v9 }
0x363a   :  { %11149 = vmatmul.mubr.msk.f32.vlgmr.msra.gmra.mrb[40].mxu1 %vm3673_vm7, %v5696_v34 }
0x363b   :  { %11170 = vmatprep.mubr.msk.f32.mxu1 %vm12655_vm6, %v12653_v16  ;;  %11732 = vmatpush3.bf16.msra.mxu1 %v11731_v22 }
0x363c   :  { %11733 = vmatprep.subr.bf16.mxu1 %v12654_v9 }
0x363f   :  { %11735 = vmatpush3.bf16.msra.mxu1 %v11734_v24 }
0x3640   :  { %11742 = vmatprep.subr.bf16.mxu1 %v12654_v9 }
0x3705   :  { %v5765_v39 = vpop.f32.mrb[38].mxu1  ;;  %v5931_v40 = vpop.f32.mrb[38].mxu0 }
0x3706   :  { %v11139_v41 = vpop.f32.mrb[39].mxu1  ;;  %v11161_v42 = vpop.f32.mrb[39].mxu0  ;;  %v5766_v43 = vadd.f32 %v10141_v38, %v5765_v39  ;;  %v5932_v5 = vadd.f32 %v10154_v2, %v5931_v40 }
0x3708   :  { %v5942_v47 = vrot.slane %v5766_v43, %v13184_v57  ;;  %v13553_v8 = vrot.slane %v5932_v5, %v13184_v57 }
0x370a   :  { %v5943_v48 = vcombine.high %v5942_v47, %v5942_v47  ;;  %v6124_v11 = vrot.slane %v13553_v8, %v13184_v57  ;;  %v13561_v55 = vcombine.high %v13553_v8, %v13553_v8 }
0x370c   :  { %v6131_v12 = vrot.slane %v13561_v55, %v13184_v57 }
0x370d   :  { %v5848_v49 = vpop.f32.mrb[40].mxu1 }
0x370e   :  { %v5849_v46 = vadd.f32 %v10147_v44, %v5848_v49  ;;  %v11150_v45 = vpop.f32.mrb[41].mxu1 }
0x3710   :  { %v5953_v50 = vrot.slane %v5849_v46, %v13184_v57 }
0x3712   :  { %v5954_v51 = vcombine.high %v5953_v50, %v5953_v50  ;;  %v5957_v52 = vmul.f32 %v5953_v50, %v5942_v47  ;;  %v5959_v53 = vmul.f32 %v5953_v50, %v5943_v48 }
0x3714   :  { %v5958_v54 = vmul.f32 %v5954_v51, %v5942_v47  ;;  %v6038_v56 = vrot.slane %v5957_v52, %v13184_v57  ;;  %v5960_v58 = vmul.f32 %v5954_v51, %v5943_v48  ;;  %v6052_v60 = vrot.slane %v5959_v53, %v13184_v57 }
0x3715   :  { %v5967_v15 = vsel %vm3934_vm8, %v5959_v53, 0.0  ;;  %v5961_v17 = vsel %vm3934_vm8, %v5957_v52, 0.0 }
0x3716   :  { %6060 = vrot.lane.b32.xlu0 %v6038_v56, %s12657_s6  ;;  %v6045_v59 = vrot.slane %v5958_v54, %v13184_v57  ;;  %v6059_v61 = vrot.slane %v5960_v58, %v13184_v57  ;;  %v5964_v14 = vsel %vm3934_vm8, %v5958_v54, 0.0  ;;  %v5970_v18 = vsel %vm3934_vm8, %v5960_v58, 0.0 }
0x3718   :  { %6062 = vrot.lane.b32.xlu1 %v6045_v59, %s12657_s6 }
0x371a   :  { %6064 = vrot.lane.b32.xlu0 %v6052_v60, %s12657_s6 }
0x371e   :  { %6066 = vrot.lane.b32.xlu0 %v6059_v61, %s12657_s6 }
0x3788   :  { %v6061_v62 = vpop.permute.xlu0 %6060 }
0x3789   :  { %v6072_v63 = vsel %vm3934_vm8, %v6061_v62, 0.0 }
0x378a   :  { %6073 = vadd.xlane.f32.xlu1 %v6072_v63  ;;  %v6063_v4 = vpop.permute.xlu1 %6062 }
0x378b   :  { %v6075_v6 = vsel %vm3934_vm8, %v6063_v4, 0.0 }
0x378c   :  { %v6065_v13 = vpop.permute.xlu0 %6064 }
0x378d   :  { %v6078_v1 = vsel %vm3934_vm8, %v6065_v13, 0.0 }
0x378e   :  { %6079 = vadd.xlane.f32.xlu0 %v6078_v1 }
0x3790   :  { %v6067_v7 = vpop.permute.xlu0 %6066 }
0x3791   :  { %v6081_v10 = vsel %vm3934_vm8, %v6067_v7, 0.0 }
0x3792   :  { %6076 = vadd.xlane.f32.xlu0 %v6075_v6 }
0x3796   :  { %6082 = vadd.xlane.f32.xlu0 %v6081_v10 }
0x379b   :  { %6132 = vrot.lane.b32.xlu1 %v6124_v11, %s12657_s6 }
0x37ac   :  { %6134 = vrot.lane.b32.xlu0 %v6131_v12, %s12657_s6 }
0x37bf   :  { %5965 = vadd.xlane.f32.xlu1 %v5964_v14 }
0x37c3   :  { %5968 = vadd.xlane.f32.xlu1 %v5967_v15 }
0x37cb   :  { %5962 = vadd.xlane.f32.xlu0 %v5961_v17 }
0x37cf   :  { %5971 = vadd.xlane.f32.xlu0 %v5970_v18 }
0x3817   :  { %v6074_v26 = vpop.xlane.xlu1 %6073 }
0x3818   :  { %v6088_v31 = vsel %vm400_vm0, %v6074_v26, -inf }
0x381b   :  { %v6080_v25 = vpop.xlane.xlu0 %6079  ;;  %v6133_v62 = vpop.permute.xlu1 %6132 }
0x381c   :  { %v6091_v35 = vsel %vm400_vm0, %v6080_v25, -inf }
0x381f   :  { %v6077_v27 = vpop.xlane.xlu0 %6076 }
0x3820   :  { %v6085_v30 = vadd.f32 -1e+30, %v6077_v27 }
0x3822   :  { %v6089_v32 = vsel %vm400_vm0, %v6085_v30, -inf }
0x3823   :  { %v6090_v33 = vmax.f32 %v6088_v31, %v6089_v32  ;;  %v6083_v34 = vpop.xlane.xlu0 %6082 }
0x3824   :  { %v6092_v36 = vsel %vm400_vm0, %v6083_v34, -inf }
0x3825   :  { %v6094_v37 = vsub.f32 %v6074_v26, %v6090_v33  ;;  %v6095_v38 = vsub.f32 %v6085_v30, %v6090_v33  ;;  %v6093_v39 = vmax.f32 %v6091_v35, %v6092_v36 }
0x3827   :  { %v6098_v40 = vmul.f32 1.442695, %v6094_v37  ;;  %v6100_v41 = vmul.f32 1.442695, %v6095_v38  ;;  %v6096_v42 = vsub.f32 %v6080_v25, %v6093_v39  ;;  %v6097_v43 = vsub.f32 %v6083_v34, %v6093_v39  ;;  %v6135_v63 = vpop.permute.xlu0 %6134 }
0x3829   :  { %12065 = vpow2.f32 %v6098_v40  ;;  %v6102_v44 = vmul.f32 1.442695, %v6096_v42  ;;  %v6104_v47 = vmul.f32 1.442695, %v6097_v43 }
0x382a   :  { %12067 = vpow2.f32 %v6100_v41 }
0x382b   :  { %12069 = vpow2.f32 %v6102_v44 }
0x382c   :  { %12071 = vpow2.f32 %v6104_v47 }
0x3833   :  { %v12066_v49 = vpop.eup %12065 }
0x3834   :  { %v12068_v46 = vpop.eup %12067  ;;  %v6106_v45 = vsel %vm400_vm0, %v12066_v49, 0.0 }
0x3835   :  { %v12070_v48 = vpop.eup %12069  ;;  %v6107_v50 = vsel %vm400_vm0, %v12068_v46, 0.0 }
0x3836   :  { %v12072_v51 = vpop.eup %12071  ;;  %v6109_v52 = vsel %vm400_vm0, %v12070_v48, 0.0  ;;  %v6108_v53 = vadd.f32 %v6107_v50, %v6106_v45 }
0x3837   :  { %v6110_v54 = vsel %vm400_vm0, %v12072_v51, 0.0 }
0x3838   :  { %v6111_v56 = vadd.f32 %v6110_v54, %v6109_v52  ;;  %12073 = vrcp.f32 %v6108_v53 }
0x383a   :  { %12075 = vrcp.f32 %v6111_v56 }
0x3842   :  { %v12074_v58 = vpop.eup %12073 }
0x3843   :  { %v6113_v59 = vmul.f32 %v12074_v58, %v12066_v49  ;;  %v6114_v60 = vmul.f32 %v12074_v58, %v12068_v46 }
0x3844   :  { %v12076_v61 = vpop.eup %12075 }
0x3845   :  { %v6116_v13 = vmul.f32 %v12076_v61, %v12070_v48  ;;  %v6117_v1 = vmul.f32 %v12076_v61, %v12072_v51  ;;  %v6138_v2 = vmul.f32 %v6133_v62, %v6113_v59  ;;  %v6139_v4 = vmul.f32 %v6135_v63, %v6114_v60 }
0x3847   :  { %v6140_v5 = vmul.f32 %v6133_v62, %v6116_v13  ;;  %v6141_v6 = vmul.f32 %v6135_v63, %v6117_v1  ;;  %v6142_v7 = vsel %vm3934_vm8, %v6138_v2, 0.0  ;;  %v6143_v10 = vsel %vm3934_vm8, %v6139_v4, 0.0 }
0x3848   :  { %v6144_v14 = vadd.f32 %v6143_v10, %v6142_v7 }
0x3849   :  { %v6145_v11 = vsel %vm3934_vm8, %v6140_v5, 0.0  ;;  %v6146_v12 = vsel %vm3934_vm8, %v6141_v6, 0.0 }
0x384a   :  { %v6147_v15 = vadd.f32 %v6146_v12, %v6145_v11 }
0x384c   :  { %v6161_v17 = vcombine.low %v6144_v14, %v6147_v15  ;;  %v5966_v20 = vpop.xlane.xlu1 %5965 }
0x384d   :  { %v5974_v23 = vadd.f32 -1e+30, %v5966_v20 }
0x384e   :  { %v6168_v18 = vrot.slane %v6161_v17, %v13184_v57 }
0x384f   :  { %v5978_v30 = vsel %vm400_vm0, %v5974_v23, -inf }
0x3850   :  { %6169 = vrot.lane.b32.xlu1 %v6168_v18, %s12637_s2  ;;  %v5969_v22 = vpop.xlane.xlu1 %5968 }
0x3851   :  { %v5980_v25 = vsel %vm400_vm0, %v5969_v22, -inf }
0x3858   :  { %v5963_v19 = vpop.xlane.xlu0 %5962 }
0x3859   :  { %v5977_v26 = vsel %vm400_vm0, %v5963_v19, -inf }
0x385a   :  { %v5979_v31 = vmax.f32 %v5977_v26, %v5978_v30 }
0x385c   :  { %v5972_v21 = vpop.xlane.xlu0 %5971  ;;  %v5983_v34 = vsub.f32 %v5963_v19, %v5979_v31  ;;  %v5984_v35 = vsub.f32 %v5974_v23, %v5979_v31 }
0x385d   :  { %v5981_v24 = vsel %vm400_vm0, %v5972_v21, -inf }
0x385e   :  { %v5982_v27 = vmax.f32 %v5980_v25, %v5981_v24  ;;  %v5987_v38 = vmul.f32 1.442695, %v5983_v34  ;;  %v5989_v39 = vmul.f32 1.442695, %v5984_v35  ;;  %v10167_v34 = vld [vmem:[%s14211_s18 + $0x48] sm:$0xff] }
0x3860   :  { %v5985_v32 = vsub.f32 %v5969_v22, %v5982_v27  ;;  %v5986_v33 = vsub.f32 %v5972_v21, %v5982_v27 }
0x3862   :  { %v5991_v36 = vmul.f32 1.442695, %v5985_v32  ;;  %v5993_v37 = vmul.f32 1.442695, %v5986_v33  ;;  %v10166_v33 = vld [vmem:[%s14211_s18 + $0x40] sm:$0xff] }
0x3863   :  { %v11737_v35 = vpack.c.bf16 %v10167_v34, %v10166_v33 }
0x3864   :  { %12077 = vpow2.f32 %v5991_v36  ;;  %v10168_v36 = vld [vmem:[%s14211_s18 + $0x50] sm:$0xff] }
0x3865   :  { %12079 = vpow2.f32 %v5993_v37  ;;  %v10169_v37 = vld [vmem:[%s14211_s18 + $0x58] sm:$0xff]  ;;  %11738 = vmatpush3.bf16.msra.mxu0 %v11737_v35 }
0x3866   :  { %12081 = vpow2.f32 %v5987_v38  ;;  %v11740_v38 = vpack.c.bf16 %v10169_v37, %v10168_v36  ;;  %11739 = vmatprep.subr.bf16.mxu0 %v12654_v9 }
0x3867   :  { %12083 = vpow2.f32 %v5989_v39  ;;  %v10172_v39 = vld [vmem:[%s14212_s22 + $0x80] sm:$0xff] }
0x3869   :  { %11741 = vmatpush3.bf16.msra.mxu0 %v11740_v38 }
0x386a   :  { %11754 = vmatprep.subr.bf16.mxu0 %v12654_v9 }
0x386e   :  { %v12078_v40 = vpop.eup %12077 }
0x386f   :  { %v12080_v41 = vpop.eup %12079  ;;  %v5998_v44 = vsel %vm400_vm0, %v12078_v40, 0.0 }
0x3870   :  { %v12082_v42 = vpop.eup %12081  ;;  %v5999_v47 = vsel %vm400_vm0, %v12080_v41, 0.0 }
0x3871   :  { %v12084_v43 = vpop.eup %12083  ;;  %v5995_v49 = vsel %vm400_vm0, %v12082_v42, 0.0  ;;  %v6000_v45 = vadd.f32 %v5999_v47, %v5998_v44  ;;  %v10176_v47 = vld [vmem:[%s14212_s22 + $0xa0] sm:$0xff] }
0x3872   :  { %v5996_v46 = vsel %vm400_vm0, %v12084_v43, 0.0 }
0x3873   :  { %v5997_v48 = vadd.f32 %v5996_v46, %v5995_v49  ;;  %12085 = vrcp.f32 %v6000_v45  ;;  %v10177_v49 = vld [vmem:[%s14212_s22 + $0xa8] sm:$0xff] }
0x3874   :  { %v11749_v46 = vpack.c.bf16 %v10177_v49, %v10176_v47  ;;  %v10187_v47 = vld [vmem:[%s14202_s1 + $0x70] sm:$0xff]  ;;  %v10188_v49 = vld [vmem:[%s14202_s1 + $0x78] sm:$0xff] }
0x3875   :  { %12087 = vrcp.f32 %v5997_v48 }
0x387d   :  { %v12086_v50 = vpop.eup %12085 }
0x387e   :  { %v6006_v52 = vmul.f32 %v12086_v50, %v12080_v41  ;;  %v6005_v53 = vmul.f32 %v12086_v50, %v12078_v40  ;;  %v10173_v40 = vld [vmem:[%s14212_s22 + $0x88] sm:$0xff]  ;;  %v10174_v41 = vld [vmem:[%s14212_s22 + $0x90] sm:$0xff] }
0x387f   :  { %v12088_v51 = vpop.eup %12087 }
0x3880   :  { %v6002_v54 = vmul.f32 %v12088_v51, %v12082_v42  ;;  %v6003_v56 = vmul.f32 %v12088_v51, %v12084_v43  ;;  %v6020_v58 = vmul.f32 %v13553_v8, %v6005_v53  ;;  %v6021_v59 = vmul.f32 %v13561_v55, %v6006_v52  ;;  %v10175_v43 = vld [vmem:[%s14212_s22 + $0x98] sm:$0xff]  ;;  %v10164_v51 = vld [vmem:[%s14213_s17 + $0x2] ss:$0 sm:$0xff] }
0x3881   :  { %v11743_v42 = vpack.c.bf16 %v10173_v40, %v10172_v39  ;;  %v11746_v44 = vpack.c.bf16 %v10175_v43, %v10174_v41  ;;  %v10165_v52 = vld [vmem:[#allocation20 + $0x2] ss:$0 sm:$0xff]  ;;  %v6359_v53 = vrot.slane %v10164_v51, %v13184_v57  ;;  %v10185_v39 = vld [vmem:[%s14202_s1 + $0x60] sm:$0xff]  ;;  %v10186_v40 = vld [vmem:[%s14202_s1 + $0x68] sm:$0xff] }
0x3882   :  { %v6018_v60 = vmul.f32 %v13553_v8, %v6002_v54  ;;  %v6019_v61 = vmul.f32 %v13561_v55, %v6003_v56  ;;  %v6025_v62 = vsel %vm3934_vm8, %v6020_v58, 0.0  ;;  %v6026_v63 = vsel %vm3934_vm8, %v6021_v59, 0.0  ;;  %v10161_v8 = vld [vmem:[%s14210_s0 + $0x2] ss:$0 sm:$0xff]  ;;  %v10199_v43 = vld [vmem:[%s14206_s20 + $0x68] sm:$0xff] }
0x3883   :  { %v6027_v2 = vadd.f32 %v6026_v63, %v6025_v62  ;;  %v6376_v54 = vrot.slane %v10165_v52, %v13184_v57  ;;  %v6360_v58 = vcombine.high %v6359_v53, %v6359_v53  ;;  %v11755_v41 = vpack.c.bf16 %v10186_v40, %v10185_v39 }
0x3884   :  { %v6022_v13 = vsel %vm3934_vm8, %v6018_v60, 0.0  ;;  %v6023_v1 = vsel %vm3934_vm8, %v6019_v61, 0.0 }
0x3885   :  { %v6024_v4 = vadd.f32 %v6023_v1, %v6022_v13  ;;  %v6377_v63 = vcombine.high %v6376_v54, %v6376_v54 }
0x3887   :  { %v6150_v5 = vcombine.low %v6024_v4, %v6027_v2 }
0x3889   :  { %v6157_v6 = vrot.slane %v6150_v5, %v13184_v57 }
0x38c2   :  { %v6170_v7 = vpop.permute.xlu1 %6169 }
0x38c3   :  { %v6172_v10 = vsel %vm499_vm4, %v6157_v6, %v6170_v7  ;;  %v10178_v7 = vld [vmem:[%s14212_s22 + $0xb0] sm:$0xff] }
0x38c4   :  { %11171 = vmatmul.mubr.msk.f32.vlgmr.msra.gmra.mrb[42].mxu1 %vm3673_vm7, %v6172_v10  ;;  %v10179_v10 = vld [vmem:[%s14212_s22 + $0xb8] sm:$0xff] }
0x38c5   :  { %11200 = vmatprep.mubr.msk.f32.mxu1 %vm12655_vm6, %v12653_v16  ;;  %11744 = vmatpush3.bf16.msra.mxu1 %v11743_v42  ;;  %v10198_v42 = vld [vmem:[%s14206_s20 + $0x60] sm:$0xff] }
0x38c6   :  { %11745 = vmatprep.subr.bf16.mxu1 %v12654_v9 }
0x38c9   :  { %11747 = vmatpush3.bf16.msra.mxu1 %v11746_v44  ;;  %v11767_v44 = vpack.c.bf16 %v10199_v43, %v10198_v42 }
0x38ca   :  { %11748 = vmatprep.subr.bf16.mxu1 %v12654_v9 }
0x38cd   :  { %11750 = vmatpush3.bf16.msra.mxu1 %v11749_v46  ;;  %v10200_v46 = vld [vmem:[%s14206_s20 + $0x70] sm:$0xff] }
0x38ce   :  { %11751 = vmatprep.subr.bf16.mxu1 %v12654_v9 }
0x3997   :  { %v6255_v55 = vpop.f32.mrb[42].mxu1 }
0x3998   :  { %v6256_v11 = vadd.f32 %v10161_v8, %v6255_v55  ;;  %v11172_v12 = vpop.f32.mrb[43].mxu1  ;;  %v11752_v8 = vpack.c.bf16 %v10179_v10, %v10178_v7  ;;  %v10170_v55 = vld [vmem:[#allocation22 + $0x2] ss:$0 sm:$0xff]  ;;  %v10192_v10 = vld [vmem:[%s14203_s7 + $0x60] sm:$0xff] }
0x399a   :  { %v6266_v14 = vrot.slane %v6256_v11, %v13184_v57  ;;  %11753 = vmatpush3.bf16.msra.mxu1 %v11752_v8  ;;  %v10193_v8 = vld [vmem:[%s14203_s7 + $0x68] sm:$0xff] }
0x399b   :  { %11766 = vmatprep.subr.bf16.mxu1 %v12654_v9 }
0x399c   :  { %v6267_v15 = vcombine.high %v6266_v14, %v6266_v14  ;;  %v6270_v17 = vadd.f32 %v6266_v14, %v13515_v28 }
0x399e   :  { %v6271_v18 = vadd.f32 %v6267_v15, %v13517_v29 }
0x39a0   :  { %v6278_v19 = vcombine.low %v6270_v17, %v6271_v18 }
0x39a2   :  { %v6285_v20 = vrot.slane %v6278_v19, %v13184_v57 }
0x39a4   :  { %v6287_v21 = vsel %vm4257_vm9, %v6285_v20, 0.0 }
0x39a5   :  { %6288 = vadd.xlane.f32.xlu0 %v6287_v21 }
0x3a32   :  { %v6289_v22 = vpop.xlane.xlu0 %6288 }
0x3a33   :  { %v6290_v23 = vmul.f32 0.03125, %v6289_v22 }
0x3a35   :  { %v6298_v24 = vrot.slane %v6290_v23, %v13292_v0  ;;  %v6305_v25 = vrot.slane %v6290_v23, %v13295_v3 }
0x3a37   :  { %v6308_v26 = vsub.f32 %v6270_v17, %v6298_v24  ;;  %v6309_v28 = vsub.f32 %v6271_v18, %v6305_v25  ;;  %v10180_v17 = vld [vmem:[#allocation23 + $0x2] ss:$0 sm:$0xff] }
0x3a39   :  { %v6310_v27 = vmul.f32 %v6308_v26, %v6308_v26  ;;  %v6311_v29 = vmul.f32 %v6309_v28, %v6309_v28 }
0x3a3b   :  { %v6314_v30 = vcombine.low %v6310_v27, %v6311_v29 }
0x3a3d   :  { %v6321_v31 = vrot.slane %v6314_v30, %v13184_v57 }
0x3a3f   :  { %v6323_v32 = vsel %vm4257_vm9, %v6321_v31, 0.0 }
0x3a40   :  { %6324 = vadd.xlane.f32.xlu0 %v6323_v32 }
0x3acd   :  { %v6325_v45 = vpop.xlane.xlu0 %6324 }
0x3ace   :  { %v6326_v48 = vmul.f32 0.03125, %v6325_v45  ;;  %v11758_v45 = vpack.c.bf16 %v10188_v49, %v10187_v47 }
0x3ad0   :  { %v6327_v50 = vadd.f32 1e-05, %v6326_v48  ;;  %v10201_v48 = vld [vmem:[%s14206_s20 + $0x78] sm:$0xff] }
0x3ad2   :  { %12089 = vrsqrt.f32 %v6327_v50  ;;  %v11770_v50 = vpack.c.bf16 %v10201_v48, %v10200_v46 }
0x3adc   :  { %v12090_v56 = vpop.eup %12089 }
0x3add   :  { %v6336_v59 = vrot.slane %v12090_v56, %v13292_v0  ;;  %v6343_v60 = vrot.slane %v12090_v56, %v13295_v3  ;;  %v10184_v56 = vld [vmem:[#allocation25 + $0x2] ss:$0 sm:$0xff] }
0x3adf   :  { %v6346_v61 = vmul.f32 %v6336_v59, %v6308_v26  ;;  %v6347_v62 = vmul.f32 %v6343_v60, %v6309_v28  ;;  %v6685_v59 = vrot.slane %v10184_v56, %v13184_v57 }
0x3ae1   :  { %v6363_v13 = vmul.f32 %v6359_v53, %v6346_v61  ;;  %v6364_v1 = vmul.f32 %v6360_v58, %v6347_v62 }
0x3ae3   :  { %v6380_v2 = vadd.f32 %v6376_v54, %v6363_v13  ;;  %v6381_v4 = vadd.f32 %v6377_v63, %v6364_v1  ;;  %v10183_v54 = vld [vmem:[%s14214_s4 + $0x2] ss:$0 sm:$0xff] }
0x3ae4   :  { %v6668_v58 = vrot.slane %v10183_v54, %v13184_v57 }
0x3ae5   :  { %v6397_v5 = vcombine.low %v6380_v2, %v6381_v4 }
0x3ae6   :  { %v6669_v61 = vcombine.high %v6668_v58, %v6668_v58 }
0x3ae7   :  { %v6404_v6 = vrot.slane %v6397_v5, %v13184_v57 }
0x3ae9   :  { %11182 = vmatmul.mubr.msk.f32.vlgmr.msra.gmra.mrb[40].mxu0 %vm3673_vm7, %v6404_v6 }
0x3aea   :  { %11211 = vmatprep.mubr.msk.f32.mxu0 %vm12655_vm6, %v12653_v16  ;;  %11756 = vmatpush3.bf16.msra.mxu0 %v11755_v41 }
0x3aeb   :  { %11757 = vmatprep.subr.bf16.mxu0 %v12654_v9 }
0x3aee   :  { %11759 = vmatpush3.bf16.msra.mxu0 %v11758_v45  ;;  %v10203_v45 = vld [vmem:[%s14208_s3 + $0x3] ss:$0 sm:$0xff] }
0x3aef   :  { %11760 = vmatprep.subr.bf16.mxu0 %v12654_v9 }
0x3bbc   :  { %v6473_v11 = vpop.f32.mrb[40].mxu0 }
0x3bbd   :  { %v6474_v12 = vadd.f32 %v10170_v55, %v6473_v11  ;;  %v11183_v14 = vpop.f32.mrb[41].mxu0  ;;  %v11761_v11 = vpack.c.bf16 %v10193_v8, %v10192_v10 }
0x3bbe   :  { %v10194_v14 = vld [vmem:[%s14203_s7 + $0x70] sm:$0xff] }
0x3bbf   :  { %v6477_v15 = vmax.f32 %v6474_v12, 0.0 }
0x3bc1   :  { %11201 = vmatmul.mubr.msk.f32.vlgmr.msra.gmra.mrb[44].mxu1 %vm825_vm5, %v6477_v15  ;;  %v10195_v15 = vld [vmem:[%s14203_s7 + $0x78] sm:$0xff] }
0x3bc2   :  { %11233 = vmatprep.mubr.msk.f32.mxu1 %vm12655_vm6, %v12653_v16  ;;  %11768 = vmatpush3.bf16.msra.mxu1 %v11767_v44 }
0x3bc3   :  { %11769 = vmatprep.subr.bf16.mxu1 %v12654_v9 }
0x3bc6   :  { %11771 = vmatpush3.bf16.msra.mxu1 %v11770_v50 }
0x3bc7   :  { %11778 = vmatprep.subr.bf16.mxu1 %v12654_v9 }
0x3c94   :  { %v6564_v18 = vpop.f32.mrb[44].mxu1 }
0x3c95   :  { %v6565_v19 = vadd.f32 %v10180_v17, %v6564_v18  ;;  %v11202_v20 = vpop.f32.mrb[45].mxu1  ;;  %v11764_v17 = vpack.c.bf16 %v10195_v15, %v10194_v14  ;;  %v10190_v18 = vld [vmem:[%s14207_s19 + $0x3] ss:$0 sm:$0xff] }
0x3c97   :  { %v6575_v21 = vrot.slane %v6565_v19, %v13184_v57 }
0x3c99   :  { %v6576_v22 = vcombine.high %v6575_v21, %v6575_v21  ;;  %v6579_v23 = vadd.f32 %v6575_v21, %v6380_v2  ;;  %v6686_v2 = vcombine.high %v6685_v59, %v6685_v59 }
0x3c9b   :  { %v6580_v24 = vadd.f32 %v6576_v22, %v6381_v4 }
0x3c9d   :  { %v6587_v25 = vcombine.low %v6579_v23, %v6580_v24 }
0x3c9f   :  { %v6594_v26 = vrot.slane %v6587_v25, %v13184_v57 }
0x3ca1   :  { %v6596_v28 = vsel %vm4257_vm9, %v6594_v26, 0.0 }
0x3ca2   :  { %6597 = vadd.xlane.f32.xlu0 %v6596_v28 }
0x3d2f   :  { %v6598_v27 = vpop.xlane.xlu0 %6597 }
0x3d30   :  { %v6599_v29 = vmul.f32 0.03125, %v6598_v27 }
0x3d32   :  { %v6607_v30 = vrot.slane %v6599_v29, %v13292_v0  ;;  %v6614_v31 = vrot.slane %v6599_v29, %v13295_v3 }
0x3d34   :  { %v6617_v32 = vsub.f32 %v6579_v23, %v6607_v30  ;;  %v6618_v33 = vsub.f32 %v6580_v24, %v6614_v31  ;;  %v10196_v24 = vld [vmem:[#allocation19 + $0x3] ss:$0 sm:$0xff] }
0x3d36   :  { %v6619_v34 = vmul.f32 %v6617_v32, %v6617_v32  ;;  %v6620_v35 = vmul.f32 %v6618_v33, %v6618_v33 }
0x3d38   :  { %v6623_v36 = vcombine.low %v6619_v34, %v6620_v35 }
0x3d3a   :  { %v6630_v37 = vrot.slane %v6623_v36, %v13184_v57 }
0x3d3c   :  { %v6632_v38 = vsel %vm4257_vm9, %v6630_v37, 0.0 }
0x3d3d   :  { %6633 = vadd.xlane.f32.xlu0 %v6632_v38 }
0x3dca   :  { %v6634_v51 = vpop.xlane.xlu0 %6633 }
0x3dcb   :  { %v6635_v52 = vmul.f32 0.03125, %v6634_v51 }
0x3dcd   :  { %v6636_v53 = vadd.f32 1e-05, %v6635_v52 }
0x3dcf   :  { %12091 = vrsqrt.f32 %v6636_v53 }
0x3dd9   :  { %v12092_v60 = vpop.eup %12091 }
0x3dda   :  { %v6645_v62 = vrot.slane %v12092_v60, %v13292_v0  ;;  %v6652_v63 = vrot.slane %v12092_v60, %v13295_v3  ;;  %v10205_v60 = vld [vmem:[%s14209_s11 + $0x60] sm:$0xff] }
0x3ddc   :  { %v6655_v13 = vmul.f32 %v6645_v62, %v6617_v32  ;;  %v6656_v1 = vmul.f32 %v6652_v63, %v6618_v33  ;;  %v10207_v62 = vld [vmem:[%s14209_s11 + $0x70] sm:$0xff] }
0x3dde   :  { %v6672_v4 = vmul.f32 %v6668_v58, %v6655_v13  ;;  %v6673_v5 = vmul.f32 %v6669_v61, %v6656_v1  ;;  %v10206_v61 = vld [vmem:[%s14209_s11 + $0x68] sm:$0xff]  ;;  %v10208_v13 = vld [vmem:[%s14209_s11 + $0x78] sm:$0xff] }
0x3ddf   :  { %v11773_v63 = vpack.c.bf16 %v10206_v61, %v10205_v60  ;;  %v11776_v1 = vpack.c.bf16 %v10208_v13, %v10207_v62 }
0x3de0   :  { %v13675_v6 = vadd.f32 %v6685_v59, %v6672_v4  ;;  %v13677_v7 = vadd.f32 %v6686_v2, %v6673_v5 }
0x3de2   :  { %v6706_v55 = vcombine.low %v13675_v6, %v13677_v7 }
0x3de4   :  { %v6713_v12 = vrot.slane %v6706_v55, %v13184_v57 }
0x3de6   :  { %11212 = vmatmul.mubr.msk.f32.vlgmr.msra.gmra.mrb[42].mxu0 %vm3673_vm7, %v6713_v12  ;;  %11234 = vmatmul.mubr.msk.f32.vlgmr.msra.gmra.mrb[46].mxu1 %vm3673_vm7, %v6713_v12 }
0x3de7   :  { %11762 = vmatpush3.bf16.msra.mxu0 %v11761_v11  ;;  %11222 = vmatprep.mubr.msk.f32.mxu0 %vm12655_vm6, %v12653_v16 }
0x3de8   :  { %11763 = vmatprep.subr.bf16.mxu0 %v12654_v9  ;;  %11255 = vmatprep.mubr.msk.f32.mxu1 %vm12655_vm6, %v12653_v16 }
0x3deb   :  { %11765 = vmatpush3.bf16.msra.mxu0 %v11764_v17 }
0x3dec   :  { %11772 = vmatprep.subr.bf16.mxu0 %v12654_v9 }
0x3dee   :  { %11223 = vmatmul.mubr.msk.f32.vlgmr.msra.gmra.mrb[44].mxu0 %vm3673_vm7, %v6713_v12 }
0x3def   :  { %11244 = vmatprep.mubr.msk.f32.mxu0 %vm12655_vm6, %v12653_v16  ;;  %11774 = vmatpush3.bf16.msra.mxu0 %v11773_v63 }
0x3df0   :  { %11775 = vmatprep.subr.bf16.mxu0 %v12654_v9 }
0x3df3   :  { %11777 = vmatpush3.bf16.msra.mxu0 %v11776_v1 }
0x3df4   :  { %11784 = vmatprep.subr.bf16.mxu0 %v12654_v9 }
0x3eb9   :  { %v6782_v19 = vpop.f32.mrb[42].mxu0  ;;  %v6948_v20 = vpop.f32.mrb[46].mxu1 }
0x3eba   :  { %v11213_v21 = vpop.f32.mrb[43].mxu0  ;;  %v11235_v22 = vpop.f32.mrb[47].mxu1  ;;  %v6783_v23 = vadd.f32 %v10190_v18, %v6782_v19  ;;  %v6949_v48 = vadd.f32 %v10203_v45, %v6948_v20 }
0x3ebc   :  { %v6959_v25 = vrot.slane %v6783_v23, %v13184_v57  ;;  %v13714_v50 = vrot.slane %v6949_v48, %v13184_v57 }
0x3ebe   :  { %v6960_v29 = vcombine.high %v6959_v25, %v6959_v25  ;;  %v13718_v51 = vcombine.high %v13714_v50, %v13714_v50  ;;  %v7141_v52 = vrot.slane %v13714_v50, %v13184_v57 }
0x3ec0   :  { %v7148_v53 = vrot.slane %v13718_v51, %v13184_v57 }
0x3ec1   :  { %v6865_v26 = vpop.f32.mrb[44].mxu0 }
0x3ec2   :  { %v6866_v28 = vadd.f32 %v10196_v24, %v6865_v26  ;;  %v11224_v27 = vpop.f32.mrb[45].mxu0 }
0x3ec4   :  { %v6970_v30 = vrot.slane %v6866_v28, %v13184_v57 }
0x3ec6   :  { %v6971_v31 = vcombine.high %v6970_v30, %v6970_v30  ;;  %v6974_v32 = vmul.f32 %v6970_v30, %v6959_v25  ;;  %v6976_v33 = vmul.f32 %v6970_v30, %v6960_v29 }
0x3ec8   :  { %v6975_v34 = vmul.f32 %v6971_v31, %v6959_v25  ;;  %v6977_v35 = vmul.f32 %v6971_v31, %v6960_v29  ;;  %v7069_v36 = vrot.slane %v6976_v33, %v13184_v57  ;;  %v7055_v37 = vrot.slane %v6974_v32, %v13184_v57 }
0x3ec9   :  { %v6978_v54 = vsel %vm3934_vm8, %v6974_v32, 0.0  ;;  %v6984_v56 = vsel %vm3934_vm8, %v6976_v33, 0.0 }
0x3eca   :  { %7081 = vrot.lane.b32.xlu1 %v7069_v36, %s12657_s6  ;;  %7077 = vrot.lane.b32.xlu0 %v7055_v37, %s12657_s6  ;;  %v7062_v38 = vrot.slane %v6975_v34, %v13184_v57  ;;  %v7076_v39 = vrot.slane %v6977_v35, %v13184_v57  ;;  %v6981_v58 = vsel %vm3934_vm8, %v6975_v34, 0.0  ;;  %v6987_v59 = vsel %vm3934_vm8, %v6977_v35, 0.0 }
0x3ece   :  { %7079 = vrot.lane.b32.xlu1 %v7062_v38, %s12657_s6 }
0x3ed2   :  { %7083 = vrot.lane.b32.xlu1 %v7076_v39, %s12657_s6 }
0x3f3c   :  { %v7082_v40 = vpop.permute.xlu1 %7081  ;;  %v7078_v41 = vpop.permute.xlu0 %7077 }
0x3f3d   :  { %v7095_v42 = vsel %vm3934_vm8, %v7082_v40, 0.0  ;;  %v7089_v43 = vsel %vm3934_vm8, %v7078_v41, 0.0 }
0x3f3e   :  { %7090 = vadd.xlane.f32.xlu0 %v7089_v43  ;;  %7096 = vadd.xlane.f32.xlu1 %v7095_v42 }
0x3f40   :  { %v7080_v44 = vpop.permute.xlu1 %7079 }
0x3f41   :  { %v7092_v47 = vsel %vm3934_vm8, %v7080_v44, 0.0 }
0x3f42   :  { %7093 = vadd.xlane.f32.xlu1 %v7092_v47 }
0x3f44   :  { %v7084_v49 = vpop.permute.xlu1 %7083 }
0x3f45   :  { %v7098_v46 = vsel %vm3934_vm8, %v7084_v49, 0.0 }
0x3f46   :  { %7099 = vadd.xlane.f32.xlu1 %v7098_v46 }
0x3f54   :  { %7149 = vrot.lane.b32.xlu0 %v7141_v52, %s12657_s6 }
0x3f57   :  { %7151 = vrot.lane.b32.xlu1 %v7148_v53, %s12657_s6 }
0x3f73   :  { %6979 = vadd.xlane.f32.xlu0 %v6978_v54 }
0x3f77   :  { %6985 = vadd.xlane.f32.xlu0 %v6984_v56 }
0x3f7b   :  { %6982 = vadd.xlane.f32.xlu1 %v6981_v58 }
0x3f7f   :  { %6988 = vadd.xlane.f32.xlu1 %v6987_v59 }
0x3fcb   :  { %v7097_v2 = vpop.xlane.xlu1 %7096  ;;  %v7091_v4 = vpop.xlane.xlu0 %7090 }
0x3fcc   :  { %v7105_v8 = vsel %vm400_vm0, %v7091_v4, -inf  ;;  %v7108_v14 = vsel %vm400_vm0, %v7097_v2, -inf }
0x3fcf   :  { %v7094_v5 = vpop.xlane.xlu1 %7093  ;;  %v7150_v40 = vpop.permute.xlu0 %7149 }
0x3fd0   :  { %v7102_v10 = vadd.f32 -1e+30, %v7094_v5 }
0x3fd2   :  { %v7106_v55 = vsel %vm400_vm0, %v7102_v10, -inf }
0x3fd3   :  { %v7107_v11 = vmax.f32 %v7105_v8, %v7106_v55  ;;  %v7100_v12 = vpop.xlane.xlu1 %7099 }
0x3fd4   :  { %v7109_v15 = vsel %vm400_vm0, %v7100_v12, -inf }
0x3fd5   :  { %v7111_v17 = vsub.f32 %v7091_v4, %v7107_v11  ;;  %v7112_v18 = vsub.f32 %v7102_v10, %v7107_v11  ;;  %v7110_v19 = vmax.f32 %v7108_v14, %v7109_v15 }
0x3fd7   :  { %v7115_v20 = vmul.f32 1.442695, %v7111_v17  ;;  %v7117_v21 = vmul.f32 1.442695, %v7112_v18  ;;  %v7113_v22 = vsub.f32 %v7097_v2, %v7110_v19  ;;  %v7114_v23 = vsub.f32 %v7100_v12, %v7110_v19  ;;  %v7152_v41 = vpop.permute.xlu1 %7151 }
0x3fd9   :  { %12093 = vpow2.f32 %v7115_v20  ;;  %v7119_v24 = vmul.f32 1.442695, %v7113_v22  ;;  %v7121_v25 = vmul.f32 1.442695, %v7114_v23 }
0x3fda   :  { %12095 = vpow2.f32 %v7117_v21 }
0x3fdb   :  { %12097 = vpow2.f32 %v7119_v24 }
0x3fdc   :  { %12099 = vpow2.f32 %v7121_v25 }
0x3fe3   :  { %v12094_v26 = vpop.eup %12093 }
0x3fe4   :  { %v12096_v28 = vpop.eup %12095  ;;  %v7123_v27 = vsel %vm400_vm0, %v12094_v26, 0.0 }
0x3fe5   :  { %v12098_v29 = vpop.eup %12097  ;;  %v7124_v30 = vsel %vm400_vm0, %v12096_v28, 0.0 }
0x3fe6   :  { %v12100_v31 = vpop.eup %12099  ;;  %v7125_v32 = vadd.f32 %v7124_v30, %v7123_v27  ;;  %v7126_v33 = vsel %vm400_vm0, %v12098_v29, 0.0 }
0x3fe7   :  { %v7127_v34 = vsel %vm400_vm0, %v12100_v31, 0.0 }
0x3fe8   :  { %12101 = vrcp.f32 %v7125_v32  ;;  %v7128_v35 = vadd.f32 %v7127_v34, %v7126_v33 }
0x3fea   :  { %12103 = vrcp.f32 %v7128_v35 }
0x3ff2   :  { %v12102_v36 = vpop.eup %12101 }
0x3ff3   :  { %v7130_v37 = vmul.f32 %v12102_v36, %v12094_v26  ;;  %v7131_v38 = vmul.f32 %v12102_v36, %v12096_v28 }
0x3ff4   :  { %v12104_v39 = vpop.eup %12103 }
0x3ff5   :  { %v7155_v42 = vmul.f32 %v7150_v40, %v7130_v37  ;;  %v7133_v43 = vmul.f32 %v12104_v39, %v12098_v29  ;;  %v7134_v44 = vmul.f32 %v12104_v39, %v12100_v31  ;;  %v7156_v47 = vmul.f32 %v7152_v41, %v7131_v38 }
0x3ff7   :  { %v7159_v49 = vsel %vm3934_vm8, %v7155_v42, 0.0  ;;  %v7157_v46 = vmul.f32 %v7150_v40, %v7133_v43  ;;  %v7158_v45 = vmul.f32 %v7152_v41, %v7134_v44  ;;  %v7160_v48 = vsel %vm3934_vm8, %v7156_v47, 0.0 }
0x3ff8   :  { %v7161_v54 = vadd.f32 %v7160_v48, %v7159_v49 }
0x3ff9   :  { %v7162_v52 = vsel %vm3934_vm8, %v7157_v46, 0.0  ;;  %v7163_v53 = vsel %vm3934_vm8, %v7158_v45, 0.0 }
0x3ffa   :  { %v7164_v56 = vadd.f32 %v7163_v53, %v7162_v52 }
0x3ffc   :  { %v7178_v58 = vcombine.low %v7161_v54, %v7164_v56 }
0x3ffe   :  { %v7185_v59 = vrot.slane %v7178_v58, %v13184_v57 }
0x4000   :  { %7186 = vrot.lane.b32.xlu0 %v7185_v59, %s12637_s2  ;;  %v6980_v61 = vpop.xlane.xlu0 %6979 }
0x4001   :  { %v6994_v10 = vsel %vm400_vm0, %v6980_v61, -inf }
0x4004   :  { %v6986_v13 = vpop.xlane.xlu0 %6985 }
0x4005   :  { %v6997_v2 = vsel %vm400_vm0, %v6986_v13, -inf }
0x4008   :  { %v6983_v60 = vpop.xlane.xlu1 %6982 }
0x4009   :  { %v6991_v63 = vadd.f32 -1e+30, %v6983_v60 }
0x400b   :  { %v6995_v4 = vsel %vm400_vm0, %v6991_v63, -inf }
0x400c   :  { %v6989_v62 = vpop.xlane.xlu1 %6988  ;;  %v6996_v8 = vmax.f32 %v6994_v10, %v6995_v4 }
0x400d   :  { %v6998_v1 = vsel %vm400_vm0, %v6989_v62, -inf }
0x400e   :  { %v6999_v5 = vmax.f32 %v6997_v2, %v6998_v1  ;;  %v7000_v12 = vsub.f32 %v6980_v61, %v6996_v8  ;;  %v7001_v14 = vsub.f32 %v6991_v63, %v6996_v8 }
0x4010   :  { %v7002_v55 = vsub.f32 %v6986_v13, %v6999_v5  ;;  %v7003_v11 = vsub.f32 %v6989_v62, %v6999_v5  ;;  %v7004_v18 = vmul.f32 1.442695, %v7000_v12  ;;  %v7006_v19 = vmul.f32 1.442695, %v7001_v14  ;;  %v10216_v12 = vld [vmem:[%s14211_s18 + $0x68] sm:$0xff] }
0x4012   :  { %v7008_v15 = vmul.f32 1.442695, %v7002_v55  ;;  %v7010_v17 = vmul.f32 1.442695, %v7003_v11  ;;  %v10215_v11 = vld [vmem:[%s14211_s18 + $0x60] sm:$0xff] }
0x4013   :  { %v11779_v14 = vpack.c.bf16 %v10216_v12, %v10215_v11 }
0x4014   :  { %12105 = vpow2.f32 %v7008_v15  ;;  %v10217_v15 = vld [vmem:[%s14211_s18 + $0x70] sm:$0xff] }
0x4015   :  { %12107 = vpow2.f32 %v7010_v17  ;;  %v10218_v17 = vld [vmem:[%s14211_s18 + $0x78] sm:$0xff]  ;;  %11780 = vmatpush3.bf16.msra.mxu1 %v11779_v14 }
0x4016   :  { %12109 = vpow2.f32 %v7004_v18  ;;  %v11782_v18 = vpack.c.bf16 %v10218_v17, %v10217_v15  ;;  %11781 = vmatprep.subr.bf16.mxu1 %v12654_v9 }
0x4017   :  { %12111 = vpow2.f32 %v7006_v19  ;;  %v10221_v19 = vld [vmem:[%s14212_s22 + $0xc0] sm:$0xff] }
0x4019   :  { %11783 = vmatpush3.bf16.msra.mxu1 %v11782_v18 }
0x401a   :  { %11796 = vmatprep.subr.bf16.mxu1 %v12654_v9 }
0x401e   :  { %v12106_v20 = vpop.eup %12105 }
0x401f   :  { %v12108_v21 = vpop.eup %12107  ;;  %v7015_v24 = vsel %vm400_vm0, %v12106_v20, 0.0 }
0x4020   :  { %v12110_v22 = vpop.eup %12109  ;;  %v7016_v25 = vsel %vm400_vm0, %v12108_v21, 0.0 }
0x4021   :  { %v12112_v23 = vpop.eup %12111  ;;  %v7012_v26 = vsel %vm400_vm0, %v12110_v22, 0.0  ;;  %v7017_v27 = vadd.f32 %v7016_v25, %v7015_v24  ;;  %v10225_v25 = vld [vmem:[%s14212_s22 + $0xe0] sm:$0xff] }
0x4022   :  { %v7013_v28 = vsel %vm400_vm0, %v12112_v23, 0.0 }
0x4023   :  { %v7014_v29 = vadd.f32 %v7013_v28, %v7012_v26  ;;  %12113 = vrcp.f32 %v7017_v27  ;;  %v10226_v26 = vld [vmem:[%s14212_s22 + $0xe8] sm:$0xff] }
0x4024   :  { %v11791_v28 = vpack.c.bf16 %v10226_v26, %v10225_v25  ;;  %v10236_v25 = vld [vmem:[%s14202_s1 + $0x90] sm:$0xff]  ;;  %v10237_v26 = vld [vmem:[%s14202_s1 + $0x98] sm:$0xff] }
0x4025   :  { %12115 = vrcp.f32 %v7014_v29 }
0x402d   :  { %v12114_v30 = vpop.eup %12113 }
0x402e   :  { %v7023_v32 = vmul.f32 %v12114_v30, %v12108_v21  ;;  %v7022_v33 = vmul.f32 %v12114_v30, %v12106_v20  ;;  %v10222_v20 = vld [vmem:[%s14212_s22 + $0xc8] sm:$0xff]  ;;  %v10223_v21 = vld [vmem:[%s14212_s22 + $0xd0] sm:$0xff] }
0x402f   :  { %v12116_v31 = vpop.eup %12115 }
0x4030   :  { %v7020_v34 = vmul.f32 %v12116_v31, %v12112_v23  ;;  %v7019_v35 = vmul.f32 %v12116_v31, %v12110_v22  ;;  %v7037_v36 = vmul.f32 %v13714_v50, %v7022_v33  ;;  %v7038_v37 = vmul.f32 %v13718_v51, %v7023_v32  ;;  %v10224_v23 = vld [vmem:[%s14212_s22 + $0xd8] sm:$0xff]  ;;  %v10213_v31 = vld [vmem:[%s14213_s17 + $0x3] ss:$0 sm:$0xff] }
0x4031   :  { %v11785_v22 = vpack.c.bf16 %v10222_v20, %v10221_v19  ;;  %v11788_v24 = vpack.c.bf16 %v10224_v23, %v10223_v21  ;;  %v10214_v32 = vld [vmem:[#allocation20 + $0x3] ss:$0 sm:$0xff]  ;;  %v7376_v33 = vrot.slane %v10213_v31, %v13184_v57  ;;  %v10234_v19 = vld [vmem:[%s14202_s1 + $0x80] sm:$0xff]  ;;  %v10235_v20 = vld [vmem:[%s14202_s1 + $0x88] sm:$0xff] }
0x4032   :  { %v7035_v38 = vmul.f32 %v13714_v50, %v7019_v35  ;;  %v7036_v39 = vmul.f32 %v13718_v51, %v7020_v34  ;;  %v7042_v40 = vsel %vm3934_vm8, %v7037_v36, 0.0  ;;  %v7043_v41 = vsel %vm3934_vm8, %v7038_v37, 0.0  ;;  %v10210_v50 = vld [vmem:[%s14210_s0 + $0x3] ss:$0 sm:$0xff]  ;;  %v10248_v23 = vld [vmem:[%s14206_s20 + $0x88] sm:$0xff] }
0x4033   :  { %v7044_v44 = vadd.f32 %v7043_v41, %v7042_v40  ;;  %v7393_v34 = vrot.slane %v10214_v32, %v13184_v57  ;;  %v7377_v36 = vcombine.high %v7376_v33, %v7376_v33  ;;  %v11797_v21 = vpack.c.bf16 %v10235_v20, %v10234_v19 }
0x4034   :  { %v7039_v42 = vsel %vm3934_vm8, %v7035_v38, 0.0  ;;  %v7040_v43 = vsel %vm3934_vm8, %v7036_v39, 0.0 }
0x4035   :  { %v7041_v47 = vadd.f32 %v7040_v43, %v7039_v42  ;;  %v7394_v41 = vcombine.high %v7393_v34, %v7393_v34 }
0x4037   :  { %v7167_v49 = vcombine.low %v7041_v47, %v7044_v44 }
0x4039   :  { %v7174_v46 = vrot.slane %v7167_v49, %v13184_v57 }
0x4072   :  { %v7187_v45 = vpop.permute.xlu0 %7186 }
0x4073   :  { %v7189_v48 = vsel %vm499_vm4, %v7174_v46, %v7187_v45  ;;  %v10227_v45 = vld [vmem:[%s14212_s22 + $0xf0] sm:$0xff] }
0x4074   :  { %11245 = vmatmul.mubr.msk.f32.vlgmr.msra.gmra.mrb[46].mxu0 %vm3673_vm7, %v7189_v48  ;;  %v10228_v48 = vld [vmem:[%s14212_s22 + $0xf8] sm:$0xff] }
0x4075   :  { %11274 = vmatprep.mubr.msk.f32.mxu0 %vm12655_vm6, %v12653_v16  ;;  %11786 = vmatpush3.bf16.msra.mxu0 %v11785_v22  ;;  %v10247_v22 = vld [vmem:[%s14206_s20 + $0x80] sm:$0xff] }
0x4076   :  { %11787 = vmatprep.subr.bf16.mxu0 %v12654_v9 }
0x4079   :  { %11789 = vmatpush3.bf16.msra.mxu0 %v11788_v24  ;;  %v11809_v24 = vpack.c.bf16 %v10248_v23, %v10247_v22 }
0x407a   :  { %11790 = vmatprep.subr.bf16.mxu0 %v12654_v9 }
0x407d   :  { %11792 = vmatpush3.bf16.msra.mxu0 %v11791_v28  ;;  %v10249_v28 = vld [vmem:[%s14206_s20 + $0x90] sm:$0xff] }
0x407e   :  { %11793 = vmatprep.subr.bf16.mxu0 %v12654_v9 }
0x4147   :  { %v7272_v51 = vpop.f32.mrb[46].mxu0 }
0x4148   :  { %v7273_v52 = vadd.f32 %v10210_v50, %v7272_v51  ;;  %v11246_v53 = vpop.f32.mrb[47].mxu0  ;;  %v11794_v50 = vpack.c.bf16 %v10228_v48, %v10227_v45  ;;  %v10219_v51 = vld [vmem:[#allocation22 + $0x3] ss:$0 sm:$0xff]  ;;  %v10241_v48 = vld [vmem:[%s14203_s7 + $0x80] sm:$0xff] }
0x414a   :  { %v7283_v54 = vrot.slane %v7273_v52, %v13184_v57  ;;  %11795 = vmatpush3.bf16.msra.mxu0 %v11794_v50  ;;  %v10242_v50 = vld [vmem:[%s14203_s7 + $0x88] sm:$0xff] }
0x414b   :  { %11808 = vmatprep.subr.bf16.mxu0 %v12654_v9 }
0x414c   :  { %v7284_v56 = vcombine.high %v7283_v54, %v7283_v54  ;;  %v7287_v58 = vadd.f32 %v7283_v54, %v13675_v6 }
0x414e   :  { %v7288_v59 = vadd.f32 %v7284_v56, %v13677_v7 }
0x4150   :  { %v7295_v60 = vcombine.low %v7287_v58, %v7288_v59 }
0x4152   :  { %v7302_v61 = vrot.slane %v7295_v60, %v13184_v57 }
0x4154   :  { %v7304_v62 = vsel %vm4257_vm9, %v7302_v61, 0.0 }
0x4155   :  { %7305 = vadd.xlane.f32.xlu1 %v7304_v62 }
0x41e2   :  { %v7306_v63 = vpop.xlane.xlu1 %7305 }
0x41e3   :  { %v7307_v13 = vmul.f32 0.03125, %v7306_v63 }
0x41e5   :  { %v7315_v1 = vrot.slane %v7307_v13, %v13292_v0  ;;  %v7322_v2 = vrot.slane %v7307_v13, %v13295_v3 }
0x41e7   :  { %v7325_v4 = vsub.f32 %v7287_v58, %v7315_v1  ;;  %v7326_v6 = vsub.f32 %v7288_v59, %v7322_v2  ;;  %v10229_v58 = vld [vmem:[#allocation23 + $0x3] ss:$0 sm:$0xff] }
0x41e9   :  { %v7327_v5 = vmul.f32 %v7325_v4, %v7325_v4  ;;  %v7328_v7 = vmul.f32 %v7326_v6, %v7326_v6 }
0x41eb   :  { %v7331_v10 = vcombine.low %v7327_v5, %v7328_v7 }
0x41ed   :  { %v7338_v8 = vrot.slane %v7331_v10, %v13184_v57 }
0x41ef   :  { %v7340_v55 = vsel %vm4257_vm9, %v7338_v8, 0.0 }
0x41f0   :  { %7341 = vadd.xlane.f32.xlu1 %v7340_v55 }
0x427d   :  { %v7342_v27 = vpop.xlane.xlu1 %7341 }
0x427e   :  { %v7343_v29 = vmul.f32 0.03125, %v7342_v27  ;;  %v11800_v27 = vpack.c.bf16 %v10237_v26, %v10236_v25 }
0x4280   :  { %v7344_v30 = vadd.f32 1e-05, %v7343_v29  ;;  %v10250_v29 = vld [vmem:[%s14206_s20 + $0x98] sm:$0xff] }
0x4282   :  { %12117 = vrsqrt.f32 %v7344_v30  ;;  %v11812_v30 = vpack.c.bf16 %v10250_v29, %v10249_v28 }
0x428c   :  { %v12118_v35 = vpop.eup %12117 }
0x428d   :  { %v7353_v37 = vrot.slane %v12118_v35, %v13292_v0  ;;  %v7360_v38 = vrot.slane %v12118_v35, %v13295_v3  ;;  %v10233_v35 = vld [vmem:[#allocation25 + $0x3] ss:$0 sm:$0xff] }
0x428f   :  { %v7363_v39 = vmul.f32 %v7353_v37, %v7325_v4  ;;  %v7364_v40 = vmul.f32 %v7360_v38, %v7326_v6  ;;  %v7702_v37 = vrot.slane %v10233_v35, %v13184_v57 }
0x4291   :  { %v7380_v42 = vmul.f32 %v7376_v33, %v7363_v39  ;;  %v7381_v43 = vmul.f32 %v7377_v36, %v7364_v40 }
0x4293   :  { %v7397_v44 = vadd.f32 %v7393_v34, %v7380_v42  ;;  %v7398_v47 = vadd.f32 %v7394_v41, %v7381_v43  ;;  %v10232_v34 = vld [vmem:[%s14214_s4 + $0x3] ss:$0 sm:$0xff] }
0x4294   :  { %v7685_v36 = vrot.slane %v10232_v34, %v13184_v57 }
0x4295   :  { %v7414_v49 = vcombine.low %v7397_v44, %v7398_v47 }
0x4296   :  { %v7686_v39 = vcombine.high %v7685_v36, %v7685_v36 }
0x4297   :  { %v7421_v46 = vrot.slane %v7414_v49, %v13184_v57 }
0x4299   :  { %11256 = vmatmul.mubr.msk.f32.vlgmr.msra.gmra.mrb[48].mxu1 %vm3673_vm7, %v7421_v46 }
0x429a   :  { %11285 = vmatprep.mubr.msk.f32.mxu1 %vm12655_vm6, %v12653_v16  ;;  %11798 = vmatpush3.bf16.msra.mxu1 %v11797_v21 }
0x429b   :  { %11799 = vmatprep.subr.bf16.mxu1 %v12654_v9 }
0x429e   :  { %11801 = vmatpush3.bf16.msra.mxu1 %v11800_v27 }
0x429f   :  { %11802 = vmatprep.subr.bf16.mxu1 %v12654_v9 }
0x436c   :  { %v7490_v52 = vpop.f32.mrb[48].mxu1 }
0x436d   :  { %v7491_v53 = vadd.f32 %v10219_v51, %v7490_v52  ;;  %v11257_v54 = vpop.f32.mrb[49].mxu1  ;;  %v11803_v52 = vpack.c.bf16 %v10242_v50, %v10241_v48 }
0x436e   :  { %v10243_v54 = vld [vmem:[%s14203_s7 + $0x90] sm:$0xff] }
0x436f   :  { %v7494_v56 = vmax.f32 %v7491_v53, 0.0 }
0x4371   :  { %11275 = vmatmul.mubr.msk.f32.vlgmr.msra.gmra.mrb[48].mxu0 %vm825_vm5, %v7494_v56  ;;  %v10244_v56 = vld [vmem:[%s14203_s7 + $0x98] sm:$0xff] }
0x4372   :  { %11307 = vmatprep.mubr.msk.f32.mxu0 %vm12655_vm6, %v12653_v16  ;;  %11810 = vmatpush3.bf16.msra.mxu0 %v11809_v24  ;;  %v10252_v24 = vld [vmem:[%s14208_s3 + $0x4] ss:$0 sm:$0xff] }
0x4373   :  { %11811 = vmatprep.subr.bf16.mxu0 %v12654_v9 }
0x4376   :  { %11813 = vmatpush3.bf16.msra.mxu0 %v11812_v30 }
0x4377   :  { %11820 = vmatprep.subr.bf16.mxu0 %v12654_v9 }
0x4444   :  { %v7581_v59 = vpop.f32.mrb[48].mxu0 }
0x4445   :  { %v7582_v60 = vadd.f32 %v10229_v58, %v7581_v59  ;;  %v11276_v61 = vpop.f32.mrb[49].mxu0  ;;  %v11806_v58 = vpack.c.bf16 %v10244_v56, %v10243_v54  ;;  %v10239_v59 = vld [vmem:[%s14207_s19 + $0x4] ss:$0 sm:$0xff] }
0x4447   :  { %v7592_v62 = vrot.slane %v7582_v60, %v13184_v57 }
0x4449   :  { %v7593_v63 = vcombine.high %v7592_v62, %v7592_v62  ;;  %v7596_v13 = vadd.f32 %v7592_v62, %v7397_v44  ;;  %v7703_v44 = vcombine.high %v7702_v37, %v7702_v37 }
0x444b   :  { %v7597_v1 = vadd.f32 %v7593_v63, %v7398_v47 }
0x444d   :  { %v7604_v2 = vcombine.low %v7596_v13, %v7597_v1 }
0x444f   :  { %v7611_v4 = vrot.slane %v7604_v2, %v13184_v57 }
0x4451   :  { %v7613_v6 = vsel %vm4257_vm9, %v7611_v4, 0.0 }
0x4452   :  { %7614 = vadd.xlane.f32.xlu1 %v7613_v6 }
0x44df   :  { %v7615_v5 = vpop.xlane.xlu1 %7614 }
0x44e0   :  { %v7616_v7 = vmul.f32 0.03125, %v7615_v5 }
0x44e2   :  { %v7624_v10 = vrot.slane %v7616_v7, %v13292_v0  ;;  %v7631_v8 = vrot.slane %v7616_v7, %v13295_v3 }
0x44e4   :  { %v7634_v55 = vsub.f32 %v7596_v13, %v7624_v10  ;;  %v7635_v11 = vsub.f32 %v7597_v1, %v7631_v8  ;;  %v10245_v1 = vld [vmem:[#allocation19 + $0x4] ss:$0 sm:$0xff] }
0x44e6   :  { %v7636_v12 = vmul.f32 %v7634_v55, %v7634_v55  ;;  %v7637_v14 = vmul.f32 %v7635_v11, %v7635_v11 }
0x44e8   :  { %v7640_v15 = vcombine.low %v7636_v12, %v7637_v14 }
0x44ea   :  { %v7647_v17 = vrot.slane %v7640_v15, %v13184_v57 }
0x44ec   :  { %v7649_v18 = vsel %vm4257_vm9, %v7647_v17, 0.0 }
0x44ed   :  { %7650 = vadd.xlane.f32.xlu1 %v7649_v18 }
0x457a   :  { %v7651_v31 = vpop.xlane.xlu1 %7650 }
0x457b   :  { %v7652_v32 = vmul.f32 0.03125, %v7651_v31 }
0x457d   :  { %v7653_v33 = vadd.f32 1e-05, %v7652_v32 }
0x457f   :  { %12119 = vrsqrt.f32 %v7653_v33 }
0x4589   :  { %v12120_v38 = vpop.eup %12119 }
0x458a   :  { %v7662_v40 = vrot.slane %v12120_v38, %v13292_v0  ;;  %v7669_v41 = vrot.slane %v12120_v38, %v13295_v3  ;;  %v10254_v38 = vld [vmem:[%s14209_s11 + $0x80] sm:$0xff] }
0x458c   :  { %v7672_v42 = vmul.f32 %v7662_v40, %v7634_v55  ;;  %v7673_v43 = vmul.f32 %v7669_v41, %v7635_v11  ;;  %v10256_v40 = vld [vmem:[%s14209_s11 + $0x90] sm:$0xff] }
0x458e   :  { %v7689_v47 = vmul.f32 %v7685_v36, %v7672_v42  ;;  %v7690_v49 = vmul.f32 %v7686_v39, %v7673_v43  ;;  %v10255_v39 = vld [vmem:[%s14209_s11 + $0x88] sm:$0xff]  ;;  %v10257_v42 = vld [vmem:[%s14209_s11 + $0x98] sm:$0xff] }
0x458f   :  { %v11815_v41 = vpack.c.bf16 %v10255_v39, %v10254_v38  ;;  %v11818_v43 = vpack.c.bf16 %v10257_v42, %v10256_v40 }
0x4590   :  { %v13835_v46 = vadd.f32 %v7702_v37, %v7689_v47  ;;  %v13837_v45 = vadd.f32 %v7703_v44, %v7690_v49 }
0x4592   :  { %v7723_v51 = vcombine.low %v13835_v46, %v13837_v45 }
0x4594   :  { %v7730_v53 = vrot.slane %v7723_v51, %v13184_v57 }
0x4596   :  { %11286 = vmatmul.mubr.msk.f32.vlgmr.msra.gmra.mrb[50].mxu1 %vm3673_vm7, %v7730_v53  ;;  %11308 = vmatmul.mubr.msk.f32.vlgmr.msra.gmra.mrb[50].mxu0 %vm3673_vm7, %v7730_v53 }
0x4597   :  { %11804 = vmatpush3.bf16.msra.mxu1 %v11803_v52  ;;  %11296 = vmatprep.mubr.msk.f32.mxu1 %vm12655_vm6, %v12653_v16 }
0x4598   :  { %11805 = vmatprep.subr.bf16.mxu1 %v12654_v9  ;;  %11329 = vmatprep.mubr.msk.f32.mxu0 %vm12655_vm6, %v12653_v16 }
0x459b   :  { %11807 = vmatpush3.bf16.msra.mxu1 %v11806_v58 }
0x459c   :  { %11814 = vmatprep.subr.bf16.mxu1 %v12654_v9 }
0x459e   :  { %11297 = vmatmul.mubr.msk.f32.vlgmr.msra.gmra.mrb[52].mxu1 %vm3673_vm7, %v7730_v53 }
0x459f   :  { %11318 = vmatprep.mubr.msk.f32.mxu1 %vm12655_vm6, %v12653_v16  ;;  %11816 = vmatpush3.bf16.msra.mxu1 %v11815_v41 }
0x45a0   :  { %11817 = vmatprep.subr.bf16.mxu1 %v12654_v9 }
0x45a3   :  { %11819 = vmatpush3.bf16.msra.mxu1 %v11818_v43 }
0x45a4   :  { %11826 = vmatprep.subr.bf16.mxu1 %v12654_v9 }
0x4669   :  { %v7799_v60 = vpop.f32.mrb[50].mxu1  ;;  %v7965_v61 = vpop.f32.mrb[50].mxu0 }
0x466a   :  { %v11287_v62 = vpop.f32.mrb[51].mxu1  ;;  %v11309_v63 = vpop.f32.mrb[51].mxu0  ;;  %v7800_v13 = vadd.f32 %v10239_v59, %v7799_v60  ;;  %v7966_v26 = vadd.f32 %v10252_v24, %v7965_v61 }
0x466c   :  { %v7976_v2 = vrot.slane %v7800_v13, %v13184_v57  ;;  %v13873_v29 = vrot.slane %v7966_v26, %v13184_v57 }
0x466e   :  { %v7977_v7 = vcombine.high %v7976_v2, %v7976_v2  ;;  %v8158_v31 = vrot.slane %v13873_v29, %v13184_v57  ;;  %v13881_v32 = vcombine.high %v13873_v29, %v13873_v29 }
0x4670   :  { %v8165_v33 = vrot.slane %v13881_v32, %v13184_v57 }
0x4671   :  { %v7882_v4 = vpop.f32.mrb[52].mxu1 }
0x4672   :  { %v7883_v6 = vadd.f32 %v10245_v1, %v7882_v4  ;;  %v11298_v5 = vpop.f32.mrb[53].mxu1 }
0x4674   :  { %v7987_v10 = vrot.slane %v7883_v6, %v13184_v57 }
0x4676   :  { %v7988_v8 = vcombine.high %v7987_v10, %v7987_v10  ;;  %v7991_v55 = vmul.f32 %v7987_v10, %v7976_v2  ;;  %v7993_v11 = vmul.f32 %v7987_v10, %v7977_v7 }
0x4678   :  { %v7992_v12 = vmul.f32 %v7988_v8, %v7976_v2  ;;  %v7994_v14 = vmul.f32 %v7988_v8, %v7977_v7  ;;  %v8072_v15 = vrot.slane %v7991_v55, %v13184_v57  ;;  %v8086_v18 = vrot.slane %v7993_v11, %v13184_v57 }
0x4679   :  { %v8001_v35 = vsel %vm3934_vm8, %v7993_v11, 0.0  ;;  %v7995_v36 = vsel %vm3934_vm8, %v7991_v55, 0.0 }
0x467a   :  { %8094 = vrot.lane.b32.xlu0 %v8072_v15, %s12657_s6  ;;  %v8079_v17 = vrot.slane %v7992_v12, %v13184_v57  ;;  %v8093_v19 = vrot.slane %v7994_v14, %v13184_v57  ;;  %v7998_v34 = vsel %vm3934_vm8, %v7992_v12, 0.0  ;;  %v8004_v37 = vsel %vm3934_vm8, %v7994_v14, 0.0 }
0x467c   :  { %8096 = vrot.lane.b32.xlu1 %v8079_v17, %s12657_s6 }
0x467e   :  { %8098 = vrot.lane.b32.xlu0 %v8086_v18, %s12657_s6 }
0x4682   :  { %8100 = vrot.lane.b32.xlu0 %v8093_v19, %s12657_s6 }
0x46ec   :  { %v8095_v20 = vpop.permute.xlu0 %8094 }
0x46ed   :  { %v8106_v21 = vsel %vm3934_vm8, %v8095_v20, 0.0 }
0x46ee   :  { %8107 = vadd.xlane.f32.xlu1 %v8106_v21  ;;  %v8097_v25 = vpop.permute.xlu1 %8096 }
0x46ef   :  { %v8109_v28 = vsel %vm3934_vm8, %v8097_v25, 0.0 }
0x46f0   :  { %v8099_v22 = vpop.permute.xlu0 %8098 }
0x46f1   :  { %v8112_v23 = vsel %vm3934_vm8, %v8099_v22, 0.0 }
0x46f2   :  { %8113 = vadd.xlane.f32.xlu0 %v8112_v23 }
0x46f4   :  { %v8101_v27 = vpop.permute.xlu0 %8100 }
0x46f5   :  { %v8115_v30 = vsel %vm3934_vm8, %v8101_v27, 0.0 }
0x46f6   :  { %8110 = vadd.xlane.f32.xlu0 %v8109_v28 }
0x46fa   :  { %8116 = vadd.xlane.f32.xlu0 %v8115_v30 }
0x46ff   :  { %8166 = vrot.lane.b32.xlu1 %v8158_v31, %s12657_s6 }
0x4710   :  { %8168 = vrot.lane.b32.xlu0 %v8165_v33, %s12657_s6 }
0x4723   :  { %7999 = vadd.xlane.f32.xlu1 %v7998_v34 }
0x4727   :  { %8002 = vadd.xlane.f32.xlu1 %v8001_v35 }
0x472f   :  { %7996 = vadd.xlane.f32.xlu0 %v7995_v36 }
0x4733   :  { %8005 = vadd.xlane.f32.xlu0 %v8004_v37 }
0x477b   :  { %v8108_v47 = vpop.xlane.xlu1 %8107 }
0x477c   :  { %v8122_v50 = vsel %vm400_vm0, %v8108_v47, -inf }
0x477f   :  { %v8114_v44 = vpop.xlane.xlu0 %8113  ;;  %v8167_v20 = vpop.permute.xlu1 %8166 }
0x4780   :  { %v8125_v54 = vsel %vm400_vm0, %v8114_v44, -inf }
0x4783   :  { %v8111_v49 = vpop.xlane.xlu0 %8110 }
0x4784   :  { %v8119_v48 = vadd.f32 -1e+30, %v8111_v49 }
0x4786   :  { %v8123_v51 = vsel %vm400_vm0, %v8119_v48, -inf }
0x4787   :  { %v8124_v52 = vmax.f32 %v8122_v50, %v8123_v51  ;;  %v8117_v53 = vpop.xlane.xlu0 %8116 }
0x4788   :  { %v8126_v56 = vsel %vm400_vm0, %v8117_v53, -inf }
0x4789   :  { %v8128_v58 = vsub.f32 %v8108_v47, %v8124_v52  ;;  %v8129_v59 = vsub.f32 %v8119_v48, %v8124_v52  ;;  %v8127_v60 = vmax.f32 %v8125_v54, %v8126_v56 }
0x478b   :  { %v8132_v61 = vmul.f32 1.442695, %v8128_v58  ;;  %v8134_v62 = vmul.f32 1.442695, %v8129_v59  ;;  %v8130_v63 = vsub.f32 %v8114_v44, %v8127_v60  ;;  %v8131_v13 = vsub.f32 %v8117_v53, %v8127_v60  ;;  %v8169_v21 = vpop.permute.xlu0 %8168 }
0x478d   :  { %12121 = vpow2.f32 %v8132_v61  ;;  %v8136_v1 = vmul.f32 1.442695, %v8130_v63  ;;  %v8138_v2 = vmul.f32 1.442695, %v8131_v13 }
0x478e   :  { %12123 = vpow2.f32 %v8134_v62 }
0x478f   :  { %12125 = vpow2.f32 %v8136_v1 }
0x4790   :  { %12127 = vpow2.f32 %v8138_v2 }
0x4797   :  { %v12122_v4 = vpop.eup %12121 }
0x4798   :  { %v12124_v6 = vpop.eup %12123  ;;  %v8140_v5 = vsel %vm400_vm0, %v12122_v4, 0.0 }
0x4799   :  { %v12126_v7 = vpop.eup %12125  ;;  %v8141_v10 = vsel %vm400_vm0, %v12124_v6, 0.0 }
0x479a   :  { %v12128_v8 = vpop.eup %12127  ;;  %v8143_v55 = vsel %vm400_vm0, %v12126_v7, 0.0  ;;  %v8142_v11 = vadd.f32 %v8141_v10, %v8140_v5 }
0x479b   :  { %v8144_v12 = vsel %vm400_vm0, %v12128_v8, 0.0 }
0x479c   :  { %v8145_v14 = vadd.f32 %v8144_v12, %v8143_v55  ;;  %12129 = vrcp.f32 %v8142_v11 }
0x479e   :  { %12131 = vrcp.f32 %v8145_v14 }
0x47a6   :  { %v12130_v15 = vpop.eup %12129 }
0x47a7   :  { %v8147_v17 = vmul.f32 %v12130_v15, %v12122_v4  ;;  %v8148_v18 = vmul.f32 %v12130_v15, %v12124_v6 }
0x47a8   :  { %v12132_v19 = vpop.eup %12131 }
0x47a9   :  { %v8150_v22 = vmul.f32 %v12132_v19, %v12126_v7  ;;  %v8151_v23 = vmul.f32 %v12132_v19, %v12128_v8  ;;  %v8172_v24 = vmul.f32 %v8167_v20, %v8147_v17  ;;  %v8173_v25 = vmul.f32 %v8169_v21, %v8148_v18 }
0x47ab   :  { %v8174_v26 = vmul.f32 %v8167_v20, %v8150_v22  ;;  %v8175_v28 = vmul.f32 %v8169_v21, %v8151_v23  ;;  %v8176_v27 = vsel %vm3934_vm8, %v8172_v24, 0.0  ;;  %v8177_v30 = vsel %vm3934_vm8, %v8173_v25, 0.0 }
0x47ac   :  { %v8178_v34 = vadd.f32 %v8177_v30, %v8176_v27 }
0x47ad   :  { %v8179_v31 = vsel %vm3934_vm8, %v8174_v26, 0.0  ;;  %v8180_v33 = vsel %vm3934_vm8, %v8175_v28, 0.0 }
0x47ae   :  { %v8181_v35 = vadd.f32 %v8180_v33, %v8179_v31 }
0x47b0   :  { %v8195_v36 = vcombine.low %v8178_v34, %v8181_v35  ;;  %v8000_v39 = vpop.xlane.xlu1 %7999 }
0x47b1   :  { %v8008_v42 = vadd.f32 -1e+30, %v8000_v39 }
0x47b2   :  { %v8202_v37 = vrot.slane %v8195_v36, %v13184_v57 }
0x47b3   :  { %v8012_v48 = vsel %vm400_vm0, %v8008_v42, -inf }
0x47b4   :  { %8203 = vrot.lane.b32.xlu1 %v8202_v37, %s12637_s2  ;;  %v8003_v41 = vpop.xlane.xlu1 %8002 }
0x47b5   :  { %v8014_v44 = vsel %vm400_vm0, %v8003_v41, -inf }
0x47bc   :  { %v7997_v38 = vpop.xlane.xlu0 %7996 }
0x47bd   :  { %v8011_v47 = vsel %vm400_vm0, %v7997_v38, -inf }
0x47be   :  { %v8013_v50 = vmax.f32 %v8011_v47, %v8012_v48 }
0x47c0   :  { %v8006_v40 = vpop.xlane.xlu0 %8005  ;;  %v8017_v53 = vsub.f32 %v7997_v38, %v8013_v50  ;;  %v8018_v54 = vsub.f32 %v8008_v42, %v8013_v50 }
0x47c1   :  { %v8015_v43 = vsel %vm400_vm0, %v8006_v40, -inf }
0x47c2   :  { %v8016_v49 = vmax.f32 %v8014_v44, %v8015_v43  ;;  %v8021_v59 = vmul.f32 1.442695, %v8017_v53  ;;  %v8023_v60 = vmul.f32 1.442695, %v8018_v54  ;;  %v10265_v53 = vld [vmem:[%s14211_s18 + $0x88] sm:$0xff] }
0x47c4   :  { %v8019_v51 = vsub.f32 %v8003_v41, %v8016_v49  ;;  %v8020_v52 = vsub.f32 %v8006_v40, %v8016_v49 }
0x47c6   :  { %v8025_v56 = vmul.f32 1.442695, %v8019_v51  ;;  %v8027_v58 = vmul.f32 1.442695, %v8020_v52  ;;  %v10264_v52 = vld [vmem:[%s14211_s18 + $0x80] sm:$0xff] }
0x47c7   :  { %v11821_v54 = vpack.c.bf16 %v10265_v53, %v10264_v52 }
0x47c8   :  { %12133 = vpow2.f32 %v8025_v56  ;;  %v10266_v56 = vld [vmem:[%s14211_s18 + $0x90] sm:$0xff] }
0x47c9   :  { %12135 = vpow2.f32 %v8027_v58  ;;  %v10267_v58 = vld [vmem:[%s14211_s18 + $0x98] sm:$0xff]  ;;  %11822 = vmatpush3.bf16.msra.mxu0 %v11821_v54 }
0x47ca   :  { %12137 = vpow2.f32 %v8021_v59  ;;  %v11824_v59 = vpack.c.bf16 %v10267_v58, %v10266_v56  ;;  %11823 = vmatprep.subr.bf16.mxu0 %v12654_v9 }
0x47cb   :  { %12139 = vpow2.f32 %v8023_v60  ;;  %v10270_v60 = vld [vmem:[%s14212_s22 + $0x100] sm:$0xff] }
0x47cd   :  { %11825 = vmatpush3.bf16.msra.mxu0 %v11824_v59 }
0x47ce   :  { %11838 = vmatprep.subr.bf16.mxu0 %v12654_v9 }
0x47d2   :  { %v12134_v61 = vpop.eup %12133 }
0x47d3   :  { %v12136_v62 = vpop.eup %12135  ;;  %v8032_v1 = vsel %vm400_vm0, %v12134_v61, 0.0 }
0x47d4   :  { %v12138_v63 = vpop.eup %12137  ;;  %v8033_v2 = vsel %vm400_vm0, %v12136_v62, 0.0 }
0x47d5   :  { %v12140_v13 = vpop.eup %12139  ;;  %v8029_v4 = vsel %vm400_vm0, %v12138_v63, 0.0  ;;  %v8034_v5 = vadd.f32 %v8033_v2, %v8032_v1  ;;  %v10274_v2 = vld [vmem:[%s14212_s22 + $0x120] sm:$0xff] }
0x47d6   :  { %v8030_v6 = vsel %vm400_vm0, %v12140_v13, 0.0 }
0x47d7   :  { %v8031_v7 = vadd.f32 %v8030_v6, %v8029_v4  ;;  %12141 = vrcp.f32 %v8034_v5  ;;  %v10275_v4 = vld [vmem:[%s14212_s22 + $0x128] sm:$0xff] }
0x47d8   :  { %v11833_v6 = vpack.c.bf16 %v10275_v4, %v10274_v2  ;;  %v10285_v2 = vld [vmem:[%s14202_s1 + $0xb0] sm:$0xff]  ;;  %v10286_v4 = vld [vmem:[%s14202_s1 + $0xb8] sm:$0xff] }
0x47d9   :  { %12143 = vrcp.f32 %v8031_v7 }
0x47e1   :  { %v12142_v10 = vpop.eup %12141 }
0x47e2   :  { %v8040_v55 = vmul.f32 %v12142_v10, %v12136_v62  ;;  %v8039_v11 = vmul.f32 %v12142_v10, %v12134_v61  ;;  %v10271_v61 = vld [vmem:[%s14212_s22 + $0x108] sm:$0xff]  ;;  %v10272_v62 = vld [vmem:[%s14212_s22 + $0x110] sm:$0xff] }
0x47e3   :  { %v12144_v8 = vpop.eup %12143 }
0x47e4   :  { %v8036_v12 = vmul.f32 %v12144_v8, %v12138_v63  ;;  %v8037_v14 = vmul.f32 %v12144_v8, %v12140_v13  ;;  %v8054_v15 = vmul.f32 %v13873_v29, %v8039_v11  ;;  %v8055_v17 = vmul.f32 %v13881_v32, %v8040_v55  ;;  %v10273_v13 = vld [vmem:[%s14212_s22 + $0x118] sm:$0xff]  ;;  %v10262_v8 = vld [vmem:[%s14213_s17 + $0x4] ss:$0 sm:$0xff] }
0x47e5   :  { %v11827_v63 = vpack.c.bf16 %v10271_v61, %v10270_v60  ;;  %v11830_v1 = vpack.c.bf16 %v10273_v13, %v10272_v62  ;;  %v10263_v55 = vld [vmem:[#allocation20 + $0x4] ss:$0 sm:$0xff]  ;;  %v8393_v11 = vrot.slane %v10262_v8, %v13184_v57  ;;  %v10283_v60 = vld [vmem:[%s14202_s1 + $0xa0] sm:$0xff]  ;;  %v10284_v61 = vld [vmem:[%s14202_s1 + $0xa8] sm:$0xff] }
0x47e6   :  { %v8052_v18 = vmul.f32 %v13873_v29, %v8036_v12  ;;  %v8053_v19 = vmul.f32 %v13881_v32, %v8037_v14  ;;  %v8059_v20 = vsel %vm3934_vm8, %v8054_v15, 0.0  ;;  %v8060_v21 = vsel %vm3934_vm8, %v8055_v17, 0.0  ;;  %v10259_v29 = vld [vmem:[%s14210_s0 + $0x4] ss:$0 sm:$0xff]  ;;  %v10297_v13 = vld [vmem:[%s14206_s20 + $0xa8] sm:$0xff] }
0x47e7   :  { %v8061_v24 = vadd.f32 %v8060_v21, %v8059_v20  ;;  %v8410_v12 = vrot.slane %v10263_v55, %v13184_v57  ;;  %v8394_v15 = vcombine.high %v8393_v11, %v8393_v11  ;;  %v11839_v62 = vpack.c.bf16 %v10284_v61, %v10283_v60 }
0x47e8   :  { %v8056_v22 = vsel %vm3934_vm8, %v8052_v18, 0.0  ;;  %v8057_v23 = vsel %vm3934_vm8, %v8053_v19, 0.0 }
0x47e9   :  { %v8058_v25 = vadd.f32 %v8057_v23, %v8056_v22  ;;  %v8411_v21 = vcombine.high %v8410_v12, %v8410_v12 }
0x47eb   :  { %v8184_v26 = vcombine.low %v8058_v25, %v8061_v24 }
0x47ed   :  { %v8191_v28 = vrot.slane %v8184_v26, %v13184_v57 }
0x4826   :  { %v8204_v27 = vpop.permute.xlu1 %8203 }
0x4827   :  { %v8206_v30 = vsel %vm499_vm4, %v8191_v28, %v8204_v27  ;;  %v10276_v27 = vld [vmem:[%s14212_s22 + $0x130] sm:$0xff] }
0x4828   :  { %11319 = vmatmul.mubr.msk.f32.vlgmr.msra.gmra.mrb[54].mxu1 %vm3673_vm7, %v8206_v30  ;;  %v10277_v30 = vld [vmem:[%s14212_s22 + $0x138] sm:$0xff] }
0x4829   :  { %11348 = vmatprep.mubr.msk.f32.mxu1 %vm12655_vm6, %v12653_v16  ;;  %11828 = vmatpush3.bf16.msra.mxu1 %v11827_v63  ;;  %v10296_v63 = vld [vmem:[%s14206_s20 + $0xa0] sm:$0xff] }
0x482a   :  { %11829 = vmatprep.subr.bf16.mxu1 %v12654_v9 }
0x482d   :  { %11831 = vmatpush3.bf16.msra.mxu1 %v11830_v1  ;;  %v11851_v1 = vpack.c.bf16 %v10297_v13, %v10296_v63 }
0x482e   :  { %11832 = vmatprep.subr.bf16.mxu1 %v12654_v9 }
0x4831   :  { %11834 = vmatpush3.bf16.msra.mxu1 %v11833_v6  ;;  %v10298_v6 = vld [vmem:[%s14206_s20 + $0xb0] sm:$0xff] }
0x4832   :  { %11835 = vmatprep.subr.bf16.mxu1 %v12654_v9 }
0x48fb   :  { %v8289_v32 = vpop.f32.mrb[54].mxu1 }
0x48fc   :  { %v8290_v31 = vadd.f32 %v10259_v29, %v8289_v32  ;;  %v11320_v33 = vpop.f32.mrb[55].mxu1  ;;  %v11836_v29 = vpack.c.bf16 %v10277_v30, %v10276_v27  ;;  %v10268_v32 = vld [vmem:[#allocation22 + $0x4] ss:$0 sm:$0xff] }
0x48fd   :  { %v10290_v30 = vld [vmem:[%s14203_s7 + $0xa0] sm:$0xff] }
0x48fe   :  { %v8300_v34 = vrot.slane %v8290_v31, %v13184_v57  ;;  %11837 = vmatpush3.bf16.msra.mxu1 %v11836_v29  ;;  %v10291_v29 = vld [vmem:[%s14203_s7 + $0xa8] sm:$0xff] }
0x48ff   :  { %11850 = vmatprep.subr.bf16.mxu1 %v12654_v9 }
0x4900   :  { %v8301_v35 = vcombine.high %v8300_v34, %v8300_v34  ;;  %v8304_v36 = vadd.f32 %v8300_v34, %v13835_v46 }
0x4902   :  { %v8305_v37 = vadd.f32 %v8301_v35, %v13837_v45 }
0x4904   :  { %v8312_v38 = vcombine.low %v8304_v36, %v8305_v37 }
0x4906   :  { %v8319_v39 = vrot.slane %v8312_v38, %v13184_v57 }
0x4908   :  { %v8321_v40 = vsel %vm4257_vm9, %v8319_v39, 0.0 }
0x4909   :  { %8322 = vadd.xlane.f32.xlu0 %v8321_v40 }
0x4996   :  { %v8323_v41 = vpop.xlane.xlu0 %8322 }
0x4997   :  { %v8324_v42 = vmul.f32 0.03125, %v8323_v41 }
0x4999   :  { %v8332_v43 = vrot.slane %v8324_v42, %v13292_v0  ;;  %v8339_v44 = vrot.slane %v8324_v42, %v13295_v3 }
0x499b   :  { %v8342_v47 = vsub.f32 %v8304_v36, %v8332_v43  ;;  %v8343_v46 = vsub.f32 %v8305_v37, %v8339_v44  ;;  %v10278_v36 = vld [vmem:[#allocation23 + $0x4] ss:$0 sm:$0xff] }
0x499d   :  { %v8344_v49 = vmul.f32 %v8342_v47, %v8342_v47  ;;  %v8345_v45 = vmul.f32 %v8343_v46, %v8343_v46 }
0x499f   :  { %v8348_v48 = vcombine.low %v8344_v49, %v8345_v45 }
0x49a1   :  { %v8355_v50 = vrot.slane %v8348_v48, %v13184_v57 }
0x49a3   :  { %v8357_v51 = vsel %vm4257_vm9, %v8355_v50, 0.0 }
0x49a4   :  { %8358 = vadd.xlane.f32.xlu0 %v8357_v51 }
0x4a31   :  { %v8359_v5 = vpop.xlane.xlu0 %8358 }
0x4a32   :  { %v8360_v7 = vmul.f32 0.03125, %v8359_v5  ;;  %v11842_v5 = vpack.c.bf16 %v10286_v4, %v10285_v2 }
0x4a34   :  { %v8361_v10 = vadd.f32 1e-05, %v8360_v7  ;;  %v10299_v7 = vld [vmem:[%s14206_s20 + $0xb8] sm:$0xff] }
0x4a36   :  { %12145 = vrsqrt.f32 %v8361_v10  ;;  %v11854_v10 = vpack.c.bf16 %v10299_v7, %v10298_v6 }
0x4a40   :  { %v12146_v14 = vpop.eup %12145 }
0x4a41   :  { %v8370_v17 = vrot.slane %v12146_v14, %v13292_v0  ;;  %v8377_v18 = vrot.slane %v12146_v14, %v13295_v3  ;;  %v10282_v14 = vld [vmem:[#allocation25 + $0x4] ss:$0 sm:$0xff] }
0x4a43   :  { %v8380_v19 = vmul.f32 %v8370_v17, %v8342_v47  ;;  %v8381_v20 = vmul.f32 %v8377_v18, %v8343_v46  ;;  %v8719_v17 = vrot.slane %v10282_v14, %v13184_v57 }
0x4a45   :  { %v8397_v22 = vmul.f32 %v8393_v11, %v8380_v19  ;;  %v8398_v23 = vmul.f32 %v8394_v15, %v8381_v20 }
0x4a47   :  { %v8414_v24 = vadd.f32 %v8410_v12, %v8397_v22  ;;  %v8415_v25 = vadd.f32 %v8411_v21, %v8398_v23  ;;  %v10281_v12 = vld [vmem:[%s14214_s4 + $0x4] ss:$0 sm:$0xff] }
0x4a48   :  { %v8702_v15 = vrot.slane %v10281_v12, %v13184_v57 }
0x4a49   :  { %v8431_v26 = vcombine.low %v8414_v24, %v8415_v25 }
0x4a4a   :  { %v8703_v19 = vcombine.high %v8702_v15, %v8702_v15 }
0x4a4b   :  { %v8438_v28 = vrot.slane %v8431_v26, %v13184_v57 }
0x4a4d   :  { %11330 = vmatmul.mubr.msk.f32.vlgmr.msra.gmra.mrb[52].mxu0 %vm3673_vm7, %v8438_v28 }
0x4a4e   :  { %11359 = vmatprep.mubr.msk.f32.mxu0 %vm12655_vm6, %v12653_v16  ;;  %11840 = vmatpush3.bf16.msra.mxu0 %v11839_v62 }
0x4a4f   :  { %11841 = vmatprep.subr.bf16.mxu0 %v12654_v9 }
0x4a52   :  { %11843 = vmatpush3.bf16.msra.mxu0 %v11842_v5  ;;  %v10301_v5 = vld [vmem:[%s14208_s3 + $0x5] ss:$0 sm:$0xff] }
0x4a53   :  { %11844 = vmatprep.subr.bf16.mxu0 %v12654_v9 }
0x4b20   :  { %v8507_v31 = vpop.f32.mrb[52].mxu0 }
0x4b21   :  { %v8508_v33 = vadd.f32 %v10268_v32, %v8507_v31  ;;  %v11331_v34 = vpop.f32.mrb[53].mxu0  ;;  %v11845_v31 = vpack.c.bf16 %v10291_v29, %v10290_v30 }
0x4b22   :  { %v10292_v34 = vld [vmem:[%s14203_s7 + $0xb0] sm:$0xff] }
0x4b23   :  { %v8511_v35 = vmax.f32 %v8508_v33, 0.0 }
0x4b25   :  { %11349 = vmatmul.mubr.msk.f32.vlgmr.msra.gmra.mrb[56].mxu1 %vm825_vm5, %v8511_v35  ;;  %v10293_v35 = vld [vmem:[%s14203_s7 + $0xb8] sm:$0xff] }
0x4b26   :  { %11381 = vmatprep.mubr.msk.f32.mxu1 %vm12655_vm6, %v12653_v16  ;;  %11852 = vmatpush3.bf16.msra.mxu1 %v11851_v1 }
0x4b27   :  { %11853 = vmatprep.subr.bf16.mxu1 %v12654_v9 }
0x4b2a   :  { %11855 = vmatpush3.bf16.msra.mxu1 %v11854_v10 }
0x4b2b   :  { %11862 = vmatprep.subr.bf16.mxu1 %v12654_v9 }
0x4bf8   :  { %v8598_v37 = vpop.f32.mrb[56].mxu1 }
0x4bf9   :  { %v8599_v38 = vadd.f32 %v10278_v36, %v8598_v37  ;;  %v11350_v39 = vpop.f32.mrb[57].mxu1  ;;  %v11848_v36 = vpack.c.bf16 %v10293_v35, %v10292_v34  ;;  %v10288_v37 = vld [vmem:[%s14207_s19 + $0x5] ss:$0 sm:$0xff] }
0x4bfb   :  { %v8609_v40 = vrot.slane %v8599_v38, %v13184_v57 }
0x4bfd   :  { %v8610_v41 = vcombine.high %v8609_v40, %v8609_v40  ;;  %v8613_v42 = vadd.f32 %v8609_v40, %v8414_v24  ;;  %v8720_v24 = vcombine.high %v8719_v17, %v8719_v17 }
0x4bff   :  { %v8614_v43 = vadd.f32 %v8610_v41, %v8415_v25 }
0x4c01   :  { %v8621_v44 = vcombine.low %v8613_v42, %v8614_v43 }
0x4c03   :  { %v8628_v47 = vrot.slane %v8621_v44, %v13184_v57 }
0x4c05   :  { %v8630_v46 = vsel %vm4257_vm9, %v8628_v47, 0.0 }
0x4c06   :  { %8631 = vadd.xlane.f32.xlu0 %v8630_v46 }
0x4c93   :  { %v8632_v49 = vpop.xlane.xlu0 %8631 }
0x4c94   :  { %v8633_v45 = vmul.f32 0.03125, %v8632_v49 }
0x4c96   :  { %v8641_v48 = vrot.slane %v8633_v45, %v13292_v0  ;;  %v8648_v50 = vrot.slane %v8633_v45, %v13295_v3 }
0x4c98   :  { %v8651_v51 = vsub.f32 %v8613_v42, %v8641_v48  ;;  %v8652_v52 = vsub.f32 %v8614_v43, %v8648_v50  ;;  %v10294_v43 = vld [vmem:[#allocation19 + $0x5] ss:$0 sm:$0xff] }
0x4c9a   :  { %v8653_v53 = vmul.f32 %v8651_v51, %v8651_v51  ;;  %v8654_v54 = vmul.f32 %v8652_v52, %v8652_v52 }
0x4c9c   :  { %v8657_v56 = vcombine.low %v8653_v53, %v8654_v54 }
0x4c9e   :  { %v8664_v58 = vrot.slane %v8657_v56, %v13184_v57 }
0x4ca0   :  { %v8666_v59 = vsel %vm4257_vm9, %v8664_v58, 0.0 }
0x4ca1   :  { %8667 = vadd.xlane.f32.xlu0 %v8666_v59 }
0x4d2e   :  { %v8668_v8 = vpop.xlane.xlu0 %8667 }
0x4d2f   :  { %v8669_v55 = vmul.f32 0.03125, %v8668_v8 }
0x4d31   :  { %v8670_v11 = vadd.f32 1e-05, %v8669_v55 }
0x4d33   :  { %12147 = vrsqrt.f32 %v8670_v11 }
0x4d3d   :  { %v12148_v18 = vpop.eup %12147 }
0x4d3e   :  { %v8679_v20 = vrot.slane %v12148_v18, %v13292_v0  ;;  %v8686_v21 = vrot.slane %v12148_v18, %v13295_v3  ;;  %v10303_v18 = vld [vmem:[%s14209_s11 + $0xa0] sm:$0xff] }
0x4d40   :  { %v8689_v22 = vmul.f32 %v8679_v20, %v8651_v51  ;;  %v8690_v23 = vmul.f32 %v8686_v21, %v8652_v52  ;;  %v10305_v20 = vld [vmem:[%s14209_s11 + $0xb0] sm:$0xff] }
0x4d42   :  { %v8706_v25 = vmul.f32 %v8702_v15, %v8689_v22  ;;  %v8707_v26 = vmul.f32 %v8703_v19, %v8690_v23  ;;  %v10304_v19 = vld [vmem:[%s14209_s11 + $0xa8] sm:$0xff]  ;;  %v10306_v22 = vld [vmem:[%s14209_s11 + $0xb8] sm:$0xff] }
0x4d43   :  { %v11857_v21 = vpack.c.bf16 %v10304_v19, %v10303_v18  ;;  %v11860_v23 = vpack.c.bf16 %v10306_v22, %v10305_v20 }
0x4d44   :  { %v13995_v28 = vadd.f32 %v8719_v17, %v8706_v25  ;;  %v13997_v27 = vadd.f32 %v8720_v24, %v8707_v26 }
0x4d46   :  { %v8740_v32 = vcombine.low %v13995_v28, %v13997_v27 }
0x4d48   :  { %v8747_v33 = vrot.slane %v8740_v32, %v13184_v57 }
0x4d4a   :  { %11360 = vmatmul.mubr.msk.f32.vlgmr.msra.gmra.mrb[54].mxu0 %vm3673_vm7, %v8747_v33  ;;  %11382 = vmatmul.mubr.msk.f32.vlgmr.msra.gmra.mrb[58].mxu1 %vm3673_vm7, %v8747_v33 }
0x4d4b   :  { %11846 = vmatpush3.bf16.msra.mxu0 %v11845_v31  ;;  %11370 = vmatprep.mubr.msk.f32.mxu0 %vm12655_vm6, %v12653_v16 }
0x4d4c   :  { %11847 = vmatprep.subr.bf16.mxu0 %v12654_v9  ;;  %11403 = vmatprep.mubr.msk.f32.mxu1 %vm12655_vm6, %v12653_v16 }
0x4d4f   :  { %11849 = vmatpush3.bf16.msra.mxu0 %v11848_v36 }
0x4d50   :  { %11856 = vmatprep.subr.bf16.mxu0 %v12654_v9 }
0x4d52   :  { %11371 = vmatmul.mubr.msk.f32.vlgmr.msra.gmra.mrb[56].mxu0 %vm3673_vm7, %v8747_v33 }
0x4d53   :  { %11392 = vmatprep.mubr.msk.f32.mxu0 %vm12655_vm6, %v12653_v16  ;;  %11858 = vmatpush3.bf16.msra.mxu0 %v11857_v21 }
0x4d54   :  { %11859 = vmatprep.subr.bf16.mxu0 %v12654_v9 }
0x4d57   :  { %11861 = vmatpush3.bf16.msra.mxu0 %v11860_v23 }
0x4d58   :  { %11868 = vmatprep.subr.bf16.mxu0 %v12654_v9 }
0x4e1d   :  { %v8816_v38 = vpop.f32.mrb[54].mxu0  ;;  %v8982_v39 = vpop.f32.mrb[58].mxu1 }
0x4e1e   :  { %v11361_v40 = vpop.f32.mrb[55].mxu0  ;;  %v11383_v41 = vpop.f32.mrb[59].mxu1  ;;  %v8817_v42 = vadd.f32 %v10288_v37, %v8816_v38  ;;  %v8983_v7 = vadd.f32 %v10301_v5, %v8982_v39 }
0x4e20   :  { %v8993_v44 = vrot.slane %v8817_v42, %v13184_v57  ;;  %v14034_v10 = vrot.slane %v8983_v7, %v13184_v57 }
0x4e22   :  { %v8994_v45 = vcombine.high %v8993_v44, %v8993_v44  ;;  %v14038_v8 = vcombine.high %v14034_v10, %v14034_v10  ;;  %v9175_v55 = vrot.slane %v14034_v10, %v13184_v57 }
0x4e24   :  { %v9182_v11 = vrot.slane %v14038_v8, %v13184_v57 }
0x4e25   :  { %v8899_v47 = vpop.f32.mrb[56].mxu0 }
0x4e26   :  { %v8900_v46 = vadd.f32 %v10294_v43, %v8899_v47  ;;  %v11372_v49 = vpop.f32.mrb[57].mxu0 }
0x4e28   :  { %v9004_v48 = vrot.slane %v8900_v46, %v13184_v57 }
0x4e2a   :  { %v9005_v50 = vcombine.high %v9004_v48, %v9004_v48  ;;  %v9008_v51 = vmul.f32 %v9004_v48, %v8993_v44  ;;  %v9010_v52 = vmul.f32 %v9004_v48, %v8994_v45 }
0x4e2c   :  { %v9009_v53 = vmul.f32 %v9005_v50, %v8993_v44  ;;  %v9011_v54 = vmul.f32 %v9005_v50, %v8994_v45  ;;  %v9103_v56 = vrot.slane %v9010_v52, %v13184_v57  ;;  %v9089_v58 = vrot.slane %v9008_v51, %v13184_v57 }
0x4e2d   :  { %v9012_v12 = vsel %vm3934_vm8, %v9008_v51, 0.0  ;;  %v9018_v14 = vsel %vm3934_vm8, %v9010_v52, 0.0 }
0x4e2e   :  { %9115 = vrot.lane.b32.xlu1 %v9103_v56, %s12657_s6  ;;  %9111 = vrot.lane.b32.xlu0 %v9089_v58, %s12657_s6  ;;  %v9096_v59 = vrot.slane %v9009_v53, %v13184_v57  ;;  %v9110_v60 = vrot.slane %v9011_v54, %v13184_v57  ;;  %v9015_v15 = vsel %vm3934_vm8, %v9009_v53, 0.0  ;;  %v9021_v17 = vsel %vm3934_vm8, %v9011_v54, 0.0 }
0x4e32   :  { %9113 = vrot.lane.b32.xlu1 %v9096_v59, %s12657_s6 }
0x4e36   :  { %9117 = vrot.lane.b32.xlu1 %v9110_v60, %s12657_s6 }
0x4ea0   :  { %v9116_v61 = vpop.permute.xlu1 %9115  ;;  %v9112_v62 = vpop.permute.xlu0 %9111 }
0x4ea1   :  { %v9129_v63 = vsel %vm3934_vm8, %v9116_v61, 0.0  ;;  %v9123_v13 = vsel %vm3934_vm8, %v9112_v62, 0.0 }
0x4ea2   :  { %9124 = vadd.xlane.f32.xlu0 %v9123_v13  ;;  %9130 = vadd.xlane.f32.xlu1 %v9129_v63 }
0x4ea4   :  { %v9114_v1 = vpop.permute.xlu1 %9113 }
0x4ea5   :  { %v9126_v2 = vsel %vm3934_vm8, %v9114_v1, 0.0 }
0x4ea6   :  { %9127 = vadd.xlane.f32.xlu1 %v9126_v2 }
0x4ea8   :  { %v9118_v4 = vpop.permute.xlu1 %9117 }
0x4ea9   :  { %v9132_v6 = vsel %vm3934_vm8, %v9118_v4, 0.0 }
0x4eaa   :  { %9133 = vadd.xlane.f32.xlu1 %v9132_v6 }
0x4eb8   :  { %9183 = vrot.lane.b32.xlu0 %v9175_v55, %s12657_s6 }
0x4ebb   :  { %9185 = vrot.lane.b32.xlu1 %v9182_v11, %s12657_s6 }
0x4ed7   :  { %9013 = vadd.xlane.f32.xlu0 %v9012_v12 }
0x4edb   :  { %9019 = vadd.xlane.f32.xlu0 %v9018_v14 }
0x4edf   :  { %9016 = vadd.xlane.f32.xlu1 %v9015_v15 }
0x4ee3   :  { %9022 = vadd.xlane.f32.xlu1 %v9021_v17 }
0x4f2f   :  { %v9131_v24 = vpop.xlane.xlu1 %9130  ;;  %v9125_v25 = vpop.xlane.xlu0 %9124 }
0x4f30   :  { %v9139_v29 = vsel %vm400_vm0, %v9125_v25, -inf  ;;  %v9142_v34 = vsel %vm400_vm0, %v9131_v24, -inf }
0x4f33   :  { %v9128_v26 = vpop.xlane.xlu1 %9127  ;;  %v9184_v61 = vpop.permute.xlu0 %9183 }
0x4f34   :  { %v9136_v30 = vadd.f32 -1e+30, %v9128_v26 }
0x4f36   :  { %v9140_v32 = vsel %vm400_vm0, %v9136_v30, -inf }
0x4f37   :  { %v9141_v31 = vmax.f32 %v9139_v29, %v9140_v32  ;;  %v9134_v33 = vpop.xlane.xlu1 %9133 }
0x4f38   :  { %v9143_v35 = vsel %vm400_vm0, %v9134_v33, -inf }
0x4f39   :  { %v9145_v36 = vsub.f32 %v9125_v25, %v9141_v31  ;;  %v9146_v37 = vsub.f32 %v9136_v30, %v9141_v31  ;;  %v9144_v38 = vmax.f32 %v9142_v34, %v9143_v35 }
0x4f3b   :  { %v9149_v39 = vmul.f32 1.442695, %v9145_v36  ;;  %v9151_v40 = vmul.f32 1.442695, %v9146_v37  ;;  %v9147_v41 = vsub.f32 %v9131_v24, %v9144_v38  ;;  %v9148_v42 = vsub.f32 %v9134_v33, %v9144_v38  ;;  %v9186_v62 = vpop.permute.xlu1 %9185 }
0x4f3d   :  { %12149 = vpow2.f32 %v9149_v39  ;;  %v9153_v43 = vmul.f32 1.442695, %v9147_v41  ;;  %v9155_v44 = vmul.f32 1.442695, %v9148_v42 }
0x4f3e   :  { %12151 = vpow2.f32 %v9151_v40 }
0x4f3f   :  { %12153 = vpow2.f32 %v9153_v43 }
0x4f40   :  { %12155 = vpow2.f32 %v9155_v44 }
0x4f47   :  { %v12150_v47 = vpop.eup %12149 }
0x4f48   :  { %v12152_v46 = vpop.eup %12151  ;;  %v9157_v49 = vsel %vm400_vm0, %v12150_v47, 0.0 }
0x4f49   :  { %v12154_v45 = vpop.eup %12153  ;;  %v9158_v48 = vsel %vm400_vm0, %v12152_v46, 0.0 }
0x4f4a   :  { %v12156_v50 = vpop.eup %12155  ;;  %v9159_v51 = vadd.f32 %v9158_v48, %v9157_v49  ;;  %v9160_v52 = vsel %vm400_vm0, %v12154_v45, 0.0 }
0x4f4b   :  { %v9161_v53 = vsel %vm400_vm0, %v12156_v50, 0.0 }
0x4f4c   :  { %12157 = vrcp.f32 %v9159_v51  ;;  %v9162_v54 = vadd.f32 %v9161_v53, %v9160_v52 }
0x4f4e   :  { %12159 = vrcp.f32 %v9162_v54 }
0x4f56   :  { %v12158_v56 = vpop.eup %12157 }
0x4f57   :  { %v9164_v58 = vmul.f32 %v12158_v56, %v12150_v47  ;;  %v9165_v59 = vmul.f32 %v12158_v56, %v12152_v46 }
0x4f58   :  { %v12160_v60 = vpop.eup %12159 }
0x4f59   :  { %v9189_v63 = vmul.f32 %v9184_v61, %v9164_v58  ;;  %v9167_v13 = vmul.f32 %v12160_v60, %v12154_v45  ;;  %v9168_v1 = vmul.f32 %v12160_v60, %v12156_v50  ;;  %v9190_v2 = vmul.f32 %v9186_v62, %v9165_v59 }
0x4f5b   :  { %v9193_v4 = vsel %vm3934_vm8, %v9189_v63, 0.0  ;;  %v9191_v6 = vmul.f32 %v9184_v61, %v9167_v13  ;;  %v9192_v5 = vmul.f32 %v9186_v62, %v9168_v1  ;;  %v9194_v7 = vsel %vm3934_vm8, %v9190_v2, 0.0 }
0x4f5c   :  { %v9195_v12 = vadd.f32 %v9194_v7, %v9193_v4 }
0x4f5d   :  { %v9196_v55 = vsel %vm3934_vm8, %v9191_v6, 0.0  ;;  %v9197_v11 = vsel %vm3934_vm8, %v9192_v5, 0.0 }
0x4f5e   :  { %v9198_v14 = vadd.f32 %v9197_v11, %v9196_v55 }
0x4f60   :  { %v9212_v15 = vcombine.low %v9195_v12, %v9198_v14 }
0x4f62   :  { %v9219_v17 = vrot.slane %v9212_v15, %v13184_v57 }
0x4f64   :  { %9220 = vrot.lane.b32.xlu0 %v9219_v17, %s12637_s2  ;;  %v9014_v19 = vpop.xlane.xlu0 %9013 }
0x4f65   :  { %v9028_v30 = vsel %vm400_vm0, %v9014_v19, -inf }
0x4f68   :  { %v9020_v22 = vpop.xlane.xlu0 %9019 }
0x4f69   :  { %v9031_v24 = vsel %vm400_vm0, %v9020_v22, -inf }
0x4f6c   :  { %v9017_v18 = vpop.xlane.xlu1 %9016 }
0x4f6d   :  { %v9025_v21 = vadd.f32 -1e+30, %v9017_v18 }
0x4f6f   :  { %v9029_v25 = vsel %vm400_vm0, %v9025_v21, -inf }
0x4f70   :  { %v9023_v20 = vpop.xlane.xlu1 %9022  ;;  %v9030_v29 = vmax.f32 %v9028_v30, %v9029_v25 }
0x4f71   :  { %v9032_v23 = vsel %vm400_vm0, %v9023_v20, -inf }
0x4f72   :  { %v9033_v26 = vmax.f32 %v9031_v24, %v9032_v23  ;;  %v9034_v33 = vsub.f32 %v9014_v19, %v9030_v29  ;;  %v9035_v34 = vsub.f32 %v9025_v21, %v9030_v29 }
0x4f74   :  { %v9036_v32 = vsub.f32 %v9020_v22, %v9033_v26  ;;  %v9037_v31 = vsub.f32 %v9023_v20, %v9033_v26  ;;  %v9038_v37 = vmul.f32 1.442695, %v9034_v33  ;;  %v9040_v38 = vmul.f32 1.442695, %v9035_v34  ;;  %v10314_v33 = vld [vmem:[%s14211_s18 + $0xa8] sm:$0xff] }
0x4f76   :  { %v9042_v35 = vmul.f32 1.442695, %v9036_v32  ;;  %v9044_v36 = vmul.f32 1.442695, %v9037_v31  ;;  %v10313_v31 = vld [vmem:[%s14211_s18 + $0xa0] sm:$0xff] }
0x4f77   :  { %v11863_v34 = vpack.c.bf16 %v10314_v33, %v10313_v31 }
0x4f78   :  { %12161 = vpow2.f32 %v9042_v35  ;;  %v10315_v35 = vld [vmem:[%s14211_s18 + $0xb0] sm:$0xff] }
0x4f79   :  { %12163 = vpow2.f32 %v9044_v36  ;;  %v10316_v36 = vld [vmem:[%s14211_s18 + $0xb8] sm:$0xff]  ;;  %11864 = vmatpush3.bf16.msra.mxu1 %v11863_v34 }
0x4f7a   :  { %12165 = vpow2.f32 %v9038_v37  ;;  %v11866_v37 = vpack.c.bf16 %v10316_v36, %v10315_v35  ;;  %11865 = vmatprep.subr.bf16.mxu1 %v12654_v9 }
0x4f7b   :  { %12167 = vpow2.f32 %v9040_v38  ;;  %v10319_v38 = vld [vmem:[%s14212_s22 + $0x140] sm:$0xff] }
0x4f7d   :  { %11867 = vmatpush3.bf16.msra.mxu1 %v11866_v37  ;;  %v9754_v37 = vld [vmem:[%s12840_s24] sm:$0xff] }
0x4f7e   :  { %11880 = vmatprep.subr.bf16.mxu1 %v12654_v9 }
0x4f82   :  { %v12162_v39 = vpop.eup %12161 }
0x4f83   :  { %v12164_v40 = vpop.eup %12163  ;;  %v9049_v43 = vsel %vm400_vm0, %v12162_v39, 0.0 }
0x4f84   :  { %v12166_v41 = vpop.eup %12165  ;;  %v9050_v44 = vsel %vm400_vm0, %v12164_v40, 0.0 }
0x4f85   :  { %v12168_v42 = vpop.eup %12167  ;;  %v9046_v47 = vsel %vm400_vm0, %v12166_v41, 0.0  ;;  %v9051_v49 = vadd.f32 %v9050_v44, %v9049_v43  ;;  %v10323_v44 = vld [vmem:[%s14212_s22 + $0x160] sm:$0xff] }
0x4f86   :  { %v9047_v46 = vsel %vm400_vm0, %v12168_v42, 0.0 }
0x4f87   :  { %v9048_v45 = vadd.f32 %v9047_v46, %v9046_v47  ;;  %12169 = vrcp.f32 %v9051_v49  ;;  %v10324_v47 = vld [vmem:[%s14212_s22 + $0x168] sm:$0xff] }
0x4f88   :  { %v11875_v46 = vpack.c.bf16 %v10324_v47, %v10323_v44 }
0x4f89   :  { %12171 = vrcp.f32 %v9048_v45 }
0x4f91   :  { %v12170_v48 = vpop.eup %12169 }
0x4f92   :  { %v9057_v51 = vmul.f32 %v12170_v48, %v12164_v40  ;;  %v9056_v52 = vmul.f32 %v12170_v48, %v12162_v39  ;;  %v10320_v39 = vld [vmem:[%s14212_s22 + $0x148] sm:$0xff]  ;;  %v10321_v40 = vld [vmem:[%s14212_s22 + $0x150] sm:$0xff] }
0x4f93   :  { %v12172_v50 = vpop.eup %12171 }
0x4f94   :  { %v9054_v53 = vmul.f32 %v12172_v50, %v12168_v42  ;;  %v9053_v54 = vmul.f32 %v12172_v50, %v12166_v41  ;;  %v9071_v56 = vmul.f32 %v14034_v10, %v9056_v52  ;;  %v9072_v58 = vmul.f32 %v14038_v8, %v9057_v51  ;;  %v10322_v42 = vld [vmem:[%s14212_s22 + $0x158] sm:$0xff]  ;;  %v10311_v50 = vld [vmem:[%s14213_s17 + $0x5] ss:$0 sm:$0xff] }
0x4f95   :  { %v11869_v41 = vpack.c.bf16 %v10320_v39, %v10319_v38  ;;  %v11872_v43 = vpack.c.bf16 %v10322_v42, %v10321_v40  ;;  %v10312_v51 = vld [vmem:[#allocation20 + $0x5] ss:$0 sm:$0xff]  ;;  %v9410_v52 = vrot.slane %v10311_v50, %v13184_v57  ;;  %v9755_v38 = vld [vmem:[%s12840_s24 + $0x8] sm:$0xff]  ;;  %v9756_v40 = vld [vmem:[%s12840_s24 + $0x10] sm:$0xff] }
0x4f96   :  { %v9069_v59 = vmul.f32 %v14034_v10, %v9053_v54  ;;  %v9070_v60 = vmul.f32 %v14038_v8, %v9054_v53  ;;  %v9076_v61 = vsel %vm3934_vm8, %v9071_v56, 0.0  ;;  %v9077_v62 = vsel %vm3934_vm8, %v9072_v58, 0.0  ;;  %v10308_v10 = vld [vmem:[%s14210_s0 + $0x5] ss:$0 sm:$0xff] }
0x4f97   :  { %v9078_v1 = vadd.f32 %v9077_v62, %v9076_v61  ;;  %v9427_v53 = vrot.slane %v10312_v51, %v13184_v57  ;;  %v9411_v56 = vcombine.high %v9410_v52, %v9410_v52  ;;  %v11881_v39 = vpack.c.bf16 %v9755_v38, %v9754_v37 }
0x4f98   :  { %v9073_v63 = vsel %vm3934_vm8, %v9069_v59, 0.0  ;;  %v9074_v13 = vsel %vm3934_vm8, %v9070_v60, 0.0 }
0x4f99   :  { %v9075_v2 = vadd.f32 %v9074_v13, %v9073_v63  ;;  %v9428_v62 = vcombine.high %v9427_v53, %v9427_v53 }
0x4f9b   :  { %v9201_v4 = vcombine.low %v9075_v2, %v9078_v1 }
0x4f9d   :  { %v9208_v6 = vrot.slane %v9201_v4, %v13184_v57 }
0x4fd6   :  { %v9221_v5 = vpop.permute.xlu0 %9220 }
0x4fd7   :  { %v9223_v7 = vsel %vm499_vm4, %v9208_v6, %v9221_v5  ;;  %v10325_v5 = vld [vmem:[%s14212_s22 + $0x170] sm:$0xff] }
0x4fd8   :  { %11393 = vmatmul.mubr.msk.f32.vlgmr.msra.gmra.mrb[58].mxu0 %vm3673_vm7, %v9223_v7  ;;  %v10326_v7 = vld [vmem:[%s14212_s22 + $0x178] sm:$0xff] }
0x4fd9   :  { %11422 = vmatprep.mubr.msk.f32.mxu0 %vm12655_vm6, %v12653_v16  ;;  %11870 = vmatpush3.bf16.msra.mxu0 %v11869_v41  ;;  %v9757_v41 = vld [vmem:[%s12840_s24 + $0x18] sm:$0xff]  ;;  %s12660_s24 = smov [#allocation28]  }
0x4fda   :  { %11871 = vmatprep.subr.bf16.mxu0 %v12654_v9  ;;  %v11884_v42 = vpack.c.bf16 %v9757_v41, %v9756_v40  ;;  %s9844_s2 = sshll.u32 %s12660_s24, 4  ;;  %s9845_s2 = int_to_ptr.vmem [resolvable:$true] %s9844_s2 }
0x4fdb   :  { %s12529_s23 = scalar_lea.vmem %s9845_s2, 64  ;;  %p12534_p3 = scmp.lt.s32.totalorder %s9845_s2, %s9845_s2 }
0x4fdc   :  { %p12530_p2 = scmp.ne.s32.totalorder %s9845_s2, %s12529_s23  ;;  %p12535_p4 = scmp.lt.s32.totalorder %s12529_s23, %s12529_s23 }
0x4fdd   :  { %11873 = vmatpush3.bf16.msra.mxu0 %v11872_v43 }
0x4fde   :  { %11874 = vmatprep.subr.bf16.mxu0 %v12654_v9  ;;  %p12536_p5 = por %p12535_p4, %p12534_p3 }
0x4fe0   :  { %p12537_p6 = pnand %p12536_p5, %p12530_p2 }
0x4fe1   :  { %11876 = vmatpush3.bf16.msra.mxu0 %v11875_v46  ;;  %v10330_v46 = vld [vmem:[%s14214_s4 + $0x5] ss:$0 sm:$0xff] }
0x4fe2   :  { %11877 = vmatprep.subr.bf16.mxu0 %v12654_v9 }
0x50ab   :  { %v9306_v8 = vpop.f32.mrb[58].mxu0 }
0x50ac   :  { %v9307_v55 = vadd.f32 %v10308_v10, %v9306_v8  ;;  %v11394_v11 = vpop.f32.mrb[59].mxu0  ;;  %v11878_v10 = vpack.c.bf16 %v10326_v7, %v10325_v5  ;;  %v10317_v8 = vld [vmem:[#allocation22 + $0x5] ss:$0 sm:$0xff] }
0x50ae   :  { %v9317_v12 = vrot.slane %v9307_v55, %v13184_v57  ;;  %11879 = vmatpush3.bf16.msra.mxu0 %v11878_v10 }
0x50b0   :  { %v9318_v14 = vcombine.high %v9317_v12, %v9317_v12  ;;  %v9321_v15 = vadd.f32 %v9317_v12, %v13995_v28 }
0x50b2   :  { %v9322_v17 = vadd.f32 %v9318_v14, %v13997_v27 }
0x50b4   :  { %v9329_v18 = vcombine.low %v9321_v15, %v9322_v17 }
0x50b6   :  { %v9336_v19 = vrot.slane %v9329_v18, %v13184_v57 }
0x50b8   :  { %v9338_v20 = vsel %vm4257_vm9, %v9336_v19, 0.0 }
0x50b9   :  { %9339 = vadd.xlane.f32.xlu1 %v9338_v20 }
0x5146   :  { %v9340_v21 = vpop.xlane.xlu1 %9339 }
0x5147   :  { %v9341_v22 = vmul.f32 0.03125, %v9340_v21 }
0x5149   :  { %v9349_v23 = vrot.slane %v9341_v22, %v13292_v0  ;;  %v9356_v24 = vrot.slane %v9341_v22, %v13295_v3 }
0x514b   :  { %v9359_v25 = vsub.f32 %v9321_v15, %v9349_v23  ;;  %v9360_v28 = vsub.f32 %v9322_v17, %v9356_v24  ;;  %v10327_v15 = vld [vmem:[#allocation23 + $0x5] ss:$0 sm:$0xff] }
0x514d   :  { %v9361_v26 = vmul.f32 %v9359_v25, %v9359_v25  ;;  %v9362_v27 = vmul.f32 %v9360_v28, %v9360_v28 }
0x514f   :  { %v9365_v30 = vcombine.low %v9361_v26, %v9362_v27 }
0x5151   :  { %v9372_v29 = vrot.slane %v9365_v30, %v13184_v57 }
0x5153   :  { %v9374_v32 = vsel %vm4257_vm9, %v9372_v29, 0.0 }
0x5154   :  { %9375 = vadd.xlane.f32.xlu1 %v9374_v32 }
0x51e1   :  { %v9376_v49 = vpop.xlane.xlu1 %9375 }
0x51e2   :  { %v9377_v45 = vmul.f32 0.03125, %v9376_v49  ;;  %v10331_v49 = vld [vmem:[#allocation25 + $0x5] ss:$0 sm:$0xff] }
0x51e4   :  { %v9378_v48 = vadd.f32 1e-05, %v9377_v45  ;;  %v9719_v45 = vrot.slane %v10330_v46, %v13184_v57 }
0x51e6   :  { %12173 = vrsqrt.f32 %v9378_v48  ;;  %v9736_v48 = vrot.slane %v10331_v49, %v13184_v57  ;;  %v9720_v51 = vcombine.high %v9719_v45, %v9719_v45 }
0x51f0   :  { %v12174_v54 = vpop.eup %12173 }
0x51f1   :  { %v9387_v58 = vrot.slane %v12174_v54, %v13292_v0  ;;  %v9394_v59 = vrot.slane %v12174_v54, %v13295_v3 }
0x51f3   :  { %v9397_v60 = vmul.f32 %v9387_v58, %v9359_v25  ;;  %v9398_v61 = vmul.f32 %v9394_v59, %v9360_v28 }
0x51f5   :  { %v9414_v63 = vmul.f32 %v9410_v52, %v9397_v60  ;;  %v9415_v13 = vmul.f32 %v9411_v56, %v9398_v61 }
0x51f7   :  { %v9431_v1 = vadd.f32 %v9427_v53, %v9414_v63  ;;  %v9432_v2 = vadd.f32 %v9428_v62, %v9415_v13 }
0x51f9   :  { %v9448_v4 = vcombine.low %v9431_v1, %v9432_v2 }
0x51fb   :  { %v9455_v6 = vrot.slane %v9448_v4, %v13184_v57 }
0x51fd   :  { %11404 = vmatmul.mubr.msk.f32.vlgmr.msra.gmra.mrb[60].mxu1 %vm3673_vm7, %v9455_v6 }
0x51fe   :  { %11433 = vmatprep.mubr.msk.f32.mxu1 %vm12655_vm6, %v12653_v16  ;;  %11882 = vmatpush3.bf16.msra.mxu1 %v11881_v39 }
0x51ff   :  { %11883 = vmatprep.subr.bf16.mxu1 %v12654_v9  ;;  %v9737_v9 = vcombine.high %v9736_v48, %v9736_v48 }
0x5202   :  { %11885 = vmatpush3.bf16.msra.mxu1 %v11884_v42 }
0x52d0   :  { %v9524_v55 = vpop.f32.mrb[60].mxu1 }
0x52d1   :  { %v9525_v11 = vadd.f32 %v10317_v8, %v9524_v55  ;;  %v11405_v12 = vpop.f32.mrb[61].mxu1 }
0x52d3   :  { %v9528_v14 = vmax.f32 %v9525_v11, 0.0 }
0x52d5   :  { %11423 = vmatmul.mubr.msk.f32.vlgmr.msra.gmra.mrb[60].mxu0 %vm825_vm5, %v9528_v14 }
0x53a8   :  { %v9615_v17 = vpop.f32.mrb[60].mxu0 }
0x53a9   :  { %v9616_v18 = vadd.f32 %v10327_v15, %v9615_v17  ;;  %v11424_v19 = vpop.f32.mrb[61].mxu0 }
0x53ab   :  { %v9626_v20 = vrot.slane %v9616_v18, %v13184_v57 }
0x53ad   :  { %v9627_v21 = vcombine.high %v9626_v20, %v9626_v20  ;;  %v9630_v22 = vadd.f32 %v9626_v20, %v9431_v1 }
0x53af   :  { %v9631_v16 = vadd.f32 %v9627_v21, %v9432_v2 }
0x53b1   :  { %v9638_v23 = vcombine.low %v9630_v22, %v9631_v16 }
0x53b3   :  { %v9645_v24 = vrot.slane %v9638_v23, %v13184_v57 }
0x53b5   :  { %v9647_v25 = vsel %vm4257_vm9, %v9645_v24, 0.0 }
0x53b6   :  { %9648 = vadd.xlane.f32.xlu1 %v9647_v25 }
0x5443   :  { %v9649_v28 = vpop.xlane.xlu1 %9648 }
0x5444   :  { %v9650_v26 = vmul.f32 0.03125, %v9649_v28 }
0x5446   :  { %v9658_v27 = vrot.slane %v9650_v26, %v13292_v0  ;;  %v9665_v30 = vrot.slane %v9650_v26, %v13295_v3 }
0x5448   :  { %v9668_v29 = vsub.f32 %v9630_v22, %v9658_v27  ;;  %v9669_v32 = vsub.f32 %v9631_v16, %v9665_v30 }
0x544a   :  { %v9670_v31 = vmul.f32 %v9668_v29, %v9668_v29  ;;  %v9671_v33 = vmul.f32 %v9669_v32, %v9669_v32 }
0x544c   :  { %v9674_v34 = vcombine.low %v9670_v31, %v9671_v33 }
0x544e   :  { %v9681_v35 = vrot.slane %v9674_v34, %v13184_v57 }
0x5450   :  { %v9683_v36 = vsel %vm4257_vm9, %v9681_v35, 0.0 }
0x5451   :  { %9684 = vadd.xlane.f32.xlu1 %v9683_v36 }
0x54de   :  { %v9685_v43 = vpop.xlane.xlu1 %9684 }
0x54df   :  { %v9686_v44 = vmul.f32 0.03125, %v9685_v43 }
0x54e1   :  { %v9687_v47 = vadd.f32 1e-05, %v9686_v44 }
0x54e3   :  { %12175 = vrsqrt.f32 %v9687_v47 }
0x54ed   :  { %v12176_v50 = vpop.eup %12175 }
0x54ee   :  { %v9696_v52 = vrot.slane %v12176_v50, %v13292_v0  ;;  %v9703_v53 = vrot.slane %v12176_v50, %v13295_v3 }
0x54f0   :  { %v9706_v54 = vmul.f32 %v9696_v52, %v9668_v29  ;;  %v9707_v56 = vmul.f32 %v9703_v53, %v9669_v32 }
0x54f2   :  { %v9723_v58 = vmul.f32 %v9719_v45, %v9706_v54  ;;  %v9724_v59 = vmul.f32 %v9720_v51, %v9707_v56 }
0x54f4   :  { %v9740_v60 = vadd.f32 %v9736_v48, %v9723_v58  ;;  %v9741_v61 = vadd.f32 %v9737_v9, %v9724_v59 }
0x54f6   :  { %v9744_v62 = vcombine.low %v9740_v60, %v9741_v61 }
0x54f8   :  { %v9751_v63 = vrot.slane %v9744_v62, %v13184_v57 }
0x54fa   :  { %11434 = vmatmul.mubr.msk.f32.vlgmr.msra.gmra.mrb[62].mxu1 %vm3673_vm7, %v9751_v63  ;;  %9753 = vst.msk [vmem:[#allocation28] sm:$0xf] %vm4257_vm9, %v9751_v63 }
0x54fb   :  { %12540 = shalt.err (!%p12537_p6)
}
0x54fc   :  { %s12541_s21 = scalar_lea.hbm %s12850_s27, 64 }
0x54fd   :  { %p12542_p7 = scmp.ne.s32.totalorder %s12850_s27, %s12541_s21  ;;  %p12545_p8 = scmp.lt.u32.totalorder %s12541_s21, %s12850_s27 }
0x54ff   :  { %p12547_p9 = pnand %p12545_p8, %p12542_p7 }
0x5501   :  { %12550 = shalt.err (!%p12547_p9)
}
0x5502   :  { %9847 = dma.vmem_to_hbm [thread:$0]  %s9845_s2, 64, %s12850_s27, [#allocation4]   ;;  %v10332_v57 = vld [vmem:[#allocation26] ss:$0 sm:$0xff] }
0x5503   :  { %s12661_s13 = smov [#allocation29]  }
0x5504   :  { %s9854_s14 = sshll.u32 %s12661_s13, 4  ;;  %s9855_s14 = int_to_ptr.vmem [resolvable:$true] %s9854_s14 }
0x5505   :  { %s12551_s15 = scalar_lea.vmem %s9855_s14, 64  ;;  %p12556_p11 = scmp.lt.s32.totalorder %s9855_s14, %s9855_s14 }
0x5506   :  { %p12552_p10 = scmp.ne.s32.totalorder %s9855_s14, %s12551_s15  ;;  %p12557_p12 = scmp.lt.s32.totalorder %s12551_s15, %s12551_s15 }
0x5508   :  { %p12558_p13 = por %p12557_p12, %p12556_p11 }
0x550a   :  { %p12559_p0 = pnand %p12558_p13, %p12552_p10 }
0x55cd   :  { %v9833_v0 = vpop.f32.mrb[62].mxu1 }
0x55ce   :  { %v9834_v3 = vadd.f32 %v10332_v57, %v9833_v0  ;;  %v11435_v13 = vpop.f32.mrb[63].mxu1 }
0x55d0   :  { %9837 = vst [vmem:[#allocation29] sm:$0xf] %v9834_v3 }
0x55d1   :  { %12562 = shalt.err (!%p12559_p0)
}
0x55d2   :  { %s12563_s30 = scalar_lea.hbm %s12855_s9, 64 }
0x55d3   :  { %p12564_p1 = scmp.ne.s32.totalorder %s12855_s9, %s12563_s30  ;;  %p12567_p2 = scmp.lt.u32.totalorder %s12563_s30, %s12855_s9 }
0x55d5   :  { %p12569_p3 = pnand %p12567_p2, %p12564_p1 }
0x55d7   :  { %12572 = shalt.err (!%p12569_p3)
}
0x55d8   :  { %9857 = dma.vmem_to_hbm [thread:$0]  %s9855_s14, 64, %s12855_s9, [#allocation30]  }
0x55d9   :  { %12591 = dma.done.wait [#allocation4], 64  }
0x55da   :  { %12592 = vsyncadd [#allocation4], 4294967232 }
0x55db   :  { %12593 = dma.done.wait [#allocation30], 64  }
0x55dc   :  { %12594 = vsyncadd [#allocation30], 4294967232 }
0x55dd   :  { %9864 = vsyncpa [#allocation3], 1 }
0x55de   :  { %9865 = vsyncpa [#allocation6], 1 }
0x55df   :  { %9866 = vsyncpa [#allocation9], 1 }
0x55e0   :  { %9867 = vsyncpa [#allocation12], 1 }
0x55e1   :  { %9868 = vsyncpa [#allocation15], 1 }
0x55e2   :  { %9869 = vsyncpa [#allocation18], 1 }
0x55e3   :  { %9870 = vsyncpa [#allocation21], 1 }
0x55e4   :  { %9871 = vsyncpa [#allocation24], 1 }
0x55e5   :  { %9872 = vsyncpa [#allocation27], 1 }
0x55e6   :  { %9873 = vsyncpa [#allocation4], 1 }
0x55e7   :  { %9874 = vsyncpa [#allocation30], 1 }

</bundles_post_ra>
